<compile_context>
chip_gen: v7x
topology: tpu7x:2x2x1
jax: 0.10.0
libtpu: 0.0.40
codegen_flags: <defaults>
</compile_context>

<pallas_src>
import math

import numpy as np

import jax
import jax.numpy as jnp
from jax import lax
from jax.experimental import pallas as pl
from jax.experimental.pallas import tpu as pltpu


# --------------------------------- kernel ---------------------------------

def _local_cnn_kernel(x_ref, w1_ref, b1_ref, w2_ref, b2_ref, wfc_ref, bfc_ref,
                      out_ref):
    """grid = (batch_blocks,); everything else is resident in VMEM."""
    x = x_ref[...]                                               # (Bt, 784) bf16

    # conv1 fused with 2x2 max-pool: one dense MXU matmul per pool-window
    # position against a 784-row slice of the resident packed weight, with a
    # running elementwise max (bias/ReLU commute with max, applied once after).
    acc = jnp.dot(x, w1_ref[pl.ds(0, 784), :],
                  preferred_element_type=jnp.float32)            # (Bt, 1152)
    for w in range(1, 4):
        y = jnp.dot(x, w1_ref[pl.ds(w * 784, 784), :],
                    preferred_element_type=jnp.float32)
        acc = jnp.maximum(acc, y)
    p1 = jnp.maximum(acc + b1_ref[...], 0.0).astype(jnp.bfloat16)  # (Bt, 1152)

    # conv2 as one dense batched matmul; output columns pre-permuted so pool2
    # is a max over four lane-aligned 256-wide slices (PyTorch CHW flatten).
    a2 = jnp.dot(p1, w2_ref[...],
                 preferred_element_type=jnp.float32)             # (Bt, 1024)
    p2 = jnp.maximum(jnp.maximum(a2[:, 0:256], a2[:, 256:512]),
                     jnp.maximum(a2[:, 512:768], a2[:, 768:1024]))
    p2 = jnp.maximum(p2 + b2_ref[...], 0.0).astype(jnp.bfloat16)  # (Bt, 256)

    # fc1 (256 -> 120, padded to 128 output lanes for dense stores).
    o = jnp.dot(p2, wfc_ref[...],
                preferred_element_type=jnp.float32)              # (Bt, 128)
    out_ref[...] = jnp.maximum(o + bfc_ref[...], 0.0)


# ----------------------- host-side weight construction -----------------------

def _build_conv1_pool_weight(w1):
    """(4*784, 1152): window-position-major dense (conv1 -> pooled map) matrix.

    Block wi = a*2+b maps pixel p = r*28+c to f1 = (i2*12+j2)*8 + oc, the conv1
    output at position (2*i2+a, 2*j2+b) for channel oc (no bias).
    """
    w_flat = np.asarray(w1, np.float32).reshape(8 * 25)       # oc*25 + dy*5 + dx
    a, b, i2, j2, oc, dy, dx = np.meshgrid(
        np.arange(2), np.arange(2), np.arange(12), np.arange(12),
        np.arange(8), np.arange(5), np.arange(5), indexing="ij")
    wi = (a * 2 + b).ravel()
    p = ((2 * i2 + a + dy) * 28 + (2 * j2 + b + dx)).ravel()
    f1 = ((i2 * 12 + j2) * 8 + oc).ravel()
    t = (oc * 25 + dy * 5 + dx).ravel()
    W = np.zeros((4, 784, 1152), np.float32)
    W[wi, p, f1] = w_flat[t]                                  # unique indices
    return W.reshape(4 * 784, 1152)


def _build_conv2_pool_weight(w2):
    """(1152, 1024): dense conv2 matrix with pool2-permuted output columns.

    Input index f1 = (s*8 + ic) over the pooled 12x12 map; output column
    g = (a*2+b)*256 + oc2*16 + i3*4 + j3 is the conv2 output at spatial position
    (2*i3+a, 2*j3+b) for channel oc2 (no bias), i.e. pool2 window (a, b) of the
    PyTorch CHW-flattened (16, 4, 4) feature map.
    """
    w_flat = np.asarray(w2, np.float32).reshape(16 * 8 * 25)
    a, b, i3, j3, oc2, ic, dy, dx = np.meshgrid(
        np.arange(2), np.arange(2), np.arange(4), np.arange(4),
        np.arange(16), np.arange(8), np.arange(5), np.arange(5), indexing="ij")
    g = ((a * 2 + b) * 256 + oc2 * 16 + i3 * 4 + j3).ravel()
    i = 2 * i3 + a
    j = 2 * j3 + b
    f1 = (((i + dy) * 12 + (j + dx)) * 8 + ic).ravel()
    t = (((oc2 * 8 + ic) * 5 + dy) * 5 + dx).ravel()
    W = np.zeros((1152, 1024), np.float32)
    W[f1, g] = w_flat[t]                                      # unique indices
    return W


def _round_up(n, m):
    return ((n + m - 1) // m) * m


def pack_params(params):
    """One-time packing of PyTorch-layout params into kernel layout (hoisted
    out of the per-call forward path)."""
    w1, b1, w2, b2, wfc, bfc = params
    w1w = jnp.asarray(_build_conv1_pool_weight(w1), jnp.bfloat16)   # (3136, 1152)
    b1p = jnp.tile(jnp.asarray(b1, jnp.float32), 144).reshape(1, 1152)
    w2p = jnp.asarray(_build_conv2_pool_weight(w2), jnp.bfloat16)   # (1152, 1024)
    b2p = jnp.repeat(jnp.asarray(b2, jnp.float32), 16).reshape(1, 256)
    wfcp = np.zeros((256, 128), np.float32)
    wfcp[:, :120] = np.asarray(wfc, np.float32).T
    wfcp = jnp.asarray(wfcp, jnp.bfloat16)
    bfcp = np.zeros((1, 128), np.float32)
    bfcp[0, :120] = np.asarray(bfc, np.float32)
    bfcp = jnp.asarray(bfcp)
    return (w1w, b1p, w2p, b2p, wfcp, bfcp)


# --------------------------------- wrapper ---------------------------------

def local_cnn_forward(x, packed_params):
    w1w, b1p, w2p, b2p, wfcp, bfcp = packed_params
    batch = x.shape[0]
    xf = x.reshape(batch, 28 * 28).astype(jnp.bfloat16)

    # Batch tile: sublane-aligned, <=512 rows, and aiming for >=2 blocks so the
    # "parallel" batch axis spans both TensorCores on v7x.
    b8 = _round_up(batch, 8)
    bt = min(512, max(8, _round_up(-(-b8 // 2), 8)))
    padded = _round_up(batch, bt)
    if padded != batch:
        xf = jnp.pad(xf, ((0, padded - batch), (0, 0)))
    nb = padded // bt

    def _resident(shape):
        # Grid-invariant block: constant index_map + single-buffered.
        return pl.BlockSpec(shape, lambda b: (0,) * len(shape),
                            pipeline_mode=pl.Buffered(1))

    out = pl.pallas_call(
        _local_cnn_kernel,
        out_shape=jax.ShapeDtypeStruct((padded, 128), jnp.float32),
        grid_spec=pltpu.PrefetchScalarGridSpec(
            num_scalar_prefetch=0,
            grid=(nb,),
            in_specs=[
                pl.BlockSpec((bt, 784), lambda b: (b, 0)),   # x (streamed)
                _resident((3136, 1152)),                     # conv1+pool1 weight
                _resident((1, 1152)),                        # b1
                _resident((1152, 1024)),                     # conv2+pool2 weight
                _resident((1, 256)),                         # b2
                _resident((256, 128)),                       # fc weight
                _resident((1, 128)),                         # fc bias
            ],
            out_specs=pl.BlockSpec((bt, 128), lambda b: (b, 0)),
        ),
        compiler_params=pltpu.CompilerParams(
            dimension_semantics=("parallel",),
            vmem_limit_bytes=48 * 1024 * 1024,
        ),
    )(xf, w1w, b1p, w2p, b2p, wfcp, bfcp)

    return out[:batch, :120]


# ------------------------- deterministic parameter init -------------------------

def init_params(key):
    ks = jax.random.split(key, 6)

    def uni(k, shape, fan_in):
        bound = 1.0 / math.sqrt(fan_in)
        return jax.random.uniform(k, shape, jnp.float32, -bound, bound)

    w1 = uni(ks[0], (8, 1, 5, 5), 25)
    b1 = uni(ks[1], (8,), 25)
    w2 = uni(ks[2], (16, 8, 5, 5), 200)
    b2 = uni(ks[3], (16,), 200)
    wfc = uni(ks[4], (120, 256), 256)
    bfc = uni(ks[5], (120,), 256)
    return (w1, b1, w2, b2, wfc, bfc)


# ------------------------------ pure-JAX reference ------------------------------

def local_cnn_reference(x, params):
    w1, b1, w2, b2, wfc, bfc = params
    dn = ('NCHW', 'OIHW', 'NCHW')
    y = lax.conv_general_dilated(x, w1, (1, 1), 'VALID', dimension_numbers=dn)
    y = jax.nn.relu(y + b1[None, :, None, None])
    y = lax.reduce_window(y, -jnp.inf, lax.max, (1, 1, 2, 2), (1, 1, 2, 2), 'VALID')
    y = lax.conv_general_dilated(y, w2, (1, 1), 'VALID', dimension_numbers=dn)
    y = jax.nn.relu(y + b2[None, :, None, None])
    y = lax.reduce_window(y, -jnp.inf, lax.max, (1, 1, 2, 2), (1, 1, 2, 2), 'VALID')
    y = y.reshape(y.shape[0], -1)
    return jax.nn.relu(y @ wfc.T + bfc)


if __name__ == "__main__":
    key = jax.random.PRNGKey(0)
    pkey, xkey = jax.random.split(key)
    params = init_params(pkey)
    packed = pack_params(params)          # one-time packing, reused every call
    # 28x28 input is what the forward implies (16*4*4 flatten after two 5x5 convs + pools).
    x = jax.random.normal(xkey, (2, 1, 28, 28), dtype=jnp.float32)

    out = jax.block_until_ready(local_cnn_forward(x, packed))
    ref = jax.block_until_ready(local_cnn_reference(x, params))

    assert out.shape == (2, 120), out.shape
    # bf16 weights/activations with f32 accumulation: loosened tolerance vs f32.
    err = float(jnp.max(jnp.abs(out - ref)))
    assert jnp.allclose(out, ref, atol=5e-2, rtol=5e-2), err
    print("KERNEL_OK")
</pallas_src>

<mosaic_0001>
module attributes {stable_mosaic.version = 11 : i64} {
  func.func @_local_cnn_kernel(%arg0: i32, %arg1: memref<8x784xbf16, #tpu.memory_space<vmem>>, %arg2: memref<3136x1152xbf16, #tpu.memory_space<vmem>>, %arg3: memref<1x1152xf32, #tpu.memory_space<vmem>>, %arg4: memref<1152x1024xbf16, #tpu.memory_space<vmem>>, %arg5: memref<1x256xf32, #tpu.memory_space<vmem>>, %arg6: memref<256x128xbf16, #tpu.memory_space<vmem>>, %arg7: memref<1x128xf32, #tpu.memory_space<vmem>>, %arg8: memref<8x128xf32, #tpu.memory_space<vmem>>) attributes {dimension_semantics = [#tpu.dimension_semantics<parallel>], iteration_bounds = array<i64: 1>, scalar_prefetch = 0 : i64, scratch_operands = 0 : i64, tpu.core_type = #tpu.core_type<tc>, window_params = [{transform_indices = @transform_0, window_bounds = array<i64: 8, 784>}, {pipeline_mode = #tpu.pipeline_mode<synchronous>, transform_indices = @transform_1, window_bounds = array<i64: 3136, 1152>}, {pipeline_mode = #tpu.pipeline_mode<synchronous>, transform_indices = @transform_2, window_bounds = array<i64: 1, 1152>}, {pipeline_mode = #tpu.pipeline_mode<synchronous>, transform_indices = @transform_3, window_bounds = array<i64: 1152, 1024>}, {pipeline_mode = #tpu.pipeline_mode<synchronous>, transform_indices = @transform_4, window_bounds = array<i64: 1, 256>}, {pipeline_mode = #tpu.pipeline_mode<synchronous>, transform_indices = @transform_5, window_bounds = array<i64: 256, 128>}, {pipeline_mode = #tpu.pipeline_mode<synchronous>, transform_indices = @transform_6, window_bounds = array<i64: 1, 128>}, {transform_indices = @transform_7, window_bounds = array<i64: 8, 128>}]} {
    %c0 = arith.constant 0 : index
    %c0_0 = arith.constant 0 : index
    %0 = vector.load %arg1[%c0, %c0_0] : memref<8x784xbf16, #tpu.memory_space<vmem>>, vector<8x784xbf16>
    %c0_1 = arith.constant 0 : index
    %c0_2 = arith.constant 0 : index
    %1 = vector.load %arg2[%c0_1, %c0_2] : memref<3136x1152xbf16, #tpu.memory_space<vmem>>, vector<784x1152xbf16>
    %cst = arith.constant dense<0.000000e+00> : vector<8x1152xf32>
    %2 = tpu.matmul %0, %1, %cst {dimension_numbers = #tpu.dot_dimension_numbers<[1], [0], [0], [1], [0, 0, 1, 1], [], []>} : vector<8x784xbf16>, vector<784x1152xbf16>, vector<8x1152xf32> -> vector<8x1152xf32>
    %c784 = arith.constant 784 : index
    %c0_3 = arith.constant 0 : index
    %3 = vector.load %arg2[%c784, %c0_3] : memref<3136x1152xbf16, #tpu.memory_space<vmem>>, vector<784x1152xbf16>
    %cst_4 = arith.constant dense<0.000000e+00> : vector<8x1152xf32>
    %4 = tpu.matmul %0, %3, %cst_4 {dimension_numbers = #tpu.dot_dimension_numbers<[1], [0], [0], [1], [0, 0, 1, 1], [], []>} : vector<8x784xbf16>, vector<784x1152xbf16>, vector<8x1152xf32> -> vector<8x1152xf32>
    %5 = arith.maximumf %2, %4 : vector<8x1152xf32>
    %c1568 = arith.constant 1568 : index
    %c0_5 = arith.constant 0 : index
    %6 = vector.load %arg2[%c1568, %c0_5] : memref<3136x1152xbf16, #tpu.memory_space<vmem>>, vector<784x1152xbf16>
    %cst_6 = arith.constant dense<0.000000e+00> : vector<8x1152xf32>
    %7 = tpu.matmul %0, %6, %cst_6 {dimension_numbers = #tpu.dot_dimension_numbers<[1], [0], [0], [1], [0, 0, 1, 1], [], []>} : vector<8x784xbf16>, vector<784x1152xbf16>, vector<8x1152xf32> -> vector<8x1152xf32>
    %8 = arith.maximumf %5, %7 : vector<8x1152xf32>
    %c2352 = arith.constant 2352 : index
    %c0_7 = arith.constant 0 : index
    %9 = vector.load %arg2[%c2352, %c0_7] : memref<3136x1152xbf16, #tpu.memory_space<vmem>>, vector<784x1152xbf16>
    %cst_8 = arith.constant dense<0.000000e+00> : vector<8x1152xf32>
    %10 = tpu.matmul %0, %9, %cst_8 {dimension_numbers = #tpu.dot_dimension_numbers<[1], [0], [0], [1], [0, 0, 1, 1], [], []>} : vector<8x784xbf16>, vector<784x1152xbf16>, vector<8x1152xf32> -> vector<8x1152xf32>
    %11 = arith.maximumf %8, %10 : vector<8x1152xf32>
    %c0_9 = arith.constant 0 : index
    %c0_10 = arith.constant 0 : index
    %12 = vector.load %arg3[%c0_9, %c0_10] : memref<1x1152xf32, #tpu.memory_space<vmem>>, vector<1x1152xf32>
    %13 = vector.broadcast %12 : vector<1x1152xf32> to vector<8x1152xf32>
    %14 = arith.addf %11, %13 : vector<8x1152xf32>
    %cst_11 = arith.constant 0.000000e+00 : f32
    %15 = vector.broadcast %cst_11 : f32 to vector<8x1152xf32>
    %16 = arith.maximumf %14, %15 : vector<8x1152xf32>
    %17 = arith.truncf %16 : vector<8x1152xf32> to vector<8x1152xbf16>
    %c0_12 = arith.constant 0 : index
    %c0_13 = arith.constant 0 : index
    %18 = vector.load %arg4[%c0_12, %c0_13] : memref<1152x1024xbf16, #tpu.memory_space<vmem>>, vector<1152x1024xbf16>
    %cst_14 = arith.constant dense<0.000000e+00> : vector<8x1024xf32>
    %19 = tpu.matmul %17, %18, %cst_14 {dimension_numbers = #tpu.dot_dimension_numbers<[1], [0], [0], [1], [0, 0, 1, 1], [], []>} : vector<8x1152xbf16>, vector<1152x1024xbf16>, vector<8x1024xf32> -> vector<8x1024xf32>
    %20 = vector.extract_strided_slice %19 {offsets = [0, 0], sizes = [8, 256], strides = [1, 1]} : vector<8x1024xf32> to vector<8x256xf32>
    %21 = vector.extract_strided_slice %19 {offsets = [0, 256], sizes = [8, 256], strides = [1, 1]} : vector<8x1024xf32> to vector<8x256xf32>
    %22 = arith.maximumf %20, %21 : vector<8x256xf32>
    %23 = vector.extract_strided_slice %19 {offsets = [0, 512], sizes = [8, 256], strides = [1, 1]} : vector<8x1024xf32> to vector<8x256xf32>
    %24 = vector.extract_strided_slice %19 {offsets = [0, 768], sizes = [8, 256], strides = [1, 1]} : vector<8x1024xf32> to vector<8x256xf32>
    %25 = arith.maximumf %23, %24 : vector<8x256xf32>
    %26 = arith.maximumf %22, %25 : vector<8x256xf32>
    %c0_15 = arith.constant 0 : index
    %c0_16 = arith.constant 0 : index
    %27 = vector.load %arg5[%c0_15, %c0_16] : memref<1x256xf32, #tpu.memory_space<vmem>>, vector<1x256xf32>
    %28 = vector.broadcast %27 : vector<1x256xf32> to vector<8x256xf32>
    %29 = arith.addf %26, %28 : vector<8x256xf32>
    %cst_17 = arith.constant 0.000000e+00 : f32
    %30 = vector.broadcast %cst_17 : f32 to vector<8x256xf32>
    %31 = arith.maximumf %29, %30 : vector<8x256xf32>
    %32 = arith.truncf %31 : vector<8x256xf32> to vector<8x256xbf16>
    %c0_18 = arith.constant 0 : index
    %c0_19 = arith.constant 0 : index
    %33 = vector.load %arg6[%c0_18, %c0_19] : memref<256x128xbf16, #tpu.memory_space<vmem>>, vector<256x128xbf16>
    %cst_20 = arith.constant dense<0.000000e+00> : vector<8x128xf32>
    %34 = tpu.matmul %32, %33, %cst_20 {dimension_numbers = #tpu.dot_dimension_numbers<[1], [0], [0], [1], [0, 0, 1, 1], [], []>} : vector<8x256xbf16>, vector<256x128xbf16>, vector<8x128xf32> -> vector<8x128xf32>
    %c0_21 = arith.constant 0 : index
    %c0_22 = arith.constant 0 : index
    %35 = vector.load %arg7[%c0_21, %c0_22] : memref<1x128xf32, #tpu.memory_space<vmem>>, vector<1x128xf32>
    %36 = vector.broadcast %35 : vector<1x128xf32> to vector<8x128xf32>
    %37 = arith.addf %34, %36 : vector<8x128xf32>
    %cst_23 = arith.constant 0.000000e+00 : f32
    %38 = vector.broadcast %cst_23 : f32 to vector<8x128xf32>
    %39 = arith.maximumf %37, %38 : vector<8x128xf32>
    %c0_24 = arith.constant 0 : index
    %c0_25 = arith.constant 0 : index
    %40 = vector.load %arg8[%c0_24, %c0_25] : memref<8x128xf32, #tpu.memory_space<vmem>>, vector<8x128xf32>
    tpu.vector_store %arg8[%c0_24, %c0_25], %39 {strides = array<i32>} : memref<8x128xf32, #tpu.memory_space<vmem>>, vector<8x128xf32>,
    return
  }
  func.func @transform_0(%arg0: i32) -> (i32, i32) {
    %c0_i32 = arith.constant 0 : i32
    %c0_i32_0 = arith.constant 0 : i32
    return %arg0, %c0_i32 : i32, i32
  }
  func.func @transform_1(%arg0: i32) -> (i32, i32) {
    %c0_i32 = arith.constant 0 : i32
    %c0_i32_0 = arith.constant 0 : i32
    %c0_i32_1 = arith.constant 0 : i32
    return %c0_i32, %c0_i32_0 : i32, i32
  }
  func.func @transform_2(%arg0: i32) -> (i32, i32) {
    %c0_i32 = arith.constant 0 : i32
    %c0_i32_0 = arith.constant 0 : i32
    %c0_i32_1 = arith.constant 0 : i32
    return %c0_i32, %c0_i32_0 : i32, i32
  }
  func.func @transform_3(%arg0: i32) -> (i32, i32) {
    %c0_i32 = arith.constant 0 : i32
    %c0_i32_0 = arith.constant 0 : i32
    %c0_i32_1 = arith.constant 0 : i32
    return %c0_i32, %c0_i32_0 : i32, i32
  }
  func.func @transform_4(%arg0: i32) -> (i32, i32) {
    %c0_i32 = arith.constant 0 : i32
    %c0_i32_0 = arith.constant 0 : i32
    %c0_i32_1 = arith.constant 0 : i32
    return %c0_i32, %c0_i32_0 : i32, i32
  }
  func.func @transform_5(%arg0: i32) -> (i32, i32) {
    %c0_i32 = arith.constant 0 : i32
    %c0_i32_0 = arith.constant 0 : i32
    %c0_i32_1 = arith.constant 0 : i32
    return %c0_i32, %c0_i32_0 : i32, i32
  }
  func.func @transform_6(%arg0: i32) -> (i32, i32) {
    %c0_i32 = arith.constant 0 : i32
    %c0_i32_0 = arith.constant 0 : i32
    %c0_i32_1 = arith.constant 0 : i32
    return %c0_i32, %c0_i32_0 : i32, i32
  }
  func.func @transform_7(%arg0: i32) -> (i32, i32) {
    %c0_i32 = arith.constant 0 : i32
    %c0_i32_0 = arith.constant 0 : i32
    return %arg0, %c0_i32 : i32, i32
  }
}

</mosaic_0001>

<bundles_post_ra>
// kernel: tpu_custom_call.1
= control target key start
LH: loop header
LB: loop body
LE: loop exit
PB: predicated region body
PF: predicated region fallthrough
CT: control target
= control target key end

     0   :  { %12 = vsyncpa [#allocation3], 0  ;;  %s25366_s0 = inlined_call_operand.hbm [shape: bf16[8,784], index: 0, kind: input, shape index: {}]   ;;  %s25367_s1 = inlined_call_operand.hbm [shape: bf16[3136,1152], index: 1, kind: input, shape index: {}]   ;;  %s25368_s2 = inlined_call_operand.hbm [shape: f32[1,1152], index: 2, kind: input, shape index: {}]   ;;  %s25369_s3 = inlined_call_operand.hbm [shape: bf16[1152,1024], index: 3, kind: input, shape index: {}]   ;;  %s25370_s4 = inlined_call_operand.hbm [shape: f32[1,256], index: 4, kind: input, shape index: {}]   ;;  %s25371_s5 = inlined_call_operand.hbm [shape: bf16[256,128], index: 5, kind: input, shape index: {}]   ;;  %s25372_s6 = inlined_call_operand.hbm [shape: f32[1,128], index: 6, kind: input, shape index: {}]   ;;  %s25373_s7 = inlined_call_operand.hbm [shape: f32[8,128], index: 7, kind: output, shape index: {}]  }
   0x1   :  { %13 = vsyncpa [#allocation6], 0 }
   0x2   :  { %14 = vsyncpa [#allocation9], 0 }
   0x3   :  { %15 = vsyncpa [#allocation12], 0 }
   0x4   :  { %16 = vsyncpa [#allocation4], 0  ;;  %s24722_s24 = smov [#allocation5]   ;;  %s24536_s28 = scalar_lea.hbm %s25367_s1, 225792 }
   0x5   :  { %s32_s25 = sshll.u32 %s24722_s24, 4  ;;  %p24537_p0 = scmp.ne.s32.totalorder %s25367_s1, %s24536_s28  ;;  %s33_s25 = int_to_ptr.vmem [resolvable:$true] %s32_s25 }
   0x6   :  { %p24540_p1 = scmp.lt.u32.totalorder %s24536_s28, %s25367_s1 }
   0x8   :  { %p24542_p2 = pnand %p24540_p1, %p24537_p0 }
   0xa   :  { %24545 = shalt.err (!%p24542_p2)
}
   0xb   :  { %s24546_s10 = scalar_lea.vmem %s33_s25, 225792  ;;  %p24551_p4 = scmp.lt.s32.totalorder %s33_s25, %s33_s25 }
   0xc   :  { %p24547_p3 = scmp.ne.s32.totalorder %s33_s25, %s24546_s10  ;;  %p24552_p5 = scmp.lt.s32.totalorder %s24546_s10, %s24546_s10 }
   0xe   :  { %p24553_p6 = por %p24552_p5, %p24551_p4 }
  0x10   :  { %p24554_p7 = pnand %p24553_p6, %p24547_p3 }
  0x12   :  { %24557 = shalt.err (!%p24554_p7)
}
  0x13   :  { %s24723_s11 = smov 576   ;;  %s24724_s12 = smov 36  }
  0x14   :  { %38 = dma.hbm_to_vmem [thread:$0]  %s25367_s1, 225792, %s33_s25, [#allocation6], %s24723_s11, %s24723_s11, %s24724_s12  }
  0x15   :  { %s24725_s15 = smov [#allocation8]   ;;  %s24558_s19 = scalar_lea.hbm %s25369_s3, 73728 }
  0x16   :  { %s54_s16 = sshll.u32 %s24725_s15, 4  ;;  %p24559_p8 = scmp.ne.s32.totalorder %s25369_s3, %s24558_s19  ;;  %s55_s16 = int_to_ptr.vmem [resolvable:$true] %s54_s16 }
  0x17   :  { %p24562_p9 = scmp.lt.u32.totalorder %s24558_s19, %s25369_s3 }
  0x19   :  { %p24564_p10 = pnand %p24562_p9, %p24559_p8 }
  0x1b   :  { %24567 = shalt.err (!%p24564_p10)
}
  0x1c   :  { %s24568_s24 = scalar_lea.vmem %s55_s16, 73728  ;;  %p24573_p12 = scmp.lt.s32.totalorder %s55_s16, %s55_s16 }
  0x1d   :  { %p24569_p11 = scmp.ne.s32.totalorder %s55_s16, %s24568_s24  ;;  %p24574_p13 = scmp.lt.s32.totalorder %s24568_s24, %s24568_s24 }
  0x1f   :  { %p24575_p0 = por %p24574_p13, %p24573_p12 }
  0x21   :  { %p24576_p1 = pnand %p24575_p0, %p24569_p11 }
  0x23   :  { %24579 = shalt.err (!%p24576_p1)
}
  0x24   :  { %s24726_s1 = smov 512   ;;  %s24727_s25 = smov 32  }
  0x25   :  { %60 = dma.hbm_to_vmem [thread:$0]  %s25369_s3, 73728, %s55_s16, [#allocation9], %s24726_s1, %s24726_s1, %s24727_s25  }
  0x26   :  { %s24728_s28 = smov [#allocation11]   ;;  %s24580_s9 = scalar_lea.hbm %s25371_s5, 2048 }
  0x27   :  { %s76_s29 = sshll.u32 %s24728_s28, 4  ;;  %p24581_p2 = scmp.ne.s32.totalorder %s25371_s5, %s24580_s9  ;;  %s77_s29 = int_to_ptr.vmem [resolvable:$true] %s76_s29 }
  0x28   :  { %p24584_p3 = scmp.lt.u32.totalorder %s24580_s9, %s25371_s5 }
  0x2a   :  { %p24586_p4 = pnand %p24584_p3, %p24581_p2 }
  0x2c   :  { %24589 = shalt.err (!%p24586_p4)
}
  0x2d   :  { %s24590_s14 = scalar_lea.vmem %s77_s29, 2048  ;;  %p24595_p6 = scmp.lt.s32.totalorder %s77_s29, %s77_s29 }
  0x2e   :  { %p24591_p5 = scmp.ne.s32.totalorder %s77_s29, %s24590_s14  ;;  %p24596_p7 = scmp.lt.s32.totalorder %s24590_s14, %s24590_s14 }
  0x30   :  { %p24597_p8 = por %p24596_p7, %p24595_p6 }
  0x32   :  { %p24598_p9 = pnand %p24597_p8, %p24591_p5 }
  0x34   :  { %24601 = shalt.err (!%p24598_p9)
}
  0x35   :  { %s24729_s3 = smov 64   ;;  %s24730_s15 = smov 4  }
  0x36   :  { %82 = dma.hbm_to_vmem [thread:$0]  %s25371_s5, 2048, %s77_s29, [#allocation12], %s24729_s3, %s24729_s3, %s24730_s15  }
  0x37   :  { %s24731_s18 = smov [#allocation2]   ;;  %s24732_s20 = smov [#allocation7]  }
  0x38   :  { %s23_s19 = sshll.u32 %s24731_s18, 4  ;;  %s45_s21 = sshll.u32 %s24732_s20, 4  ;;  %s24_s19 = int_to_ptr.vmem [resolvable:$true] %s23_s19  ;;  %s46_s21 = int_to_ptr.vmem [resolvable:$true] %s45_s21 }
  0x39   :  { %s24602_s24 = scalar_lea.hbm %s25366_s0, 448 }
  0x3a   :  { %p24603_p10 = scmp.ne.s32.totalorder %s25366_s0, %s24602_s24  ;;  %p24606_p11 = scmp.lt.u32.totalorder %s24602_s24, %s25366_s0 }
  0x3c   :  { %p24608_p12 = pnand %p24606_p11, %p24603_p10 }
  0x3e   :  { %24611 = shalt.err (!%p24608_p12)
}
  0x3f   :  { %s24612_s5 = scalar_lea.vmem %s24_s19, 448  ;;  %p24617_p0 = scmp.lt.s32.totalorder %s24_s19, %s24_s19 }
  0x40   :  { %p24613_p13 = scmp.ne.s32.totalorder %s24_s19, %s24612_s5  ;;  %p24618_p1 = scmp.lt.s32.totalorder %s24612_s5, %s24612_s5 }
  0x42   :  { %p24619_p2 = por %p24618_p1, %p24617_p0 }
  0x44   :  { %p24620_p3 = pnand %p24619_p2, %p24613_p13 }
  0x46   :  { %24623 = shalt.err (!%p24620_p3)
}
  0x47   :  { %26 = dma.hbm_to_vmem [thread:$0]  %s25366_s0, 448, %s24_s19, [#allocation3]  }
  0x48   :  { %s24624_s9 = scalar_lea.hbm %s25368_s2, 144 }
  0x49   :  { %p24625_p4 = scmp.ne.s32.totalorder %s25368_s2, %s24624_s9  ;;  %p24628_p5 = scmp.lt.u32.totalorder %s24624_s9, %s25368_s2 }
  0x4b   :  { %p24630_p6 = pnand %p24628_p5, %p24625_p4 }
  0x4d   :  { %24633 = shalt.err (!%p24630_p6)
}
  0x4e   :  { %s24634_s14 = scalar_lea.vmem %s46_s21, 144  ;;  %s24638_s3 = scalar_lea.vmem %s46_s21, 160 }
  0x4f   :  { %p24635_p7 = scmp.ne.s32.totalorder %s46_s21, %s24634_s14  ;;  %p24639_p8 = scmp.lt.s32.totalorder %s46_s21, %s46_s21 }
  0x50   :  { %p24640_p9 = scmp.lt.s32.totalorder %s24638_s3, %s24634_s14 }
  0x52   :  { %p24641_p10 = por %p24640_p9, %p24639_p8 }
  0x54   :  { %p24642_p11 = pnand %p24641_p10, %p24635_p7 }
  0x56   :  { %24645 = shalt.err (!%p24642_p11)
}
  0x57   :  { %48 = dma.hbm_to_vmem [thread:$0]  %s25368_s2, 144, %s46_s21, [#allocation6]  }
  0x58   :  { %s24733_s16 = smov [#allocation10]   ;;  %s24734_s18 = smov [#allocation13]  }
  0x59   :  { %s67_s17 = sshll.u32 %s24733_s16, 4  ;;  %s89_s19 = sshll.u32 %s24734_s18, 4  ;;  %s68_s17 = int_to_ptr.vmem [resolvable:$true] %s67_s17  ;;  %s90_s19 = int_to_ptr.vmem [resolvable:$true] %s89_s19 }
  0x5a   :  { %s24646_s23 = scalar_lea.hbm %s25370_s4, 32 }
  0x5b   :  { %p24647_p12 = scmp.ne.s32.totalorder %s25370_s4, %s24646_s23  ;;  %p24650_p13 = scmp.lt.u32.totalorder %s24646_s23, %s25370_s4 }
  0x5d   :  { %p24652_p0 = pnand %p24650_p13, %p24647_p12 }
  0x5f   :  { %24655 = shalt.err (!%p24652_p0)
}
  0x60   :  { %s24656_s2 = scalar_lea.vmem %s68_s17, 32  ;;  %p24661_p2 = scmp.lt.s32.totalorder %s68_s17, %s68_s17 }
  0x61   :  { %p24657_p1 = scmp.ne.s32.totalorder %s68_s17, %s24656_s2  ;;  %p24662_p3 = scmp.lt.s32.totalorder %s24656_s2, %s24656_s2 }
  0x63   :  { %p24663_p4 = por %p24662_p3, %p24661_p2 }
  0x65   :  { %p24664_p5 = pnand %p24663_p4, %p24657_p1 }
  0x67   :  { %24667 = shalt.err (!%p24664_p5)
}
  0x68   :  { %70 = dma.hbm_to_vmem [thread:$0]  %s25370_s4, 32, %s68_s17, [#allocation9]  }
  0x69   :  { %s24668_s29 = scalar_lea.hbm %s25372_s6, 16 }
  0x6a   :  { %p24669_p6 = scmp.ne.s32.totalorder %s25372_s6, %s24668_s29  ;;  %p24672_p7 = scmp.lt.u32.totalorder %s24668_s29, %s25372_s6 }
  0x6c   :  { %p24674_p8 = pnand %p24672_p7, %p24669_p6 }
  0x6e   :  { %24677 = shalt.err (!%p24674_p8)
}
  0x6f   :  { %s24678_s11 = scalar_lea.vmem %s90_s19, 16  ;;  %s24682_s12 = scalar_lea.vmem %s90_s19, 32 }
  0x70   :  { %p24679_p9 = scmp.ne.s32.totalorder %s90_s19, %s24678_s11  ;;  %p24683_p10 = scmp.lt.s32.totalorder %s90_s19, %s90_s19 }
  0x71   :  { %p24684_p11 = scmp.lt.s32.totalorder %s24682_s12, %s24678_s11 }
  0x73   :  { %p24685_p12 = por %p24684_p11, %p24683_p10 }
  0x75   :  { %p24686_p13 = pnand %p24685_p12, %p24679_p9 }
  0x77   :  { %24689 = shalt.err (!%p24686_p13)
}
  0x78   :  { %92 = dma.hbm_to_vmem [thread:$0]  %s25372_s6, 16, %s90_s19, [#allocation12]  }
  0x79   :  { %24712 = dma.done.wait [#allocation3], 448  }
  0x7a   :  { %24713 = vsyncadd [#allocation3], 4294966848 }
  0x7b   :  { %24714 = dma.done.wait [#allocation6], 225936  }
  0x7c   :  { %24715 = vsyncadd [#allocation6], 4294741360 }
  0x7d   :  { %24716 = dma.done.wait [#allocation9], 73760  }
  0x7e   :  { %24717 = vsyncadd [#allocation9], 4294893536 }
  0x7f   :  { %24718 = dma.done.wait [#allocation12], 2064  }
  0x80   :  { %24719 = vsyncadd [#allocation12], 4294965232  ;;  %v24735_v0 = vmov 0   ;;  %v21957_v1 = vld [vmem:[#allocation5 + $0x4] ss:$36 sps:$4 sm:$0xff]   ;;  %vm2887_vm0 = vcmask 130048  }
  0x81   :  { %3046 = vmatprep.mubr.bf16.mxu1 %v24735_v0  ;;  %v21959_v2 = vld [vmem:[#allocation5 + $0xd84] ss:$36 sps:$4 sm:$0xff]   ;;  %2891 = vmatprep.subr.bf16.mxu0 %v21957_v1  ;;  %v21963_v5 = vld [vmem:[#allocation5 + $0x4c] ss:$36 sps:$4 sm:$0xff]   ;;  %v21965_v6 = vld [vmem:[#allocation2 + $0x18] ss:$0 sps:$4 sm:$0xff]  }
  0x82   :  { %v21961_v3 = vld [vmem:[#allocation5] ss:$36 sps:$4 sm:$0xff]   ;;  %3014 = vmatprep.subr.bf16.mxu1 %v21959_v2  ;;  %v21966_v7 = vld [vmem:[#allocation5 + $0x8] ss:$36 sps:$4 sm:$0xff]   ;;  %v21970_v10 = vld [vmem:[#allocation5 + $0x94] ss:$36 sps:$4 sm:$0xff]  }
  0x83   :  { %v21962_v4 = vld [vmem:[#allocation5 + $0xd80] ss:$36 sps:$4 sm:$0xff]   ;;  %2892 = vmatpush1.bf16.msra.mxu0 %v21961_v3  ;;  %v21968_v8 = vld [vmem:[#allocation5 + $0xc] ss:$36 sps:$4 sm:$0xff]   ;;  %v21974_v12 = vld [vmem:[#allocation5 + $0x54] ss:$36 sps:$4 sm:$0xff]  }
  0x84   :  { %3015 = vmatpush1.bf16.msra.mxu1 %v21962_v4  ;;  %2893 = vmatprep.subr.bf16.mxu0 %v21963_v5  ;;  %v21969_v9 = vld [vmem:[#allocation5 + $0x48] ss:$36 sps:$4 sm:$0xff]   ;;  %v21972_v11 = vld [vmem:[#allocation5 + $0x50] ss:$36 sps:$4 sm:$0xff]   ;;  %v21976_v14 = vld [vmem:[#allocation5 + $0xdc] ss:$36 sps:$4 sm:$0xff]  }
  0x85   :  { %3055 = vmatprep.subr.bf16.mxu1 %v21968_v8  ;;  %v21975_v13 = vld [vmem:[#allocation5 + $0x90] ss:$36 sps:$4 sm:$0xff]   ;;  %v21980_v15 = vld [vmem:[#allocation5 + $0x9c] ss:$36 sps:$4 sm:$0xff]   ;;  %v21982_v18 = vld [vmem:[#allocation5 + $0x124] ss:$36 sps:$4 sm:$0xff]  }
  0x86   :  { %v21978_v16 = vld [vmem:[#allocation5 + $0x98] ss:$36 sps:$4 sm:$0xff]   ;;  %v21986_v19 = vld [vmem:[#allocation5 + $0xe4] ss:$36 sps:$4 sm:$0xff]   ;;  %v21988_v22 = vld [vmem:[#allocation5 + $0x16c] ss:$36 sps:$4 sm:$0xff]  }
  0x87   :  { %19433 = vmatmul.mubr.msk.bf16.vlgmr.msra.gmra.mrb[0].mxu1 %vm2887_vm0, %v21965_v6  ;;  %2894 = vmatpush1.bf16.msra.mxu0 %v21969_v9  ;;  %v21981_v17 = vld [vmem:[#allocation5 + $0xd8] ss:$36 sps:$4 sm:$0xff]   ;;  %v21984_v20 = vld [vmem:[#allocation5 + $0xe0] ss:$36 sps:$4 sm:$0xff]   ;;  %v21992_v23 = vld [vmem:[#allocation5 + $0x12c] ss:$36 sps:$4 sm:$0xff]  }
  0x88   :  { %3056 = vmatpush1.bf16.msra.mxu1 %v21966_v7  ;;  %2895 = vmatprep.subr.bf16.mxu0 %v21970_v10  ;;  %v21987_v21 = vld [vmem:[#allocation5 + $0x120] ss:$36 sps:$4 sm:$0xff]   ;;  %v21990_v24 = vld [vmem:[#allocation5 + $0x128] ss:$36 sps:$4 sm:$0xff]   ;;  %v21994_v26 = vld [vmem:[#allocation5 + $0x1b4] ss:$36 sps:$4 sm:$0xff]  }
  0x89   :  { %3057 = vmatprep.subr.bf16.mxu1 %v21974_v12  ;;  %v21993_v25 = vld [vmem:[#allocation5 + $0x168] ss:$36 sps:$4 sm:$0xff]   ;;  %v21998_v27 = vld [vmem:[#allocation5 + $0x174] ss:$36 sps:$4 sm:$0xff]   ;;  %v22000_v30 = vld [vmem:[#allocation5 + $0x1fc] ss:$36 sps:$4 sm:$0xff]  }
  0x8a   :  { %v21996_v28 = vld [vmem:[#allocation5 + $0x170] ss:$36 sps:$4 sm:$0xff]   ;;  %v22004_v31 = vld [vmem:[#allocation5 + $0x1bc] ss:$36 sps:$4 sm:$0xff]   ;;  %v22006_v34 = vld [vmem:[#allocation5 + $0x244] ss:$36 sps:$4 sm:$0xff]  }
  0x8b   :  { %2896 = vmatpush1.bf16.msra.mxu0 %v21975_v13  ;;  %v21999_v29 = vld [vmem:[#allocation5 + $0x1b0] ss:$36 sps:$4 sm:$0xff]   ;;  %v22002_v32 = vld [vmem:[#allocation5 + $0x1b8] ss:$36 sps:$4 sm:$0xff]   ;;  %v22010_v35 = vld [vmem:[#allocation5 + $0x204] ss:$36 sps:$4 sm:$0xff]  }
  0x8c   :  { %3058 = vmatpush1.bf16.msra.mxu1 %v21972_v11  ;;  %2897 = vmatprep.subr.bf16.mxu0 %v21976_v14  ;;  %v22005_v33 = vld [vmem:[#allocation5 + $0x1f8] ss:$36 sps:$4 sm:$0xff]   ;;  %v22008_v36 = vld [vmem:[#allocation5 + $0x200] ss:$36 sps:$4 sm:$0xff]   ;;  %v22012_v38 = vld [vmem:[#allocation5 + $0x28c] ss:$36 sps:$4 sm:$0xff]  }
  0x8d   :  { %3059 = vmatprep.subr.bf16.mxu1 %v21980_v15  ;;  %v22011_v37 = vld [vmem:[#allocation5 + $0x240] ss:$36 sps:$4 sm:$0xff]   ;;  %v22016_v39 = vld [vmem:[#allocation5 + $0x24c] ss:$36 sps:$4 sm:$0xff]   ;;  %v22018_v42 = vld [vmem:[#allocation5 + $0x2d4] ss:$36 sps:$4 sm:$0xff]  }
  0x8e   :  { %v22014_v40 = vld [vmem:[#allocation5 + $0x248] ss:$36 sps:$4 sm:$0xff]   ;;  %v22022_v43 = vld [vmem:[#allocation5 + $0x294] ss:$36 sps:$4 sm:$0xff]   ;;  %v22024_v46 = vld [vmem:[#allocation5 + $0x31c] ss:$36 sps:$4 sm:$0xff]  }
  0x8f   :  { %2898 = vmatpush1.bf16.msra.mxu0 %v21981_v17  ;;  %v22017_v41 = vld [vmem:[#allocation5 + $0x288] ss:$36 sps:$4 sm:$0xff]   ;;  %v22020_v44 = vld [vmem:[#allocation5 + $0x290] ss:$36 sps:$4 sm:$0xff]   ;;  %v22028_v47 = vld [vmem:[#allocation5 + $0x2dc] ss:$36 sps:$4 sm:$0xff]  }
  0x90   :  { %3060 = vmatpush1.bf16.msra.mxu1 %v21978_v16  ;;  %2899 = vmatprep.subr.bf16.mxu0 %v21982_v18  ;;  %v22023_v45 = vld [vmem:[#allocation5 + $0x2d0] ss:$36 sps:$4 sm:$0xff]   ;;  %v22026_v48 = vld [vmem:[#allocation5 + $0x2d8] ss:$36 sps:$4 sm:$0xff]   ;;  %v115_v49 = vld [vmem:[#allocation2] sm:$0xff]  ;;  %vm24737_vm1 = vmmov 0  }
  0x91   :  { %3061 = vmatprep.subr.bf16.mxu1 %v21986_v19  ;;  %v22029_v50 = vld [vmem:[#allocation5 + $0x318] ss:$36 sps:$4 sm:$0xff]   ;;  %v22030_v51 = vld [vmem:[#allocation5 + $0x364] ss:$36 sps:$4 sm:$0xff]   ;;  %v24865_v52 = vcombine.high %v115_v49, %v115_v49  ;;  %v22036_v56 = vld [vmem:[#allocation5 + $0x3ac] ss:$36 sps:$4 sm:$0xff]   ;;  %v24869_v8 = vcombine.low %v115_v49, %v115_v49 }
  0x92   :  { %v22034_v53 = vld [vmem:[#allocation5 + $0x324] ss:$36 sps:$4 sm:$0xff]   ;;  %v22040_v57 = vld [vmem:[#allocation5 + $0x36c] ss:$36 sps:$4 sm:$0xff]   ;;  %v22042_v60 = vld [vmem:[#allocation5 + $0x3f4] ss:$36 sps:$4 sm:$0xff]  }
  0x93   :  { %2900 = vmatpush1.bf16.msra.mxu0 %v21987_v21  ;;  %2923 = vmatprep.mubr.bf16.mxu0 %v24865_v52  ;;  %v22032_v54 = vld [vmem:[#allocation5 + $0x320] ss:$36 sps:$4 sm:$0xff]   ;;  %v22038_v58 = vld [vmem:[#allocation5 + $0x368] ss:$36 sps:$4 sm:$0xff]   ;;  %v22046_v61 = vld [vmem:[#allocation5 + $0x3b4] ss:$36 sps:$4 sm:$0xff]  }
  0x94   :  { %3062 = vmatpush1.bf16.msra.mxu1 %v21984_v20  ;;  %2901 = vmatprep.subr.bf16.mxu0 %v21988_v22  ;;  %v22035_v55 = vld [vmem:[#allocation5 + $0x360] ss:$36 sps:$4 sm:$0xff]   ;;  %v22041_v59 = vld [vmem:[#allocation5 + $0x3a8] ss:$36 sps:$4 sm:$0xff]   ;;  %v22044_v62 = vld [vmem:[#allocation5 + $0x3b0] ss:$36 sps:$4 sm:$0xff]  }
  0x95   :  { %3063 = vmatprep.subr.bf16.mxu1 %v21992_v23  ;;  %3087 = vmatprep.mubr.bf16.mxu1 %v24865_v52  ;;  %v22047_v63 = vld [vmem:[#allocation5 + $0x3f0] ss:$36 sps:$4 sm:$0xff]   ;;  %v22048_v1 = vld [vmem:[#allocation5 + $0x43c] ss:$36 sps:$4 sm:$0xff]   ;;  %v22057_v5 = vld [vmem:[#allocation5 + $0x484] ss:$36 sps:$4 sm:$0xff]  }
  0x96   :  { %v22052_v2 = vld [vmem:[#allocation5 + $0x3fc] ss:$36 sps:$4 sm:$0xff]   ;;  %v22060_v6 = vld [vmem:[#allocation5 + $0x444] ss:$36 sps:$4 sm:$0xff]   ;;  %v22064_v10 = vld [vmem:[#allocation5 + $0x4cc] ss:$36 sps:$4 sm:$0xff]  }
  0x97   :  { %2902 = vmatpush1.bf16.msra.mxu0 %v21993_v25  ;;  %v22050_v3 = vld [vmem:[#allocation5 + $0x3f8] ss:$36 sps:$4 sm:$0xff]   ;;  %v22055_v7 = vld [vmem:[#allocation5 + $0x480] ss:$36 sps:$4 sm:$0xff]   ;;  %v22067_v11 = vld [vmem:[#allocation5 + $0x48c] ss:$36 sps:$4 sm:$0xff]  }
  0x98   :  { %3064 = vmatpush1.bf16.msra.mxu1 %v21990_v24  ;;  %2903 = vmatprep.subr.bf16.mxu0 %v21994_v26  ;;  %v22053_v4 = vld [vmem:[#allocation5 + $0x438] ss:$36 sps:$4 sm:$0xff]   ;;  %v22058_v9 = vld [vmem:[#allocation5 + $0x440] ss:$36 sps:$4 sm:$0xff]   ;;  %v22062_v12 = vld [vmem:[#allocation5 + $0x4c8] ss:$36 sps:$4 sm:$0xff]  }
  0x99   :  { %3065 = vmatprep.subr.bf16.mxu1 %v21998_v27  ;;  %v22065_v13 = vld [vmem:[#allocation5 + $0x488] ss:$36 sps:$4 sm:$0xff]   ;;  %v22070_v14 = vld [vmem:[#allocation5 + $0x514] ss:$36 sps:$4 sm:$0xff]   ;;  %v22076_v18 = vld [vmem:[#allocation5 + $0x55c] ss:$36 sps:$4 sm:$0xff]  }
  0x9a   :  { %v22073_v15 = vld [vmem:[#allocation5 + $0x4d4] ss:$36 sps:$4 sm:$0xff]   ;;  %v22079_v19 = vld [vmem:[#allocation5 + $0x51c] ss:$36 sps:$4 sm:$0xff]   ;;  %v22082_v22 = vld [vmem:[#allocation5 + $0x5a4] ss:$36 sps:$4 sm:$0xff]  }
  0x9b   :  { %2904 = vmatpush1.bf16.msra.mxu0 %v21999_v29  ;;  %v22068_v16 = vld [vmem:[#allocation5 + $0x510] ss:$36 sps:$4 sm:$0xff]   ;;  %v22074_v20 = vld [vmem:[#allocation5 + $0x558] ss:$36 sps:$4 sm:$0xff]   ;;  %v22085_v23 = vld [vmem:[#allocation5 + $0x564] ss:$36 sps:$4 sm:$0xff]  }
  0x9c   :  { %3066 = vmatpush1.bf16.msra.mxu1 %v21996_v28  ;;  %2905 = vmatprep.subr.bf16.mxu0 %v22000_v30  ;;  %v22071_v17 = vld [vmem:[#allocation5 + $0x4d0] ss:$36 sps:$4 sm:$0xff]   ;;  %v22077_v21 = vld [vmem:[#allocation5 + $0x518] ss:$36 sps:$4 sm:$0xff]   ;;  %v22080_v24 = vld [vmem:[#allocation5 + $0x5a0] ss:$36 sps:$4 sm:$0xff]  }
  0x9d   :  { %3067 = vmatprep.subr.bf16.mxu1 %v22004_v31  ;;  %v22083_v25 = vld [vmem:[#allocation5 + $0x560] ss:$36 sps:$4 sm:$0xff]   ;;  %v22088_v26 = vld [vmem:[#allocation5 + $0x5ec] ss:$36 sps:$4 sm:$0xff]   ;;  %v22094_v30 = vld [vmem:[#allocation5 + $0x634] ss:$36 sps:$4 sm:$0xff]  }
  0x9e   :  { %v22091_v27 = vld [vmem:[#allocation5 + $0x5ac] ss:$36 sps:$4 sm:$0xff]   ;;  %v22097_v31 = vld [vmem:[#allocation5 + $0x5f4] ss:$36 sps:$4 sm:$0xff]   ;;  %s24738_s6 = smov [#allocation14]  }
  0x9f   :  { %2906 = vmatpush1.bf16.msra.mxu0 %v22005_v33  ;;  %v22086_v28 = vld [vmem:[#allocation5 + $0x5e8] ss:$36 sps:$4 sm:$0xff]   ;;  %v22092_v33 = vld [vmem:[#allocation5 + $0x630] ss:$36 sps:$4 sm:$0xff]   ;;  %s18973_s14 = sshll.u32 %s24738_s6, 4  ;;  %s18974_s14 = int_to_ptr.vmem [resolvable:$true] %s18973_s14 }
  0xa0   :  { %3068 = vmatpush1.bf16.msra.mxu1 %v22002_v32  ;;  %2907 = vmatprep.subr.bf16.mxu0 %v22006_v34  ;;  %v22089_v29 = vld [vmem:[#allocation5 + $0x5a8] ss:$36 sps:$4 sm:$0xff]   ;;  %v22095_v34 = vld [vmem:[#allocation5 + $0x5f0] ss:$36 sps:$4 sm:$0xff]   ;;  %s24690_s3 = scalar_lea.vmem %s18974_s14, 128  ;;  %p24695_p1 = scmp.lt.s32.totalorder %s18974_s14, %s18974_s14 }
  0xa1   :  { %3069 = vmatprep.subr.bf16.mxu1 %v22010_v35  ;;  %v24873_v32 = vld [vmem:[#allocation2 + $0x8] sm:$0xff]  ;;  %v22121_v49 = vld [vmem:[#allocation5 + $0x714] ss:$36 sps:$4 sm:$0xff]   ;;  %p24691_p0 = scmp.ne.s32.totalorder %s18974_s14, %s24690_s3  ;;  %p24696_p2 = scmp.lt.s32.totalorder %s24690_s3, %s24690_s3 }
  0xa2   :  { %v24877_v35 = vcombine.high %v24873_v32, %v24873_v32 }
  0xa3   :  { %2908 = vmatpush1.bf16.msra.mxu0 %v22011_v37  ;;  %v22103_v37 = vld [vmem:[#allocation5 + $0x63c] ss:$36 sps:$4 sm:$0xff]   ;;  %p24697_p3 = por %p24696_p2, %p24695_p1 }
  0xa4   :  { %3070 = vmatpush1.bf16.msra.mxu1 %v22008_v36  ;;  %2909 = vmatprep.subr.bf16.mxu0 %v22012_v38  ;;  %v22100_v36 = vld [vmem:[#allocation5 + $0x67c] ss:$36 sps:$4 sm:$0xff]  }
  0xa5   :  { %3071 = vmatprep.subr.bf16.mxu1 %v22016_v39  ;;  %v22098_v38 = vld [vmem:[#allocation5 + $0x678] ss:$36 sps:$4 sm:$0xff]   ;;  %p24698_p4 = pnand %p24697_p3, %p24691_p0 }
  0xa6   :  { %v22101_v39 = vld [vmem:[#allocation5 + $0x638] ss:$36 sps:$4 sm:$0xff]  }
  0xa7   :  { %2910 = vmatpush1.bf16.msra.mxu0 %v22017_v41  ;;  %v22109_v41 = vld [vmem:[#allocation5 + $0x684] ss:$36 sps:$4 sm:$0xff]  }
  0xa8   :  { %3072 = vmatpush1.bf16.msra.mxu1 %v22014_v40  ;;  %2911 = vmatprep.subr.bf16.mxu0 %v22018_v42  ;;  %v22106_v40 = vld [vmem:[#allocation5 + $0x6c4] ss:$36 sps:$4 sm:$0xff]  }
  0xa9   :  { %3073 = vmatprep.subr.bf16.mxu1 %v22022_v43  ;;  %v22104_v42 = vld [vmem:[#allocation5 + $0x6c0] ss:$36 sps:$4 sm:$0xff]  }
  0xaa   :  { %v22107_v43 = vld [vmem:[#allocation5 + $0x680] ss:$36 sps:$4 sm:$0xff]  }
  0xab   :  { %2912 = vmatpush1.bf16.msra.mxu0 %v22023_v45  ;;  %v22115_v45 = vld [vmem:[#allocation5 + $0x6cc] ss:$36 sps:$4 sm:$0xff]  }
  0xac   :  { %3074 = vmatpush1.bf16.msra.mxu1 %v22020_v44  ;;  %2913 = vmatprep.subr.bf16.mxu0 %v22024_v46  ;;  %v22112_v44 = vld [vmem:[#allocation5 + $0x70c] ss:$36 sps:$4 sm:$0xff]  }
  0xad   :  { %3075 = vmatprep.subr.bf16.mxu1 %v22028_v47  ;;  %v22110_v46 = vld [vmem:[#allocation5 + $0x708] ss:$36 sps:$4 sm:$0xff]  }
  0xae   :  { %v22113_v47 = vld [vmem:[#allocation5 + $0x6c8] ss:$36 sps:$4 sm:$0xff]  }
  0xaf   :  { %2914 = vmatpush1.bf16.msra.mxu0 %v22029_v50  ;;  %v22116_v50 = vld [vmem:[#allocation5 + $0x750] ss:$36 sps:$4 sm:$0xff]  }
  0xb0   :  { %3076 = vmatpush1.bf16.msra.mxu1 %v22026_v48  ;;  %2915 = vmatprep.subr.bf16.mxu0 %v22030_v51  ;;  %v22118_v48 = vld [vmem:[#allocation5 + $0x754] ss:$36 sps:$4 sm:$0xff]  }
  0xb1   :  { %3077 = vmatprep.subr.bf16.mxu1 %v22034_v53  ;;  %v22119_v51 = vld [vmem:[#allocation5 + $0x710] ss:$36 sps:$4 sm:$0xff]   ;;  %v22124_v53 = vld [vmem:[#allocation5 + $0x79c] ss:$36 sps:$4 sm:$0xff]  }
  0xb3   :  { %2916 = vmatpush1.bf16.msra.mxu0 %v22035_v55  ;;  %v22122_v55 = vld [vmem:[#allocation5 + $0x798] ss:$36 sps:$4 sm:$0xff]  }
  0xb4   :  { %3078 = vmatpush1.bf16.msra.mxu1 %v22032_v54  ;;  %2917 = vmatprep.subr.bf16.mxu0 %v22036_v56  ;;  %v22127_v54 = vld [vmem:[#allocation5 + $0x75c] ss:$36 sps:$4 sm:$0xff]  }
  0xb5   :  { %3079 = vmatprep.subr.bf16.mxu1 %v22040_v57  ;;  %v22125_v56 = vld [vmem:[#allocation5 + $0x758] ss:$36 sps:$4 sm:$0xff]   ;;  %v22130_v57 = vld [vmem:[#allocation5 + $0x7e4] ss:$36 sps:$4 sm:$0xff]  }
  0xb7   :  { %2918 = vmatpush1.bf16.msra.mxu0 %v22041_v59  ;;  %v22128_v59 = vld [vmem:[#allocation5 + $0x7e0] ss:$36 sps:$4 sm:$0xff]  }
  0xb8   :  { %3080 = vmatpush1.bf16.msra.mxu1 %v22038_v58  ;;  %2919 = vmatprep.subr.bf16.mxu0 %v22042_v60  ;;  %v22133_v58 = vld [vmem:[#allocation5 + $0x7a4] ss:$36 sps:$4 sm:$0xff]  }
  0xb9   :  { %3081 = vmatprep.subr.bf16.mxu1 %v22046_v61  ;;  %v22131_v60 = vld [vmem:[#allocation5 + $0x7a0] ss:$36 sps:$4 sm:$0xff]   ;;  %v22136_v61 = vld [vmem:[#allocation5 + $0x82c] ss:$36 sps:$4 sm:$0xff]  }
  0xbb   :  { %2920 = vmatpush1.bf16.msra.mxu0 %v22047_v63  ;;  %v22134_v63 = vld [vmem:[#allocation5 + $0x828] ss:$36 sps:$4 sm:$0xff]  }
  0xbc   :  { %3082 = vmatpush1.bf16.msra.mxu1 %v22044_v62  ;;  %2921 = vmatprep.subr.bf16.mxu0 %v22048_v1  ;;  %v22139_v62 = vld [vmem:[#allocation5 + $0x7ec] ss:$36 sps:$4 sm:$0xff]  }
  0xbd   :  { %3083 = vmatprep.subr.bf16.mxu1 %v22052_v2  ;;  %v22137_v1 = vld [vmem:[#allocation5 + $0x7e8] ss:$36 sps:$4 sm:$0xff]   ;;  %v22142_v2 = vld [vmem:[#allocation5 + $0x874] ss:$36 sps:$4 sm:$0xff]  }
  0xbf   :  { %2922 = vmatpush1.bf16.msra.mxu0 %v22053_v4  ;;  %v22140_v4 = vld [vmem:[#allocation5 + $0x870] ss:$36 sps:$4 sm:$0xff]  }
  0xc0   :  { %3084 = vmatpush1.bf16.msra.mxu1 %v22050_v3  ;;  %2932 = vmatprep.subr.bf16.mxu0 %v22057_v5  ;;  %v22145_v3 = vld [vmem:[#allocation5 + $0x834] ss:$36 sps:$4 sm:$0xff]  }
  0xc1   :  { %3085 = vmatprep.subr.bf16.mxu1 %v22060_v6  ;;  %v22143_v5 = vld [vmem:[#allocation5 + $0x830] ss:$36 sps:$4 sm:$0xff]   ;;  %v22148_v6 = vld [vmem:[#allocation5 + $0x8bc] ss:$36 sps:$4 sm:$0xff]  }
  0xc2   :  { %2924 = vmatmul.mubr.bf16.vlgmr.msra.gmra.mrb[0].mxu0 %v24869_v8 }
  0xc3   :  { %2933 = vmatpush1.bf16.msra.mxu0 %v22055_v7  ;;  %2964 = vmatprep.mubr.bf16.mxu0 %v24877_v35  ;;  %v22151_v7 = vld [vmem:[#allocation5 + $0x87c] ss:$36 sps:$4 sm:$0xff]  }
  0xc4   :  { %3086 = vmatpush1.bf16.msra.mxu1 %v22058_v9  ;;  %2934 = vmatprep.subr.bf16.mxu0 %v22064_v10  ;;  %v22146_v9 = vld [vmem:[#allocation5 + $0x8b8] ss:$36 sps:$4 sm:$0xff]  }
  0xc5   :  { %3096 = vmatprep.subr.bf16.mxu1 %v22067_v11  ;;  %v22149_v10 = vld [vmem:[#allocation5 + $0x878] ss:$36 sps:$4 sm:$0xff]   ;;  %v22155_v11 = vld [vmem:[#allocation5 + $0x904] ss:$36 sps:$4 sm:$0xff]  }
  0xc7   :  { %3088 = vmatmul.mubr.bf16.vlgmr.msra.gmra.mrb[4].mxu1 %v24869_v8  ;;  %2935 = vmatpush1.bf16.msra.mxu0 %v22062_v12  ;;  %v22158_v12 = vld [vmem:[#allocation5 + $0x8c4] ss:$36 sps:$4 sm:$0xff]  }
  0xc8   :  { %3097 = vmatpush1.bf16.msra.mxu1 %v22065_v13  ;;  %2936 = vmatprep.subr.bf16.mxu0 %v22070_v14  ;;  %v22153_v13 = vld [vmem:[#allocation5 + $0x900] ss:$36 sps:$4 sm:$0xff]  }
  0xc9   :  { %3098 = vmatprep.subr.bf16.mxu1 %v22073_v15  ;;  %3128 = vmatprep.mubr.bf16.mxu1 %v24877_v35  ;;  %v22156_v14 = vld [vmem:[#allocation5 + $0x8c0] ss:$36 sps:$4 sm:$0xff]   ;;  %v24883_v15 = vcombine.low %v24873_v32, %v24873_v32 }
  0xca   :  { %v22178_v32 = vld [vmem:[#allocation5 + $0xa20] ss:$36 sps:$4 sm:$0xff]  }
  0xcb   :  { %2937 = vmatpush1.bf16.msra.mxu0 %v22068_v16  ;;  %v22162_v16 = vld [vmem:[#allocation5 + $0x94c] ss:$36 sps:$4 sm:$0xff]  }
  0xcc   :  { %3099 = vmatpush1.bf16.msra.mxu1 %v22071_v17  ;;  %2938 = vmatprep.subr.bf16.mxu0 %v22076_v18  ;;  %v22165_v17 = vld [vmem:[#allocation5 + $0x90c] ss:$36 sps:$4 sm:$0xff]   ;;  %v24885_v18 = vld [vmem:[#allocation2 + $0x10] sm:$0xff] }
  0xcd   :  { %3100 = vmatprep.subr.bf16.mxu1 %v22079_v19  ;;  %v24889_v19 = vcombine.high %v24885_v18, %v24885_v18 }
  0xcf   :  { %2939 = vmatpush1.bf16.msra.mxu0 %v22074_v20  ;;  %v22160_v20 = vld [vmem:[#allocation5 + $0x948] ss:$36 sps:$4 sm:$0xff]  }
  0xd0   :  { %3101 = vmatpush1.bf16.msra.mxu1 %v22077_v21  ;;  %2940 = vmatprep.subr.bf16.mxu0 %v22082_v22  ;;  %v22163_v21 = vld [vmem:[#allocation5 + $0x908] ss:$36 sps:$4 sm:$0xff]   ;;  %v22168_v22 = vld [vmem:[#allocation5 + $0x994] ss:$36 sps:$4 sm:$0xff]  }
  0xd1   :  { %3102 = vmatprep.subr.bf16.mxu1 %v22085_v23  ;;  %v22171_v23 = vld [vmem:[#allocation5 + $0x954] ss:$36 sps:$4 sm:$0xff]  }
  0xd3   :  { %2941 = vmatpush1.bf16.msra.mxu0 %v22080_v24  ;;  %v22166_v24 = vld [vmem:[#allocation5 + $0x990] ss:$36 sps:$4 sm:$0xff]  }
  0xd4   :  { %3103 = vmatpush1.bf16.msra.mxu1 %v22083_v25  ;;  %2942 = vmatprep.subr.bf16.mxu0 %v22088_v26  ;;  %v22169_v25 = vld [vmem:[#allocation5 + $0x950] ss:$36 sps:$4 sm:$0xff]   ;;  %v22174_v26 = vld [vmem:[#allocation5 + $0x9dc] ss:$36 sps:$4 sm:$0xff]  }
  0xd5   :  { %3104 = vmatprep.subr.bf16.mxu1 %v22091_v27  ;;  %v22177_v27 = vld [vmem:[#allocation5 + $0x99c] ss:$36 sps:$4 sm:$0xff]  }
  0xd7   :  { %2943 = vmatpush1.bf16.msra.mxu0 %v22086_v28  ;;  %v22172_v28 = vld [vmem:[#allocation5 + $0x9d8] ss:$36 sps:$4 sm:$0xff]  }
  0xd8   :  { %3105 = vmatpush1.bf16.msra.mxu1 %v22089_v29  ;;  %2944 = vmatprep.subr.bf16.mxu0 %v22094_v30  ;;  %v22175_v29 = vld [vmem:[#allocation5 + $0x998] ss:$36 sps:$4 sm:$0xff]   ;;  %v22180_v30 = vld [vmem:[#allocation5 + $0xa24] ss:$36 sps:$4 sm:$0xff]  }
  0xd9   :  { %3106 = vmatprep.subr.bf16.mxu1 %v22097_v31  ;;  %v22183_v31 = vld [vmem:[#allocation5 + $0x9e4] ss:$36 sps:$4 sm:$0xff]  }
  0xdb   :  { %2945 = vmatpush1.bf16.msra.mxu0 %v22092_v33  ;;  %v22181_v33 = vld [vmem:[#allocation5 + $0x9e0] ss:$36 sps:$4 sm:$0xff]  }
  0xdc   :  { %3107 = vmatpush1.bf16.msra.mxu1 %v22095_v34  ;;  %2946 = vmatprep.subr.bf16.mxu0 %v22100_v36  ;;  %v22186_v34 = vld [vmem:[#allocation5 + $0xa6c] ss:$36 sps:$4 sm:$0xff]  }
  0xdd   :  { %3108 = vmatprep.subr.bf16.mxu1 %v22103_v37  ;;  %v22189_v36 = vld [vmem:[#allocation5 + $0xa2c] ss:$36 sps:$4 sm:$0xff]  }
  0xde   :  { %v22184_v37 = vld [vmem:[#allocation5 + $0xa68] ss:$36 sps:$4 sm:$0xff]  }
  0xdf   :  { %2947 = vmatpush1.bf16.msra.mxu0 %v22098_v38  ;;  %v22187_v38 = vld [vmem:[#allocation5 + $0xa28] ss:$36 sps:$4 sm:$0xff]  }
  0xe0   :  { %3109 = vmatpush1.bf16.msra.mxu1 %v22101_v39  ;;  %2948 = vmatprep.subr.bf16.mxu0 %v22106_v40  ;;  %v22192_v39 = vld [vmem:[#allocation5 + $0xab4] ss:$36 sps:$4 sm:$0xff]  }
  0xe1   :  { %3110 = vmatprep.subr.bf16.mxu1 %v22109_v41  ;;  %v22195_v40 = vld [vmem:[#allocation5 + $0xa74] ss:$36 sps:$4 sm:$0xff]  }
  0xe2   :  { %v22190_v41 = vld [vmem:[#allocation5 + $0xab0] ss:$36 sps:$4 sm:$0xff]  }
  0xe3   :  { %2949 = vmatpush1.bf16.msra.mxu0 %v22104_v42  ;;  %v22193_v42 = vld [vmem:[#allocation5 + $0xa70] ss:$36 sps:$4 sm:$0xff]  }
  0xe4   :  { %3111 = vmatpush1.bf16.msra.mxu1 %v22107_v43  ;;  %2950 = vmatprep.subr.bf16.mxu0 %v22112_v44  ;;  %v22198_v43 = vld [vmem:[#allocation5 + $0xafc] ss:$36 sps:$4 sm:$0xff]  }
  0xe5   :  { %3112 = vmatprep.subr.bf16.mxu1 %v22115_v45  ;;  %v22201_v44 = vld [vmem:[#allocation5 + $0xabc] ss:$36 sps:$4 sm:$0xff]  }
  0xe6   :  { %v22196_v45 = vld [vmem:[#allocation5 + $0xaf8] ss:$36 sps:$4 sm:$0xff]  }
  0xe7   :  { %2951 = vmatpush1.bf16.msra.mxu0 %v22110_v46  ;;  %v22199_v46 = vld [vmem:[#allocation5 + $0xab8] ss:$36 sps:$4 sm:$0xff]  }
  0xe8   :  { %3113 = vmatpush1.bf16.msra.mxu1 %v22113_v47  ;;  %2952 = vmatprep.subr.bf16.mxu0 %v22118_v48  ;;  %v22204_v47 = vld [vmem:[#allocation5 + $0xb44] ss:$36 sps:$4 sm:$0xff]  }
  0xe9   :  { %3114 = vmatprep.subr.bf16.mxu1 %v22121_v49  ;;  %v22207_v48 = vld [vmem:[#allocation5 + $0xb04] ss:$36 sps:$4 sm:$0xff]  }
  0xea   :  { %v22202_v49 = vld [vmem:[#allocation5 + $0xb40] ss:$36 sps:$4 sm:$0xff]  }
  0xeb   :  { %2953 = vmatpush1.bf16.msra.mxu0 %v22116_v50  ;;  %v22205_v50 = vld [vmem:[#allocation5 + $0xb00] ss:$36 sps:$4 sm:$0xff]  }
  0xec   :  { %3115 = vmatpush1.bf16.msra.mxu1 %v22119_v51  ;;  %2954 = vmatprep.subr.bf16.mxu0 %v22124_v53  ;;  %v22210_v51 = vld [vmem:[#allocation5 + $0xb8c] ss:$36 sps:$4 sm:$0xff]  }
  0xed   :  { %3116 = vmatprep.subr.bf16.mxu1 %v22127_v54  ;;  %v22213_v53 = vld [vmem:[#allocation5 + $0xb4c] ss:$36 sps:$4 sm:$0xff]  }
  0xee   :  { %v22208_v54 = vld [vmem:[#allocation5 + $0xb88] ss:$36 sps:$4 sm:$0xff]  }
  0xef   :  { %2955 = vmatpush1.bf16.msra.mxu0 %v22122_v55  ;;  %v22211_v55 = vld [vmem:[#allocation5 + $0xb48] ss:$36 sps:$4 sm:$0xff]  }
  0xf0   :  { %3117 = vmatpush1.bf16.msra.mxu1 %v22125_v56  ;;  %2956 = vmatprep.subr.bf16.mxu0 %v22130_v57  ;;  %v22216_v56 = vld [vmem:[#allocation5 + $0xbd4] ss:$36 sps:$4 sm:$0xff]  }
  0xf1   :  { %3118 = vmatprep.subr.bf16.mxu1 %v22133_v58  ;;  %v22219_v57 = vld [vmem:[#allocation5 + $0xb94] ss:$36 sps:$4 sm:$0xff]  }
  0xf2   :  { %v22214_v58 = vld [vmem:[#allocation5 + $0xbd0] ss:$36 sps:$4 sm:$0xff]  }
  0xf3   :  { %2957 = vmatpush1.bf16.msra.mxu0 %v22128_v59  ;;  %v22217_v59 = vld [vmem:[#allocation5 + $0xb90] ss:$36 sps:$4 sm:$0xff]  }
  0xf4   :  { %3119 = vmatpush1.bf16.msra.mxu1 %v22131_v60  ;;  %2958 = vmatprep.subr.bf16.mxu0 %v22136_v61  ;;  %v22222_v60 = vld [vmem:[#allocation5 + $0xc1c] ss:$36 sps:$4 sm:$0xff]  }
  0xf5   :  { %3120 = vmatprep.subr.bf16.mxu1 %v22139_v62  ;;  %v22225_v61 = vld [vmem:[#allocation5 + $0xbdc] ss:$36 sps:$4 sm:$0xff]  }
  0xf6   :  { %v22220_v62 = vld [vmem:[#allocation5 + $0xc18] ss:$36 sps:$4 sm:$0xff]  }
  0xf7   :  { %2959 = vmatpush1.bf16.msra.mxu0 %v22134_v63  ;;  %v22223_v63 = vld [vmem:[#allocation5 + $0xbd8] ss:$36 sps:$4 sm:$0xff]  }
  0xf8   :  { %3121 = vmatpush1.bf16.msra.mxu1 %v22137_v1  ;;  %2960 = vmatprep.subr.bf16.mxu0 %v22142_v2  ;;  %v22228_v1 = vld [vmem:[#allocation5 + $0xc64] ss:$36 sps:$4 sm:$0xff]  }
  0xf9   :  { %3122 = vmatprep.subr.bf16.mxu1 %v22145_v3  ;;  %v22231_v2 = vld [vmem:[#allocation5 + $0xc24] ss:$36 sps:$4 sm:$0xff]  }
  0xfa   :  { %v22226_v3 = vld [vmem:[#allocation5 + $0xc60] ss:$36 sps:$4 sm:$0xff]  }
  0xfb   :  { %2961 = vmatpush1.bf16.msra.mxu0 %v22140_v4  ;;  %v22229_v4 = vld [vmem:[#allocation5 + $0xc20] ss:$36 sps:$4 sm:$0xff]  }
  0xfc   :  { %3123 = vmatpush1.bf16.msra.mxu1 %v22143_v5  ;;  %2962 = vmatprep.subr.bf16.mxu0 %v22148_v6  ;;  %v22234_v5 = vld [vmem:[#allocation5 + $0xcac] ss:$36 sps:$4 sm:$0xff]  }
  0xfd   :  { %3124 = vmatprep.subr.bf16.mxu1 %v22151_v7  ;;  %v22237_v6 = vld [vmem:[#allocation5 + $0xc6c] ss:$36 sps:$4 sm:$0xff]  }
  0xfe   :  { %v22232_v7 = vld [vmem:[#allocation5 + $0xca8] ss:$36 sps:$4 sm:$0xff]  }
  0xff   :  { %2963 = vmatpush1.bf16.msra.mxu0 %v22146_v9  ;;  %v22235_v9 = vld [vmem:[#allocation5 + $0xc68] ss:$36 sps:$4 sm:$0xff]  }
 0x100   :  { %3125 = vmatpush1.bf16.msra.mxu1 %v22149_v10  ;;  %2973 = vmatprep.subr.bf16.mxu0 %v22155_v11  ;;  %v22240_v10 = vld [vmem:[#allocation5 + $0xcf4] ss:$36 sps:$4 sm:$0xff]  }
 0x101   :  { %3126 = vmatprep.subr.bf16.mxu1 %v22158_v12  ;;  %v22243_v11 = vld [vmem:[#allocation5 + $0xcb4] ss:$36 sps:$4 sm:$0xff]  }
 0x102   :  { %2965 = vmatmul.mubr.bf16.vlgmr.msra.gmra.mrb[0].mxu0 %v24883_v15  ;;  %v22238_v12 = vld [vmem:[#allocation5 + $0xcf0] ss:$36 sps:$4 sm:$0xff]  }
 0x103   :  { %2974 = vmatpush1.bf16.msra.mxu0 %v22153_v13  ;;  %3005 = vmatprep.mubr.bf16.mxu0 %v24889_v19  ;;  %v22241_v13 = vld [vmem:[#allocation5 + $0xcb0] ss:$36 sps:$4 sm:$0xff]  }
 0x104   :  { %3127 = vmatpush1.bf16.msra.mxu1 %v22156_v14  ;;  %2975 = vmatprep.subr.bf16.mxu0 %v22162_v16  ;;  %v22246_v14 = vld [vmem:[#allocation5 + $0xd3c] ss:$36 sps:$4 sm:$0xff]  }
 0x105   :  { %3137 = vmatprep.subr.bf16.mxu1 %v22165_v17  ;;  %v22249_v16 = vld [vmem:[#allocation5 + $0xcfc] ss:$36 sps:$4 sm:$0xff]  }
 0x106   :  { %v22244_v17 = vld [vmem:[#allocation5 + $0xd38] ss:$36 sps:$4 sm:$0xff]  }
 0x107   :  { %3129 = vmatmul.mubr.bf16.vlgmr.msra.gmra.mrb[4].mxu1 %v24883_v15  ;;  %2976 = vmatpush1.bf16.msra.mxu0 %v22160_v20  ;;  %v22247_v20 = vld [vmem:[#allocation5 + $0xcf8] ss:$36 sps:$4 sm:$0xff]  }
 0x108   :  { %3138 = vmatpush1.bf16.msra.mxu1 %v22163_v21  ;;  %2977 = vmatprep.subr.bf16.mxu0 %v22168_v22  ;;  %v22254_v21 = vld [vmem:[#allocation5 + $0xd44] ss:$36 sps:$4 sm:$0xff]   ;;  %v22257_v22 = vld [vmem:[#allocation5 + $0x14] ss:$36 sps:$4 sm:$0xff]  }
 0x109   :  { %3139 = vmatprep.subr.bf16.mxu1 %v22171_v23  ;;  %3169 = vmatprep.mubr.bf16.mxu1 %v24889_v19  ;;  %v24897_v23 = vcombine.low %v24885_v18, %v24885_v18  ;;  %v22264_v18 = vld [vmem:[#allocation5 + $0xa0] ss:$36 sps:$4 sm:$0xff]  }
 0x10b   :  { %2978 = vmatpush1.bf16.msra.mxu0 %v22166_v24  ;;  %v22252_v24 = vld [vmem:[#allocation5 + $0xd40] ss:$36 sps:$4 sm:$0xff]  }
 0x10c   :  { %3140 = vmatpush1.bf16.msra.mxu1 %v22169_v25  ;;  %2979 = vmatprep.subr.bf16.mxu0 %v22174_v26  ;;  %v22255_v25 = vld [vmem:[#allocation5 + $0x10] ss:$36 sps:$4 sm:$0xff]  }
 0x10d   :  { %3141 = vmatprep.subr.bf16.mxu1 %v22177_v27  ;;  %v22260_v26 = vld [vmem:[#allocation5 + $0xd8c] ss:$36 sps:$4 sm:$0xff]   ;;  %v22263_v27 = vld [vmem:[#allocation5 + $0x5c] ss:$36 sps:$4 sm:$0xff]  }
 0x10f   :  { %2980 = vmatpush1.bf16.msra.mxu0 %v22172_v28  ;;  %v22258_v28 = vld [vmem:[#allocation5 + $0xd88] ss:$36 sps:$4 sm:$0xff]  }
 0x110   :  { %3142 = vmatpush1.bf16.msra.mxu1 %v22175_v29  ;;  %2981 = vmatprep.subr.bf16.mxu0 %v22180_v30  ;;  %v22261_v29 = vld [vmem:[#allocation5 + $0x58] ss:$36 sps:$4 sm:$0xff]   ;;  %v22266_v30 = vld [vmem:[#allocation5 + $0xa4] ss:$36 sps:$4 sm:$0xff]  }
 0x111   :  { %3143 = vmatprep.subr.bf16.mxu1 %v22183_v31  ;;  %v22275_v31 = vld [vmem:[#allocation5 + $0xd94] ss:$36 sps:$4 sm:$0xff]  }
 0x113   :  { %2982 = vmatpush1.bf16.msra.mxu0 %v22178_v32  ;;  %v22269_v32 = vld [vmem:[#allocation5 + $0xec] ss:$36 sps:$4 sm:$0xff]  }
 0x114   :  { %3144 = vmatpush1.bf16.msra.mxu1 %v22181_v33  ;;  %2983 = vmatprep.subr.bf16.mxu0 %v22186_v34  ;;  %v22267_v33 = vld [vmem:[#allocation5 + $0xe8] ss:$36 sps:$4 sm:$0xff]   ;;  %v22272_v34 = vld [vmem:[#allocation5 + $0x134] ss:$36 sps:$4 sm:$0xff]  }
 0x115   :  { %3145 = vmatprep.subr.bf16.mxu1 %v22189_v36  ;;  %v22270_v36 = vld [vmem:[#allocation5 + $0x130] ss:$36 sps:$4 sm:$0xff]  }
 0x117   :  { %2984 = vmatpush1.bf16.msra.mxu0 %v22184_v37  ;;  %v22273_v37 = vld [vmem:[#allocation5 + $0xd90] ss:$36 sps:$4 sm:$0xff]  }
 0x118   :  { %3146 = vmatpush1.bf16.msra.mxu1 %v22187_v38  ;;  %2985 = vmatprep.subr.bf16.mxu0 %v22192_v39  ;;  %v22278_v38 = vld [vmem:[#allocation5 + $0x17c] ss:$36 sps:$4 sm:$0xff]  }
 0x119   :  { %3147 = vmatprep.subr.bf16.mxu1 %v22195_v40  ;;  %v22281_v39 = vld [vmem:[#allocation5 + $0x1c] ss:$36 sps:$4 sm:$0xff]  }
 0x11a   :  { %v24528_v40 = vld [vmem:[#allocation2 + $0x18] ss:$0 sps:$4 sm:$0xff]  }
 0x11b   :  { %2986 = vmatpush1.bf16.msra.mxu0 %v22190_v41  ;;  %v22276_v41 = vld [vmem:[#allocation5 + $0x178] ss:$36 sps:$4 sm:$0xff]  }
 0x11c   :  { %3148 = vmatpush1.bf16.msra.mxu1 %v22193_v42  ;;  %2987 = vmatprep.subr.bf16.mxu0 %v22198_v43  ;;  %v22284_v42 = vld [vmem:[#allocation5 + $0x1c4] ss:$36 sps:$4 sm:$0xff]   ;;  %v22279_v43 = vld [vmem:[#allocation5 + $0x18] ss:$36 sps:$4 sm:$0xff]  }
 0x11d   :  { %3149 = vmatprep.subr.bf16.mxu1 %v22201_v44  ;;  %v22282_v44 = vld [vmem:[#allocation5 + $0x1c0] ss:$36 sps:$4 sm:$0xff]  }
 0x11f   :  { %2988 = vmatpush1.bf16.msra.mxu0 %v22196_v45  ;;  %v22287_v45 = vld [vmem:[#allocation5 + $0x64] ss:$36 sps:$4 sm:$0xff]  }
 0x120   :  { %3150 = vmatpush1.bf16.msra.mxu1 %v22199_v46  ;;  %2989 = vmatprep.subr.bf16.mxu0 %v22204_v47  ;;  %v22290_v46 = vld [vmem:[#allocation5 + $0x20c] ss:$36 sps:$4 sm:$0xff]  }
 0x121   :  { %3151 = vmatprep.subr.bf16.mxu1 %v22207_v48 }
 0x123   :  { %2990 = vmatpush1.bf16.msra.mxu0 %v22202_v49  ;;  %v22285_v49 = vld [vmem:[#allocation5 + $0x60] ss:$36 sps:$4 sm:$0xff]  }
 0x124   :  { %3152 = vmatpush1.bf16.msra.mxu1 %v22205_v50  ;;  %2991 = vmatprep.subr.bf16.mxu0 %v22210_v51  ;;  %v22288_v51 = vld [vmem:[#allocation5 + $0x208] ss:$36 sps:$4 sm:$0xff]  }
 0x125   :  { %3153 = vmatprep.subr.bf16.mxu1 %v22213_v53 }
 0x127   :  { %2992 = vmatpush1.bf16.msra.mxu0 %v22208_v54  ;;  %v22293_v54 = vld [vmem:[#allocation5 + $0xac] ss:$36 sps:$4 sm:$0xff]  }
 0x128   :  { %3154 = vmatpush1.bf16.msra.mxu1 %v22211_v55  ;;  %2993 = vmatprep.subr.bf16.mxu0 %v22216_v56  ;;  %v22296_v55 = vld [vmem:[#allocation5 + $0x254] ss:$36 sps:$4 sm:$0xff]   ;;  %v22291_v56 = vld [vmem:[#allocation5 + $0xa8] ss:$36 sps:$4 sm:$0xff]  }
 0x129   :  { %3155 = vmatprep.subr.bf16.mxu1 %v22219_v57  ;;  %v22294_v57 = vld [vmem:[#allocation5 + $0x250] ss:$36 sps:$4 sm:$0xff]  }
 0x12b   :  { %2994 = vmatpush1.bf16.msra.mxu0 %v22214_v58  ;;  %v22299_v58 = vld [vmem:[#allocation5 + $0xf4] ss:$36 sps:$4 sm:$0xff]  }
 0x12c   :  { %3156 = vmatpush1.bf16.msra.mxu1 %v22217_v59  ;;  %2995 = vmatprep.subr.bf16.mxu0 %v22222_v60  ;;  %v22302_v59 = vld [vmem:[#allocation5 + $0x29c] ss:$36 sps:$4 sm:$0xff]   ;;  %v22297_v60 = vld [vmem:[#allocation5 + $0xf0] ss:$36 sps:$4 sm:$0xff]  }
 0x12d   :  { %3157 = vmatprep.subr.bf16.mxu1 %v22225_v61  ;;  %v22300_v61 = vld [vmem:[#allocation5 + $0x298] ss:$36 sps:$4 sm:$0xff]  }
 0x12f   :  { %2996 = vmatpush1.bf16.msra.mxu0 %v22220_v62  ;;  %v22305_v62 = vld [vmem:[#allocation5 + $0x13c] ss:$36 sps:$4 sm:$0xff]  }
 0x130   :  { %3158 = vmatpush1.bf16.msra.mxu1 %v22223_v63  ;;  %2997 = vmatprep.subr.bf16.mxu0 %v22228_v1  ;;  %v22308_v63 = vld [vmem:[#allocation5 + $0x2e4] ss:$36 sps:$4 sm:$0xff]   ;;  %v22303_v1 = vld [vmem:[#allocation5 + $0x138] ss:$36 sps:$4 sm:$0xff]  }
 0x131   :  { %3159 = vmatprep.subr.bf16.mxu1 %v22231_v2  ;;  %v22306_v2 = vld [vmem:[#allocation5 + $0x2e0] ss:$36 sps:$4 sm:$0xff]  }
 0x133   :  { %2998 = vmatpush1.bf16.msra.mxu0 %v22226_v3  ;;  %v22311_v3 = vld [vmem:[#allocation5 + $0x184] ss:$36 sps:$4 sm:$0xff]  }
 0x134   :  { %3160 = vmatpush1.bf16.msra.mxu1 %v22229_v4  ;;  %2999 = vmatprep.subr.bf16.mxu0 %v22234_v5  ;;  %v22314_v4 = vld [vmem:[#allocation5 + $0x32c] ss:$36 sps:$4 sm:$0xff]   ;;  %v22309_v5 = vld [vmem:[#allocation5 + $0x180] ss:$36 sps:$4 sm:$0xff]  }
 0x135   :  { %3161 = vmatprep.subr.bf16.mxu1 %v22237_v6  ;;  %v22312_v6 = vld [vmem:[#allocation5 + $0x328] ss:$36 sps:$4 sm:$0xff]  }
 0x137   :  { %3000 = vmatpush1.bf16.msra.mxu0 %v22232_v7  ;;  %v22317_v7 = vld [vmem:[#allocation5 + $0x1cc] ss:$36 sps:$4 sm:$0xff]  }
 0x138   :  { %3162 = vmatpush1.bf16.msra.mxu1 %v22235_v9  ;;  %3001 = vmatprep.subr.bf16.mxu0 %v22240_v10  ;;  %v22320_v9 = vld [vmem:[#allocation5 + $0x374] ss:$36 sps:$4 sm:$0xff]   ;;  %v22315_v10 = vld [vmem:[#allocation5 + $0x1c8] ss:$36 sps:$4 sm:$0xff]  }
 0x139   :  { %3163 = vmatprep.subr.bf16.mxu1 %v22243_v11  ;;  %v22318_v11 = vld [vmem:[#allocation5 + $0x370] ss:$36 sps:$4 sm:$0xff]  }
 0x13b   :  { %3002 = vmatpush1.bf16.msra.mxu0 %v22238_v12  ;;  %v22323_v12 = vld [vmem:[#allocation5 + $0x214] ss:$36 sps:$4 sm:$0xff]  }
 0x13c   :  { %3164 = vmatpush1.bf16.msra.mxu1 %v22241_v13  ;;  %3003 = vmatprep.subr.bf16.mxu0 %v22246_v14  ;;  %v22326_v13 = vld [vmem:[#allocation5 + $0x3bc] ss:$36 sps:$4 sm:$0xff]   ;;  %v22321_v14 = vld [vmem:[#allocation5 + $0x210] ss:$36 sps:$4 sm:$0xff]  }
 0x13d   :  { %3165 = vmatprep.subr.bf16.mxu1 %v22249_v16  ;;  %v22324_v16 = vld [vmem:[#allocation5 + $0x3b8] ss:$36 sps:$4 sm:$0xff]  }
 0x13f   :  { %3004 = vmatpush1.bf16.msra.mxu0 %v22244_v17  ;;  %v22329_v17 = vld [vmem:[#allocation5 + $0x25c] ss:$36 sps:$4 sm:$0xff]  }
 0x140   :  { %3166 = vmatpush1.bf16.msra.mxu1 %v22247_v20  ;;  %3219 = vmatprep.subr.bf16.mxu0 %v22257_v22  ;;  %v22332_v20 = vld [vmem:[#allocation5 + $0x404] ss:$36 sps:$4 sm:$0xff]  }
 0x141   :  { %3167 = vmatprep.subr.bf16.mxu1 %v22254_v21  ;;  %v22327_v21 = vld [vmem:[#allocation5 + $0x258] ss:$36 sps:$4 sm:$0xff]   ;;  %v22330_v22 = vld [vmem:[#allocation5 + $0x400] ss:$36 sps:$4 sm:$0xff]  }
 0x142   :  { %3006 = vmatmul.mubr.bf16.vlgmr.msra.gmra.mrb[0].mxu0 %v24897_v23 }
 0x143   :  { %3220 = vmatpush1.bf16.msra.mxu0 %v22255_v25  ;;  %3251 = vmatprep.mubr.bf16.mxu0 %v24865_v52  ;;  %v22338_v25 = vld [vmem:[#allocation5 + $0x44c] ss:$36 sps:$4 sm:$0xff]  }
 0x144   :  { %3168 = vmatpush1.bf16.msra.mxu1 %v22252_v24  ;;  %3221 = vmatprep.subr.bf16.mxu0 %v22263_v27  ;;  %v22335_v24 = vld [vmem:[#allocation5 + $0x2a4] ss:$36 sps:$4 sm:$0xff]  }
 0x145   :  { %3178 = vmatprep.subr.bf16.mxu1 %v22260_v26  ;;  %v22333_v26 = vld [vmem:[#allocation5 + $0x2a0] ss:$36 sps:$4 sm:$0xff]   ;;  %v22336_v27 = vld [vmem:[#allocation5 + $0x448] ss:$36 sps:$4 sm:$0xff]  }
 0x147   :  { %3170 = vmatmul.mubr.bf16.vlgmr.msra.gmra.mrb[4].mxu1 %v24897_v23  ;;  %3222 = vmatpush1.bf16.msra.mxu0 %v22261_v29  ;;  %v22344_v29 = vld [vmem:[#allocation5 + $0x494] ss:$36 sps:$4 sm:$0xff]  }
 0x148   :  { %3179 = vmatpush1.bf16.msra.mxu1 %v22258_v28  ;;  %3223 = vmatprep.subr.bf16.mxu0 %v22266_v30  ;;  %v22341_v28 = vld [vmem:[#allocation5 + $0x2ec] ss:$36 sps:$4 sm:$0xff]  }
 0x149   :  { %3210 = vmatprep.mubr.bf16.mxu1 %v24735_v0  ;;  %3342 = vmatprep.subr.bf16.mxu1 %v22275_v31  ;;  %v22339_v30 = vld [vmem:[#allocation5 + $0x2e8] ss:$36 sps:$4 sm:$0xff]   ;;  %v22342_v31 = vld [vmem:[#allocation5 + $0x490] ss:$36 sps:$4 sm:$0xff]  }
 0x14b   :  { %3224 = vmatpush1.bf16.msra.mxu0 %v22264_v18  ;;  %v22347_v18 = vld [vmem:[#allocation5 + $0x334] ss:$36 sps:$4 sm:$0xff]  }
 0x14c   :  { %3225 = vmatprep.subr.bf16.mxu0 %v22269_v32  ;;  %v22350_v32 = vld [vmem:[#allocation5 + $0x4dc] ss:$36 sps:$4 sm:$0xff]  }
 0x14f   :  { %3226 = vmatpush1.bf16.msra.mxu0 %v22267_v33  ;;  %v22345_v33 = vld [vmem:[#allocation5 + $0x330] ss:$36 sps:$4 sm:$0xff]  }
 0x150   :  { %3227 = vmatprep.subr.bf16.mxu0 %v22272_v34  ;;  %v22348_v34 = vld [vmem:[#allocation5 + $0x4d8] ss:$36 sps:$4 sm:$0xff]  }
 0x153   :  { %19434 = vmatmul.mubr.msk.bf16.vlgmr.msra.gmra.mrb[4].mxu1 %vm2887_vm0, %v24528_v40  ;;  %3228 = vmatpush1.bf16.msra.mxu0 %v22270_v36  ;;  %v22353_v36 = vld [vmem:[#allocation5 + $0x37c] ss:$36 sps:$4 sm:$0xff]  }
 0x154   :  { %3343 = vmatpush1.bf16.msra.mxu1 %v22273_v37  ;;  %3229 = vmatprep.subr.bf16.mxu0 %v22278_v38  ;;  %v22356_v37 = vld [vmem:[#allocation5 + $0x524] ss:$36 sps:$4 sm:$0xff]   ;;  %v22351_v38 = vld [vmem:[#allocation5 + $0x378] ss:$36 sps:$4 sm:$0xff]  }
 0x155   :  { %3374 = vmatprep.mubr.bf16.mxu1 %v24735_v0  ;;  %3383 = vmatprep.subr.bf16.mxu1 %v22281_v39  ;;  %v22354_v39 = vld [vmem:[#allocation5 + $0x520] ss:$36 sps:$4 sm:$0xff]  }
 0x157   :  { %3230 = vmatpush1.bf16.msra.mxu0 %v22276_v41  ;;  %v22362_v41 = vld [vmem:[#allocation5 + $0x56c] ss:$36 sps:$4 sm:$0xff]  }
 0x158   :  { %3231 = vmatprep.subr.bf16.mxu0 %v22284_v42  ;;  %v22357_v42 = vld [vmem:[#allocation5 + $0x3c0] ss:$36 sps:$4 sm:$0xff]  }
 0x15a   :  { %v24905_v47 = vpop.f32.mrb[0].mxu1 }
 0x15b   :  { %v24907_v48 = vpop.f32.mrb[1].mxu1  ;;  %19435 = vmatmul.mubr.msk.bf16.vlgmr.msra.gmra.mrb[8].mxu1 %vm2887_vm0, %v24528_v40  ;;  %3232 = vmatpush1.bf16.msra.mxu0 %v22282_v44  ;;  %v22359_v40 = vld [vmem:[#allocation5 + $0x3c4] ss:$36 sps:$4 sm:$0xff]   ;;  %v22365_v44 = vld [vmem:[#allocation5 + $0x40c] ss:$36 sps:$4 sm:$0xff]  }
 0x15c   :  { %3384 = vmatpush1.bf16.msra.mxu1 %v22279_v43  ;;  %v3052_v50 = vpop.f32.mrb[2].mxu1  ;;  %3233 = vmatprep.subr.bf16.mxu0 %v22290_v46  ;;  %v22360_v43 = vld [vmem:[#allocation5 + $0x568] ss:$36 sps:$4 sm:$0xff]  }
 0x15d   :  { %v3053_v53 = vpop.f32.mrb[3].mxu1  ;;  %3385 = vmatprep.subr.bf16.mxu1 %v22287_v45  ;;  %3415 = vmatprep.mubr.bf16.mxu1 %v24865_v52  ;;  %v22368_v45 = vld [vmem:[#allocation5 + $0x5b4] ss:$36 sps:$4 sm:$0xff]   ;;  %v22363_v46 = vld [vmem:[#allocation5 + $0x408] ss:$36 sps:$4 sm:$0xff]  }
 0x15e   :  { %v22371_v50 = vld [vmem:[#allocation5 + $0x454] ss:$36 sps:$4 sm:$0xff]  }
 0x15f   :  { %3234 = vmatpush1.bf16.msra.mxu0 %v22288_v51  ;;  %v22374_v51 = vld [vmem:[#allocation5 + $0x5fc] ss:$36 sps:$4 sm:$0xff]   ;;  %v22369_v53 = vld [vmem:[#allocation5 + $0x450] ss:$36 sps:$4 sm:$0xff]  }
 0x160   :  { %3386 = vmatpush1.bf16.msra.mxu1 %v22285_v49  ;;  %3235 = vmatprep.subr.bf16.mxu0 %v22296_v55  ;;  %v22366_v49 = vld [vmem:[#allocation5 + $0x5b0] ss:$36 sps:$4 sm:$0xff]   ;;  %v22377_v55 = vld [vmem:[#allocation5 + $0x49c] ss:$36 sps:$4 sm:$0xff]  }
 0x161   :  { %3387 = vmatprep.subr.bf16.mxu1 %v22293_v54  ;;  %v22372_v54 = vld [vmem:[#allocation5 + $0x5f8] ss:$36 sps:$4 sm:$0xff]  }
 0x163   :  { %3236 = vmatpush1.bf16.msra.mxu0 %v22294_v57  ;;  %v22375_v57 = vld [vmem:[#allocation5 + $0x498] ss:$36 sps:$4 sm:$0xff]  }
 0x164   :  { %3388 = vmatpush1.bf16.msra.mxu1 %v22291_v56  ;;  %3237 = vmatprep.subr.bf16.mxu0 %v22302_v59  ;;  %v22380_v56 = vld [vmem:[#allocation5 + $0x644] ss:$36 sps:$4 sm:$0xff]  }
 0x165   :  { %3389 = vmatprep.subr.bf16.mxu1 %v22299_v58  ;;  %v22378_v58 = vld [vmem:[#allocation5 + $0x640] ss:$36 sps:$4 sm:$0xff]  }
 0x166   :  { %v22383_v59 = vld [vmem:[#allocation5 + $0x4e4] ss:$36 sps:$4 sm:$0xff]  }
 0x167   :  { %3238 = vmatpush1.bf16.msra.mxu0 %v22300_v61  ;;  %v22381_v61 = vld [vmem:[#allocation5 + $0x4e0] ss:$36 sps:$4 sm:$0xff]  }
 0x168   :  { %3390 = vmatpush1.bf16.msra.mxu1 %v22297_v60  ;;  %3239 = vmatprep.subr.bf16.mxu0 %v22308_v63  ;;  %v22386_v60 = vld [vmem:[#allocation5 + $0x68c] ss:$36 sps:$4 sm:$0xff]  }
 0x169   :  { %3391 = vmatprep.subr.bf16.mxu1 %v22305_v62  ;;  %v22384_v62 = vld [vmem:[#allocation5 + $0x688] ss:$36 sps:$4 sm:$0xff]  }
 0x16a   :  { %v22389_v63 = vld [vmem:[#allocation5 + $0x52c] ss:$36 sps:$4 sm:$0xff]  }
 0x16b   :  { %3240 = vmatpush1.bf16.msra.mxu0 %v22306_v2  ;;  %v22387_v2 = vld [vmem:[#allocation5 + $0x528] ss:$36 sps:$4 sm:$0xff]  }
 0x16c   :  { %3392 = vmatpush1.bf16.msra.mxu1 %v22303_v1  ;;  %3241 = vmatprep.subr.bf16.mxu0 %v22314_v4  ;;  %v22392_v1 = vld [vmem:[#allocation5 + $0x6d4] ss:$36 sps:$4 sm:$0xff]  }
 0x16d   :  { %3393 = vmatprep.subr.bf16.mxu1 %v22311_v3  ;;  %v22390_v3 = vld [vmem:[#allocation5 + $0x6d0] ss:$36 sps:$4 sm:$0xff]  }
 0x16e   :  { %v22395_v4 = vld [vmem:[#allocation5 + $0x574] ss:$36 sps:$4 sm:$0xff]  }
 0x16f   :  { %3242 = vmatpush1.bf16.msra.mxu0 %v22312_v6  ;;  %v22393_v6 = vld [vmem:[#allocation5 + $0x570] ss:$36 sps:$4 sm:$0xff]  }
 0x170   :  { %3394 = vmatpush1.bf16.msra.mxu1 %v22309_v5  ;;  %3243 = vmatprep.subr.bf16.mxu0 %v22320_v9  ;;  %v22398_v5 = vld [vmem:[#allocation5 + $0x71c] ss:$36 sps:$4 sm:$0xff]  }
 0x171   :  { %3395 = vmatprep.subr.bf16.mxu1 %v22317_v7  ;;  %v22396_v7 = vld [vmem:[#allocation5 + $0x718] ss:$36 sps:$4 sm:$0xff]  }
 0x172   :  { %v22401_v9 = vld [vmem:[#allocation5 + $0x5bc] ss:$36 sps:$4 sm:$0xff]  }
 0x173   :  { %3244 = vmatpush1.bf16.msra.mxu0 %v22318_v11  ;;  %v22399_v11 = vld [vmem:[#allocation5 + $0x5b8] ss:$36 sps:$4 sm:$0xff]  }
 0x174   :  { %3396 = vmatpush1.bf16.msra.mxu1 %v22315_v10  ;;  %3245 = vmatprep.subr.bf16.mxu0 %v22326_v13  ;;  %v22404_v10 = vld [vmem:[#allocation5 + $0x764] ss:$36 sps:$4 sm:$0xff]  }
 0x175   :  { %3397 = vmatprep.subr.bf16.mxu1 %v22323_v12  ;;  %v22402_v12 = vld [vmem:[#allocation5 + $0x760] ss:$36 sps:$4 sm:$0xff]  }
 0x176   :  { %v22407_v13 = vld [vmem:[#allocation5 + $0x604] ss:$36 sps:$4 sm:$0xff]  }
 0x177   :  { %3246 = vmatpush1.bf16.msra.mxu0 %v22324_v16  ;;  %v22405_v16 = vld [vmem:[#allocation5 + $0x600] ss:$36 sps:$4 sm:$0xff]  }
 0x178   :  { %3398 = vmatpush1.bf16.msra.mxu1 %v22321_v14  ;;  %3247 = vmatprep.subr.bf16.mxu0 %v22332_v20  ;;  %v22410_v14 = vld [vmem:[#allocation5 + $0x7ac] ss:$36 sps:$4 sm:$0xff]  }
 0x179   :  { %3399 = vmatprep.subr.bf16.mxu1 %v22329_v17  ;;  %v22408_v17 = vld [vmem:[#allocation5 + $0x7a8] ss:$36 sps:$4 sm:$0xff]  }
 0x17a   :  { %v22413_v20 = vld [vmem:[#allocation5 + $0x64c] ss:$36 sps:$4 sm:$0xff]  }
 0x17b   :  { %3248 = vmatpush1.bf16.msra.mxu0 %v22330_v22  ;;  %v22411_v22 = vld [vmem:[#allocation5 + $0x648] ss:$36 sps:$4 sm:$0xff]  }
 0x17c   :  { %3400 = vmatpush1.bf16.msra.mxu1 %v22327_v21  ;;  %3249 = vmatprep.subr.bf16.mxu0 %v22338_v25  ;;  %v22416_v21 = vld [vmem:[#allocation5 + $0x7f4] ss:$36 sps:$4 sm:$0xff]  }
 0x17d   :  { %3401 = vmatprep.subr.bf16.mxu1 %v22335_v24  ;;  %v22414_v24 = vld [vmem:[#allocation5 + $0x7f0] ss:$36 sps:$4 sm:$0xff]  }
 0x17e   :  { %v22419_v25 = vld [vmem:[#allocation5 + $0x694] ss:$36 sps:$4 sm:$0xff]  }
 0x17f   :  { %3250 = vmatpush1.bf16.msra.mxu0 %v22336_v27  ;;  %v22417_v27 = vld [vmem:[#allocation5 + $0x690] ss:$36 sps:$4 sm:$0xff]  }
 0x180   :  { %3402 = vmatpush1.bf16.msra.mxu1 %v22333_v26  ;;  %3260 = vmatprep.subr.bf16.mxu0 %v22344_v29  ;;  %v22422_v26 = vld [vmem:[#allocation5 + $0x83c] ss:$36 sps:$4 sm:$0xff]  }
 0x181   :  { %3403 = vmatprep.subr.bf16.mxu1 %v22341_v28  ;;  %v22420_v28 = vld [vmem:[#allocation5 + $0x838] ss:$36 sps:$4 sm:$0xff]  }
 0x182   :  { %3252 = vmatmul.mubr.bf16.vlgmr.msra.gmra.mrb[4].mxu0 %v24869_v8  ;;  %v22425_v29 = vld [vmem:[#allocation5 + $0x6dc] ss:$36 sps:$4 sm:$0xff]  }
 0x183   :  { %3261 = vmatpush1.bf16.msra.mxu0 %v22342_v31  ;;  %3292 = vmatprep.mubr.bf16.mxu0 %v24877_v35  ;;  %v22423_v31 = vld [vmem:[#allocation5 + $0x6d8] ss:$36 sps:$4 sm:$0xff]  }
 0x184   :  { %3404 = vmatpush1.bf16.msra.mxu1 %v22339_v30  ;;  %3262 = vmatprep.subr.bf16.mxu0 %v22350_v32  ;;  %v22428_v30 = vld [vmem:[#allocation5 + $0x884] ss:$36 sps:$4 sm:$0xff]  }
 0x185   :  { %3405 = vmatprep.subr.bf16.mxu1 %v22347_v18  ;;  %v22426_v18 = vld [vmem:[#allocation5 + $0x880] ss:$36 sps:$4 sm:$0xff]  }
 0x186   :  { %v22431_v32 = vld [vmem:[#allocation5 + $0x724] ss:$36 sps:$4 sm:$0xff]  }
 0x187   :  { %3263 = vmatpush1.bf16.msra.mxu0 %v22348_v34  ;;  %v22429_v34 = vld [vmem:[#allocation5 + $0x720] ss:$36 sps:$4 sm:$0xff]  }
 0x188   :  { %3406 = vmatpush1.bf16.msra.mxu1 %v22345_v33  ;;  %3264 = vmatprep.subr.bf16.mxu0 %v22356_v37  ;;  %v22434_v33 = vld [vmem:[#allocation5 + $0x8cc] ss:$36 sps:$4 sm:$0xff]  }
 0x189   :  { %3407 = vmatprep.subr.bf16.mxu1 %v22353_v36  ;;  %v22432_v36 = vld [vmem:[#allocation5 + $0x8c8] ss:$36 sps:$4 sm:$0xff]  }
 0x18a   :  { %v22437_v37 = vld [vmem:[#allocation5 + $0x76c] ss:$36 sps:$4 sm:$0xff]  }
 0x18b   :  { %3265 = vmatpush1.bf16.msra.mxu0 %v22354_v39  ;;  %v22435_v39 = vld [vmem:[#allocation5 + $0x768] ss:$36 sps:$4 sm:$0xff]  }
 0x18c   :  { %3408 = vmatpush1.bf16.msra.mxu1 %v22351_v38  ;;  %3266 = vmatprep.subr.bf16.mxu0 %v22362_v41  ;;  %v22440_v38 = vld [vmem:[#allocation5 + $0x914] ss:$36 sps:$4 sm:$0xff]  }
 0x18d   :  { %3409 = vmatprep.subr.bf16.mxu1 %v22359_v40  ;;  %v22438_v40 = vld [vmem:[#allocation5 + $0x910] ss:$36 sps:$4 sm:$0xff]  }
 0x18e   :  { %v22443_v41 = vld [vmem:[#allocation5 + $0x7b4] ss:$36 sps:$4 sm:$0xff]  }
 0x18f   :  { %3267 = vmatpush1.bf16.msra.mxu0 %v22360_v43  ;;  %v22441_v43 = vld [vmem:[#allocation5 + $0x7b0] ss:$36 sps:$4 sm:$0xff]  }
 0x190   :  { %3410 = vmatpush1.bf16.msra.mxu1 %v22357_v42  ;;  %3268 = vmatprep.subr.bf16.mxu0 %v22368_v45  ;;  %v22446_v42 = vld [vmem:[#allocation5 + $0x95c] ss:$36 sps:$4 sm:$0xff]  }
 0x191   :  { %3411 = vmatprep.subr.bf16.mxu1 %v22365_v44  ;;  %v22444_v44 = vld [vmem:[#allocation5 + $0x958] ss:$36 sps:$4 sm:$0xff]  }
 0x192   :  { %v22449_v45 = vld [vmem:[#allocation5 + $0x7fc] ss:$36 sps:$4 sm:$0xff]  }
 0x193   :  { %3269 = vmatpush1.bf16.msra.mxu0 %v22366_v49  ;;  %v22447_v49 = vld [vmem:[#allocation5 + $0x7f8] ss:$36 sps:$4 sm:$0xff]  }
 0x194   :  { %3412 = vmatpush1.bf16.msra.mxu1 %v22363_v46  ;;  %3270 = vmatprep.subr.bf16.mxu0 %v22374_v51  ;;  %v22452_v46 = vld [vmem:[#allocation5 + $0x9a4] ss:$36 sps:$4 sm:$0xff]  }
 0x195   :  { %3413 = vmatprep.subr.bf16.mxu1 %v22371_v50  ;;  %v22450_v50 = vld [vmem:[#allocation5 + $0x9a0] ss:$36 sps:$4 sm:$0xff]  }
 0x196   :  { %v22455_v51 = vld [vmem:[#allocation5 + $0x844] ss:$36 sps:$4 sm:$0xff]  }
 0x197   :  { %3271 = vmatpush1.bf16.msra.mxu0 %v22372_v54  ;;  %v22453_v54 = vld [vmem:[#allocation5 + $0x840] ss:$36 sps:$4 sm:$0xff]  }
 0x198   :  { %3414 = vmatpush1.bf16.msra.mxu1 %v22369_v53  ;;  %3272 = vmatprep.subr.bf16.mxu0 %v22380_v56  ;;  %v22458_v53 = vld [vmem:[#allocation5 + $0x9ec] ss:$36 sps:$4 sm:$0xff]  }
 0x199   :  { %3424 = vmatprep.subr.bf16.mxu1 %v22377_v55  ;;  %v22456_v55 = vld [vmem:[#allocation5 + $0x9e8] ss:$36 sps:$4 sm:$0xff]  }
 0x19a   :  { %v22461_v56 = vld [vmem:[#allocation5 + $0x88c] ss:$36 sps:$4 sm:$0xff]  }
 0x19b   :  { %3416 = vmatmul.mubr.bf16.vlgmr.msra.gmra.mrb[12].mxu1 %v24869_v8  ;;  %3273 = vmatpush1.bf16.msra.mxu0 %v22378_v58  ;;  %v22459_v58 = vld [vmem:[#allocation5 + $0x888] ss:$36 sps:$4 sm:$0xff]  }
 0x19c   :  { %3425 = vmatpush1.bf16.msra.mxu1 %v22375_v57  ;;  %3274 = vmatprep.subr.bf16.mxu0 %v22386_v60  ;;  %v22464_v57 = vld [vmem:[#allocation5 + $0xa34] ss:$36 sps:$4 sm:$0xff]  }
 0x19d   :  { %3426 = vmatprep.subr.bf16.mxu1 %v22383_v59  ;;  %3456 = vmatprep.mubr.bf16.mxu1 %v24877_v35  ;;  %v22462_v59 = vld [vmem:[#allocation5 + $0xa30] ss:$36 sps:$4 sm:$0xff]  }
 0x19e   :  { %v22467_v60 = vld [vmem:[#allocation5 + $0x8d4] ss:$36 sps:$4 sm:$0xff]  }
 0x19f   :  { %3275 = vmatpush1.bf16.msra.mxu0 %v22384_v62  ;;  %v22465_v62 = vld [vmem:[#allocation5 + $0x8d0] ss:$36 sps:$4 sm:$0xff]  }
 0x1a0   :  { %3427 = vmatpush1.bf16.msra.mxu1 %v22381_v61  ;;  %3276 = vmatprep.subr.bf16.mxu0 %v22392_v1  ;;  %v22470_v61 = vld [vmem:[#allocation5 + $0xa7c] ss:$36 sps:$4 sm:$0xff]  }
 0x1a1   :  { %3428 = vmatprep.subr.bf16.mxu1 %v22389_v63  ;;  %v22468_v63 = vld [vmem:[#allocation5 + $0xa78] ss:$36 sps:$4 sm:$0xff]  }
 0x1a2   :  { %v22473_v1 = vld [vmem:[#allocation5 + $0x91c] ss:$36 sps:$4 sm:$0xff]  }
 0x1a3   :  { %3277 = vmatpush1.bf16.msra.mxu0 %v22390_v3  ;;  %v22471_v3 = vld [vmem:[#allocation5 + $0x918] ss:$36 sps:$4 sm:$0xff]  }
 0x1a4   :  { %3429 = vmatpush1.bf16.msra.mxu1 %v22387_v2  ;;  %3278 = vmatprep.subr.bf16.mxu0 %v22398_v5  ;;  %v22476_v2 = vld [vmem:[#allocation5 + $0xac4] ss:$36 sps:$4 sm:$0xff]  }
 0x1a5   :  { %3430 = vmatprep.subr.bf16.mxu1 %v22395_v4  ;;  %v22474_v4 = vld [vmem:[#allocation5 + $0xac0] ss:$36 sps:$4 sm:$0xff]  }
 0x1a6   :  { %v22479_v5 = vld [vmem:[#allocation5 + $0x964] ss:$36 sps:$4 sm:$0xff]  }
 0x1a7   :  { %3279 = vmatpush1.bf16.msra.mxu0 %v22396_v7  ;;  %v22477_v7 = vld [vmem:[#allocation5 + $0x960] ss:$36 sps:$4 sm:$0xff]  }
 0x1a8   :  { %3431 = vmatpush1.bf16.msra.mxu1 %v22393_v6  ;;  %3280 = vmatprep.subr.bf16.mxu0 %v22404_v10  ;;  %v22482_v6 = vld [vmem:[#allocation5 + $0xb0c] ss:$36 sps:$4 sm:$0xff]  }
 0x1a9   :  { %3432 = vmatprep.subr.bf16.mxu1 %v22401_v9  ;;  %v22480_v9 = vld [vmem:[#allocation5 + $0xb08] ss:$36 sps:$4 sm:$0xff]  }
 0x1aa   :  { %v22485_v10 = vld [vmem:[#allocation5 + $0x9ac] ss:$36 sps:$4 sm:$0xff]  }
 0x1ab   :  { %3281 = vmatpush1.bf16.msra.mxu0 %v22402_v12  ;;  %v22483_v12 = vld [vmem:[#allocation5 + $0x9a8] ss:$36 sps:$4 sm:$0xff]  }
 0x1ac   :  { %3433 = vmatpush1.bf16.msra.mxu1 %v22399_v11  ;;  %3282 = vmatprep.subr.bf16.mxu0 %v22410_v14  ;;  %v22488_v11 = vld [vmem:[#allocation5 + $0xb54] ss:$36 sps:$4 sm:$0xff]  }
 0x1ad   :  { %3434 = vmatprep.subr.bf16.mxu1 %v22407_v13  ;;  %v22486_v13 = vld [vmem:[#allocation5 + $0xb50] ss:$36 sps:$4 sm:$0xff]  }
 0x1ae   :  { %v22491_v14 = vld [vmem:[#allocation5 + $0x9f4] ss:$36 sps:$4 sm:$0xff]  }
 0x1af   :  { %3283 = vmatpush1.bf16.msra.mxu0 %v22408_v17  ;;  %v22489_v17 = vld [vmem:[#allocation5 + $0x9f0] ss:$36 sps:$4 sm:$0xff]  }
 0x1b0   :  { %3435 = vmatpush1.bf16.msra.mxu1 %v22405_v16  ;;  %3284 = vmatprep.subr.bf16.mxu0 %v22416_v21  ;;  %v22494_v16 = vld [vmem:[#allocation5 + $0xb9c] ss:$36 sps:$4 sm:$0xff]  }
 0x1b1   :  { %3436 = vmatprep.subr.bf16.mxu1 %v22413_v20  ;;  %v22492_v20 = vld [vmem:[#allocation5 + $0xb98] ss:$36 sps:$4 sm:$0xff]  }
 0x1b2   :  { %v22497_v21 = vld [vmem:[#allocation5 + $0xa3c] ss:$36 sps:$4 sm:$0xff]  }
 0x1b3   :  { %3285 = vmatpush1.bf16.msra.mxu0 %v22414_v24  ;;  %v22495_v24 = vld [vmem:[#allocation5 + $0xa38] ss:$36 sps:$4 sm:$0xff]  }
 0x1b4   :  { %3437 = vmatpush1.bf16.msra.mxu1 %v22411_v22  ;;  %3286 = vmatprep.subr.bf16.mxu0 %v22422_v26  ;;  %v22500_v22 = vld [vmem:[#allocation5 + $0xbe4] ss:$36 sps:$4 sm:$0xff]  }
 0x1b5   :  { %3438 = vmatprep.subr.bf16.mxu1 %v22419_v25  ;;  %v22498_v25 = vld [vmem:[#allocation5 + $0xbe0] ss:$36 sps:$4 sm:$0xff]  }
 0x1b6   :  { %v22503_v26 = vld [vmem:[#allocation5 + $0xa84] ss:$36 sps:$4 sm:$0xff]  }
 0x1b7   :  { %3287 = vmatpush1.bf16.msra.mxu0 %v22420_v28  ;;  %v22501_v28 = vld [vmem:[#allocation5 + $0xa80] ss:$36 sps:$4 sm:$0xff]  }
 0x1b8   :  { %3439 = vmatpush1.bf16.msra.mxu1 %v22417_v27  ;;  %3288 = vmatprep.subr.bf16.mxu0 %v22428_v30  ;;  %v22506_v27 = vld [vmem:[#allocation5 + $0xc2c] ss:$36 sps:$4 sm:$0xff]  }
 0x1b9   :  { %3440 = vmatprep.subr.bf16.mxu1 %v22425_v29  ;;  %v22504_v29 = vld [vmem:[#allocation5 + $0xc28] ss:$36 sps:$4 sm:$0xff]  }
 0x1ba   :  { %v22509_v30 = vld [vmem:[#allocation5 + $0xacc] ss:$36 sps:$4 sm:$0xff]  }
 0x1bb   :  { %3289 = vmatpush1.bf16.msra.mxu0 %v22426_v18  ;;  %v22507_v18 = vld [vmem:[#allocation5 + $0xac8] ss:$36 sps:$4 sm:$0xff]  }
 0x1bc   :  { %3441 = vmatpush1.bf16.msra.mxu1 %v22423_v31  ;;  %3290 = vmatprep.subr.bf16.mxu0 %v22434_v33  ;;  %v22512_v31 = vld [vmem:[#allocation5 + $0xc74] ss:$36 sps:$4 sm:$0xff]  }
 0x1bd   :  { %3442 = vmatprep.subr.bf16.mxu1 %v22431_v32  ;;  %v22510_v32 = vld [vmem:[#allocation5 + $0xc70] ss:$36 sps:$4 sm:$0xff]  }
 0x1be   :  { %v22515_v33 = vld [vmem:[#allocation5 + $0xb14] ss:$36 sps:$4 sm:$0xff]  }
 0x1bf   :  { %3291 = vmatpush1.bf16.msra.mxu0 %v22432_v36  ;;  %v22513_v36 = vld [vmem:[#allocation5 + $0xb10] ss:$36 sps:$4 sm:$0xff]  }
 0x1c0   :  { %3443 = vmatpush1.bf16.msra.mxu1 %v22429_v34  ;;  %3301 = vmatprep.subr.bf16.mxu0 %v22440_v38  ;;  %v22518_v34 = vld [vmem:[#allocation5 + $0xcbc] ss:$36 sps:$4 sm:$0xff]  }
 0x1c1   :  { %3444 = vmatprep.subr.bf16.mxu1 %v22437_v37  ;;  %v22516_v37 = vld [vmem:[#allocation5 + $0xcb8] ss:$36 sps:$4 sm:$0xff]  }
 0x1c2   :  { %3293 = vmatmul.mubr.bf16.vlgmr.msra.gmra.mrb[4].mxu0 %v24883_v15  ;;  %v22521_v38 = vld [vmem:[#allocation5 + $0xb5c] ss:$36 sps:$4 sm:$0xff]  }
 0x1c3   :  { %3302 = vmatpush1.bf16.msra.mxu0 %v22438_v40  ;;  %3333 = vmatprep.mubr.bf16.mxu0 %v24889_v19  ;;  %v22519_v40 = vld [vmem:[#allocation5 + $0xb58] ss:$36 sps:$4 sm:$0xff]  }
 0x1c4   :  { %3445 = vmatpush1.bf16.msra.mxu1 %v22435_v39  ;;  %3303 = vmatprep.subr.bf16.mxu0 %v22446_v42  ;;  %v22524_v39 = vld [vmem:[#allocation5 + $0xd04] ss:$36 sps:$4 sm:$0xff]  }
 0x1c5   :  { %3446 = vmatprep.subr.bf16.mxu1 %v22443_v41  ;;  %v22522_v41 = vld [vmem:[#allocation5 + $0xd00] ss:$36 sps:$4 sm:$0xff]  }
 0x1c6   :  { %v22527_v42 = vld [vmem:[#allocation5 + $0xba4] ss:$36 sps:$4 sm:$0xff]  }
 0x1c7   :  { %3304 = vmatpush1.bf16.msra.mxu0 %v22444_v44  ;;  %v22525_v44 = vld [vmem:[#allocation5 + $0xba0] ss:$36 sps:$4 sm:$0xff]  }
 0x1c8   :  { %3447 = vmatpush1.bf16.msra.mxu1 %v22441_v43  ;;  %3305 = vmatprep.subr.bf16.mxu0 %v22452_v46  ;;  %v22530_v43 = vld [vmem:[#allocation5 + $0xd4c] ss:$36 sps:$4 sm:$0xff]  }
 0x1c9   :  { %3448 = vmatprep.subr.bf16.mxu1 %v22449_v45  ;;  %v22528_v45 = vld [vmem:[#allocation5 + $0xd48] ss:$36 sps:$4 sm:$0xff]  }
 0x1ca   :  { %v22533_v46 = vld [vmem:[#allocation5 + $0xbec] ss:$36 sps:$4 sm:$0xff]  }
 0x1cb   :  { %3306 = vmatpush1.bf16.msra.mxu0 %v22450_v50  ;;  %v22531_v50 = vld [vmem:[#allocation5 + $0xbe8] ss:$36 sps:$4 sm:$0xff]  }
 0x1cc   :  { %3449 = vmatpush1.bf16.msra.mxu1 %v22447_v49  ;;  %3307 = vmatprep.subr.bf16.mxu0 %v22458_v53  ;;  %v22534_v49 = vld [vmem:[#allocation5 + $0x260] ss:$36 sps:$4 sm:$0xff]   ;;  %v22538_v53 = vld [vmem:[#allocation5 + $0xc34] ss:$36 sps:$4 sm:$0xff]  }
 0x1cd   :  { %3450 = vmatprep.subr.bf16.mxu1 %v22455_v51  ;;  %v22535_v51 = vld [vmem:[#allocation5 + $0x20] ss:$36 sps:$4 sm:$0xff]  }
 0x1cf   :  { %3308 = vmatpush1.bf16.msra.mxu0 %v22456_v55  ;;  %v22536_v55 = vld [vmem:[#allocation5 + $0xc30] ss:$36 sps:$4 sm:$0xff]  }
 0x1d0   :  { %3451 = vmatpush1.bf16.msra.mxu1 %v22453_v54  ;;  %3309 = vmatprep.subr.bf16.mxu0 %v22464_v57  ;;  %v22539_v54 = vld [vmem:[#allocation5 + $0x2a8] ss:$36 sps:$4 sm:$0xff]   ;;  %v22543_v57 = vld [vmem:[#allocation5 + $0xc7c] ss:$36 sps:$4 sm:$0xff]  }
 0x1d1   :  { %3452 = vmatprep.subr.bf16.mxu1 %v22461_v56  ;;  %v22540_v56 = vld [vmem:[#allocation5 + $0x68] ss:$36 sps:$4 sm:$0xff]  }
 0x1d3   :  { %3310 = vmatpush1.bf16.msra.mxu0 %v22462_v59  ;;  %v22541_v59 = vld [vmem:[#allocation5 + $0xc78] ss:$36 sps:$4 sm:$0xff]  }
 0x1d4   :  { %3453 = vmatpush1.bf16.msra.mxu1 %v22459_v58  ;;  %3311 = vmatprep.subr.bf16.mxu0 %v22470_v61  ;;  %v22544_v58 = vld [vmem:[#allocation5 + $0x2f0] ss:$36 sps:$4 sm:$0xff]   ;;  %v22548_v61 = vld [vmem:[#allocation5 + $0xcc4] ss:$36 sps:$4 sm:$0xff]  }
 0x1d5   :  { %3454 = vmatprep.subr.bf16.mxu1 %v22467_v60  ;;  %v22545_v60 = vld [vmem:[#allocation5 + $0xb0] ss:$36 sps:$4 sm:$0xff]  }
 0x1d7   :  { %3312 = vmatpush1.bf16.msra.mxu0 %v22468_v63  ;;  %v22546_v63 = vld [vmem:[#allocation5 + $0xcc0] ss:$36 sps:$4 sm:$0xff]  }
 0x1d8   :  { %3455 = vmatpush1.bf16.msra.mxu1 %v22465_v62  ;;  %3313 = vmatprep.subr.bf16.mxu0 %v22476_v2  ;;  %v22549_v62 = vld [vmem:[#allocation5 + $0x338] ss:$36 sps:$4 sm:$0xff]   ;;  %v22553_v2 = vld [vmem:[#allocation5 + $0xd0c] ss:$36 sps:$4 sm:$0xff]  }
 0x1d9   :  { %3465 = vmatprep.subr.bf16.mxu1 %v22473_v1  ;;  %v22550_v1 = vld [vmem:[#allocation5 + $0xf8] ss:$36 sps:$4 sm:$0xff]  }
 0x1db   :  { %3457 = vmatmul.mubr.bf16.vlgmr.msra.gmra.mrb[12].mxu1 %v24883_v15  ;;  %3314 = vmatpush1.bf16.msra.mxu0 %v22474_v4  ;;  %v22551_v4 = vld [vmem:[#allocation5 + $0xd08] ss:$36 sps:$4 sm:$0xff]  }
 0x1dc   :  { %3466 = vmatpush1.bf16.msra.mxu1 %v22471_v3  ;;  %3315 = vmatprep.subr.bf16.mxu0 %v22482_v6  ;;  %v22554_v3 = vld [vmem:[#allocation5 + $0x380] ss:$36 sps:$4 sm:$0xff]   ;;  %v22558_v6 = vld [vmem:[#allocation5 + $0xd54] ss:$36 sps:$4 sm:$0xff]  }
 0x1dd   :  { %3467 = vmatprep.subr.bf16.mxu1 %v22479_v5  ;;  %3497 = vmatprep.mubr.bf16.mxu1 %v24889_v19  ;;  %v22555_v5 = vld [vmem:[#allocation5 + $0x140] ss:$36 sps:$4 sm:$0xff]  }
 0x1df   :  { %3316 = vmatpush1.bf16.msra.mxu0 %v22480_v9  ;;  %v22556_v9 = vld [vmem:[#allocation5 + $0xd50] ss:$36 sps:$4 sm:$0xff]  }
 0x1e0   :  { %3468 = vmatpush1.bf16.msra.mxu1 %v22477_v7  ;;  %3317 = vmatprep.subr.bf16.mxu0 %v22488_v11  ;;  %v22559_v7 = vld [vmem:[#allocation5 + $0x3c8] ss:$36 sps:$4 sm:$0xff]   ;;  %v22564_v11 = vld [vmem:[#allocation5 + $0x410] ss:$36 sps:$4 sm:$0xff]  }
 0x1e1   :  { %3469 = vmatprep.subr.bf16.mxu1 %v22485_v10  ;;  %v22560_v10 = vld [vmem:[#allocation5 + $0x188] ss:$36 sps:$4 sm:$0xff]  }
 0x1e3   :  { %3318 = vmatpush1.bf16.msra.mxu0 %v22486_v13 }
 0x1e4   :  { %3470 = vmatpush1.bf16.msra.mxu1 %v22483_v12  ;;  %3319 = vmatprep.subr.bf16.mxu0 %v22494_v16  ;;  %v22563_v12 = vld [vmem:[#allocation5 + $0xd9c] ss:$36 sps:$4 sm:$0xff]  }
 0x1e5   :  { %3471 = vmatprep.subr.bf16.mxu1 %v22491_v14 }
 0x1e7   :  { %3320 = vmatpush1.bf16.msra.mxu0 %v22492_v20 }
 0x1e8   :  { %3472 = vmatpush1.bf16.msra.mxu1 %v22489_v17  ;;  %3321 = vmatprep.subr.bf16.mxu0 %v22500_v22  ;;  %v22565_v22 = vld [vmem:[#allocation5 + $0x1d0] ss:$36 sps:$4 sm:$0xff]  }
 0x1e9   :  { %3473 = vmatprep.subr.bf16.mxu1 %v22497_v21  ;;  %v22561_v21 = vld [vmem:[#allocation5 + $0xd98] ss:$36 sps:$4 sm:$0xff]  }
 0x1eb   :  { %3322 = vmatpush1.bf16.msra.mxu0 %v22498_v25  ;;  %v22566_v25 = vld [vmem:[#allocation5 + $0x458] ss:$36 sps:$4 sm:$0xff]  }
 0x1ec   :  { %3474 = vmatpush1.bf16.msra.mxu1 %v22495_v24  ;;  %3323 = vmatprep.subr.bf16.mxu0 %v22506_v27  ;;  %v22568_v27 = vld [vmem:[#allocation5 + $0xb60] ss:$36 sps:$4 sm:$0xff]  }
 0x1ed   :  { %3475 = vmatprep.subr.bf16.mxu1 %v22503_v26  ;;  %v22570_v26 = vld [vmem:[#allocation5 + $0x6e0] ss:$36 sps:$4 sm:$0xff]  }
 0x1ef   :  { %3324 = vmatpush1.bf16.msra.mxu0 %v22504_v29  ;;  %v22571_v29 = vld [vmem:[#allocation5 + $0x4a0] ss:$36 sps:$4 sm:$0xff]  }
 0x1f0   :  { %3476 = vmatpush1.bf16.msra.mxu1 %v22501_v28  ;;  %3325 = vmatprep.subr.bf16.mxu0 %v22512_v31  ;;  %v22572_v28 = vld [vmem:[#allocation5 + $0xba8] ss:$36 sps:$4 sm:$0xff]  }
 0x1f1   :  { %3477 = vmatprep.subr.bf16.mxu1 %v22509_v30  ;;  %v22573_v30 = vld [vmem:[#allocation5 + $0x968] ss:$36 sps:$4 sm:$0xff]  }
 0x1f2   :  { %v22574_v31 = vld [vmem:[#allocation5 + $0x728] ss:$36 sps:$4 sm:$0xff]  }
 0x1f3   :  { %3326 = vmatpush1.bf16.msra.mxu0 %v22510_v32 }
 0x1f4   :  { %3478 = vmatpush1.bf16.msra.mxu1 %v22507_v18  ;;  %3327 = vmatprep.subr.bf16.mxu0 %v22518_v34  ;;  %v22576_v18 = vld [vmem:[#allocation5 + $0xbf0] ss:$36 sps:$4 sm:$0xff]  }
 0x1f5   :  { %3479 = vmatprep.subr.bf16.mxu1 %v22515_v33  ;;  %v24933_v33 = vld [vmem:[#allocation2 + $0x18] ss:$0 sps:$4 sm:$0xff]  }
 0x1f7   :  { %3328 = vmatpush1.bf16.msra.mxu0 %v22516_v37  ;;  %v22575_v37 = vld [vmem:[#allocation5 + $0x4e8] ss:$36 sps:$4 sm:$0xff]  }
 0x1f8   :  { %3480 = vmatpush1.bf16.msra.mxu1 %v22513_v36  ;;  %3329 = vmatprep.subr.bf16.mxu0 %v22524_v39 }
 0x1f9   :  { %3481 = vmatprep.subr.bf16.mxu1 %v22521_v38  ;;  %v22577_v38 = vld [vmem:[#allocation5 + $0x9b0] ss:$36 sps:$4 sm:$0xff]  }
 0x1fb   :  { %3330 = vmatpush1.bf16.msra.mxu0 %v22522_v41  ;;  %v22580_v41 = vld [vmem:[#allocation5 + $0xc38] ss:$36 sps:$4 sm:$0xff]  }
 0x1fc   :  { %3482 = vmatpush1.bf16.msra.mxu1 %v22519_v40  ;;  %3331 = vmatprep.subr.bf16.mxu0 %v22530_v43  ;;  %v22578_v40 = vld [vmem:[#allocation5 + $0x770] ss:$36 sps:$4 sm:$0xff]   ;;  %v22581_v43 = vld [vmem:[#allocation5 + $0x9f8] ss:$36 sps:$4 sm:$0xff]  }
 0x1fd   :  { %3483 = vmatprep.subr.bf16.mxu1 %v22527_v42  ;;  %v22579_v42 = vld [vmem:[#allocation5 + $0x530] ss:$36 sps:$4 sm:$0xff]  }
 0x1ff   :  { %3332 = vmatpush1.bf16.msra.mxu0 %v22528_v45  ;;  %v22584_v45 = vld [vmem:[#allocation5 + $0xc80] ss:$36 sps:$4 sm:$0xff]  }
 0x200   :  { %3484 = vmatpush1.bf16.msra.mxu1 %v22525_v44  ;;  %21370 = vmatprep.subr.bf16.mxu0 %v22534_v49  ;;  %v22582_v44 = vld [vmem:[#allocation5 + $0x7b8] ss:$36 sps:$4 sm:$0xff]  }
 0x201   :  { %3485 = vmatprep.subr.bf16.mxu1 %v22533_v46 }
 0x202   :  { %3334 = vmatmul.mubr.bf16.vlgmr.msra.gmra.mrb[4].mxu0 %v24897_v23 }
 0x203   :  { %21371 = vmatpush3.bf16.msra.mxu0 %v22535_v51  ;;  %3579 = vmatprep.mubr.bf16.mxu0 %v24865_v52  ;;  %v22583_v51 = vld [vmem:[#allocation5 + $0x578] ss:$36 sps:$4 sm:$0xff]  }
 0x204   :  { %3486 = vmatpush1.bf16.msra.mxu1 %v22531_v50  ;;  %21372 = vmatprep.subr.bf16.mxu0 %v22539_v54 }
 0x205   :  { %3487 = vmatprep.subr.bf16.mxu1 %v22538_v53  ;;  %v22585_v53 = vld [vmem:[#allocation5 + $0xa40] ss:$36 sps:$4 sm:$0xff]  }
 0x207   :  { %21373 = vmatpush3.bf16.msra.mxu0 %v22540_v56  ;;  %v22588_v56 = vld [vmem:[#allocation5 + $0xcc8] ss:$36 sps:$4 sm:$0xff]  }
 0x208   :  { %3488 = vmatpush1.bf16.msra.mxu1 %v22536_v55  ;;  %21374 = vmatprep.subr.bf16.mxu0 %v22544_v58  ;;  %v22586_v55 = vld [vmem:[#allocation5 + $0x800] ss:$36 sps:$4 sm:$0xff]   ;;  %v22589_v58 = vld [vmem:[#allocation5 + $0xa88] ss:$36 sps:$4 sm:$0xff]  }
 0x209   :  { %3489 = vmatprep.subr.bf16.mxu1 %v22543_v57  ;;  %v22587_v57 = vld [vmem:[#allocation5 + $0x5c0] ss:$36 sps:$4 sm:$0xff]  }
 0x20b   :  { %21375 = vmatpush3.bf16.msra.mxu0 %v22545_v60  ;;  %v22592_v60 = vld [vmem:[#allocation5 + $0xd10] ss:$36 sps:$4 sm:$0xff]  }
 0x20c   :  { %3490 = vmatpush1.bf16.msra.mxu1 %v22541_v59  ;;  %21376 = vmatprep.subr.bf16.mxu0 %v22549_v62  ;;  %v22590_v59 = vld [vmem:[#allocation5 + $0x848] ss:$36 sps:$4 sm:$0xff]   ;;  %v22593_v62 = vld [vmem:[#allocation5 + $0xad0] ss:$36 sps:$4 sm:$0xff]  }
 0x20d   :  { %3491 = vmatprep.subr.bf16.mxu1 %v22548_v61  ;;  %v22591_v61 = vld [vmem:[#allocation5 + $0x608] ss:$36 sps:$4 sm:$0xff]  }
 0x20f   :  { %21377 = vmatpush3.bf16.msra.mxu0 %v22550_v1  ;;  %v22596_v1 = vld [vmem:[#allocation5 + $0xd58] ss:$36 sps:$4 sm:$0xff]  }
 0x210   :  { %3492 = vmatpush1.bf16.msra.mxu1 %v22546_v63  ;;  %21378 = vmatprep.subr.bf16.mxu0 %v22554_v3  ;;  %v22594_v63 = vld [vmem:[#allocation5 + $0x890] ss:$36 sps:$4 sm:$0xff]   ;;  %v22597_v3 = vld [vmem:[#allocation5 + $0xb18] ss:$36 sps:$4 sm:$0xff]  }
 0x211   :  { %3493 = vmatprep.subr.bf16.mxu1 %v22553_v2  ;;  %v22595_v2 = vld [vmem:[#allocation5 + $0x650] ss:$36 sps:$4 sm:$0xff]  }
 0x213   :  { %21379 = vmatpush3.bf16.msra.mxu0 %v22555_v5  ;;  %v22602_v5 = vld [vmem:[#allocation5 + $0xdd4] ss:$36 sps:$4 sm:$0xff]  }
 0x214   :  { %3494 = vmatpush1.bf16.msra.mxu1 %v22551_v4  ;;  %21380 = vmatprep.subr.bf16.mxu0 %v22559_v7  ;;  %v22598_v4 = vld [vmem:[#allocation5 + $0x8d8] ss:$36 sps:$4 sm:$0xff]   ;;  %v22600_v7 = vld [vmem:[#allocation5 + $0xdd0] ss:$36 sps:$4 sm:$0xff]  }
 0x215   :  { %3495 = vmatprep.subr.bf16.mxu1 %v22558_v6  ;;  %v3007_v13 = vpop.f32.mrb[0].mxu0  ;;  %v22599_v6 = vld [vmem:[#allocation5 + $0x698] ss:$36 sps:$4 sm:$0xff]  }
 0x216   :  { %v24922_v14 = vadd.f32 %v24905_v47, %v3007_v13  ;;  %v3009_v16 = vpop.f32.mrb[1].mxu0  ;;  %v22567_v47 = vld [vmem:[#allocation5 + $0x218] ss:$36 sps:$4 sm:$0xff]   ;;  %v24736_v13 = vmov 0.0  }
 0x217   :  { %v24925_v17 = vadd.f32 %v24907_v48, %v3009_v16  ;;  %v3011_v20 = vpop.f32.mrb[2].mxu0  ;;  %21381 = vmatpush3.bf16.msra.mxu0 %v22560_v10  ;;  %v22569_v48 = vld [vmem:[#allocation5 + $0x920] ss:$36 sps:$4 sm:$0xff]   ;;  %v22612_v16 = vld [vmem:[#allocation5 + $0xdcc] ss:$36 sps:$4 sm:$0xff]  }
 0x218   :  { %3496 = vmatpush1.bf16.msra.mxu1 %v22556_v9  ;;  %v3012_v24 = vpop.f32.mrb[3].mxu0  ;;  %21382 = vmatprep.subr.bf16.mxu0 %v22564_v11  ;;  %v22606_v9 = vld [vmem:[#allocation5 + $0xe1c] ss:$36 sps:$4 sm:$0xff]  }
 0x219   :  { %3506 = vmatprep.subr.bf16.mxu1 %v22563_v12  ;;  %v22603_v10 = vld [vmem:[#allocation5 + $0xda0] ss:$36 sps:$4 sm:$0xff]   ;;  %v22604_v11 = vld [vmem:[#allocation5 + $0xe18] ss:$36 sps:$4 sm:$0xff]   ;;  %v22613_v24 = vld [vmem:[#allocation5 + $0xea8] ss:$36 sps:$4 sm:$0xff]  }
 0x21a   :  { %v22609_v12 = vld [vmem:[#allocation5 + $0xe64] ss:$36 sps:$4 sm:$0xff]  }
 0x21b   :  { %3498 = vmatmul.mubr.bf16.vlgmr.msra.gmra.mrb[12].mxu1 %v24897_v23  ;;  %21383 = vmatpush3.bf16.msra.mxu0 %v22565_v22  ;;  %v22607_v20 = vld [vmem:[#allocation5 + $0xe60] ss:$36 sps:$4 sm:$0xff]   ;;  %v22610_v22 = vld [vmem:[#allocation5 + $0xdc8] ss:$36 sps:$4 sm:$0xff]  }
 0x21c   :  { %3507 = vmatpush1.bf16.msra.mxu1 %v22561_v21  ;;  %21384 = vmatprep.subr.bf16.mxu0 %v22566_v25  ;;  %v22615_v21 = vld [vmem:[#allocation5 + $0xeac] ss:$36 sps:$4 sm:$0xff]   ;;  %v22618_v25 = vld [vmem:[#allocation5 + $0xe14] ss:$36 sps:$4 sm:$0xff]  }
 0x21d   :  { %3538 = vmatprep.mubr.bf16.mxu1 %v24735_v0  ;;  %21392 = vmatprep.subr.bf16.mxu1 %v22570_v26  ;;  %v22621_v26 = vld [vmem:[#allocation5 + $0xef4] ss:$36 sps:$4 sm:$0xff]  }
 0x21f   :  { %21385 = vmatpush3.bf16.msra.mxu0 %v22567_v47  ;;  %v22616_v47 = vld [vmem:[#allocation5 + $0xe10] ss:$36 sps:$4 sm:$0xff]  }
 0x220   :  { %21414 = vmatprep.subr.bf16.mxu0 %v22568_v27  ;;  %v22619_v27 = vld [vmem:[#allocation5 + $0xef0] ss:$36 sps:$4 sm:$0xff]  }
 0x222   :  { %3580 = vmatmul.mubr.bf16.vlgmr.msra.gmra.mrb[8].mxu0 %v24869_v8 }
 0x223   :  { %21415 = vmatpush3.bf16.msra.mxu0 %v22569_v48  ;;  %3659 = vmatprep.mubr.bf16.mxu0 %v24889_v19  ;;  %v22624_v48 = vld [vmem:[#allocation5 + $0xe5c] ss:$36 sps:$4 sm:$0xff]  }
 0x224   :  { %21416 = vmatprep.subr.bf16.mxu0 %v22572_v28  ;;  %v22627_v28 = vld [vmem:[#allocation5 + $0xf3c] ss:$36 sps:$4 sm:$0xff]  }
 0x226   :  { %v24931_v32 = vpop.f32.mrb[4].mxu1 }
 0x227   :  { %19436 = vmatmul.mubr.msk.bf16.vlgmr.msra.gmra.mrb[12].mxu1 %vm2887_vm0, %v24933_v33  ;;  %v24937_v34 = vpop.f32.mrb[5].mxu1  ;;  %21417 = vmatpush3.bf16.msra.mxu0 %v22573_v30  ;;  %v22625_v30 = vld [vmem:[#allocation5 + $0xf38] ss:$36 sps:$4 sm:$0xff]  }
 0x228   :  { %21393 = vmatpush3.bf16.msra.mxu1 %v22571_v29  ;;  %v3216_v36 = vpop.f32.mrb[6].mxu1  ;;  %21418 = vmatprep.subr.bf16.mxu0 %v22576_v18  ;;  %v22622_v29 = vld [vmem:[#allocation5 + $0xe58] ss:$36 sps:$4 sm:$0xff]   ;;  %v22633_v18 = vld [vmem:[#allocation5 + $0xf84] ss:$36 sps:$4 sm:$0xff]  }
 0x229   :  { %v3217_v39 = vpop.f32.mrb[7].mxu1  ;;  %21394 = vmatprep.subr.bf16.mxu1 %v22574_v31  ;;  %3619 = vmatprep.mubr.bf16.mxu1 %v24877_v35  ;;  %v22630_v31 = vld [vmem:[#allocation5 + $0xea4] ss:$36 sps:$4 sm:$0xff]  }
 0x22a   :  { %v22631_v36 = vld [vmem:[#allocation5 + $0xf80] ss:$36 sps:$4 sm:$0xff]   ;;  %v22634_v39 = vld [vmem:[#allocation5 + $0xee8] ss:$36 sps:$4 sm:$0xff]  }
 0x22b   :  { %21419 = vmatpush3.bf16.msra.mxu0 %v22577_v38  ;;  %v22639_v38 = vld [vmem:[#allocation5 + $0xfcc] ss:$36 sps:$4 sm:$0xff]  }
 0x22c   :  { %21395 = vmatpush3.bf16.msra.mxu1 %v22575_v37  ;;  %21420 = vmatprep.subr.bf16.mxu0 %v22580_v41  ;;  %v22636_v37 = vld [vmem:[#allocation5 + $0xeec] ss:$36 sps:$4 sm:$0xff]   ;;  %v22642_v41 = vld [vmem:[#allocation5 + $0xf34] ss:$36 sps:$4 sm:$0xff]  }
 0x22d   :  { %21396 = vmatprep.subr.bf16.mxu1 %v22578_v40  ;;  %v22637_v40 = vld [vmem:[#allocation5 + $0xfc8] ss:$36 sps:$4 sm:$0xff]  }
 0x22e   :  { %v24940_v46 = vpop.f32.mrb[8].mxu1 }
 0x22f   :  { %v24942_v49 = vpop.f32.mrb[9].mxu1  ;;  %21421 = vmatpush3.bf16.msra.mxu0 %v22581_v43  ;;  %v22640_v43 = vld [vmem:[#allocation5 + $0xf30] ss:$36 sps:$4 sm:$0xff]  }
 0x230   :  { %21397 = vmatpush3.bf16.msra.mxu1 %v22579_v42  ;;  %v3380_v50 = vpop.f32.mrb[10].mxu1  ;;  %21422 = vmatprep.subr.bf16.mxu0 %v22584_v45  ;;  %v22645_v42 = vld [vmem:[#allocation5 + $0x1014] ss:$36 sps:$4 sm:$0xff]   ;;  %v22648_v45 = vld [vmem:[#allocation5 + $0xf7c] ss:$36 sps:$4 sm:$0xff]  }
 0x231   :  { %v3381_v54 = vpop.f32.mrb[11].mxu1  ;;  %21398 = vmatprep.subr.bf16.mxu1 %v22582_v44  ;;  %v22643_v44 = vld [vmem:[#allocation5 + $0x1010] ss:$36 sps:$4 sm:$0xff]   ;;  %v22651_v50 = vld [vmem:[#allocation5 + $0x105c] ss:$36 sps:$4 sm:$0xff]  }
 0x232   :  { %v22654_v54 = vld [vmem:[#allocation5 + $0xfc4] ss:$36 sps:$4 sm:$0xff]  }
 0x233   :  { %21423 = vmatpush3.bf16.msra.mxu0 %v22585_v53  ;;  %v22649_v53 = vld [vmem:[#allocation5 + $0x1058] ss:$36 sps:$4 sm:$0xff]  }
 0x234   :  { %21399 = vmatpush3.bf16.msra.mxu1 %v22583_v51  ;;  %21424 = vmatprep.subr.bf16.mxu0 %v22588_v56  ;;  %v22646_v51 = vld [vmem:[#allocation5 + $0xf78] ss:$36 sps:$4 sm:$0xff]   ;;  %v22652_v56 = vld [vmem:[#allocation5 + $0xfc0] ss:$36 sps:$4 sm:$0xff]  }
 0x235   :  { %21400 = vmatprep.subr.bf16.mxu1 %v22586_v55  ;;  %v22657_v55 = vld [vmem:[#allocation5 + $0x10a4] ss:$36 sps:$4 sm:$0xff]  }
 0x237   :  { %21425 = vmatpush3.bf16.msra.mxu0 %v22589_v58  ;;  %v22660_v58 = vld [vmem:[#allocation5 + $0x100c] ss:$36 sps:$4 sm:$0xff]  }
 0x238   :  { %21401 = vmatpush3.bf16.msra.mxu1 %v22587_v57  ;;  %21426 = vmatprep.subr.bf16.mxu0 %v22592_v60  ;;  %v22655_v57 = vld [vmem:[#allocation5 + $0x10a0] ss:$36 sps:$4 sm:$0xff]   ;;  %v22658_v60 = vld [vmem:[#allocation5 + $0x1008] ss:$36 sps:$4 sm:$0xff]  }
 0x239   :  { %21402 = vmatprep.subr.bf16.mxu1 %v22590_v59  ;;  %v22663_v59 = vld [vmem:[#allocation5 + $0x10ec] ss:$36 sps:$4 sm:$0xff]  }
 0x23b   :  { %21427 = vmatpush3.bf16.msra.mxu0 %v22593_v62  ;;  %v22666_v62 = vld [vmem:[#allocation5 + $0x1054] ss:$36 sps:$4 sm:$0xff]  }
 0x23c   :  { %21403 = vmatpush3.bf16.msra.mxu1 %v22591_v61  ;;  %21428 = vmatprep.subr.bf16.mxu0 %v22596_v1  ;;  %v22661_v61 = vld [vmem:[#allocation5 + $0x10e8] ss:$36 sps:$4 sm:$0xff]   ;;  %v22664_v1 = vld [vmem:[#allocation5 + $0x1050] ss:$36 sps:$4 sm:$0xff]  }
 0x23d   :  { %21404 = vmatprep.subr.bf16.mxu1 %v22594_v63  ;;  %v22669_v63 = vld [vmem:[#allocation5 + $0x1134] ss:$36 sps:$4 sm:$0xff]  }
 0x23f   :  { %21429 = vmatpush3.bf16.msra.mxu0 %v22597_v3  ;;  %v22672_v3 = vld [vmem:[#allocation5 + $0x109c] ss:$36 sps:$4 sm:$0xff]  }
 0x240   :  { %21405 = vmatpush3.bf16.msra.mxu1 %v22595_v2  ;;  %6615 = vmatprep.subr.bf16.mxu0 %v22602_v5  ;;  %v22667_v2 = vld [vmem:[#allocation5 + $0x1130] ss:$36 sps:$4 sm:$0xff]   ;;  %v22670_v5 = vld [vmem:[#allocation5 + $0x1098] ss:$36 sps:$4 sm:$0xff]  }
 0x241   :  { %21406 = vmatprep.subr.bf16.mxu1 %v22598_v4  ;;  %v22675_v4 = vld [vmem:[#allocation5 + $0x117c] ss:$36 sps:$4 sm:$0xff]  }
 0x242   :  { %3660 = vmatmul.mubr.bf16.vlgmr.msra.gmra.mrb[12].mxu0 %v24897_v23 }
 0x243   :  { %6616 = vmatpush1.bf16.msra.mxu0 %v22600_v7  ;;  %6647 = vmatprep.mubr.bf16.mxu0 %v24865_v52  ;;  %v22678_v7 = vld [vmem:[#allocation5 + $0x10e4] ss:$36 sps:$4 sm:$0xff]  }
 0x244   :  { %21407 = vmatpush3.bf16.msra.mxu1 %v22599_v6  ;;  %6617 = vmatprep.subr.bf16.mxu0 %v22606_v9  ;;  %v22673_v6 = vld [vmem:[#allocation5 + $0x1178] ss:$36 sps:$4 sm:$0xff]   ;;  %v22681_v9 = vld [vmem:[#allocation5 + $0x11c4] ss:$36 sps:$4 sm:$0xff]  }
 0x245   :  { %21664 = vmatprep.subr.bf16.mxu1 %v24736_v13 }
 0x247   :  { %3620 = vmatmul.mubr.bf16.vlgmr.msra.gmra.mrb[16].mxu1 %v24883_v15  ;;  %6618 = vmatpush1.bf16.msra.mxu0 %v22604_v11  ;;  %v22679_v11 = vld [vmem:[#allocation5 + $0x11c0] ss:$36 sps:$4 sm:$0xff]  }
 0x248   :  { %21665 = vmatpush3.bf16.msra.mxu1 %v22603_v10  ;;  %6619 = vmatprep.subr.bf16.mxu0 %v22609_v12  ;;  %v22676_v10 = vld [vmem:[#allocation5 + $0x10e0] ss:$36 sps:$4 sm:$0xff]   ;;  %v22684_v12 = vld [vmem:[#allocation5 + $0x112c] ss:$36 sps:$4 sm:$0xff]  }
 0x249   :  { %21666 = vmatprep.mubr.msk.bf16.mxu1 %vm24737_vm1, %v24736_v13  ;;  %6451 = vmatprep.subr.bf16.mxu1 %v22612_v16  ;;  %v22687_v16 = vld [vmem:[#allocation5 + $0x120c] ss:$36 sps:$4 sm:$0xff]  }
 0x24b   :  { %6620 = vmatpush1.bf16.msra.mxu0 %v22607_v20  ;;  %v22682_v20 = vld [vmem:[#allocation5 + $0x1128] ss:$36 sps:$4 sm:$0xff]  }
 0x24c   :  { %6621 = vmatprep.subr.bf16.mxu0 %v22615_v21  ;;  %v22685_v21 = vld [vmem:[#allocation5 + $0x1208] ss:$36 sps:$4 sm:$0xff]  }
 0x24f   :  { %21667 = vmatmul.mubr.msk.bf16.vlgmr.msra.gmra.mrb[20].mxu1 %vm2887_vm0, %v24933_v33  ;;  %6622 = vmatpush1.bf16.msra.mxu0 %v22613_v24  ;;  %v22628_v33 = vld [vmem:[#allocation5 + $0xea0] ss:$36 sps:$4 sm:$0xff]   ;;  %v22693_v24 = vld [vmem:[#allocation5 + $0x1254] ss:$36 sps:$4 sm:$0xff]  }
 0x250   :  { %6452 = vmatpush1.bf16.msra.mxu1 %v22610_v22  ;;  %6623 = vmatprep.subr.bf16.mxu0 %v22621_v26  ;;  %v22690_v22 = vld [vmem:[#allocation5 + $0x1174] ss:$36 sps:$4 sm:$0xff]  }
 0x251   :  { %6453 = vmatprep.subr.bf16.mxu1 %v22618_v25  ;;  %6483 = vmatprep.mubr.bf16.mxu1 %v24865_v52  ;;  %v22688_v25 = vld [vmem:[#allocation5 + $0x1170] ss:$36 sps:$4 sm:$0xff]  }
 0x252   :  { %v22691_v26 = vld [vmem:[#allocation5 + $0x1250] ss:$36 sps:$4 sm:$0xff]  }
 0x253   :  { %6624 = vmatpush1.bf16.msra.mxu0 %v22619_v27  ;;  %v22699_v27 = vld [vmem:[#allocation5 + $0x129c] ss:$36 sps:$4 sm:$0xff]  }
 0x254   :  { %6454 = vmatpush1.bf16.msra.mxu1 %v22616_v47  ;;  %6625 = vmatprep.subr.bf16.mxu0 %v22627_v28  ;;  %v22696_v47 = vld [vmem:[#allocation5 + $0x11bc] ss:$36 sps:$4 sm:$0xff]  }
 0x255   :  { %6455 = vmatprep.subr.bf16.mxu1 %v22624_v48  ;;  %v22694_v48 = vld [vmem:[#allocation5 + $0x11b8] ss:$36 sps:$4 sm:$0xff]  }
 0x256   :  { %v22697_v28 = vld [vmem:[#allocation5 + $0x1298] ss:$36 sps:$4 sm:$0xff]  }
 0x257   :  { %6626 = vmatpush1.bf16.msra.mxu0 %v22625_v30  ;;  %v22705_v30 = vld [vmem:[#allocation5 + $0x12e4] ss:$36 sps:$4 sm:$0xff]  }
 0x258   :  { %6456 = vmatpush1.bf16.msra.mxu1 %v22622_v29  ;;  %6627 = vmatprep.subr.bf16.mxu0 %v22633_v18  ;;  %v22702_v29 = vld [vmem:[#allocation5 + $0x1204] ss:$36 sps:$4 sm:$0xff]  }
 0x259   :  { %6457 = vmatprep.subr.bf16.mxu1 %v22630_v31  ;;  %v22700_v31 = vld [vmem:[#allocation5 + $0x1200] ss:$36 sps:$4 sm:$0xff]  }
 0x25a   :  { %v22703_v18 = vld [vmem:[#allocation5 + $0x12e0] ss:$36 sps:$4 sm:$0xff]  }
 0x25b   :  { %6628 = vmatpush1.bf16.msra.mxu0 %v22631_v36  ;;  %v22711_v36 = vld [vmem:[#allocation5 + $0x132c] ss:$36 sps:$4 sm:$0xff]  }
 0x25c   :  { %6458 = vmatpush1.bf16.msra.mxu1 %v22628_v33  ;;  %6629 = vmatprep.subr.bf16.mxu0 %v22639_v38  ;;  %v22708_v33 = vld [vmem:[#allocation5 + $0x124c] ss:$36 sps:$4 sm:$0xff]  }
 0x25d   :  { %6459 = vmatprep.subr.bf16.mxu1 %v22636_v37  ;;  %v22706_v37 = vld [vmem:[#allocation5 + $0x1248] ss:$36 sps:$4 sm:$0xff]  }
 0x25e   :  { %v22709_v38 = vld [vmem:[#allocation5 + $0x1328] ss:$36 sps:$4 sm:$0xff]  }
 0x25f   :  { %6630 = vmatpush1.bf16.msra.mxu0 %v22637_v40  ;;  %v22717_v40 = vld [vmem:[#allocation5 + $0x1374] ss:$36 sps:$4 sm:$0xff]  }
 0x260   :  { %6460 = vmatpush1.bf16.msra.mxu1 %v22634_v39  ;;  %6631 = vmatprep.subr.bf16.mxu0 %v22645_v42  ;;  %v22714_v39 = vld [vmem:[#allocation5 + $0x1294] ss:$36 sps:$4 sm:$0xff]  }
 0x261   :  { %6461 = vmatprep.subr.bf16.mxu1 %v22642_v41  ;;  %v22712_v41 = vld [vmem:[#allocation5 + $0x1290] ss:$36 sps:$4 sm:$0xff]  }
 0x262   :  { %v22715_v42 = vld [vmem:[#allocation5 + $0x1370] ss:$36 sps:$4 sm:$0xff]  }
 0x263   :  { %6632 = vmatpush1.bf16.msra.mxu0 %v22643_v44  ;;  %v22723_v44 = vld [vmem:[#allocation5 + $0x13bc] ss:$36 sps:$4 sm:$0xff]  }
 0x264   :  { %6462 = vmatpush1.bf16.msra.mxu1 %v22640_v43  ;;  %6633 = vmatprep.subr.bf16.mxu0 %v22651_v50  ;;  %v22720_v43 = vld [vmem:[#allocation5 + $0x12dc] ss:$36 sps:$4 sm:$0xff]  }
 0x265   :  { %6463 = vmatprep.subr.bf16.mxu1 %v22648_v45  ;;  %v22718_v45 = vld [vmem:[#allocation5 + $0x12d8] ss:$36 sps:$4 sm:$0xff]  }
 0x266   :  { %v22721_v50 = vld [vmem:[#allocation5 + $0x13b8] ss:$36 sps:$4 sm:$0xff]  }
 0x267   :  { %6634 = vmatpush1.bf16.msra.mxu0 %v22649_v53  ;;  %v22729_v53 = vld [vmem:[#allocation5 + $0x1404] ss:$36 sps:$4 sm:$0xff]  }
 0x268   :  { %6464 = vmatpush1.bf16.msra.mxu1 %v22646_v51  ;;  %6635 = vmatprep.subr.bf16.mxu0 %v22657_v55  ;;  %v22726_v51 = vld [vmem:[#allocation5 + $0x1324] ss:$36 sps:$4 sm:$0xff]  }
 0x269   :  { %6465 = vmatprep.subr.bf16.mxu1 %v22654_v54  ;;  %v22724_v54 = vld [vmem:[#allocation5 + $0x1320] ss:$36 sps:$4 sm:$0xff]  }
 0x26a   :  { %v22727_v55 = vld [vmem:[#allocation5 + $0x1400] ss:$36 sps:$4 sm:$0xff]  }
 0x26b   :  { %6636 = vmatpush1.bf16.msra.mxu0 %v22655_v57  ;;  %v22735_v57 = vld [vmem:[#allocation5 + $0x144c] ss:$36 sps:$4 sm:$0xff]  }
 0x26c   :  { %6466 = vmatpush1.bf16.msra.mxu1 %v22652_v56  ;;  %6637 = vmatprep.subr.bf16.mxu0 %v22663_v59  ;;  %v22732_v56 = vld [vmem:[#allocation5 + $0x136c] ss:$36 sps:$4 sm:$0xff]  }
 0x26d   :  { %6467 = vmatprep.subr.bf16.mxu1 %v22660_v58  ;;  %v22730_v58 = vld [vmem:[#allocation5 + $0x1368] ss:$36 sps:$4 sm:$0xff]  }
 0x26e   :  { %v22733_v59 = vld [vmem:[#allocation5 + $0x1448] ss:$36 sps:$4 sm:$0xff]  }
 0x26f   :  { %6638 = vmatpush1.bf16.msra.mxu0 %v22661_v61  ;;  %v22741_v61 = vld [vmem:[#allocation5 + $0x1494] ss:$36 sps:$4 sm:$0xff]  }
 0x270   :  { %6468 = vmatpush1.bf16.msra.mxu1 %v22658_v60  ;;  %6639 = vmatprep.subr.bf16.mxu0 %v22669_v63  ;;  %v22738_v60 = vld [vmem:[#allocation5 + $0x13b4] ss:$36 sps:$4 sm:$0xff]  }
 0x271   :  { %6469 = vmatprep.subr.bf16.mxu1 %v22666_v62  ;;  %v22736_v62 = vld [vmem:[#allocation5 + $0x13b0] ss:$36 sps:$4 sm:$0xff]  }
 0x272   :  { %v22739_v63 = vld [vmem:[#allocation5 + $0x1490] ss:$36 sps:$4 sm:$0xff]  }
 0x273   :  { %6640 = vmatpush1.bf16.msra.mxu0 %v22667_v2  ;;  %v22747_v2 = vld [vmem:[#allocation5 + $0x14dc] ss:$36 sps:$4 sm:$0xff]  }
 0x274   :  { %6470 = vmatpush1.bf16.msra.mxu1 %v22664_v1  ;;  %6641 = vmatprep.subr.bf16.mxu0 %v22675_v4  ;;  %v22744_v1 = vld [vmem:[#allocation5 + $0x13fc] ss:$36 sps:$4 sm:$0xff]  }
 0x275   :  { %6471 = vmatprep.subr.bf16.mxu1 %v22672_v3  ;;  %v22742_v3 = vld [vmem:[#allocation5 + $0x13f8] ss:$36 sps:$4 sm:$0xff]  }
 0x276   :  { %v22745_v4 = vld [vmem:[#allocation5 + $0x14d8] ss:$36 sps:$4 sm:$0xff]  }
 0x277   :  { %6642 = vmatpush1.bf16.msra.mxu0 %v22673_v6  ;;  %v22753_v6 = vld [vmem:[#allocation5 + $0x1524] ss:$36 sps:$4 sm:$0xff]  }
 0x278   :  { %6472 = vmatpush1.bf16.msra.mxu1 %v22670_v5  ;;  %6643 = vmatprep.subr.bf16.mxu0 %v22681_v9  ;;  %v22750_v5 = vld [vmem:[#allocation5 + $0x1444] ss:$36 sps:$4 sm:$0xff]  }
 0x279   :  { %6473 = vmatprep.subr.bf16.mxu1 %v22678_v7  ;;  %v22748_v7 = vld [vmem:[#allocation5 + $0x1440] ss:$36 sps:$4 sm:$0xff]  }
 0x27a   :  { %v22751_v9 = vld [vmem:[#allocation5 + $0x1520] ss:$36 sps:$4 sm:$0xff]  }
 0x27b   :  { %6644 = vmatpush1.bf16.msra.mxu0 %v22679_v11  ;;  %v22759_v11 = vld [vmem:[#allocation5 + $0x156c] ss:$36 sps:$4 sm:$0xff]  }
 0x27c   :  { %6474 = vmatpush1.bf16.msra.mxu1 %v22676_v10  ;;  %6645 = vmatprep.subr.bf16.mxu0 %v22687_v16  ;;  %v22756_v10 = vld [vmem:[#allocation5 + $0x148c] ss:$36 sps:$4 sm:$0xff]  }
 0x27d   :  { %6475 = vmatprep.subr.bf16.mxu1 %v22684_v12  ;;  %v22754_v12 = vld [vmem:[#allocation5 + $0x1488] ss:$36 sps:$4 sm:$0xff]  }
 0x27e   :  { %v22757_v16 = vld [vmem:[#allocation5 + $0x1568] ss:$36 sps:$4 sm:$0xff]  }
 0x27f   :  { %6646 = vmatpush1.bf16.msra.mxu0 %v22685_v21  ;;  %v22765_v21 = vld [vmem:[#allocation5 + $0x15b4] ss:$36 sps:$4 sm:$0xff]  }
 0x280   :  { %6476 = vmatpush1.bf16.msra.mxu1 %v22682_v20  ;;  %6656 = vmatprep.subr.bf16.mxu0 %v22693_v24  ;;  %v22762_v20 = vld [vmem:[#allocation5 + $0x14d4] ss:$36 sps:$4 sm:$0xff]  }
 0x281   :  { %6477 = vmatprep.subr.bf16.mxu1 %v22690_v22  ;;  %v22760_v22 = vld [vmem:[#allocation5 + $0x14d0] ss:$36 sps:$4 sm:$0xff]  }
 0x282   :  { %6648 = vmatmul.mubr.bf16.vlgmr.msra.gmra.mrb[16].mxu0 %v24869_v8  ;;  %v22763_v24 = vld [vmem:[#allocation5 + $0x15b0] ss:$36 sps:$4 sm:$0xff]  }
 0x283   :  { %6657 = vmatpush1.bf16.msra.mxu0 %v22691_v26  ;;  %6688 = vmatprep.mubr.bf16.mxu0 %v24877_v35  ;;  %v22771_v26 = vld [vmem:[#allocation5 + $0x15fc] ss:$36 sps:$4 sm:$0xff]  }
 0x284   :  { %6478 = vmatpush1.bf16.msra.mxu1 %v22688_v25  ;;  %6658 = vmatprep.subr.bf16.mxu0 %v22699_v27  ;;  %v22768_v25 = vld [vmem:[#allocation5 + $0x151c] ss:$36 sps:$4 sm:$0xff]  }
 0x285   :  { %6479 = vmatprep.subr.bf16.mxu1 %v22696_v47  ;;  %v22766_v47 = vld [vmem:[#allocation5 + $0x1518] ss:$36 sps:$4 sm:$0xff]  }
 0x286   :  { %v22769_v27 = vld [vmem:[#allocation5 + $0x15f8] ss:$36 sps:$4 sm:$0xff]  }
 0x287   :  { %6659 = vmatpush1.bf16.msra.mxu0 %v22697_v28  ;;  %v22777_v28 = vld [vmem:[#allocation5 + $0x1644] ss:$36 sps:$4 sm:$0xff]  }
 0x288   :  { %6480 = vmatpush1.bf16.msra.mxu1 %v22694_v48  ;;  %6660 = vmatprep.subr.bf16.mxu0 %v22705_v30  ;;  %v22774_v48 = vld [vmem:[#allocation5 + $0x1564] ss:$36 sps:$4 sm:$0xff]  }
 0x289   :  { %6481 = vmatprep.subr.bf16.mxu1 %v22702_v29  ;;  %v22772_v29 = vld [vmem:[#allocation5 + $0x1560] ss:$36 sps:$4 sm:$0xff]  }
 0x28a   :  { %v22775_v30 = vld [vmem:[#allocation5 + $0x1640] ss:$36 sps:$4 sm:$0xff]  }
 0x28b   :  { %6661 = vmatpush1.bf16.msra.mxu0 %v22703_v18  ;;  %v22783_v18 = vld [vmem:[#allocation5 + $0x168c] ss:$36 sps:$4 sm:$0xff]  }
 0x28c   :  { %6482 = vmatpush1.bf16.msra.mxu1 %v22700_v31  ;;  %6662 = vmatprep.subr.bf16.mxu0 %v22711_v36  ;;  %v22780_v31 = vld [vmem:[#allocation5 + $0x15ac] ss:$36 sps:$4 sm:$0xff]  }
 0x28d   :  { %6492 = vmatprep.subr.bf16.mxu1 %v22708_v33  ;;  %v22778_v33 = vld [vmem:[#allocation5 + $0x15a8] ss:$36 sps:$4 sm:$0xff]  }
 0x28e   :  { %v22781_v36 = vld [vmem:[#allocation5 + $0x1688] ss:$36 sps:$4 sm:$0xff]  }
 0x28f   :  { %6484 = vmatmul.mubr.bf16.vlgmr.msra.gmra.mrb[24].mxu1 %v24869_v8  ;;  %6663 = vmatpush1.bf16.msra.mxu0 %v22709_v38  ;;  %v22789_v38 = vld [vmem:[#allocation5 + $0x16d4] ss:$36 sps:$4 sm:$0xff]  }
 0x290   :  { %6493 = vmatpush1.bf16.msra.mxu1 %v22706_v37  ;;  %6664 = vmatprep.subr.bf16.mxu0 %v22717_v40  ;;  %v22786_v37 = vld [vmem:[#allocation5 + $0x15f4] ss:$36 sps:$4 sm:$0xff]  }
 0x291   :  { %6494 = vmatprep.subr.bf16.mxu1 %v22714_v39  ;;  %6524 = vmatprep.mubr.bf16.mxu1 %v24877_v35  ;;  %v22784_v39 = vld [vmem:[#allocation5 + $0x15f0] ss:$36 sps:$4 sm:$0xff]  }
 0x292   :  { %v22787_v40 = vld [vmem:[#allocation5 + $0x16d0] ss:$36 sps:$4 sm:$0xff]  }
 0x293   :  { %6665 = vmatpush1.bf16.msra.mxu0 %v22715_v42  ;;  %v22795_v42 = vld [vmem:[#allocation5 + $0x171c] ss:$36 sps:$4 sm:$0xff]  }
 0x294   :  { %6495 = vmatpush1.bf16.msra.mxu1 %v22712_v41  ;;  %6666 = vmatprep.subr.bf16.mxu0 %v22723_v44  ;;  %v22792_v41 = vld [vmem:[#allocation5 + $0x163c] ss:$36 sps:$4 sm:$0xff]  }
 0x295   :  { %6496 = vmatprep.subr.bf16.mxu1 %v22720_v43  ;;  %v22790_v43 = vld [vmem:[#allocation5 + $0x1638] ss:$36 sps:$4 sm:$0xff]  }
 0x296   :  { %v22793_v44 = vld [vmem:[#allocation5 + $0x1718] ss:$36 sps:$4 sm:$0xff]  }
 0x297   :  { %6667 = vmatpush1.bf16.msra.mxu0 %v22721_v50  ;;  %v22801_v50 = vld [vmem:[#allocation5 + $0x1764] ss:$36 sps:$4 sm:$0xff]  }
 0x298   :  { %6497 = vmatpush1.bf16.msra.mxu1 %v22718_v45  ;;  %6668 = vmatprep.subr.bf16.mxu0 %v22729_v53  ;;  %v22798_v45 = vld [vmem:[#allocation5 + $0x1684] ss:$36 sps:$4 sm:$0xff]  }
 0x299   :  { %6498 = vmatprep.subr.bf16.mxu1 %v22726_v51  ;;  %v22796_v51 = vld [vmem:[#allocation5 + $0x1680] ss:$36 sps:$4 sm:$0xff]  }
 0x29a   :  { %v22799_v53 = vld [vmem:[#allocation5 + $0x1760] ss:$36 sps:$4 sm:$0xff]  }
 0x29b   :  { %6669 = vmatpush1.bf16.msra.mxu0 %v22727_v55  ;;  %v22807_v55 = vld [vmem:[#allocation5 + $0x17ac] ss:$36 sps:$4 sm:$0xff]  }
 0x29c   :  { %6499 = vmatpush1.bf16.msra.mxu1 %v22724_v54  ;;  %6670 = vmatprep.subr.bf16.mxu0 %v22735_v57  ;;  %v22804_v54 = vld [vmem:[#allocation5 + $0x16cc] ss:$36 sps:$4 sm:$0xff]  }
 0x29d   :  { %6500 = vmatprep.subr.bf16.mxu1 %v22732_v56  ;;  %v22802_v56 = vld [vmem:[#allocation5 + $0x16c8] ss:$36 sps:$4 sm:$0xff]  }
 0x29e   :  { %v22805_v57 = vld [vmem:[#allocation5 + $0x17a8] ss:$36 sps:$4 sm:$0xff]  }
 0x29f   :  { %6671 = vmatpush1.bf16.msra.mxu0 %v22733_v59  ;;  %v22813_v59 = vld [vmem:[#allocation5 + $0x17f4] ss:$36 sps:$4 sm:$0xff]  }
 0x2a0   :  { %6501 = vmatpush1.bf16.msra.mxu1 %v22730_v58  ;;  %6672 = vmatprep.subr.bf16.mxu0 %v22741_v61  ;;  %v22810_v58 = vld [vmem:[#allocation5 + $0x1714] ss:$36 sps:$4 sm:$0xff]  }
 0x2a1   :  { %6502 = vmatprep.subr.bf16.mxu1 %v22738_v60  ;;  %v22808_v60 = vld [vmem:[#allocation5 + $0x1710] ss:$36 sps:$4 sm:$0xff]  }
 0x2a2   :  { %v22811_v61 = vld [vmem:[#allocation5 + $0x17f0] ss:$36 sps:$4 sm:$0xff]  }
 0x2a3   :  { %6673 = vmatpush1.bf16.msra.mxu0 %v22739_v63  ;;  %v22819_v63 = vld [vmem:[#allocation5 + $0x183c] ss:$36 sps:$4 sm:$0xff]  }
 0x2a4   :  { %6503 = vmatpush1.bf16.msra.mxu1 %v22736_v62  ;;  %6674 = vmatprep.subr.bf16.mxu0 %v22747_v2  ;;  %v22816_v62 = vld [vmem:[#allocation5 + $0x175c] ss:$36 sps:$4 sm:$0xff]  }
 0x2a5   :  { %6504 = vmatprep.subr.bf16.mxu1 %v22744_v1  ;;  %v22814_v1 = vld [vmem:[#allocation5 + $0x1758] ss:$36 sps:$4 sm:$0xff]  }
 0x2a6   :  { %v22817_v2 = vld [vmem:[#allocation5 + $0x1838] ss:$36 sps:$4 sm:$0xff]  }
 0x2a7   :  { %6675 = vmatpush1.bf16.msra.mxu0 %v22745_v4  ;;  %v22825_v4 = vld [vmem:[#allocation5 + $0x1884] ss:$36 sps:$4 sm:$0xff]  }
 0x2a8   :  { %6505 = vmatpush1.bf16.msra.mxu1 %v22742_v3  ;;  %6676 = vmatprep.subr.bf16.mxu0 %v22753_v6  ;;  %v22822_v3 = vld [vmem:[#allocation5 + $0x17a4] ss:$36 sps:$4 sm:$0xff]  }
 0x2a9   :  { %6506 = vmatprep.subr.bf16.mxu1 %v22750_v5 }
 0x2ab   :  { %6677 = vmatpush1.bf16.msra.mxu0 %v22751_v9 }
 0x2ac   :  { %6507 = vmatpush1.bf16.msra.mxu1 %v22748_v7  ;;  %6678 = vmatprep.subr.bf16.mxu0 %v22759_v11  ;;  %v22820_v11 = vld [vmem:[#allocation5 + $0x17a0] ss:$36 sps:$4 sm:$0xff]  }
 0x2ad   :  { %6508 = vmatprep.subr.bf16.mxu1 %v22756_v10 }
 0x2af   :  { %6679 = vmatpush1.bf16.msra.mxu0 %v22757_v16 }
 0x2b0   :  { %6509 = vmatpush1.bf16.msra.mxu1 %v22754_v12  ;;  %6680 = vmatprep.subr.bf16.mxu0 %v22765_v21  ;;  %v22823_v12 = vld [vmem:[#allocation5 + $0x1880] ss:$36 sps:$4 sm:$0xff]   ;;  %v22831_v21 = vld [vmem:[#allocation5 + $0x18cc] ss:$36 sps:$4 sm:$0xff]  }
 0x2b1   :  { %6510 = vmatprep.subr.bf16.mxu1 %v22762_v20  ;;  %v22828_v20 = vld [vmem:[#allocation5 + $0x17ec] ss:$36 sps:$4 sm:$0xff]  }
 0x2b3   :  { %6681 = vmatpush1.bf16.msra.mxu0 %v22763_v24  ;;  %v22829_v24 = vld [vmem:[#allocation5 + $0x18c8] ss:$36 sps:$4 sm:$0xff]  }
 0x2b4   :  { %6511 = vmatpush1.bf16.msra.mxu1 %v22760_v22  ;;  %6682 = vmatprep.subr.bf16.mxu0 %v22771_v26  ;;  %v22826_v22 = vld [vmem:[#allocation5 + $0x17e8] ss:$36 sps:$4 sm:$0xff]   ;;  %v22835_v26 = vld [vmem:[#allocation5 + $0x1910] ss:$36 sps:$4 sm:$0xff]  }
 0x2b5   :  { %6512 = vmatprep.subr.bf16.mxu1 %v22768_v25  ;;  %v22837_v25 = vld [vmem:[#allocation5 + $0x1914] ss:$36 sps:$4 sm:$0xff]  }
 0x2b7   :  { %6683 = vmatpush1.bf16.msra.mxu0 %v22769_v27  ;;  %v22843_v27 = vld [vmem:[#allocation5 + $0x195c] ss:$36 sps:$4 sm:$0xff]  }
 0x2b8   :  { %6513 = vmatpush1.bf16.msra.mxu1 %v22766_v47  ;;  %6684 = vmatprep.subr.bf16.mxu0 %v22777_v28  ;;  %v22840_v47 = vld [vmem:[#allocation5 + $0x187c] ss:$36 sps:$4 sm:$0xff]  }
 0x2b9   :  { %6514 = vmatprep.subr.bf16.mxu1 %v22774_v48  ;;  %v22838_v48 = vld [vmem:[#allocation5 + $0x1878] ss:$36 sps:$4 sm:$0xff]  }
 0x2ba   :  { %v22841_v28 = vld [vmem:[#allocation5 + $0x1958] ss:$36 sps:$4 sm:$0xff]  }
 0x2bb   :  { %6685 = vmatpush1.bf16.msra.mxu0 %v22775_v30  ;;  %v22849_v30 = vld [vmem:[#allocation5 + $0x19a4] ss:$36 sps:$4 sm:$0xff]  }
 0x2bc   :  { %6515 = vmatpush1.bf16.msra.mxu1 %v22772_v29  ;;  %6686 = vmatprep.subr.bf16.mxu0 %v22783_v18  ;;  %v22846_v29 = vld [vmem:[#allocation5 + $0x18c4] ss:$36 sps:$4 sm:$0xff]  }
 0x2bd   :  { %6516 = vmatprep.subr.bf16.mxu1 %v22780_v31  ;;  %v22844_v31 = vld [vmem:[#allocation5 + $0x18c0] ss:$36 sps:$4 sm:$0xff]  }
 0x2be   :  { %v22847_v18 = vld [vmem:[#allocation5 + $0x19a0] ss:$36 sps:$4 sm:$0xff]  }
 0x2bf   :  { %6687 = vmatpush1.bf16.msra.mxu0 %v22781_v36  ;;  %v22855_v36 = vld [vmem:[#allocation5 + $0x19ec] ss:$36 sps:$4 sm:$0xff]  }
 0x2c0   :  { %6517 = vmatpush1.bf16.msra.mxu1 %v22778_v33  ;;  %6697 = vmatprep.subr.bf16.mxu0 %v22789_v38  ;;  %v22852_v33 = vld [vmem:[#allocation5 + $0x190c] ss:$36 sps:$4 sm:$0xff]  }
 0x2c1   :  { %6518 = vmatprep.subr.bf16.mxu1 %v22786_v37  ;;  %v22850_v37 = vld [vmem:[#allocation5 + $0x1908] ss:$36 sps:$4 sm:$0xff]  }
 0x2c2   :  { %6689 = vmatmul.mubr.bf16.vlgmr.msra.gmra.mrb[16].mxu0 %v24883_v15  ;;  %v22853_v38 = vld [vmem:[#allocation5 + $0x19e8] ss:$36 sps:$4 sm:$0xff]  }
 0x2c3   :  { %6698 = vmatpush1.bf16.msra.mxu0 %v22787_v40  ;;  %6729 = vmatprep.mubr.bf16.mxu0 %v24889_v19  ;;  %v22861_v40 = vld [vmem:[#allocation5 + $0x1a34] ss:$36 sps:$4 sm:$0xff]  }
 0x2c4   :  { %6519 = vmatpush1.bf16.msra.mxu1 %v22784_v39  ;;  %6699 = vmatprep.subr.bf16.mxu0 %v22795_v42  ;;  %v22858_v39 = vld [vmem:[#allocation5 + $0x1954] ss:$36 sps:$4 sm:$0xff]  }
 0x2c5   :  { %6520 = vmatprep.subr.bf16.mxu1 %v22792_v41  ;;  %v22856_v41 = vld [vmem:[#allocation5 + $0x1950] ss:$36 sps:$4 sm:$0xff]  }
 0x2c6   :  { %v22859_v42 = vld [vmem:[#allocation5 + $0x1a30] ss:$36 sps:$4 sm:$0xff]  }
 0x2c7   :  { %6700 = vmatpush1.bf16.msra.mxu0 %v22793_v44  ;;  %v22867_v44 = vld [vmem:[#allocation5 + $0x1a7c] ss:$36 sps:$4 sm:$0xff]  }
 0x2c8   :  { %6521 = vmatpush1.bf16.msra.mxu1 %v22790_v43  ;;  %6701 = vmatprep.subr.bf16.mxu0 %v22801_v50  ;;  %v22864_v43 = vld [vmem:[#allocation5 + $0x199c] ss:$36 sps:$4 sm:$0xff]  }
 0x2c9   :  { %6522 = vmatprep.subr.bf16.mxu1 %v22798_v45  ;;  %v22862_v45 = vld [vmem:[#allocation5 + $0x1998] ss:$36 sps:$4 sm:$0xff]  }
 0x2ca   :  { %v22865_v50 = vld [vmem:[#allocation5 + $0x1a78] ss:$36 sps:$4 sm:$0xff]  }
 0x2cb   :  { %6702 = vmatpush1.bf16.msra.mxu0 %v22799_v53  ;;  %v22873_v53 = vld [vmem:[#allocation5 + $0x1ac4] ss:$36 sps:$4 sm:$0xff]  }
 0x2cc   :  { %6523 = vmatpush1.bf16.msra.mxu1 %v22796_v51  ;;  %6703 = vmatprep.subr.bf16.mxu0 %v22807_v55  ;;  %v22870_v51 = vld [vmem:[#allocation5 + $0x19e4] ss:$36 sps:$4 sm:$0xff]  }
 0x2cd   :  { %6533 = vmatprep.subr.bf16.mxu1 %v22804_v54 }
 0x2cf   :  { %6525 = vmatmul.mubr.bf16.vlgmr.msra.gmra.mrb[24].mxu1 %v24883_v15  ;;  %6704 = vmatpush1.bf16.msra.mxu0 %v22805_v57  ;;  %v22871_v57 = vld [vmem:[#allocation5 + $0x1ac0] ss:$36 sps:$4 sm:$0xff]  }
 0x2d0   :  { %6534 = vmatpush1.bf16.msra.mxu1 %v22802_v56  ;;  %6705 = vmatprep.subr.bf16.mxu0 %v22813_v59  ;;  %v22868_v56 = vld [vmem:[#allocation5 + $0x19e0] ss:$36 sps:$4 sm:$0xff]  }
 0x2d1   :  { %6535 = vmatprep.subr.bf16.mxu1 %v22810_v58  ;;  %6565 = vmatprep.mubr.bf16.mxu1 %v24889_v19 }
 0x2d3   :  { %6706 = vmatpush1.bf16.msra.mxu0 %v22811_v61  ;;  %v22879_v61 = vld [vmem:[#allocation5 + $0x1b0c] ss:$36 sps:$4 sm:$0xff]  }
 0x2d4   :  { %6536 = vmatpush1.bf16.msra.mxu1 %v22808_v60  ;;  %6707 = vmatprep.subr.bf16.mxu0 %v22819_v63  ;;  %v22876_v60 = vld [vmem:[#allocation5 + $0x1a2c] ss:$36 sps:$4 sm:$0xff]  }
 0x2d5   :  { %6537 = vmatprep.subr.bf16.mxu1 %v22816_v62  ;;  %v3335_v5 = vpop.f32.mrb[4].mxu0 }
 0x2d6   :  { %v24962_v6 = vadd.f32 %v24940_v46, %v3335_v5  ;;  %v3337_v7 = vpop.f32.mrb[5].mxu0  ;;  %v22834_v46 = vld [vmem:[#allocation5 + $0x1834] ss:$36 sps:$4 sm:$0xff]  }
 0x2d7   :  { %v24965_v9 = vadd.f32 %v24942_v49, %v3337_v7  ;;  %v3339_v10 = vpop.f32.mrb[6].mxu0  ;;  %6708 = vmatpush1.bf16.msra.mxu0 %v22817_v2  ;;  %v22832_v49 = vld [vmem:[#allocation5 + $0x1830] ss:$36 sps:$4 sm:$0xff]  }
 0x2d8   :  { %6538 = vmatpush1.bf16.msra.mxu1 %v22814_v1  ;;  %v3340_v16 = vpop.f32.mrb[7].mxu0  ;;  %6709 = vmatprep.subr.bf16.mxu0 %v22825_v4  ;;  %v22877_v4 = vld [vmem:[#allocation5 + $0x1b08] ss:$36 sps:$4 sm:$0xff]   ;;  %v22882_v7 = vld [vmem:[#allocation5 + $0x1a74] ss:$36 sps:$4 sm:$0xff]  }
 0x2d9   :  { %6539 = vmatprep.subr.bf16.mxu1 %v22822_v3  ;;  %v22874_v3 = vld [vmem:[#allocation5 + $0x1a28] ss:$36 sps:$4 sm:$0xff]   ;;  %v22891_v10 = vld [vmem:[#allocation5 + $0x1b54] ss:$36 sps:$4 sm:$0xff]  }
 0x2da   :  { %v22889_v16 = vld [vmem:[#allocation5 + $0x1b50] ss:$36 sps:$4 sm:$0xff]  }
 0x2db   :  { %6710 = vmatpush1.bf16.msra.mxu0 %v22823_v12  ;;  %v22885_v12 = vld [vmem:[#allocation5 + $0x1abc] ss:$36 sps:$4 sm:$0xff]  }
 0x2dc   :  { %6540 = vmatpush1.bf16.msra.mxu1 %v22820_v11  ;;  %6711 = vmatprep.subr.bf16.mxu0 %v22831_v21  ;;  %v22880_v11 = vld [vmem:[#allocation5 + $0x1a70] ss:$36 sps:$4 sm:$0xff]   ;;  %v22883_v21 = vld [vmem:[#allocation5 + $0x1ab8] ss:$36 sps:$4 sm:$0xff]  }
 0x2dd   :  { %6541 = vmatprep.subr.bf16.mxu1 %v22828_v20  ;;  %v22897_v20 = vld [vmem:[#allocation5 + $0xde4] ss:$36 sps:$4 sm:$0xff]  }
 0x2df   :  { %6712 = vmatpush1.bf16.msra.mxu0 %v22829_v24  ;;  %v22886_v24 = vld [vmem:[#allocation5 + $0x1b00] ss:$36 sps:$4 sm:$0xff]  }
 0x2e0   :  { %6542 = vmatpush1.bf16.msra.mxu1 %v22826_v22  ;;  %6713 = vmatprep.subr.bf16.mxu0 %v22837_v25  ;;  %v22888_v22 = vld [vmem:[#allocation5 + $0x1b04] ss:$36 sps:$4 sm:$0xff]  }
 0x2e1   :  { %6543 = vmatprep.subr.bf16.mxu1 %v22834_v46  ;;  %v22894_v46 = vld [vmem:[#allocation5 + $0x1b4c] ss:$36 sps:$4 sm:$0xff]  }
 0x2e2   :  { %v22892_v25 = vld [vmem:[#allocation5 + $0x1b48] ss:$36 sps:$4 sm:$0xff]  }
 0x2e3   :  { %6714 = vmatpush1.bf16.msra.mxu0 %v22835_v26  ;;  %v22900_v26 = vld [vmem:[#allocation5 + $0xe2c] ss:$36 sps:$4 sm:$0xff]  }
 0x2e4   :  { %6544 = vmatpush1.bf16.msra.mxu1 %v22832_v49  ;;  %6715 = vmatprep.subr.bf16.mxu0 %v22843_v27  ;;  %v22895_v49 = vld [vmem:[#allocation5 + $0xde0] ss:$36 sps:$4 sm:$0xff]   ;;  %v24530_v27 = vld [vmem:[#allocation2 + $0x18] ss:$0 sps:$4 sm:$0xff]  }
 0x2e5   :  { %6545 = vmatprep.subr.bf16.mxu1 %v22840_v47  ;;  %v22906_v47 = vld [vmem:[#allocation5 + $0xddc] ss:$36 sps:$4 sm:$0xff]  }
 0x2e7   :  { %6716 = vmatpush1.bf16.msra.mxu0 %v22841_v28  ;;  %v22903_v28 = vld [vmem:[#allocation5 + $0xe74] ss:$36 sps:$4 sm:$0xff]  }
 0x2e8   :  { %6546 = vmatpush1.bf16.msra.mxu1 %v22838_v48  ;;  %6717 = vmatprep.subr.bf16.mxu0 %v22849_v30  ;;  %v22898_v48 = vld [vmem:[#allocation5 + $0xe28] ss:$36 sps:$4 sm:$0xff]   ;;  %v22909_v30 = vld [vmem:[#allocation5 + $0xebc] ss:$36 sps:$4 sm:$0xff]  }
 0x2e9   :  { %6547 = vmatprep.subr.bf16.mxu1 %v22846_v29  ;;  %v22901_v29 = vld [vmem:[#allocation5 + $0xe70] ss:$36 sps:$4 sm:$0xff]  }
 0x2eb   :  { %6718 = vmatpush1.bf16.msra.mxu0 %v22847_v18 }
 0x2ec   :  { %6548 = vmatpush1.bf16.msra.mxu1 %v22844_v31  ;;  %6719 = vmatprep.subr.bf16.mxu0 %v22855_v36  ;;  %v22907_v36 = vld [vmem:[#allocation5 + $0xeb8] ss:$36 sps:$4 sm:$0xff]  }
 0x2ed   :  { %6549 = vmatprep.subr.bf16.mxu1 %v22852_v33  ;;  %v22904_v33 = vld [vmem:[#allocation5 + $0xdd8] ss:$36 sps:$4 sm:$0xff]  }
 0x2ef   :  { %6720 = vmatpush1.bf16.msra.mxu0 %v22853_v38 }
 0x2f0   :  { %6550 = vmatpush1.bf16.msra.mxu1 %v22850_v37  ;;  %6721 = vmatprep.subr.bf16.mxu0 %v22861_v40  ;;  %v22915_v40 = vld [vmem:[#allocation5 + $0xf04] ss:$36 sps:$4 sm:$0xff]  }
 0x2f1   :  { %6551 = vmatprep.subr.bf16.mxu1 %v22858_v39  ;;  %v22912_v39 = vld [vmem:[#allocation5 + $0xe24] ss:$36 sps:$4 sm:$0xff]  }
 0x2f3   :  { %6722 = vmatpush1.bf16.msra.mxu0 %v22859_v42 }
 0x2f4   :  { %6552 = vmatpush1.bf16.msra.mxu1 %v22856_v41  ;;  %6723 = vmatprep.subr.bf16.mxu0 %v22867_v44 }
 0x2f5   :  { %6553 = vmatprep.subr.bf16.mxu1 %v22864_v43  ;;  %v21386_v54 = vpop.f32.mrb[8].mxu0 }
 0x2f6   :  { %v21387_v55 = vpop.f32.mrb[9].mxu0 }
 0x2f7   :  { %6724 = vmatpush1.bf16.msra.mxu0 %v22865_v50  ;;  %v24967_v58 = vadd.f32 %v21387_v55, %v21386_v54  ;;  %v21389_v59 = vpop.f32.mrb[10].mxu0  ;;  %v22910_v50 = vld [vmem:[#allocation5 + $0xe20] ss:$36 sps:$4 sm:$0xff]   ;;  %v22918_v54 = vld [vmem:[#allocation5 + $0xe6c] ss:$36 sps:$4 sm:$0xff]  }
 0x2f8   :  { %6554 = vmatpush1.bf16.msra.mxu1 %v22862_v45  ;;  %6725 = vmatprep.subr.bf16.mxu0 %v22873_v53  ;;  %v21390_v62 = vpop.f32.mrb[11].mxu0  ;;  %v22921_v55 = vld [vmem:[#allocation5 + $0xf4c] ss:$36 sps:$4 sm:$0xff]  }
 0x2f9   :  { %6555 = vmatprep.subr.bf16.mxu1 %v22870_v51  ;;  %v22913_v51 = vld [vmem:[#allocation5 + $0xf00] ss:$36 sps:$4 sm:$0xff]   ;;  %v22927_v62 = vld [vmem:[#allocation5 + $0xf94] ss:$36 sps:$4 sm:$0xff]  }
 0x2fa   :  { %v24969_v63 = vpop.f32.mrb[12].mxu1 }
 0x2fb   :  { %v24971_v1 = vpop.f32.mrb[13].mxu1  ;;  %6726 = vmatpush1.bf16.msra.mxu0 %v22871_v57  ;;  %v22916_v57 = vld [vmem:[#allocation5 + $0xe68] ss:$36 sps:$4 sm:$0xff]  }
 0x2fc   :  { %6556 = vmatpush1.bf16.msra.mxu1 %v22868_v56  ;;  %v3544_v2 = vpop.f32.mrb[14].mxu1  ;;  %6727 = vmatprep.subr.bf16.mxu0 %v22879_v61  ;;  %v22924_v61 = vld [vmem:[#allocation5 + $0xeb4] ss:$36 sps:$4 sm:$0xff]  }
 0x2fd   :  { %v3545_v5 = vpop.f32.mrb[15].mxu1  ;;  %6557 = vmatprep.subr.bf16.mxu1 %v22876_v60  ;;  %v22919_v60 = vld [vmem:[#allocation5 + $0xf48] ss:$36 sps:$4 sm:$0xff]  }
 0x2ff   :  { %6728 = vmatpush1.bf16.msra.mxu0 %v22877_v4 }
 0x300   :  { %6558 = vmatpush1.bf16.msra.mxu1 %v22874_v3  ;;  %6738 = vmatprep.subr.bf16.mxu0 %v22891_v10 }
 0x301   :  { %6559 = vmatprep.subr.bf16.mxu1 %v22882_v7  ;;  %v22922_v7 = vld [vmem:[#allocation5 + $0xeb0] ss:$36 sps:$4 sm:$0xff]  }
 0x302   :  { %6730 = vmatmul.mubr.bf16.vlgmr.msra.gmra.mrb[16].mxu0 %v24897_v23 }
 0x303   :  { %6739 = vmatpush1.bf16.msra.mxu0 %v22889_v16  ;;  %6770 = vmatprep.mubr.bf16.mxu0 %v24735_v0  ;;  %v22928_v16 = vld [vmem:[#allocation5 + $0xef8] ss:$36 sps:$4 sm:$0xff]  }
 0x304   :  { %6560 = vmatpush1.bf16.msra.mxu1 %v22880_v11  ;;  %6943 = vmatprep.subr.bf16.mxu0 %v22897_v20  ;;  %v22930_v11 = vld [vmem:[#allocation5 + $0xefc] ss:$36 sps:$4 sm:$0xff]  }
 0x305   :  { %6561 = vmatprep.subr.bf16.mxu1 %v22885_v12  ;;  %v22933_v12 = vld [vmem:[#allocation5 + $0xfdc] ss:$36 sps:$4 sm:$0xff]  }
 0x306   :  { %v22931_v20 = vld [vmem:[#allocation5 + $0xfd8] ss:$36 sps:$4 sm:$0xff]  }
 0x308   :  { %6562 = vmatpush1.bf16.msra.mxu1 %v22883_v21  ;;  %v22936_v21 = vld [vmem:[#allocation5 + $0xf44] ss:$36 sps:$4 sm:$0xff]  }
 0x309   :  { %6563 = vmatprep.subr.bf16.mxu1 %v22888_v22  ;;  %v22939_v22 = vld [vmem:[#allocation5 + $0x1024] ss:$36 sps:$4 sm:$0xff]  }
 0x30c   :  { %6564 = vmatpush1.bf16.msra.mxu1 %v22886_v24  ;;  %v22934_v24 = vld [vmem:[#allocation5 + $0xf40] ss:$36 sps:$4 sm:$0xff]  }
 0x30d   :  { %6574 = vmatprep.subr.bf16.mxu1 %v22894_v46  ;;  %v22937_v46 = vld [vmem:[#allocation5 + $0x1020] ss:$36 sps:$4 sm:$0xff]  }
 0x30e   :  { %19880 = vmatmul.mubr.msk.bf16.vlgmr.msra.gmra.mrb[16].mxu0 %vm2887_vm0, %v24530_v27 }
 0x30f   :  { %6566 = vmatmul.mubr.bf16.vlgmr.msra.gmra.mrb[24].mxu1 %v24897_v23  ;;  %6944 = vmatpush1.bf16.msra.mxu0 %v22895_v49  ;;  %v22945_v49 = vld [vmem:[#allocation5 + $0x106c] ss:$36 sps:$4 sm:$0xff]  }
 0x310   :  { %6575 = vmatpush1.bf16.msra.mxu1 %v22892_v25  ;;  %6945 = vmatprep.subr.bf16.mxu0 %v22900_v26  ;;  %v22942_v25 = vld [vmem:[#allocation5 + $0xf8c] ss:$36 sps:$4 sm:$0xff]  }
 0x311   :  { %6606 = vmatprep.mubr.bf16.mxu1 %v24735_v0  ;;  %6779 = vmatprep.subr.bf16.mxu1 %v22906_v47  ;;  %v22940_v26 = vld [vmem:[#allocation5 + $0xf88] ss:$36 sps:$4 sm:$0xff]  }
 0x312   :  { %6975 = vmatprep.mubr.bf16.mxu0 %v24865_v52  ;;  %v22943_v47 = vld [vmem:[#allocation5 + $0x1068] ss:$36 sps:$4 sm:$0xff]  }
 0x313   :  { %6946 = vmatpush1.bf16.msra.mxu0 %v22898_v48  ;;  %v22951_v48 = vld [vmem:[#allocation5 + $0x10b4] ss:$36 sps:$4 sm:$0xff]  }
 0x314   :  { %6947 = vmatprep.subr.bf16.mxu0 %v22903_v28  ;;  %v22946_v28 = vld [vmem:[#allocation5 + $0xfd0] ss:$36 sps:$4 sm:$0xff]  }
 0x315   :  { %v21430_v31 = vpop.f32.mrb[12].mxu0 }
 0x316   :  { %v21431_v18 = vpop.f32.mrb[13].mxu0 }
 0x317   :  { %6948 = vmatpush1.bf16.msra.mxu0 %v22901_v29  ;;  %v21432_v37 = vadd.f32 %v21431_v18, %v21430_v31  ;;  %v21433_v38 = vpop.f32.mrb[14].mxu0  ;;  %v22949_v29 = vld [vmem:[#allocation5 + $0x10b0] ss:$36 sps:$4 sm:$0xff]   ;;  %v22957_v31 = vld [vmem:[#allocation5 + $0x10fc] ss:$36 sps:$4 sm:$0xff]  }
 0x318   :  { %6949 = vmatprep.subr.bf16.mxu0 %v22909_v30  ;;  %v21434_v41 = vpop.f32.mrb[15].mxu0  ;;  %v22954_v30 = vld [vmem:[#allocation5 + $0x101c] ss:$36 sps:$4 sm:$0xff]  }
 0x319   :  { %v22952_v18 = vld [vmem:[#allocation5 + $0x1018] ss:$36 sps:$4 sm:$0xff]   ;;  %v22958_v38 = vld [vmem:[#allocation5 + $0x1060] ss:$36 sps:$4 sm:$0xff]   ;;  %v22969_v41 = vld [vmem:[#allocation5 + $0x118c] ss:$36 sps:$4 sm:$0xff]  }
 0x31a   :  { %v21408_v42 = vpop.f32.mrb[16].mxu1 }
 0x31b   :  { %19879 = vmatmul.mubr.msk.bf16.vlgmr.msra.gmra.mrb[24].mxu1 %vm2887_vm0, %v24530_v27  ;;  %v21409_v43 = vpop.f32.mrb[17].mxu1  ;;  %6950 = vmatpush1.bf16.msra.mxu0 %v22907_v36  ;;  %v22948_v27 = vld [vmem:[#allocation5 + $0xfd4] ss:$36 sps:$4 sm:$0xff]   ;;  %v22960_v36 = vld [vmem:[#allocation5 + $0x1064] ss:$36 sps:$4 sm:$0xff]  }
 0x31c   :  { %6780 = vmatpush1.bf16.msra.mxu1 %v22904_v33  ;;  %v21410_v44 = vadd.f32 %v21409_v43, %v21408_v42  ;;  %v21411_v45 = vpop.f32.mrb[18].mxu1  ;;  %6951 = vmatprep.subr.bf16.mxu0 %v22915_v40  ;;  %v22955_v33 = vld [vmem:[#allocation5 + $0x10f8] ss:$36 sps:$4 sm:$0xff]   ;;  %v22966_v40 = vld [vmem:[#allocation5 + $0x10ac] ss:$36 sps:$4 sm:$0xff]  }
 0x31d   :  { %v21412_v53 = vpop.f32.mrb[19].mxu1  ;;  %6781 = vmatprep.subr.bf16.mxu1 %v22912_v39  ;;  %6811 = vmatprep.mubr.bf16.mxu1 %v24865_v52  ;;  %v22961_v39 = vld [vmem:[#allocation5 + $0x1140] ss:$36 sps:$4 sm:$0xff]   ;;  %v22964_v42 = vld [vmem:[#allocation5 + $0x10a8] ss:$36 sps:$4 sm:$0xff]  }
 0x31e   :  { %v3622_v56 = vadd.f32 %v21410_v44, %v24967_v58  ;;  %v22925_v58 = vld [vmem:[#allocation5 + $0xf90] ss:$36 sps:$4 sm:$0xff]   ;;  %v22967_v43 = vld [vmem:[#allocation5 + $0x1188] ss:$36 sps:$4 sm:$0xff]   ;;  %v22978_v53 = vld [vmem:[#allocation5 + $0x113c] ss:$36 sps:$4 sm:$0xff]  }
 0x31f   :  { %6952 = vmatpush1.bf16.msra.mxu0 %v22913_v51  ;;  %v22972_v44 = vld [vmem:[#allocation5 + $0x10f4] ss:$36 sps:$4 sm:$0xff]  }
 0x320   :  { %6782 = vmatpush1.bf16.msra.mxu1 %v22910_v50  ;;  %v3662_v59 = vadd.f32 %v21432_v37, %v3622_v56  ;;  %6953 = vmatprep.subr.bf16.mxu0 %v22921_v55  ;;  %v22963_v37 = vld [vmem:[#allocation5 + $0x1144] ss:$36 sps:$4 sm:$0xff]   ;;  %v22975_v45 = vld [vmem:[#allocation5 + $0x11d4] ss:$36 sps:$4 sm:$0xff]  }
 0x321   :  { %6783 = vmatprep.subr.bf16.mxu1 %v22918_v54  ;;  %v22970_v50 = vld [vmem:[#allocation5 + $0x10f0] ss:$36 sps:$4 sm:$0xff]   ;;  %v22981_v54 = vld [vmem:[#allocation5 + $0x121c] ss:$36 sps:$4 sm:$0xff]  }
 0x322   :  { %v3701_v2 = vpop.f32.mrb[20].mxu1  ;;  %v22973_v51 = vld [vmem:[#allocation5 + $0x11d0] ss:$36 sps:$4 sm:$0xff]   ;;  %v22976_v55 = vld [vmem:[#allocation5 + $0x1138] ss:$36 sps:$4 sm:$0xff]  }
 0x323   :  { %v24982_v3 = vadd.f32 %v3701_v2, %v3662_v59  ;;  %v21668_v4 = vpop.f32.mrb[21].mxu1  ;;  %6954 = vmatpush1.bf16.msra.mxu0 %v22919_v60  ;;  %v22979_v56 = vld [vmem:[#allocation5 + $0x1218] ss:$36 sps:$4 sm:$0xff]   ;;  %v22987_v59 = vld [vmem:[#allocation5 + $0x1264] ss:$36 sps:$4 sm:$0xff]  }
 0x324   :  { %6784 = vmatpush1.bf16.msra.mxu1 %v22916_v57  ;;  %v3704_v5 = vpop.f32.mrb[22].mxu1  ;;  %6955 = vmatprep.subr.bf16.mxu0 %v22927_v62  ;;  %v22984_v57 = vld [vmem:[#allocation5 + $0x1184] ss:$36 sps:$4 sm:$0xff]   ;;  %v22990_v62 = vld [vmem:[#allocation5 + $0x11cc] ss:$36 sps:$4 sm:$0xff]  }
 0x325   :  { %v21669_v10 = vpop.f32.mrb[23].mxu1  ;;  %6785 = vmatprep.subr.bf16.mxu1 %v22924_v61  ;;  %v22982_v60 = vld [vmem:[#allocation5 + $0x1180] ss:$36 sps:$4 sm:$0xff]   ;;  %v22993_v2 = vld [vmem:[#allocation5 + $0x12ac] ss:$36 sps:$4 sm:$0xff]  }
 0x326   :  { %v22985_v61 = vld [vmem:[#allocation5 + $0x1260] ss:$36 sps:$4 sm:$0xff]   ;;  %v22988_v4 = vld [vmem:[#allocation5 + $0x11c8] ss:$36 sps:$4 sm:$0xff]   ;;  %v22994_v10 = vld [vmem:[#allocation5 + $0x1210] ss:$36 sps:$4 sm:$0xff]  }
 0x327   :  { %6956 = vmatpush1.bf16.msra.mxu0 %v22925_v58  ;;  %v22991_v5 = vld [vmem:[#allocation5 + $0x12a8] ss:$36 sps:$4 sm:$0xff]   ;;  %v22999_v58 = vld [vmem:[#allocation5 + $0x12f4] ss:$36 sps:$4 sm:$0xff]  }
 0x328   :  { %6786 = vmatpush1.bf16.msra.mxu1 %v22922_v7  ;;  %6957 = vmatprep.subr.bf16.mxu0 %v22933_v12  ;;  %v22996_v7 = vld [vmem:[#allocation5 + $0x1214] ss:$36 sps:$4 sm:$0xff]   ;;  %v23002_v12 = vld [vmem:[#allocation5 + $0x125c] ss:$36 sps:$4 sm:$0xff]  }
 0x329   :  { %6787 = vmatprep.subr.bf16.mxu1 %v22930_v11  ;;  %v22997_v11 = vld [vmem:[#allocation5 + $0x12f0] ss:$36 sps:$4 sm:$0xff]  }
 0x32b   :  { %6958 = vmatpush1.bf16.msra.mxu0 %v22931_v20  ;;  %v23000_v20 = vld [vmem:[#allocation5 + $0x1258] ss:$36 sps:$4 sm:$0xff]  }
 0x32c   :  { %6788 = vmatpush1.bf16.msra.mxu1 %v22928_v16  ;;  %6959 = vmatprep.subr.bf16.mxu0 %v22939_v22  ;;  %v23005_v16 = vld [vmem:[#allocation5 + $0x133c] ss:$36 sps:$4 sm:$0xff]   ;;  %v23008_v22 = vld [vmem:[#allocation5 + $0x12a4] ss:$36 sps:$4 sm:$0xff]  }
 0x32d   :  { %6789 = vmatprep.subr.bf16.mxu1 %v22936_v21  ;;  %v23003_v21 = vld [vmem:[#allocation5 + $0x1338] ss:$36 sps:$4 sm:$0xff]  }
 0x32f   :  { %6960 = vmatpush1.bf16.msra.mxu0 %v22937_v46  ;;  %v23006_v46 = vld [vmem:[#allocation5 + $0x12a0] ss:$36 sps:$4 sm:$0xff]  }
 0x330   :  { %6790 = vmatpush1.bf16.msra.mxu1 %v22934_v24  ;;  %6961 = vmatprep.subr.bf16.mxu0 %v22945_v49  ;;  %v23011_v24 = vld [vmem:[#allocation5 + $0x1384] ss:$36 sps:$4 sm:$0xff]   ;;  %v23014_v49 = vld [vmem:[#allocation5 + $0x12ec] ss:$36 sps:$4 sm:$0xff]  }
 0x331   :  { %6791 = vmatprep.subr.bf16.mxu1 %v22942_v25  ;;  %v23009_v25 = vld [vmem:[#allocation5 + $0x1380] ss:$36 sps:$4 sm:$0xff]  }
 0x333   :  { %6962 = vmatpush1.bf16.msra.mxu0 %v22943_v47  ;;  %v23012_v47 = vld [vmem:[#allocation5 + $0x12e8] ss:$36 sps:$4 sm:$0xff]  }
 0x334   :  { %6792 = vmatpush1.bf16.msra.mxu1 %v22940_v26  ;;  %6963 = vmatprep.subr.bf16.mxu0 %v22951_v48  ;;  %v23017_v26 = vld [vmem:[#allocation5 + $0x13cc] ss:$36 sps:$4 sm:$0xff]   ;;  %v23020_v48 = vld [vmem:[#allocation5 + $0x1334] ss:$36 sps:$4 sm:$0xff]  }
 0x335   :  { %6793 = vmatprep.subr.bf16.mxu1 %v22948_v27  ;;  %v23015_v27 = vld [vmem:[#allocation5 + $0x13c8] ss:$36 sps:$4 sm:$0xff]  }
 0x337   :  { %6964 = vmatpush1.bf16.msra.mxu0 %v22949_v29  ;;  %v23018_v29 = vld [vmem:[#allocation5 + $0x1330] ss:$36 sps:$4 sm:$0xff]  }
 0x338   :  { %6794 = vmatpush1.bf16.msra.mxu1 %v22946_v28  ;;  %6965 = vmatprep.subr.bf16.mxu0 %v22957_v31  ;;  %v23023_v28 = vld [vmem:[#allocation5 + $0x1414] ss:$36 sps:$4 sm:$0xff]   ;;  %v23026_v31 = vld [vmem:[#allocation5 + $0x137c] ss:$36 sps:$4 sm:$0xff]  }
 0x339   :  { %6795 = vmatprep.subr.bf16.mxu1 %v22954_v30  ;;  %v23021_v30 = vld [vmem:[#allocation5 + $0x1410] ss:$36 sps:$4 sm:$0xff]  }
 0x33b   :  { %6966 = vmatpush1.bf16.msra.mxu0 %v22955_v33  ;;  %v23024_v33 = vld [vmem:[#allocation5 + $0x1378] ss:$36 sps:$4 sm:$0xff]  }
 0x33c   :  { %6796 = vmatpush1.bf16.msra.mxu1 %v22952_v18  ;;  %6967 = vmatprep.subr.bf16.mxu0 %v22963_v37  ;;  %v23029_v18 = vld [vmem:[#allocation5 + $0x145c] ss:$36 sps:$4 sm:$0xff]   ;;  %v23032_v37 = vld [vmem:[#allocation5 + $0x13c4] ss:$36 sps:$4 sm:$0xff]  }
 0x33d   :  { %6797 = vmatprep.subr.bf16.mxu1 %v22960_v36  ;;  %v23027_v36 = vld [vmem:[#allocation5 + $0x1458] ss:$36 sps:$4 sm:$0xff]  }
 0x33f   :  { %6968 = vmatpush1.bf16.msra.mxu0 %v22961_v39  ;;  %v23030_v39 = vld [vmem:[#allocation5 + $0x13c0] ss:$36 sps:$4 sm:$0xff]  }
 0x340   :  { %6798 = vmatpush1.bf16.msra.mxu1 %v22958_v38  ;;  %6969 = vmatprep.subr.bf16.mxu0 %v22969_v41  ;;  %v23035_v38 = vld [vmem:[#allocation5 + $0x14a4] ss:$36 sps:$4 sm:$0xff]   ;;  %v23038_v41 = vld [vmem:[#allocation5 + $0x140c] ss:$36 sps:$4 sm:$0xff]  }
 0x341   :  { %6799 = vmatprep.subr.bf16.mxu1 %v22966_v40  ;;  %v23033_v40 = vld [vmem:[#allocation5 + $0x14a0] ss:$36 sps:$4 sm:$0xff]  }
 0x343   :  { %6970 = vmatpush1.bf16.msra.mxu0 %v22967_v43  ;;  %v23036_v43 = vld [vmem:[#allocation5 + $0x1408] ss:$36 sps:$4 sm:$0xff]  }
 0x344   :  { %6800 = vmatpush1.bf16.msra.mxu1 %v22964_v42  ;;  %6971 = vmatprep.subr.bf16.mxu0 %v22975_v45  ;;  %v23041_v42 = vld [vmem:[#allocation5 + $0x14ec] ss:$36 sps:$4 sm:$0xff]   ;;  %v23044_v45 = vld [vmem:[#allocation5 + $0x1454] ss:$36 sps:$4 sm:$0xff]  }
 0x345   :  { %6801 = vmatprep.subr.bf16.mxu1 %v22972_v44  ;;  %v23039_v44 = vld [vmem:[#allocation5 + $0x14e8] ss:$36 sps:$4 sm:$0xff]  }
 0x347   :  { %6972 = vmatpush1.bf16.msra.mxu0 %v22973_v51  ;;  %v23042_v51 = vld [vmem:[#allocation5 + $0x1450] ss:$36 sps:$4 sm:$0xff]  }
 0x348   :  { %6802 = vmatpush1.bf16.msra.mxu1 %v22970_v50  ;;  %6973 = vmatprep.subr.bf16.mxu0 %v22981_v54  ;;  %v23047_v50 = vld [vmem:[#allocation5 + $0x1534] ss:$36 sps:$4 sm:$0xff]   ;;  %v23050_v54 = vld [vmem:[#allocation5 + $0x149c] ss:$36 sps:$4 sm:$0xff]  }
 0x349   :  { %6803 = vmatprep.subr.bf16.mxu1 %v22978_v53  ;;  %v23045_v53 = vld [vmem:[#allocation5 + $0x1530] ss:$36 sps:$4 sm:$0xff]  }
 0x34b   :  { %6974 = vmatpush1.bf16.msra.mxu0 %v22979_v56  ;;  %v23048_v56 = vld [vmem:[#allocation5 + $0x1498] ss:$36 sps:$4 sm:$0xff]  }
 0x34c   :  { %6804 = vmatpush1.bf16.msra.mxu1 %v22976_v55  ;;  %6984 = vmatprep.subr.bf16.mxu0 %v22987_v59  ;;  %v23053_v55 = vld [vmem:[#allocation5 + $0x157c] ss:$36 sps:$4 sm:$0xff]   ;;  %v23056_v59 = vld [vmem:[#allocation5 + $0x14e4] ss:$36 sps:$4 sm:$0xff]  }
 0x34d   :  { %6805 = vmatprep.subr.bf16.mxu1 %v22984_v57  ;;  %v23051_v57 = vld [vmem:[#allocation5 + $0x1578] ss:$36 sps:$4 sm:$0xff]  }
 0x34e   :  { %6976 = vmatmul.mubr.bf16.vlgmr.msra.gmra.mrb[20].mxu0 %v24869_v8 }
 0x34f   :  { %6985 = vmatpush1.bf16.msra.mxu0 %v22985_v61  ;;  %7016 = vmatprep.mubr.bf16.mxu0 %v24877_v35  ;;  %v23054_v61 = vld [vmem:[#allocation5 + $0x14e0] ss:$36 sps:$4 sm:$0xff]  }
 0x350   :  { %6806 = vmatpush1.bf16.msra.mxu1 %v22982_v60  ;;  %6986 = vmatprep.subr.bf16.mxu0 %v22993_v2  ;;  %v23059_v60 = vld [vmem:[#allocation5 + $0x15c4] ss:$36 sps:$4 sm:$0xff]   ;;  %v23062_v2 = vld [vmem:[#allocation5 + $0x152c] ss:$36 sps:$4 sm:$0xff]  }
 0x351   :  { %6807 = vmatprep.subr.bf16.mxu1 %v22990_v62  ;;  %v23057_v62 = vld [vmem:[#allocation5 + $0x15c0] ss:$36 sps:$4 sm:$0xff]  }
 0x353   :  { %6987 = vmatpush1.bf16.msra.mxu0 %v22991_v5  ;;  %v23060_v5 = vld [vmem:[#allocation5 + $0x1528] ss:$36 sps:$4 sm:$0xff]  }
 0x354   :  { %6808 = vmatpush1.bf16.msra.mxu1 %v22988_v4  ;;  %6988 = vmatprep.subr.bf16.mxu0 %v22999_v58  ;;  %v23065_v4 = vld [vmem:[#allocation5 + $0x160c] ss:$36 sps:$4 sm:$0xff]   ;;  %v23068_v58 = vld [vmem:[#allocation5 + $0x1574] ss:$36 sps:$4 sm:$0xff]  }
 0x355   :  { %6809 = vmatprep.subr.bf16.mxu1 %v22996_v7  ;;  %v23063_v7 = vld [vmem:[#allocation5 + $0x1608] ss:$36 sps:$4 sm:$0xff]  }
 0x357   :  { %6989 = vmatpush1.bf16.msra.mxu0 %v22997_v11  ;;  %v23066_v11 = vld [vmem:[#allocation5 + $0x1570] ss:$36 sps:$4 sm:$0xff]  }
 0x358   :  { %6810 = vmatpush1.bf16.msra.mxu1 %v22994_v10  ;;  %6990 = vmatprep.subr.bf16.mxu0 %v23005_v16  ;;  %v23071_v10 = vld [vmem:[#allocation5 + $0x1654] ss:$36 sps:$4 sm:$0xff]   ;;  %v23074_v16 = vld [vmem:[#allocation5 + $0x15bc] ss:$36 sps:$4 sm:$0xff]  }
 0x359   :  { %6820 = vmatprep.subr.bf16.mxu1 %v23002_v12  ;;  %v23069_v12 = vld [vmem:[#allocation5 + $0x1650] ss:$36 sps:$4 sm:$0xff]  }
 0x35b   :  { %6812 = vmatmul.mubr.bf16.vlgmr.msra.gmra.mrb[28].mxu1 %v24869_v8  ;;  %6991 = vmatpush1.bf16.msra.mxu0 %v23003_v21  ;;  %v23072_v21 = vld [vmem:[#allocation5 + $0x15b8] ss:$36 sps:$4 sm:$0xff]  }
 0x35c   :  { %6821 = vmatpush1.bf16.msra.mxu1 %v23000_v20  ;;  %6992 = vmatprep.subr.bf16.mxu0 %v23011_v24  ;;  %v23077_v20 = vld [vmem:[#allocation5 + $0x169c] ss:$36 sps:$4 sm:$0xff]   ;;  %v23080_v24 = vld [vmem:[#allocation5 + $0x1604] ss:$36 sps:$4 sm:$0xff]  }
 0x35d   :  { %6822 = vmatprep.subr.bf16.mxu1 %v23008_v22  ;;  %6852 = vmatprep.mubr.bf16.mxu1 %v24877_v35  ;;  %v23075_v22 = vld [vmem:[#allocation5 + $0x1698] ss:$36 sps:$4 sm:$0xff]  }
 0x35f   :  { %6993 = vmatpush1.bf16.msra.mxu0 %v23009_v25  ;;  %v23078_v25 = vld [vmem:[#allocation5 + $0x1600] ss:$36 sps:$4 sm:$0xff]  }
 0x360   :  { %6823 = vmatpush1.bf16.msra.mxu1 %v23006_v46  ;;  %6994 = vmatprep.subr.bf16.mxu0 %v23017_v26  ;;  %v23083_v46 = vld [vmem:[#allocation5 + $0x16e4] ss:$36 sps:$4 sm:$0xff]   ;;  %v23086_v26 = vld [vmem:[#allocation5 + $0x164c] ss:$36 sps:$4 sm:$0xff]  }
 0x361   :  { %6824 = vmatprep.subr.bf16.mxu1 %v23014_v49  ;;  %v23081_v49 = vld [vmem:[#allocation5 + $0x16e0] ss:$36 sps:$4 sm:$0xff]  }
 0x363   :  { %6995 = vmatpush1.bf16.msra.mxu0 %v23015_v27  ;;  %v23084_v27 = vld [vmem:[#allocation5 + $0x1648] ss:$36 sps:$4 sm:$0xff]  }
 0x364   :  { %6825 = vmatpush1.bf16.msra.mxu1 %v23012_v47  ;;  %6996 = vmatprep.subr.bf16.mxu0 %v23023_v28  ;;  %v23089_v47 = vld [vmem:[#allocation5 + $0x172c] ss:$36 sps:$4 sm:$0xff]   ;;  %v23092_v28 = vld [vmem:[#allocation5 + $0x1694] ss:$36 sps:$4 sm:$0xff]  }
 0x365   :  { %6826 = vmatprep.subr.bf16.mxu1 %v23020_v48  ;;  %v23087_v48 = vld [vmem:[#allocation5 + $0x1728] ss:$36 sps:$4 sm:$0xff]  }
 0x367   :  { %6997 = vmatpush1.bf16.msra.mxu0 %v23021_v30  ;;  %v23090_v30 = vld [vmem:[#allocation5 + $0x1690] ss:$36 sps:$4 sm:$0xff]  }
 0x368   :  { %6827 = vmatpush1.bf16.msra.mxu1 %v23018_v29  ;;  %6998 = vmatprep.subr.bf16.mxu0 %v23029_v18  ;;  %v23095_v29 = vld [vmem:[#allocation5 + $0x1774] ss:$36 sps:$4 sm:$0xff]   ;;  %v23098_v18 = vld [vmem:[#allocation5 + $0x16dc] ss:$36 sps:$4 sm:$0xff]  }
 0x369   :  { %6828 = vmatprep.subr.bf16.mxu1 %v23026_v31  ;;  %v23093_v31 = vld [vmem:[#allocation5 + $0x1770] ss:$36 sps:$4 sm:$0xff]  }
 0x36b   :  { %6999 = vmatpush1.bf16.msra.mxu0 %v23027_v36  ;;  %v23096_v36 = vld [vmem:[#allocation5 + $0x16d8] ss:$36 sps:$4 sm:$0xff]  }
 0x36c   :  { %6829 = vmatpush1.bf16.msra.mxu1 %v23024_v33  ;;  %7000 = vmatprep.subr.bf16.mxu0 %v23035_v38  ;;  %v23101_v33 = vld [vmem:[#allocation5 + $0x17bc] ss:$36 sps:$4 sm:$0xff]   ;;  %v23104_v38 = vld [vmem:[#allocation5 + $0x1724] ss:$36 sps:$4 sm:$0xff]  }
 0x36d   :  { %6830 = vmatprep.subr.bf16.mxu1 %v23032_v37  ;;  %v23099_v37 = vld [vmem:[#allocation5 + $0x17b8] ss:$36 sps:$4 sm:$0xff]  }
 0x36f   :  { %7001 = vmatpush1.bf16.msra.mxu0 %v23033_v40  ;;  %v23102_v40 = vld [vmem:[#allocation5 + $0x1720] ss:$36 sps:$4 sm:$0xff]  }
 0x370   :  { %6831 = vmatpush1.bf16.msra.mxu1 %v23030_v39  ;;  %7002 = vmatprep.subr.bf16.mxu0 %v23041_v42  ;;  %v23107_v39 = vld [vmem:[#allocation5 + $0x1804] ss:$36 sps:$4 sm:$0xff]   ;;  %v23110_v42 = vld [vmem:[#allocation5 + $0x176c] ss:$36 sps:$4 sm:$0xff]  }
 0x371   :  { %6832 = vmatprep.subr.bf16.mxu1 %v23038_v41  ;;  %v23105_v41 = vld [vmem:[#allocation5 + $0x1800] ss:$36 sps:$4 sm:$0xff]  }
 0x373   :  { %7003 = vmatpush1.bf16.msra.mxu0 %v23039_v44  ;;  %v23108_v44 = vld [vmem:[#allocation5 + $0x1768] ss:$36 sps:$4 sm:$0xff]  }
 0x374   :  { %6833 = vmatpush1.bf16.msra.mxu1 %v23036_v43  ;;  %7004 = vmatprep.subr.bf16.mxu0 %v23047_v50  ;;  %v23113_v43 = vld [vmem:[#allocation5 + $0x184c] ss:$36 sps:$4 sm:$0xff]   ;;  %v23116_v50 = vld [vmem:[#allocation5 + $0x17b4] ss:$36 sps:$4 sm:$0xff]  }
 0x375   :  { %6834 = vmatprep.subr.bf16.mxu1 %v23044_v45  ;;  %v23111_v45 = vld [vmem:[#allocation5 + $0x1848] ss:$36 sps:$4 sm:$0xff]  }
 0x377   :  { %7005 = vmatpush1.bf16.msra.mxu0 %v23045_v53  ;;  %v23114_v53 = vld [vmem:[#allocation5 + $0x17b0] ss:$36 sps:$4 sm:$0xff]  }
 0x378   :  { %6835 = vmatpush1.bf16.msra.mxu1 %v23042_v51  ;;  %7006 = vmatprep.subr.bf16.mxu0 %v23053_v55  ;;  %v23119_v51 = vld [vmem:[#allocation5 + $0x1894] ss:$36 sps:$4 sm:$0xff]   ;;  %v23122_v55 = vld [vmem:[#allocation5 + $0x17fc] ss:$36 sps:$4 sm:$0xff]  }
 0x379   :  { %6836 = vmatprep.subr.bf16.mxu1 %v23050_v54  ;;  %v23117_v54 = vld [vmem:[#allocation5 + $0x1890] ss:$36 sps:$4 sm:$0xff]  }
 0x37b   :  { %7007 = vmatpush1.bf16.msra.mxu0 %v23051_v57  ;;  %v23120_v57 = vld [vmem:[#allocation5 + $0x17f8] ss:$36 sps:$4 sm:$0xff]  }
 0x37c   :  { %6837 = vmatpush1.bf16.msra.mxu1 %v23048_v56  ;;  %7008 = vmatprep.subr.bf16.mxu0 %v23059_v60  ;;  %v23125_v56 = vld [vmem:[#allocation5 + $0x18dc] ss:$36 sps:$4 sm:$0xff]   ;;  %v23128_v60 = vld [vmem:[#allocation5 + $0x1844] ss:$36 sps:$4 sm:$0xff]  }
 0x37d   :  { %6838 = vmatprep.subr.bf16.mxu1 %v23056_v59  ;;  %v23123_v59 = vld [vmem:[#allocation5 + $0x18d8] ss:$36 sps:$4 sm:$0xff]  }
 0x37f   :  { %7009 = vmatpush1.bf16.msra.mxu0 %v23057_v62  ;;  %v23126_v62 = vld [vmem:[#allocation5 + $0x1840] ss:$36 sps:$4 sm:$0xff]  }
 0x380   :  { %6839 = vmatpush1.bf16.msra.mxu1 %v23054_v61  ;;  %7010 = vmatprep.subr.bf16.mxu0 %v23065_v4  ;;  %v23131_v61 = vld [vmem:[#allocation5 + $0x1924] ss:$36 sps:$4 sm:$0xff]   ;;  %v23134_v4 = vld [vmem:[#allocation5 + $0x188c] ss:$36 sps:$4 sm:$0xff]  }
 0x381   :  { %6840 = vmatprep.subr.bf16.mxu1 %v23062_v2  ;;  %v23129_v2 = vld [vmem:[#allocation5 + $0x1920] ss:$36 sps:$4 sm:$0xff]  }
 0x383   :  { %7011 = vmatpush1.bf16.msra.mxu0 %v23063_v7  ;;  %v23132_v7 = vld [vmem:[#allocation5 + $0x1888] ss:$36 sps:$4 sm:$0xff]  }
 0x384   :  { %6841 = vmatpush1.bf16.msra.mxu1 %v23060_v5  ;;  %7012 = vmatprep.subr.bf16.mxu0 %v23071_v10  ;;  %v23137_v5 = vld [vmem:[#allocation5 + $0x196c] ss:$36 sps:$4 sm:$0xff]   ;;  %v23140_v10 = vld [vmem:[#allocation5 + $0x18d4] ss:$36 sps:$4 sm:$0xff]  }
 0x385   :  { %6842 = vmatprep.subr.bf16.mxu1 %v23068_v58  ;;  %v23135_v58 = vld [vmem:[#allocation5 + $0x1968] ss:$36 sps:$4 sm:$0xff]  }
 0x387   :  { %7013 = vmatpush1.bf16.msra.mxu0 %v23069_v12  ;;  %v23138_v12 = vld [vmem:[#allocation5 + $0x18d0] ss:$36 sps:$4 sm:$0xff]  }
 0x388   :  { %6843 = vmatpush1.bf16.msra.mxu1 %v23066_v11  ;;  %7014 = vmatprep.subr.bf16.mxu0 %v23077_v20  ;;  %v23143_v11 = vld [vmem:[#allocation5 + $0x19b4] ss:$36 sps:$4 sm:$0xff]   ;;  %v23146_v20 = vld [vmem:[#allocation5 + $0x191c] ss:$36 sps:$4 sm:$0xff]  }
 0x389   :  { %6844 = vmatprep.subr.bf16.mxu1 %v23074_v16  ;;  %v23141_v16 = vld [vmem:[#allocation5 + $0x19b0] ss:$36 sps:$4 sm:$0xff]  }
 0x38b   :  { %7015 = vmatpush1.bf16.msra.mxu0 %v23075_v22  ;;  %v23144_v22 = vld [vmem:[#allocation5 + $0x1918] ss:$36 sps:$4 sm:$0xff]  }
 0x38c   :  { %6845 = vmatpush1.bf16.msra.mxu1 %v23072_v21  ;;  %7025 = vmatprep.subr.bf16.mxu0 %v23083_v46  ;;  %v23149_v21 = vld [vmem:[#allocation5 + $0x19fc] ss:$36 sps:$4 sm:$0xff]   ;;  %v23152_v46 = vld [vmem:[#allocation5 + $0x1964] ss:$36 sps:$4 sm:$0xff]  }
 0x38d   :  { %6846 = vmatprep.subr.bf16.mxu1 %v23080_v24  ;;  %v23147_v24 = vld [vmem:[#allocation5 + $0x19f8] ss:$36 sps:$4 sm:$0xff]  }
 0x38e   :  { %7017 = vmatmul.mubr.bf16.vlgmr.msra.gmra.mrb[20].mxu0 %v24883_v15 }
 0x38f   :  { %7026 = vmatpush1.bf16.msra.mxu0 %v23081_v49  ;;  %7057 = vmatprep.mubr.bf16.mxu0 %v24889_v19  ;;  %v23150_v49 = vld [vmem:[#allocation5 + $0x1960] ss:$36 sps:$4 sm:$0xff]  }
 0x390   :  { %6847 = vmatpush1.bf16.msra.mxu1 %v23078_v25  ;;  %7027 = vmatprep.subr.bf16.mxu0 %v23089_v47  ;;  %v23155_v25 = vld [vmem:[#allocation5 + $0x1a44] ss:$36 sps:$4 sm:$0xff]   ;;  %v23158_v47 = vld [vmem:[#allocation5 + $0x19ac] ss:$36 sps:$4 sm:$0xff]  }
 0x391   :  { %6848 = vmatprep.subr.bf16.mxu1 %v23086_v26  ;;  %v23153_v26 = vld [vmem:[#allocation5 + $0x1a40] ss:$36 sps:$4 sm:$0xff]  }
 0x393   :  { %7028 = vmatpush1.bf16.msra.mxu0 %v23087_v48  ;;  %v23156_v48 = vld [vmem:[#allocation5 + $0x19a8] ss:$36 sps:$4 sm:$0xff]  }
 0x394   :  { %6849 = vmatpush1.bf16.msra.mxu1 %v23084_v27  ;;  %7029 = vmatprep.subr.bf16.mxu0 %v23095_v29  ;;  %v23161_v27 = vld [vmem:[#allocation5 + $0x1a8c] ss:$36 sps:$4 sm:$0xff]   ;;  %v23164_v29 = vld [vmem:[#allocation5 + $0x19f4] ss:$36 sps:$4 sm:$0xff]  }
 0x395   :  { %6850 = vmatprep.subr.bf16.mxu1 %v23092_v28  ;;  %v23159_v28 = vld [vmem:[#allocation5 + $0x1a88] ss:$36 sps:$4 sm:$0xff]  }
 0x397   :  { %7030 = vmatpush1.bf16.msra.mxu0 %v23093_v31  ;;  %v23162_v31 = vld [vmem:[#allocation5 + $0x19f0] ss:$36 sps:$4 sm:$0xff]  }
 0x398   :  { %6851 = vmatpush1.bf16.msra.mxu1 %v23090_v30  ;;  %7031 = vmatprep.subr.bf16.mxu0 %v23101_v33  ;;  %v23167_v30 = vld [vmem:[#allocation5 + $0x1ad4] ss:$36 sps:$4 sm:$0xff]   ;;  %v23170_v33 = vld [vmem:[#allocation5 + $0x1a3c] ss:$36 sps:$4 sm:$0xff]  }
 0x399   :  { %6861 = vmatprep.subr.bf16.mxu1 %v23098_v18  ;;  %v23165_v18 = vld [vmem:[#allocation5 + $0x1ad0] ss:$36 sps:$4 sm:$0xff]  }
 0x39b   :  { %6853 = vmatmul.mubr.bf16.vlgmr.msra.gmra.mrb[28].mxu1 %v24883_v15  ;;  %7032 = vmatpush1.bf16.msra.mxu0 %v23099_v37  ;;  %v23168_v37 = vld [vmem:[#allocation5 + $0x1a38] ss:$36 sps:$4 sm:$0xff]  }
 0x39c   :  { %6862 = vmatpush1.bf16.msra.mxu1 %v23096_v36  ;;  %7033 = vmatprep.subr.bf16.mxu0 %v23107_v39  ;;  %v23173_v36 = vld [vmem:[#allocation5 + $0x1b1c] ss:$36 sps:$4 sm:$0xff]   ;;  %v23176_v39 = vld [vmem:[#allocation5 + $0x1a84] ss:$36 sps:$4 sm:$0xff]  }
 0x39d   :  { %6863 = vmatprep.subr.bf16.mxu1 %v23104_v38  ;;  %6893 = vmatprep.mubr.bf16.mxu1 %v24889_v19  ;;  %v23171_v38 = vld [vmem:[#allocation5 + $0x1b18] ss:$36 sps:$4 sm:$0xff]  }
 0x39f   :  { %7034 = vmatpush1.bf16.msra.mxu0 %v23105_v41  ;;  %v23174_v41 = vld [vmem:[#allocation5 + $0x1a80] ss:$36 sps:$4 sm:$0xff]  }
 0x3a0   :  { %6864 = vmatpush1.bf16.msra.mxu1 %v23102_v40  ;;  %7035 = vmatprep.subr.bf16.mxu0 %v23113_v43  ;;  %v23185_v40 = vld [vmem:[#allocation5 + $0x1b64] ss:$36 sps:$4 sm:$0xff]  }
 0x3a1   :  { %6865 = vmatprep.subr.bf16.mxu1 %v23110_v42  ;;  %v23179_v42 = vld [vmem:[#allocation5 + $0x1acc] ss:$36 sps:$4 sm:$0xff]   ;;  %v23183_v43 = vld [vmem:[#allocation5 + $0x1b60] ss:$36 sps:$4 sm:$0xff]  }
 0x3a3   :  { %7036 = vmatpush1.bf16.msra.mxu0 %v23111_v45  ;;  %v23177_v45 = vld [vmem:[#allocation5 + $0x1ac8] ss:$36 sps:$4 sm:$0xff]  }
 0x3a4   :  { %6866 = vmatpush1.bf16.msra.mxu1 %v23108_v44  ;;  %7037 = vmatprep.subr.bf16.mxu0 %v23119_v51  ;;  %v23189_v44 = vld [vmem:[#allocation5 + $0x14a8] ss:$36 sps:$4 sm:$0xff]   ;;  %v23180_v51 = vld [vmem:[#allocation5 + $0x1b10] ss:$36 sps:$4 sm:$0xff]  }
 0x3a5   :  { %6867 = vmatprep.subr.bf16.mxu1 %v23116_v50  ;;  %v23182_v50 = vld [vmem:[#allocation5 + $0x1b14] ss:$36 sps:$4 sm:$0xff]  }
 0x3a7   :  { %7038 = vmatpush1.bf16.msra.mxu0 %v23117_v54  ;;  %v23186_v54 = vld [vmem:[#allocation5 + $0x1b58] ss:$36 sps:$4 sm:$0xff]  }
 0x3a8   :  { %6868 = vmatpush1.bf16.msra.mxu1 %v23114_v53  ;;  %7039 = vmatprep.subr.bf16.mxu0 %v23125_v56  ;;  %v23188_v53 = vld [vmem:[#allocation5 + $0x1b5c] ss:$36 sps:$4 sm:$0xff]   ;;  %v23191_v56 = vld [vmem:[#allocation5 + $0x14f0] ss:$36 sps:$4 sm:$0xff]  }
 0x3a9   :  { %6869 = vmatprep.subr.bf16.mxu1 %v23122_v55  ;;  %v23190_v55 = vld [vmem:[#allocation5 + $0x1268] ss:$36 sps:$4 sm:$0xff]  }
 0x3ab   :  { %7040 = vmatpush1.bf16.msra.mxu0 %v23123_v59  ;;  %v24995_v59 = vld [vmem:[#allocation2 + $0x18] ss:$0 sps:$4 sm:$0xff]  }
 0x3ac   :  { %6870 = vmatpush1.bf16.msra.mxu1 %v23120_v57  ;;  %7041 = vmatprep.subr.bf16.mxu0 %v23131_v61  ;;  %v23194_v57 = vld [vmem:[#allocation5 + $0x1028] ss:$36 sps:$4 sm:$0xff]   ;;  %v23193_v61 = vld [vmem:[#allocation5 + $0x1538] ss:$36 sps:$4 sm:$0xff]  }
 0x3ad   :  { %6871 = vmatprep.subr.bf16.mxu1 %v23128_v60  ;;  %v23192_v60 = vld [vmem:[#allocation5 + $0x12b0] ss:$36 sps:$4 sm:$0xff]  }
 0x3af   :  { %7042 = vmatpush1.bf16.msra.mxu0 %v23129_v2  ;;  %v23197_v2 = vld [vmem:[#allocation5 + $0x1580] ss:$36 sps:$4 sm:$0xff]  }
 0x3b0   :  { %6872 = vmatpush1.bf16.msra.mxu1 %v23126_v62  ;;  %7043 = vmatprep.subr.bf16.mxu0 %v23137_v5  ;;  %v23195_v62 = vld [vmem:[#allocation5 + $0x12f8] ss:$36 sps:$4 sm:$0xff]  }
 0x3b1   :  { %6873 = vmatprep.subr.bf16.mxu1 %v23134_v4 }
 0x3b3   :  { %7044 = vmatpush1.bf16.msra.mxu0 %v23135_v58  ;;  %v23196_v58 = vld [vmem:[#allocation5 + $0xde8] ss:$36 sps:$4 sm:$0xff]  }
 0x3b4   :  { %6874 = vmatpush1.bf16.msra.mxu1 %v23132_v7  ;;  %7045 = vmatprep.subr.bf16.mxu0 %v23143_v11 }
 0x3b5   :  { %6875 = vmatprep.subr.bf16.mxu1 %v23140_v10 }
 0x3b7   :  { %7046 = vmatpush1.bf16.msra.mxu0 %v23141_v16  ;;  %v23199_v16 = vld [vmem:[#allocation5 + $0x1340] ss:$36 sps:$4 sm:$0xff]  }
 0x3b8   :  { %6876 = vmatpush1.bf16.msra.mxu1 %v23138_v12  ;;  %7047 = vmatprep.subr.bf16.mxu0 %v23149_v21  ;;  %v23198_v12 = vld [vmem:[#allocation5 + $0x1070] ss:$36 sps:$4 sm:$0xff]   ;;  %v23201_v21 = vld [vmem:[#allocation5 + $0x15c8] ss:$36 sps:$4 sm:$0xff]  }
 0x3b9   :  { %6877 = vmatprep.subr.bf16.mxu1 %v23146_v20 }
 0x3bb   :  { %7048 = vmatpush1.bf16.msra.mxu0 %v23147_v24  ;;  %v23202_v24 = vld [vmem:[#allocation5 + $0x10b8] ss:$36 sps:$4 sm:$0xff]  }
 0x3bc   :  { %6878 = vmatpush1.bf16.msra.mxu1 %v23144_v22  ;;  %7049 = vmatprep.subr.bf16.mxu0 %v23155_v25  ;;  %v23200_v22 = vld [vmem:[#allocation5 + $0xe30] ss:$36 sps:$4 sm:$0xff]  }
 0x3bd   :  { %6879 = vmatprep.subr.bf16.mxu1 %v23152_v46  ;;  %v23203_v46 = vld [vmem:[#allocation5 + $0x1388] ss:$36 sps:$4 sm:$0xff]   ;;  %v23205_v25 = vld [vmem:[#allocation5 + $0x1610] ss:$36 sps:$4 sm:$0xff]  }
 0x3bf   :  { %7050 = vmatpush1.bf16.msra.mxu0 %v23153_v26  ;;  %v23206_v26 = vld [vmem:[#allocation5 + $0x1100] ss:$36 sps:$4 sm:$0xff]  }
 0x3c0   :  { %6880 = vmatpush1.bf16.msra.mxu1 %v23150_v49  ;;  %7051 = vmatprep.subr.bf16.mxu0 %v23161_v27  ;;  %v23204_v49 = vld [vmem:[#allocation5 + $0xe78] ss:$36 sps:$4 sm:$0xff]  }
 0x3c1   :  { %6881 = vmatprep.subr.bf16.mxu1 %v23158_v47  ;;  %v23207_v47 = vld [vmem:[#allocation5 + $0x13d0] ss:$36 sps:$4 sm:$0xff]   ;;  %v23209_v27 = vld [vmem:[#allocation5 + $0x1658] ss:$36 sps:$4 sm:$0xff]  }
 0x3c3   :  { %7052 = vmatpush1.bf16.msra.mxu0 %v23159_v28 }
 0x3c4   :  { %6882 = vmatpush1.bf16.msra.mxu1 %v23156_v48  ;;  %7053 = vmatprep.subr.bf16.mxu0 %v23167_v30  ;;  %v23208_v30 = vld [vmem:[#allocation5 + $0xec0] ss:$36 sps:$4 sm:$0xff]  }
 0x3c5   :  { %6883 = vmatprep.subr.bf16.mxu1 %v23164_v29 }
 0x3c7   :  { %7054 = vmatpush1.bf16.msra.mxu0 %v23165_v18 }
 0x3c8   :  { %6884 = vmatpush1.bf16.msra.mxu1 %v23162_v31  ;;  %7055 = vmatprep.subr.bf16.mxu0 %v23173_v36  ;;  %v23211_v36 = vld [vmem:[#allocation5 + $0x1418] ss:$36 sps:$4 sm:$0xff]  }
 0x3c9   :  { %6885 = vmatprep.subr.bf16.mxu1 %v23170_v33  ;;  %v23210_v33 = vld [vmem:[#allocation5 + $0x1148] ss:$36 sps:$4 sm:$0xff]  }
 0x3cb   :  { %7056 = vmatpush1.bf16.msra.mxu0 %v23171_v38  ;;  %v23213_v38 = vld [vmem:[#allocation5 + $0x16a0] ss:$36 sps:$4 sm:$0xff]  }
 0x3cc   :  { %6886 = vmatpush1.bf16.msra.mxu1 %v23168_v37  ;;  %7066 = vmatprep.subr.bf16.mxu0 %v23185_v40  ;;  %v23214_v40 = vld [vmem:[#allocation5 + $0x1190] ss:$36 sps:$4 sm:$0xff]  }
 0x3cd   :  { %6887 = vmatprep.subr.bf16.mxu1 %v23176_v39  ;;  %v23212_v39 = vld [vmem:[#allocation5 + $0xf08] ss:$36 sps:$4 sm:$0xff]  }
 0x3ce   :  { %7058 = vmatmul.mubr.bf16.vlgmr.msra.gmra.mrb[20].mxu0 %v24897_v23 }
 0x3cf   :  { %7067 = vmatpush1.bf16.msra.mxu0 %v23183_v43  ;;  %7098 = vmatprep.mubr.bf16.mxu0 %v24735_v0  ;;  %v23217_v43 = vld [vmem:[#allocation5 + $0x11d8] ss:$36 sps:$4 sm:$0xff]  }
 0x3d0   :  { %6888 = vmatpush1.bf16.msra.mxu1 %v23174_v41  ;;  %21460 = vmatprep.subr.bf16.mxu0 %v23189_v44  ;;  %v23215_v41 = vld [vmem:[#allocation5 + $0x1460] ss:$36 sps:$4 sm:$0xff]   ;;  %v23219_v44 = vld [vmem:[#allocation5 + $0x1b68] ss:$36 sps:$4 sm:$0xff]  }
 0x3d1   :  { %6889 = vmatprep.subr.bf16.mxu1 %v23179_v42  ;;  %v23216_v42 = vld [vmem:[#allocation5 + $0xf50] ss:$36 sps:$4 sm:$0xff]  }
 0x3d4   :  { %6890 = vmatpush1.bf16.msra.mxu1 %v23177_v45  ;;  %v23224_v45 = vld [vmem:[#allocation5 + $0x1b94] ss:$36 sps:$4 sm:$0xff]  }
 0x3d5   :  { %6891 = vmatprep.subr.bf16.mxu1 %v23182_v50  ;;  %v23218_v50 = vld [vmem:[#allocation5 + $0xf98] ss:$36 sps:$4 sm:$0xff]  }
 0x3d8   :  { %6892 = vmatpush1.bf16.msra.mxu1 %v23180_v51  ;;  %v23220_v51 = vld [vmem:[#allocation5 + $0x1220] ss:$36 sps:$4 sm:$0xff]  }
 0x3d9   :  { %6902 = vmatprep.subr.bf16.mxu1 %v23188_v53  ;;  %v23221_v53 = vld [vmem:[#allocation5 + $0xfe0] ss:$36 sps:$4 sm:$0xff]  }
 0x3da   :  { %19882 = vmatmul.mubr.msk.bf16.vlgmr.msra.gmra.mrb[20].mxu0 %vm2887_vm0, %v24995_v59 }
 0x3db   :  { %6894 = vmatmul.mubr.bf16.vlgmr.msra.gmra.mrb[28].mxu1 %v24897_v23  ;;  %21461 = vmatpush3.bf16.msra.mxu0 %v23190_v55  ;;  %v23225_v55 = vld [vmem:[#allocation5 + $0x1928] ss:$36 sps:$4 sm:$0xff]  }
 0x3dc   :  { %6903 = vmatpush1.bf16.msra.mxu1 %v23186_v54  ;;  %21462 = vmatprep.subr.bf16.mxu0 %v23191_v56  ;;  %v23222_v54 = vld [vmem:[#allocation5 + $0x1b90] ss:$36 sps:$4 sm:$0xff]   ;;  %v23229_v56 = vld [vmem:[#allocation5 + $0x1bdc] ss:$36 sps:$4 sm:$0xff]  }
 0x3dd   :  { %6934 = vmatprep.mubr.bf16.mxu1 %v24735_v0  ;;  %21438 = vmatprep.subr.bf16.mxu1 %v23194_v57  ;;  %v23226_v57 = vld [vmem:[#allocation5 + $0x16e8] ss:$36 sps:$4 sm:$0xff]  }
 0x3de   :  { %7179 = vmatprep.mubr.bf16.mxu0 %v24877_v35 }
 0x3df   :  { %21463 = vmatpush3.bf16.msra.mxu0 %v23192_v60  ;;  %v23227_v60 = vld [vmem:[#allocation5 + $0x1bd8] ss:$36 sps:$4 sm:$0xff]  }
 0x3e0   :  { %21464 = vmatprep.subr.bf16.mxu0 %v23193_v61  ;;  %v23230_v61 = vld [vmem:[#allocation5 + $0x1970] ss:$36 sps:$4 sm:$0xff]  }
 0x3e1   :  { %v25001_v4 = vpop.f32.mrb[16].mxu0 }
 0x3e2   :  { %v7269_v5 = vmax.f32 %v24931_v32, %v25001_v4  ;;  %v25005_v7 = vpop.f32.mrb[17].mxu0  ;;  %v23861_v32 = vld [vmem:[#allocation5 + $0x2150] ss:$36 sps:$4 sm:$0xff]   ;;  %v23863_v4 = vld [vmem:[#allocation5 + $0x2618] ss:$36 sps:$4 sm:$0xff]  }
 0x3e3   :  { %21465 = vmatpush3.bf16.msra.mxu0 %v23195_v62  ;;  %v7270_v10 = vmax.f32 %v24937_v34, %v25005_v7  ;;  %v6776_v11 = vpop.f32.mrb[18].mxu0  ;;  %v23234_v62 = vld [vmem:[#allocation5 + $0x1c24] ss:$36 sps:$4 sm:$0xff]   ;;  %v23865_v34 = vld [vmem:[#allocation5 + $0x2198] ss:$36 sps:$4 sm:$0xff]  }
 0x3e4   :  { %v6777_v20 = vpop.f32.mrb[19].mxu0  ;;  %21466 = vmatprep.subr.bf16.mxu0 %v23197_v2  ;;  %v23231_v2 = vld [vmem:[#allocation5 + $0x1730] ss:$36 sps:$4 sm:$0xff]   ;;  %v23235_v11 = vld [vmem:[#allocation5 + $0x19b8] ss:$36 sps:$4 sm:$0xff]  }
 0x3e5   :  { %v23240_v20 = vld [vmem:[#allocation5 + $0x1a00] ss:$36 sps:$4 sm:$0xff]  }
 0x3e6   :  { %v23867_v7 = vld [vmem:[#allocation5 + $0x2660] ss:$36 sps:$4 sm:$0xff]  }
 0x3e7   :  { %19881 = vmatmul.mubr.msk.bf16.vlgmr.msra.gmra.mrb[28].mxu1 %vm2887_vm0, %v24995_v59  ;;  %21467 = vmatpush3.bf16.msra.mxu0 %v23199_v16  ;;  %v23237_v16 = vld [vmem:[#allocation5 + $0x1c68] ss:$36 sps:$4 sm:$0xff]  }
 0x3e8   :  { %21439 = vmatpush3.bf16.msra.mxu1 %v23196_v58  ;;  %21468 = vmatprep.subr.bf16.mxu0 %v23201_v21  ;;  %v23232_v58 = vld [vmem:[#allocation5 + $0x1c20] ss:$36 sps:$4 sm:$0xff]   ;;  %v23244_v21 = vld [vmem:[#allocation5 + $0x1cb4] ss:$36 sps:$4 sm:$0xff]  }
 0x3e9   :  { %21440 = vmatprep.subr.bf16.mxu1 %v23198_v12  ;;  %7139 = vmatprep.mubr.bf16.mxu1 %v24865_v52  ;;  %v23239_v12 = vld [vmem:[#allocation5 + $0x1c6c] ss:$36 sps:$4 sm:$0xff]  }
 0x3eb   :  { %21469 = vmatpush3.bf16.msra.mxu0 %v23203_v46  ;;  %v23245_v46 = vld [vmem:[#allocation5 + $0x1a48] ss:$36 sps:$4 sm:$0xff]  }
 0x3ec   :  { %21441 = vmatpush3.bf16.msra.mxu1 %v23200_v22  ;;  %21470 = vmatprep.subr.bf16.mxu0 %v23205_v25  ;;  %v23241_v22 = vld [vmem:[#allocation5 + $0x17c0] ss:$36 sps:$4 sm:$0xff]  }
 0x3ed   :  { %21442 = vmatprep.subr.bf16.mxu1 %v23202_v24  ;;  %v23242_v24 = vld [vmem:[#allocation5 + $0x1cb0] ss:$36 sps:$4 sm:$0xff]   ;;  %v23249_v25 = vld [vmem:[#allocation5 + $0x1cfc] ss:$36 sps:$4 sm:$0xff]  }
 0x3ee   :  { %v25012_v48 = vpop.f32.mrb[24].mxu1 }
 0x3ef   :  { %v7267_v28 = vmax.f32 %v24922_v14, %v25012_v48  ;;  %v25016_v29 = vpop.f32.mrb[25].mxu1  ;;  %21471 = vmatpush3.bf16.msra.mxu0 %v23207_v47  ;;  %v23250_v47 = vld [vmem:[#allocation5 + $0x1a90] ss:$36 sps:$4 sm:$0xff]   ;;  %v23825_v14 = vld [vmem:[#allocation5 + $0x2898] ss:$36 sps:$4 sm:$0xff]  }
 0x3f0   :  { %21443 = vmatpush3.bf16.msra.mxu1 %v23204_v49  ;;  %v7268_v31 = vmax.f32 %v24925_v17, %v25016_v29  ;;  %v6612_v18 = vpop.f32.mrb[26].mxu1  ;;  %21472 = vmatprep.subr.bf16.mxu0 %v23209_v27  ;;  %v23246_v49 = vld [vmem:[#allocation5 + $0x1808] ss:$36 sps:$4 sm:$0xff]   ;;  %v23829_v48 = vld [vmem:[#allocation5 + $0x1cd0] ss:$36 sps:$4 sm:$0xff]  }
 0x3f1   :  { %v6613_v37 = vpop.f32.mrb[27].mxu1  ;;  %21444 = vmatprep.subr.bf16.mxu1 %v23206_v26  ;;  %v23247_v26 = vld [vmem:[#allocation5 + $0x1cf8] ss:$36 sps:$4 sm:$0xff]   ;;  %v23254_v27 = vld [vmem:[#allocation5 + $0x1d44] ss:$36 sps:$4 sm:$0xff]  }
 0x3f2   :  { %v23252_v18 = vld [vmem:[#allocation5 + $0x1d40] ss:$36 sps:$4 sm:$0xff]   ;;  %v23256_v37 = vld [vmem:[#allocation5 + $0x1898] ss:$36 sps:$4 sm:$0xff]  }
 0x3f3   :  { %21473 = vmatpush3.bf16.msra.mxu0 %v23211_v36  ;;  %v23259_v36 = vld [vmem:[#allocation5 + $0x1d8c] ss:$36 sps:$4 sm:$0xff]   ;;  %v23830_v17 = vld [vmem:[#allocation5 + $0x28e0] ss:$36 sps:$4 sm:$0xff]   ;;  %v23834_v29 = vld [vmem:[#allocation5 + $0x1d18] ss:$36 sps:$4 sm:$0xff]  }
 0x3f4   :  { %21445 = vmatpush3.bf16.msra.mxu1 %v23208_v30  ;;  %21474 = vmatprep.subr.bf16.mxu0 %v23213_v38  ;;  %v23251_v30 = vld [vmem:[#allocation5 + $0x1850] ss:$36 sps:$4 sm:$0xff]   ;;  %v23257_v38 = vld [vmem:[#allocation5 + $0x1d88] ss:$36 sps:$4 sm:$0xff]  }
 0x3f5   :  { %21446 = vmatprep.subr.bf16.mxu1 %v23210_v33  ;;  %v23255_v33 = vld [vmem:[#allocation5 + $0x1ad8] ss:$36 sps:$4 sm:$0xff]  }
 0x3f7   :  { %21475 = vmatpush3.bf16.msra.mxu0 %v23215_v41  ;;  %v23261_v41 = vld [vmem:[#allocation5 + $0x18e0] ss:$36 sps:$4 sm:$0xff]  }
 0x3f8   :  { %21447 = vmatpush3.bf16.msra.mxu1 %v23212_v39  ;;  %21670 = vmatprep.subr.bf16.mxu0 %v24736_v13  ;;  %v23260_v39 = vld [vmem:[#allocation5 + $0x1b20] ss:$36 sps:$4 sm:$0xff]  }
 0x3f9   :  { %21448 = vmatprep.subr.bf16.mxu1 %v23214_v40  ;;  %v23264_v40 = vld [vmem:[#allocation5 + $0x1dd4] ss:$36 sps:$4 sm:$0xff]  }
 0x3fa   :  { %7180 = vmatmul.mubr.bf16.vlgmr.msra.gmra.mrb[24].mxu0 %v24883_v15 }
 0x3fb   :  { %21671 = vmatpush3.bf16.msra.mxu0 %v23219_v44  ;;  %21672 = vmatprep.mubr.msk.bf16.mxu0 %vm24737_vm1, %v24736_v13  ;;  %v23270_v44 = vld [vmem:[#allocation5 + $0x1e1c] ss:$36 sps:$4 sm:$0xff]  }
 0x3fc   :  { %21449 = vmatpush3.bf16.msra.mxu1 %v23216_v42  ;;  %10020 = vmatprep.subr.bf16.mxu0 %v23224_v45  ;;  %v23262_v42 = vld [vmem:[#allocation5 + $0x1dd0] ss:$36 sps:$4 sm:$0xff]   ;;  %v23265_v45 = vld [vmem:[#allocation5 + $0x1b98] ss:$36 sps:$4 sm:$0xff]  }
 0x3fd   :  { %21450 = vmatprep.subr.bf16.mxu1 %v23217_v43  ;;  %v23267_v43 = vld [vmem:[#allocation5 + $0x1b9c] ss:$36 sps:$4 sm:$0xff]  }
 0x400   :  { %21451 = vmatpush3.bf16.msra.mxu1 %v23218_v50  ;;  %v23268_v50 = vld [vmem:[#allocation5 + $0x1e18] ss:$36 sps:$4 sm:$0xff]  }
 0x401   :  { %21452 = vmatprep.subr.bf16.mxu1 %v23220_v51  ;;  %v23273_v51 = vld [vmem:[#allocation5 + $0x1be4] ss:$36 sps:$4 sm:$0xff]  }
 0x402   :  { %21673 = vmatmul.mubr.msk.bf16.vlgmr.msra.gmra.mrb[28].mxu0 %vm2887_vm0, %v24995_v59  ;;  %v23236_v59 = vld [vmem:[#allocation5 + $0x1778] ss:$36 sps:$4 sm:$0xff]  }
 0x403   :  { %10021 = vmatpush1.bf16.msra.mxu0 %v23222_v54  ;;  %10052 = vmatprep.mubr.bf16.mxu0 %v24865_v52  ;;  %v23271_v54 = vld [vmem:[#allocation5 + $0x1be0] ss:$36 sps:$4 sm:$0xff]  }
 0x404   :  { %21453 = vmatpush3.bf16.msra.mxu1 %v23221_v53  ;;  %10022 = vmatprep.subr.bf16.mxu0 %v23229_v56  ;;  %v23276_v53 = vld [vmem:[#allocation5 + $0x1e64] ss:$36 sps:$4 sm:$0xff]   ;;  %v23279_v56 = vld [vmem:[#allocation5 + $0x1c2c] ss:$36 sps:$4 sm:$0xff]  }
 0x405   :  { %21482 = vmatprep.subr.bf16.mxu1 %v23225_v55  ;;  %v23274_v55 = vld [vmem:[#allocation5 + $0x1e60] ss:$36 sps:$4 sm:$0xff]  }
 0x407   :  { %7140 = vmatmul.mubr.bf16.vlgmr.msra.gmra.mrb[32].mxu1 %v24869_v8  ;;  %10023 = vmatpush1.bf16.msra.mxu0 %v23227_v60  ;;  %v23277_v60 = vld [vmem:[#allocation5 + $0x1c28] ss:$36 sps:$4 sm:$0xff]  }
 0x408   :  { %21483 = vmatpush3.bf16.msra.mxu1 %v23226_v57  ;;  %10024 = vmatprep.subr.bf16.mxu0 %v23234_v62  ;;  %v23282_v57 = vld [vmem:[#allocation5 + $0x1eac] ss:$36 sps:$4 sm:$0xff]   ;;  %v23285_v62 = vld [vmem:[#allocation5 + $0x1c74] ss:$36 sps:$4 sm:$0xff]  }
 0x409   :  { %21484 = vmatprep.subr.bf16.mxu1 %v23230_v61  ;;  %7219 = vmatprep.mubr.bf16.mxu1 %v24889_v19  ;;  %v23280_v61 = vld [vmem:[#allocation5 + $0x1ea8] ss:$36 sps:$4 sm:$0xff]  }
 0x40b   :  { %10025 = vmatpush1.bf16.msra.mxu0 %v23232_v58  ;;  %v23283_v58 = vld [vmem:[#allocation5 + $0x1c70] ss:$36 sps:$4 sm:$0xff]  }
 0x40c   :  { %21485 = vmatpush3.bf16.msra.mxu1 %v23231_v2  ;;  %10026 = vmatprep.subr.bf16.mxu0 %v23239_v12  ;;  %v23288_v2 = vld [vmem:[#allocation5 + $0x1ef4] ss:$36 sps:$4 sm:$0xff]   ;;  %v23291_v12 = vld [vmem:[#allocation5 + $0x1cbc] ss:$36 sps:$4 sm:$0xff]  }
 0x40d   :  { %21486 = vmatprep.subr.bf16.mxu1 %v23235_v11  ;;  %v23286_v11 = vld [vmem:[#allocation5 + $0x1ef0] ss:$36 sps:$4 sm:$0xff]  }
 0x40f   :  { %10027 = vmatpush1.bf16.msra.mxu0 %v23237_v16  ;;  %v23289_v16 = vld [vmem:[#allocation5 + $0x1cb8] ss:$36 sps:$4 sm:$0xff]  }
 0x410   :  { %21487 = vmatpush3.bf16.msra.mxu1 %v23236_v59  ;;  %10028 = vmatprep.subr.bf16.mxu0 %v23244_v21  ;;  %v23294_v59 = vld [vmem:[#allocation5 + $0x1f3c] ss:$36 sps:$4 sm:$0xff]   ;;  %v23297_v21 = vld [vmem:[#allocation5 + $0x1d04] ss:$36 sps:$4 sm:$0xff]  }
 0x411   :  { %21488 = vmatprep.subr.bf16.mxu1 %v23240_v20  ;;  %v23292_v20 = vld [vmem:[#allocation5 + $0x1f38] ss:$36 sps:$4 sm:$0xff]  }
 0x413   :  { %10029 = vmatpush1.bf16.msra.mxu0 %v23242_v24  ;;  %v23295_v24 = vld [vmem:[#allocation5 + $0x1d00] ss:$36 sps:$4 sm:$0xff]  }
 0x414   :  { %21489 = vmatpush3.bf16.msra.mxu1 %v23241_v22  ;;  %10030 = vmatprep.subr.bf16.mxu0 %v23249_v25  ;;  %v23300_v22 = vld [vmem:[#allocation5 + $0x1f84] ss:$36 sps:$4 sm:$0xff]   ;;  %v23303_v25 = vld [vmem:[#allocation5 + $0x1d4c] ss:$36 sps:$4 sm:$0xff]  }
 0x415   :  { %21490 = vmatprep.subr.bf16.mxu1 %v23245_v46  ;;  %v23298_v46 = vld [vmem:[#allocation5 + $0x1f80] ss:$36 sps:$4 sm:$0xff]  }
 0x417   :  { %10031 = vmatpush1.bf16.msra.mxu0 %v23247_v26  ;;  %v23301_v26 = vld [vmem:[#allocation5 + $0x1d48] ss:$36 sps:$4 sm:$0xff]  }
 0x418   :  { %21491 = vmatpush3.bf16.msra.mxu1 %v23246_v49  ;;  %10032 = vmatprep.subr.bf16.mxu0 %v23254_v27  ;;  %v23306_v49 = vld [vmem:[#allocation5 + $0x1fcc] ss:$36 sps:$4 sm:$0xff]   ;;  %v23309_v27 = vld [vmem:[#allocation5 + $0x1d94] ss:$36 sps:$4 sm:$0xff]  }
 0x419   :  { %21492 = vmatprep.subr.bf16.mxu1 %v23250_v47  ;;  %v23304_v47 = vld [vmem:[#allocation5 + $0x1fc8] ss:$36 sps:$4 sm:$0xff]  }
 0x41b   :  { %10033 = vmatpush1.bf16.msra.mxu0 %v23252_v18  ;;  %v23307_v18 = vld [vmem:[#allocation5 + $0x1d90] ss:$36 sps:$4 sm:$0xff]  }
 0x41c   :  { %21493 = vmatpush3.bf16.msra.mxu1 %v23251_v30  ;;  %10034 = vmatprep.subr.bf16.mxu0 %v23259_v36  ;;  %v23312_v30 = vld [vmem:[#allocation5 + $0x2014] ss:$36 sps:$4 sm:$0xff]   ;;  %v23315_v36 = vld [vmem:[#allocation5 + $0x1ddc] ss:$36 sps:$4 sm:$0xff]  }
 0x41d   :  { %21494 = vmatprep.subr.bf16.mxu1 %v23255_v33  ;;  %v23310_v33 = vld [vmem:[#allocation5 + $0x2010] ss:$36 sps:$4 sm:$0xff]  }
 0x41f   :  { %10035 = vmatpush1.bf16.msra.mxu0 %v23257_v38  ;;  %v23313_v38 = vld [vmem:[#allocation5 + $0x1dd8] ss:$36 sps:$4 sm:$0xff]  }
 0x420   :  { %21495 = vmatpush3.bf16.msra.mxu1 %v23256_v37  ;;  %10036 = vmatprep.subr.bf16.mxu0 %v23264_v40  ;;  %v23318_v37 = vld [vmem:[#allocation5 + $0x205c] ss:$36 sps:$4 sm:$0xff]   ;;  %v23321_v40 = vld [vmem:[#allocation5 + $0x1e24] ss:$36 sps:$4 sm:$0xff]  }
 0x421   :  { %21496 = vmatprep.subr.bf16.mxu1 %v23260_v39  ;;  %v23316_v39 = vld [vmem:[#allocation5 + $0x2058] ss:$36 sps:$4 sm:$0xff]  }
 0x423   :  { %10037 = vmatpush1.bf16.msra.mxu0 %v23262_v42  ;;  %v23319_v42 = vld [vmem:[#allocation5 + $0x1e20] ss:$36 sps:$4 sm:$0xff]  }
 0x424   :  { %21497 = vmatpush3.bf16.msra.mxu1 %v23261_v41  ;;  %10038 = vmatprep.subr.bf16.mxu0 %v23270_v44  ;;  %v23324_v41 = vld [vmem:[#allocation5 + $0x20a4] ss:$36 sps:$4 sm:$0xff]   ;;  %v23327_v44 = vld [vmem:[#allocation5 + $0x1e6c] ss:$36 sps:$4 sm:$0xff]  }
 0x425   :  { %10184 = vmatprep.subr.bf16.mxu1 %v23267_v43  ;;  %v23322_v43 = vld [vmem:[#allocation5 + $0x20a0] ss:$36 sps:$4 sm:$0xff]  }
 0x427   :  { %7220 = vmatmul.mubr.bf16.vlgmr.msra.gmra.mrb[36].mxu1 %v24897_v23  ;;  %10039 = vmatpush1.bf16.msra.mxu0 %v23268_v50  ;;  %v23325_v50 = vld [vmem:[#allocation5 + $0x1e68] ss:$36 sps:$4 sm:$0xff]  }
 0x428   :  { %10185 = vmatpush1.bf16.msra.mxu1 %v23265_v45  ;;  %10040 = vmatprep.subr.bf16.mxu0 %v23276_v53  ;;  %v23330_v45 = vld [vmem:[#allocation5 + $0x20ec] ss:$36 sps:$4 sm:$0xff]   ;;  %v23333_v53 = vld [vmem:[#allocation5 + $0x1eb4] ss:$36 sps:$4 sm:$0xff]  }
 0x429   :  { %10186 = vmatprep.subr.bf16.mxu1 %v23273_v51  ;;  %10216 = vmatprep.mubr.bf16.mxu1 %v24865_v52  ;;  %v23328_v51 = vld [vmem:[#allocation5 + $0x20e8] ss:$36 sps:$4 sm:$0xff]  }
 0x42b   :  { %10041 = vmatpush1.bf16.msra.mxu0 %v23274_v55  ;;  %v23331_v55 = vld [vmem:[#allocation5 + $0x1eb0] ss:$36 sps:$4 sm:$0xff]  }
 0x42c   :  { %10187 = vmatpush1.bf16.msra.mxu1 %v23271_v54  ;;  %10042 = vmatprep.subr.bf16.mxu0 %v23282_v57  ;;  %v23336_v54 = vld [vmem:[#allocation5 + $0x2134] ss:$36 sps:$4 sm:$0xff]   ;;  %v23339_v57 = vld [vmem:[#allocation5 + $0x1efc] ss:$36 sps:$4 sm:$0xff]  }
 0x42d   :  { %10188 = vmatprep.subr.bf16.mxu1 %v23279_v56  ;;  %v23334_v56 = vld [vmem:[#allocation5 + $0x2130] ss:$36 sps:$4 sm:$0xff]  }
 0x42f   :  { %10043 = vmatpush1.bf16.msra.mxu0 %v23280_v61  ;;  %v23337_v61 = vld [vmem:[#allocation5 + $0x1ef8] ss:$36 sps:$4 sm:$0xff]  }
 0x430   :  { %10189 = vmatpush1.bf16.msra.mxu1 %v23277_v60  ;;  %10044 = vmatprep.subr.bf16.mxu0 %v23288_v2  ;;  %v23342_v60 = vld [vmem:[#allocation5 + $0x217c] ss:$36 sps:$4 sm:$0xff]   ;;  %v23345_v2 = vld [vmem:[#allocation5 + $0x1f44] ss:$36 sps:$4 sm:$0xff]  }
 0x431   :  { %10190 = vmatprep.subr.bf16.mxu1 %v23285_v62  ;;  %v23340_v62 = vld [vmem:[#allocation5 + $0x2178] ss:$36 sps:$4 sm:$0xff]  }
 0x433   :  { %10045 = vmatpush1.bf16.msra.mxu0 %v23286_v11  ;;  %v23343_v11 = vld [vmem:[#allocation5 + $0x1f40] ss:$36 sps:$4 sm:$0xff]  }
 0x434   :  { %10191 = vmatpush1.bf16.msra.mxu1 %v23283_v58  ;;  %10046 = vmatprep.subr.bf16.mxu0 %v23294_v59  ;;  %v23348_v58 = vld [vmem:[#allocation5 + $0x21c4] ss:$36 sps:$4 sm:$0xff]   ;;  %v23351_v59 = vld [vmem:[#allocation5 + $0x1f8c] ss:$36 sps:$4 sm:$0xff]  }
 0x435   :  { %10192 = vmatprep.subr.bf16.mxu1 %v23291_v12  ;;  %v23346_v12 = vld [vmem:[#allocation5 + $0x21c0] ss:$36 sps:$4 sm:$0xff]  }
 0x437   :  { %10047 = vmatpush1.bf16.msra.mxu0 %v23292_v20  ;;  %v23349_v20 = vld [vmem:[#allocation5 + $0x1f88] ss:$36 sps:$4 sm:$0xff]  }
 0x438   :  { %10193 = vmatpush1.bf16.msra.mxu1 %v23289_v16  ;;  %10048 = vmatprep.subr.bf16.mxu0 %v23300_v22  ;;  %v23354_v16 = vld [vmem:[#allocation5 + $0x220c] ss:$36 sps:$4 sm:$0xff]   ;;  %v23357_v22 = vld [vmem:[#allocation5 + $0x1fd4] ss:$36 sps:$4 sm:$0xff]  }
 0x439   :  { %10194 = vmatprep.subr.bf16.mxu1 %v23297_v21  ;;  %v23352_v21 = vld [vmem:[#allocation5 + $0x2208] ss:$36 sps:$4 sm:$0xff]  }
 0x43b   :  { %10049 = vmatpush1.bf16.msra.mxu0 %v23298_v46  ;;  %v23355_v46 = vld [vmem:[#allocation5 + $0x1fd0] ss:$36 sps:$4 sm:$0xff]  }
 0x43c   :  { %10195 = vmatpush1.bf16.msra.mxu1 %v23295_v24  ;;  %10050 = vmatprep.subr.bf16.mxu0 %v23306_v49  ;;  %v23360_v24 = vld [vmem:[#allocation5 + $0x2254] ss:$36 sps:$4 sm:$0xff]   ;;  %v23363_v49 = vld [vmem:[#allocation5 + $0x201c] ss:$36 sps:$4 sm:$0xff]  }
 0x43d   :  { %10196 = vmatprep.subr.bf16.mxu1 %v23303_v25  ;;  %v23358_v25 = vld [vmem:[#allocation5 + $0x2250] ss:$36 sps:$4 sm:$0xff]  }
 0x43f   :  { %10051 = vmatpush1.bf16.msra.mxu0 %v23304_v47  ;;  %v23361_v47 = vld [vmem:[#allocation5 + $0x2018] ss:$36 sps:$4 sm:$0xff]  }
 0x440   :  { %10197 = vmatpush1.bf16.msra.mxu1 %v23301_v26  ;;  %10061 = vmatprep.subr.bf16.mxu0 %v23312_v30  ;;  %v23366_v26 = vld [vmem:[#allocation5 + $0x229c] ss:$36 sps:$4 sm:$0xff]   ;;  %v23369_v30 = vld [vmem:[#allocation5 + $0x2064] ss:$36 sps:$4 sm:$0xff]  }
 0x441   :  { %10198 = vmatprep.subr.bf16.mxu1 %v23309_v27  ;;  %v23364_v27 = vld [vmem:[#allocation5 + $0x2298] ss:$36 sps:$4 sm:$0xff]  }
 0x442   :  { %10053 = vmatmul.mubr.bf16.vlgmr.msra.gmra.mrb[32].mxu0 %v24869_v8 }
 0x443   :  { %10062 = vmatpush1.bf16.msra.mxu0 %v23310_v33  ;;  %10093 = vmatprep.mubr.bf16.mxu0 %v24877_v35  ;;  %v23367_v33 = vld [vmem:[#allocation5 + $0x2060] ss:$36 sps:$4 sm:$0xff]  }
 0x444   :  { %10199 = vmatpush1.bf16.msra.mxu1 %v23307_v18  ;;  %10063 = vmatprep.subr.bf16.mxu0 %v23318_v37  ;;  %v23372_v18 = vld [vmem:[#allocation5 + $0x22e4] ss:$36 sps:$4 sm:$0xff]   ;;  %v23375_v37 = vld [vmem:[#allocation5 + $0x20ac] ss:$36 sps:$4 sm:$0xff]  }
 0x445   :  { %10200 = vmatprep.subr.bf16.mxu1 %v23315_v36  ;;  %v23370_v36 = vld [vmem:[#allocation5 + $0x22e0] ss:$36 sps:$4 sm:$0xff]  }
 0x447   :  { %10064 = vmatpush1.bf16.msra.mxu0 %v23316_v39  ;;  %v23373_v39 = vld [vmem:[#allocation5 + $0x20a8] ss:$36 sps:$4 sm:$0xff]  }
 0x448   :  { %10201 = vmatpush1.bf16.msra.mxu1 %v23313_v38  ;;  %10065 = vmatprep.subr.bf16.mxu0 %v23324_v41  ;;  %v23378_v38 = vld [vmem:[#allocation5 + $0x232c] ss:$36 sps:$4 sm:$0xff]   ;;  %v23381_v41 = vld [vmem:[#allocation5 + $0x20f4] ss:$36 sps:$4 sm:$0xff]  }
 0x449   :  { %10202 = vmatprep.subr.bf16.mxu1 %v23321_v40  ;;  %v23376_v40 = vld [vmem:[#allocation5 + $0x2328] ss:$36 sps:$4 sm:$0xff]  }
 0x44b   :  { %10066 = vmatpush1.bf16.msra.mxu0 %v23322_v43  ;;  %v23379_v43 = vld [vmem:[#allocation5 + $0x20f0] ss:$36 sps:$4 sm:$0xff]  }
 0x44c   :  { %10203 = vmatpush1.bf16.msra.mxu1 %v23319_v42  ;;  %10067 = vmatprep.subr.bf16.mxu0 %v23330_v45  ;;  %v23384_v42 = vld [vmem:[#allocation5 + $0x2374] ss:$36 sps:$4 sm:$0xff]   ;;  %v23387_v45 = vld [vmem:[#allocation5 + $0x213c] ss:$36 sps:$4 sm:$0xff]  }
 0x44d   :  { %10204 = vmatprep.subr.bf16.mxu1 %v23327_v44  ;;  %v23382_v44 = vld [vmem:[#allocation5 + $0x2370] ss:$36 sps:$4 sm:$0xff]  }
 0x44f   :  { %10068 = vmatpush1.bf16.msra.mxu0 %v23328_v51  ;;  %v23385_v51 = vld [vmem:[#allocation5 + $0x2138] ss:$36 sps:$4 sm:$0xff]  }
 0x450   :  { %10205 = vmatpush1.bf16.msra.mxu1 %v23325_v50  ;;  %10069 = vmatprep.subr.bf16.mxu0 %v23336_v54  ;;  %v23390_v50 = vld [vmem:[#allocation5 + $0x23bc] ss:$36 sps:$4 sm:$0xff]   ;;  %v23393_v54 = vld [vmem:[#allocation5 + $0x2184] ss:$36 sps:$4 sm:$0xff]  }
 0x451   :  { %10206 = vmatprep.subr.bf16.mxu1 %v23333_v53  ;;  %v23388_v53 = vld [vmem:[#allocation5 + $0x23b8] ss:$36 sps:$4 sm:$0xff]  }
 0x453   :  { %10070 = vmatpush1.bf16.msra.mxu0 %v23334_v56  ;;  %v23391_v56 = vld [vmem:[#allocation5 + $0x2180] ss:$36 sps:$4 sm:$0xff]  }
 0x454   :  { %10207 = vmatpush1.bf16.msra.mxu1 %v23331_v55  ;;  %10071 = vmatprep.subr.bf16.mxu0 %v23342_v60  ;;  %v23396_v55 = vld [vmem:[#allocation5 + $0x2404] ss:$36 sps:$4 sm:$0xff]   ;;  %v23399_v60 = vld [vmem:[#allocation5 + $0x21cc] ss:$36 sps:$4 sm:$0xff]  }
 0x455   :  { %10208 = vmatprep.subr.bf16.mxu1 %v23339_v57  ;;  %v23394_v57 = vld [vmem:[#allocation5 + $0x2400] ss:$36 sps:$4 sm:$0xff]  }
 0x457   :  { %10072 = vmatpush1.bf16.msra.mxu0 %v23340_v62  ;;  %v23397_v62 = vld [vmem:[#allocation5 + $0x21c8] ss:$36 sps:$4 sm:$0xff]  }
 0x458   :  { %10209 = vmatpush1.bf16.msra.mxu1 %v23337_v61  ;;  %10073 = vmatprep.subr.bf16.mxu0 %v23348_v58  ;;  %v23402_v61 = vld [vmem:[#allocation5 + $0x244c] ss:$36 sps:$4 sm:$0xff]   ;;  %v23405_v58 = vld [vmem:[#allocation5 + $0x2214] ss:$36 sps:$4 sm:$0xff]  }
 0x459   :  { %10210 = vmatprep.subr.bf16.mxu1 %v23345_v2  ;;  %v23400_v2 = vld [vmem:[#allocation5 + $0x2448] ss:$36 sps:$4 sm:$0xff]  }
 0x45b   :  { %10074 = vmatpush1.bf16.msra.mxu0 %v23346_v12  ;;  %v23403_v12 = vld [vmem:[#allocation5 + $0x2210] ss:$36 sps:$4 sm:$0xff]  }
 0x45c   :  { %10211 = vmatpush1.bf16.msra.mxu1 %v23343_v11  ;;  %10075 = vmatprep.subr.bf16.mxu0 %v23354_v16  ;;  %v23408_v11 = vld [vmem:[#allocation5 + $0x2494] ss:$36 sps:$4 sm:$0xff]   ;;  %v23411_v16 = vld [vmem:[#allocation5 + $0x225c] ss:$36 sps:$4 sm:$0xff]  }
 0x45d   :  { %10212 = vmatprep.subr.bf16.mxu1 %v23351_v59  ;;  %v23406_v59 = vld [vmem:[#allocation5 + $0x2490] ss:$36 sps:$4 sm:$0xff]  }
 0x45f   :  { %10076 = vmatpush1.bf16.msra.mxu0 %v23352_v21  ;;  %v23409_v21 = vld [vmem:[#allocation5 + $0x2258] ss:$36 sps:$4 sm:$0xff]  }
 0x460   :  { %10213 = vmatpush1.bf16.msra.mxu1 %v23349_v20  ;;  %10077 = vmatprep.subr.bf16.mxu0 %v23360_v24  ;;  %v23414_v20 = vld [vmem:[#allocation5 + $0x24dc] ss:$36 sps:$4 sm:$0xff]   ;;  %v23417_v24 = vld [vmem:[#allocation5 + $0x22a4] ss:$36 sps:$4 sm:$0xff]  }
 0x461   :  { %10214 = vmatprep.subr.bf16.mxu1 %v23357_v22  ;;  %v23412_v22 = vld [vmem:[#allocation5 + $0x24d8] ss:$36 sps:$4 sm:$0xff]  }
 0x463   :  { %10078 = vmatpush1.bf16.msra.mxu0 %v23358_v25  ;;  %v23415_v25 = vld [vmem:[#allocation5 + $0x22a0] ss:$36 sps:$4 sm:$0xff]  }
 0x464   :  { %10215 = vmatpush1.bf16.msra.mxu1 %v23355_v46  ;;  %10079 = vmatprep.subr.bf16.mxu0 %v23366_v26  ;;  %v23420_v46 = vld [vmem:[#allocation5 + $0x2524] ss:$36 sps:$4 sm:$0xff]   ;;  %v23423_v26 = vld [vmem:[#allocation5 + $0x22ec] ss:$36 sps:$4 sm:$0xff]  }
 0x465   :  { %10225 = vmatprep.subr.bf16.mxu1 %v23363_v49  ;;  %v23418_v49 = vld [vmem:[#allocation5 + $0x2520] ss:$36 sps:$4 sm:$0xff]  }
 0x467   :  { %10217 = vmatmul.mubr.bf16.vlgmr.msra.gmra.mrb[40].mxu1 %v24869_v8  ;;  %10080 = vmatpush1.bf16.msra.mxu0 %v23364_v27  ;;  %v23421_v27 = vld [vmem:[#allocation5 + $0x22e8] ss:$36 sps:$4 sm:$0xff]  }
 0x468   :  { %10226 = vmatpush1.bf16.msra.mxu1 %v23361_v47  ;;  %10081 = vmatprep.subr.bf16.mxu0 %v23372_v18  ;;  %v23426_v47 = vld [vmem:[#allocation5 + $0x256c] ss:$36 sps:$4 sm:$0xff]   ;;  %v23429_v18 = vld [vmem:[#allocation5 + $0x2334] ss:$36 sps:$4 sm:$0xff]  }
 0x469   :  { %10227 = vmatprep.subr.bf16.mxu1 %v23369_v30  ;;  %10257 = vmatprep.mubr.bf16.mxu1 %v24877_v35  ;;  %v23424_v30 = vld [vmem:[#allocation5 + $0x2568] ss:$36 sps:$4 sm:$0xff]  }
 0x46b   :  { %10082 = vmatpush1.bf16.msra.mxu0 %v23370_v36  ;;  %v23427_v36 = vld [vmem:[#allocation5 + $0x2330] ss:$36 sps:$4 sm:$0xff]  }
 0x46c   :  { %10228 = vmatpush1.bf16.msra.mxu1 %v23367_v33  ;;  %10083 = vmatprep.subr.bf16.mxu0 %v23378_v38  ;;  %v23432_v33 = vld [vmem:[#allocation5 + $0x25b4] ss:$36 sps:$4 sm:$0xff]   ;;  %v23435_v38 = vld [vmem:[#allocation5 + $0x237c] ss:$36 sps:$4 sm:$0xff]  }
 0x46d   :  { %10229 = vmatprep.subr.bf16.mxu1 %v23375_v37  ;;  %v23430_v37 = vld [vmem:[#allocation5 + $0x25b0] ss:$36 sps:$4 sm:$0xff]  }
 0x46f   :  { %10084 = vmatpush1.bf16.msra.mxu0 %v23376_v40  ;;  %v23433_v40 = vld [vmem:[#allocation5 + $0x2378] ss:$36 sps:$4 sm:$0xff]  }
 0x470   :  { %10230 = vmatpush1.bf16.msra.mxu1 %v23373_v39  ;;  %10085 = vmatprep.subr.bf16.mxu0 %v23384_v42  ;;  %v23438_v39 = vld [vmem:[#allocation5 + $0x25fc] ss:$36 sps:$4 sm:$0xff]   ;;  %v23441_v42 = vld [vmem:[#allocation5 + $0x23c4] ss:$36 sps:$4 sm:$0xff]  }
 0x471   :  { %10231 = vmatprep.subr.bf16.mxu1 %v23381_v41  ;;  %v23436_v41 = vld [vmem:[#allocation5 + $0x25f8] ss:$36 sps:$4 sm:$0xff]  }
 0x473   :  { %10086 = vmatpush1.bf16.msra.mxu0 %v23382_v44  ;;  %v23439_v44 = vld [vmem:[#allocation5 + $0x23c0] ss:$36 sps:$4 sm:$0xff]  }
 0x474   :  { %10232 = vmatpush1.bf16.msra.mxu1 %v23379_v43  ;;  %10087 = vmatprep.subr.bf16.mxu0 %v23390_v50  ;;  %v23444_v43 = vld [vmem:[#allocation5 + $0x2644] ss:$36 sps:$4 sm:$0xff]   ;;  %v23447_v50 = vld [vmem:[#allocation5 + $0x240c] ss:$36 sps:$4 sm:$0xff]  }
 0x475   :  { %10233 = vmatprep.subr.bf16.mxu1 %v23387_v45  ;;  %v23442_v45 = vld [vmem:[#allocation5 + $0x2640] ss:$36 sps:$4 sm:$0xff]  }
 0x477   :  { %10088 = vmatpush1.bf16.msra.mxu0 %v23388_v53  ;;  %v23445_v53 = vld [vmem:[#allocation5 + $0x2408] ss:$36 sps:$4 sm:$0xff]  }
 0x478   :  { %10234 = vmatpush1.bf16.msra.mxu1 %v23385_v51  ;;  %10089 = vmatprep.subr.bf16.mxu0 %v23396_v55  ;;  %v23450_v51 = vld [vmem:[#allocation5 + $0x268c] ss:$36 sps:$4 sm:$0xff]   ;;  %v23453_v55 = vld [vmem:[#allocation5 + $0x2454] ss:$36 sps:$4 sm:$0xff]  }
 0x479   :  { %10235 = vmatprep.subr.bf16.mxu1 %v23393_v54  ;;  %v23448_v54 = vld [vmem:[#allocation5 + $0x2688] ss:$36 sps:$4 sm:$0xff]  }
 0x47b   :  { %10090 = vmatpush1.bf16.msra.mxu0 %v23394_v57  ;;  %v23451_v57 = vld [vmem:[#allocation5 + $0x2450] ss:$36 sps:$4 sm:$0xff]  }
 0x47c   :  { %10236 = vmatpush1.bf16.msra.mxu1 %v23391_v56  ;;  %10091 = vmatprep.subr.bf16.mxu0 %v23402_v61  ;;  %v23456_v56 = vld [vmem:[#allocation5 + $0x26d4] ss:$36 sps:$4 sm:$0xff]   ;;  %v23459_v61 = vld [vmem:[#allocation5 + $0x249c] ss:$36 sps:$4 sm:$0xff]  }
 0x47d   :  { %10237 = vmatprep.subr.bf16.mxu1 %v23399_v60  ;;  %v23454_v60 = vld [vmem:[#allocation5 + $0x26d0] ss:$36 sps:$4 sm:$0xff]  }
 0x47f   :  { %10092 = vmatpush1.bf16.msra.mxu0 %v23400_v2  ;;  %v23457_v2 = vld [vmem:[#allocation5 + $0x2498] ss:$36 sps:$4 sm:$0xff]  }
 0x480   :  { %10238 = vmatpush1.bf16.msra.mxu1 %v23397_v62  ;;  %10102 = vmatprep.subr.bf16.mxu0 %v23408_v11  ;;  %v23462_v62 = vld [vmem:[#allocation5 + $0x271c] ss:$36 sps:$4 sm:$0xff]   ;;  %v23465_v11 = vld [vmem:[#allocation5 + $0x24e4] ss:$36 sps:$4 sm:$0xff]  }
 0x481   :  { %10239 = vmatprep.subr.bf16.mxu1 %v23405_v58  ;;  %v23460_v58 = vld [vmem:[#allocation5 + $0x2718] ss:$36 sps:$4 sm:$0xff]  }
 0x482   :  { %10094 = vmatmul.mubr.bf16.vlgmr.msra.gmra.mrb[32].mxu0 %v24883_v15 }
 0x483   :  { %10103 = vmatpush1.bf16.msra.mxu0 %v23406_v59  ;;  %10134 = vmatprep.mubr.bf16.mxu0 %v24889_v19  ;;  %v23463_v59 = vld [vmem:[#allocation5 + $0x24e0] ss:$36 sps:$4 sm:$0xff]  }
 0x484   :  { %10240 = vmatpush1.bf16.msra.mxu1 %v23403_v12  ;;  %10104 = vmatprep.subr.bf16.mxu0 %v23414_v20  ;;  %v23468_v12 = vld [vmem:[#allocation5 + $0x2764] ss:$36 sps:$4 sm:$0xff]   ;;  %v23471_v20 = vld [vmem:[#allocation5 + $0x252c] ss:$36 sps:$4 sm:$0xff]  }
 0x485   :  { %10241 = vmatprep.subr.bf16.mxu1 %v23411_v16  ;;  %v23466_v16 = vld [vmem:[#allocation5 + $0x2760] ss:$36 sps:$4 sm:$0xff]  }
 0x487   :  { %10105 = vmatpush1.bf16.msra.mxu0 %v23412_v22  ;;  %v23469_v22 = vld [vmem:[#allocation5 + $0x2528] ss:$36 sps:$4 sm:$0xff]  }
 0x488   :  { %10242 = vmatpush1.bf16.msra.mxu1 %v23409_v21  ;;  %10106 = vmatprep.subr.bf16.mxu0 %v23420_v46  ;;  %v23474_v21 = vld [vmem:[#allocation5 + $0x27ac] ss:$36 sps:$4 sm:$0xff]   ;;  %v23477_v46 = vld [vmem:[#allocation5 + $0x2574] ss:$36 sps:$4 sm:$0xff]  }
 0x489   :  { %10243 = vmatprep.subr.bf16.mxu1 %v23417_v24  ;;  %v23472_v24 = vld [vmem:[#allocation5 + $0x27a8] ss:$36 sps:$4 sm:$0xff]  }
 0x48b   :  { %10107 = vmatpush1.bf16.msra.mxu0 %v23418_v49 }
 0x48c   :  { %10244 = vmatpush1.bf16.msra.mxu1 %v23415_v25  ;;  %10108 = vmatprep.subr.bf16.mxu0 %v23426_v47  ;;  %v23480_v25 = vld [vmem:[#allocation5 + $0x27f4] ss:$36 sps:$4 sm:$0xff]  }
 0x48d   :  { %10245 = vmatprep.subr.bf16.mxu1 %v23423_v26 }
 0x48f   :  { %10109 = vmatpush1.bf16.msra.mxu0 %v23424_v30  ;;  %v23475_v30 = vld [vmem:[#allocation5 + $0x2570] ss:$36 sps:$4 sm:$0xff]  }
 0x490   :  { %10246 = vmatpush1.bf16.msra.mxu1 %v23421_v27  ;;  %10110 = vmatprep.subr.bf16.mxu0 %v23432_v33  ;;  %v23478_v33 = vld [vmem:[#allocation5 + $0x27f0] ss:$36 sps:$4 sm:$0xff]  }
 0x491   :  { %10247 = vmatprep.subr.bf16.mxu1 %v23429_v18 }
 0x493   :  { %10111 = vmatpush1.bf16.msra.mxu0 %v23430_v37  ;;  %v23483_v37 = vld [vmem:[#allocation5 + $0x25bc] ss:$36 sps:$4 sm:$0xff]  }
 0x494   :  { %10248 = vmatpush1.bf16.msra.mxu1 %v23427_v36  ;;  %10112 = vmatprep.subr.bf16.mxu0 %v23438_v39  ;;  %v23481_v39 = vld [vmem:[#allocation5 + $0x25b8] ss:$36 sps:$4 sm:$0xff]  }
 0x495   :  { %10249 = vmatprep.subr.bf16.mxu1 %v23435_v38  ;;  %v23486_v38 = vld [vmem:[#allocation5 + $0x283c] ss:$36 sps:$4 sm:$0xff]  }
 0x497   :  { %10113 = vmatpush1.bf16.msra.mxu0 %v23436_v41  ;;  %v23489_v41 = vld [vmem:[#allocation5 + $0x2604] ss:$36 sps:$4 sm:$0xff]  }
 0x498   :  { %10250 = vmatpush1.bf16.msra.mxu1 %v23433_v40  ;;  %10114 = vmatprep.subr.bf16.mxu0 %v23444_v43  ;;  %v23484_v40 = vld [vmem:[#allocation5 + $0x2838] ss:$36 sps:$4 sm:$0xff]   ;;  %v23487_v43 = vld [vmem:[#allocation5 + $0x2600] ss:$36 sps:$4 sm:$0xff]  }
 0x499   :  { %10251 = vmatprep.subr.bf16.mxu1 %v23441_v42  ;;  %v23492_v42 = vld [vmem:[#allocation5 + $0x2884] ss:$36 sps:$4 sm:$0xff]  }
 0x49b   :  { %10115 = vmatpush1.bf16.msra.mxu0 %v23442_v45  ;;  %v23495_v45 = vld [vmem:[#allocation5 + $0x264c] ss:$36 sps:$4 sm:$0xff]  }
 0x49c   :  { %10252 = vmatpush1.bf16.msra.mxu1 %v23439_v44  ;;  %10116 = vmatprep.subr.bf16.mxu0 %v23450_v51  ;;  %v23490_v44 = vld [vmem:[#allocation5 + $0x2880] ss:$36 sps:$4 sm:$0xff]  }
 0x49d   :  { %10253 = vmatprep.subr.bf16.mxu1 %v23447_v50  ;;  %v23498_v50 = vld [vmem:[#allocation5 + $0x28cc] ss:$36 sps:$4 sm:$0xff]  }
 0x49f   :  { %10117 = vmatpush1.bf16.msra.mxu0 %v23448_v54 }
 0x4a0   :  { %10254 = vmatpush1.bf16.msra.mxu1 %v23445_v53  ;;  %10118 = vmatprep.subr.bf16.mxu0 %v23456_v56 }
 0x4a1   :  { %10255 = vmatprep.subr.bf16.mxu1 %v23453_v55 }
 0x4a3   :  { %10119 = vmatpush1.bf16.msra.mxu0 %v23454_v60  ;;  %v23496_v60 = vld [vmem:[#allocation5 + $0x28c8] ss:$36 sps:$4 sm:$0xff]  }
 0x4a4   :  { %10256 = vmatpush1.bf16.msra.mxu1 %v23451_v57  ;;  %10120 = vmatprep.subr.bf16.mxu0 %v23462_v62  ;;  %v23493_v57 = vld [vmem:[#allocation5 + $0x2648] ss:$36 sps:$4 sm:$0xff]   ;;  %v23501_v62 = vld [vmem:[#allocation5 + $0x2694] ss:$36 sps:$4 sm:$0xff]  }
 0x4a5   :  { %10266 = vmatprep.subr.bf16.mxu1 %v23459_v61 }
 0x4a7   :  { %10258 = vmatmul.mubr.bf16.vlgmr.msra.gmra.mrb[40].mxu1 %v24883_v15  ;;  %10121 = vmatpush1.bf16.msra.mxu0 %v23460_v58  ;;  %v23499_v58 = vld [vmem:[#allocation5 + $0x2690] ss:$36 sps:$4 sm:$0xff]  }
 0x4a8   :  { %10267 = vmatpush1.bf16.msra.mxu1 %v23457_v2  ;;  %10122 = vmatprep.subr.bf16.mxu0 %v23468_v12  ;;  %v23510_v2 = vld [vmem:[#allocation5 + $0x2914] ss:$36 sps:$4 sm:$0xff]   ;;  %v23504_v12 = vld [vmem:[#allocation5 + $0x26dc] ss:$36 sps:$4 sm:$0xff]  }
 0x4a9   :  { %10268 = vmatprep.subr.bf16.mxu1 %v23465_v11  ;;  %10298 = vmatprep.mubr.bf16.mxu1 %v24889_v19  ;;  %v23508_v11 = vld [vmem:[#allocation5 + $0x2910] ss:$36 sps:$4 sm:$0xff]  }
 0x4ab   :  { %10123 = vmatpush1.bf16.msra.mxu0 %v23466_v16  ;;  %v23502_v16 = vld [vmem:[#allocation5 + $0x26d8] ss:$36 sps:$4 sm:$0xff]  }
 0x4ac   :  { %10269 = vmatpush1.bf16.msra.mxu1 %v23463_v59  ;;  %10124 = vmatprep.subr.bf16.mxu0 %v23474_v21  ;;  %v23516_v59 = vld [vmem:[#allocation5 + $0x1ba4] ss:$36 sps:$4 sm:$0xff]  }
 0x4ad   :  { %10270 = vmatprep.subr.bf16.mxu1 %v23471_v20  ;;  %v25039_v49 = vpop.f32.mrb[20].mxu0  ;;  %v23507_v20 = vld [vmem:[#allocation5 + $0x2724] ss:$36 sps:$4 sm:$0xff]  }
 0x4ae   :  { %v7273_v26 = vmax.f32 %v24969_v63, %v25039_v49  ;;  %v25043_v47 = vpop.f32.mrb[21].mxu0  ;;  %v23505_v21 = vld [vmem:[#allocation5 + $0x2720] ss:$36 sps:$4 sm:$0xff]  }
 0x4af   :  { %10125 = vmatpush1.bf16.msra.mxu0 %v23472_v24  ;;  %v7274_v27 = vmax.f32 %v24971_v1, %v25043_v47  ;;  %v7104_v18 = vpop.f32.mrb[22].mxu0  ;;  %v23511_v24 = vld [vmem:[#allocation5 + $0x2768] ss:$36 sps:$4 sm:$0xff]   ;;  %v24154_v63 = vld [vmem:[#allocation5 + $0x3600] ss:$36 sps:$4 sm:$0xff]  }
 0x4b0   :  { %10271 = vmatpush1.bf16.msra.mxu1 %v23469_v22  ;;  %v7105_v36 = vpop.f32.mrb[23].mxu0  ;;  %10126 = vmatprep.subr.bf16.mxu0 %v23480_v25  ;;  %v23513_v22 = vld [vmem:[#allocation5 + $0x276c] ss:$36 sps:$4 sm:$0xff]   ;;  %v23519_v25 = vld [vmem:[#allocation5 + $0x27b4] ss:$36 sps:$4 sm:$0xff]  }
 0x4b1   :  { %10272 = vmatprep.subr.bf16.mxu1 %v23477_v46  ;;  %v23514_v46 = vld [vmem:[#allocation5 + $0x1ba0] ss:$36 sps:$4 sm:$0xff]   ;;  %v24157_v1 = vld [vmem:[#allocation5 + $0x3648] ss:$36 sps:$4 sm:$0xff]   ;;  %v24162_v47 = vld [vmem:[#allocation5 + $0x3694] ss:$36 sps:$4 sm:$0xff]  }
 0x4b2   :  { %v24163_v49 = vld [vmem:[#allocation5 + $0x36e0] ss:$36 sps:$4 sm:$0xff]  }
 0x4b3   :  { %10127 = vmatpush1.bf16.msra.mxu0 %v23478_v33  ;;  %v25057_v33 = vld [vmem:[#allocation2 + $0x18] ss:$0 sps:$4 sm:$0xff]  }
 0x4b4   :  { %10273 = vmatpush1.bf16.msra.mxu1 %v23475_v30  ;;  %10128 = vmatprep.subr.bf16.mxu0 %v23486_v38  ;;  %v23522_v30 = vld [vmem:[#allocation5 + $0x1bec] ss:$36 sps:$4 sm:$0xff]  }
 0x4b5   :  { %10274 = vmatprep.subr.bf16.mxu1 %v23483_v37  ;;  %v23517_v37 = vld [vmem:[#allocation5 + $0x27b0] ss:$36 sps:$4 sm:$0xff]   ;;  %v23520_v38 = vld [vmem:[#allocation5 + $0x1be8] ss:$36 sps:$4 sm:$0xff]  }
 0x4b7   :  { %10129 = vmatpush1.bf16.msra.mxu0 %v23484_v40 }
 0x4b8   :  { %10275 = vmatpush1.bf16.msra.mxu1 %v23481_v39  ;;  %10130 = vmatprep.subr.bf16.mxu0 %v23492_v42  ;;  %v23528_v42 = vld [vmem:[#allocation5 + $0x1c34] ss:$36 sps:$4 sm:$0xff]  }
 0x4b9   :  { %10276 = vmatprep.subr.bf16.mxu1 %v23489_v41  ;;  %v23525_v41 = vld [vmem:[#allocation5 + $0x27fc] ss:$36 sps:$4 sm:$0xff]  }
 0x4ba   :  { %v25047_v51 = vpop.f32.mrb[28].mxu1 }
 0x4bb   :  { %v7271_v53 = vmax.f32 %v24962_v6, %v25047_v51  ;;  %v25051_v54 = vpop.f32.mrb[29].mxu1  ;;  %10131 = vmatpush1.bf16.msra.mxu0 %v23490_v44  ;;  %v23523_v44 = vld [vmem:[#allocation5 + $0x27f8] ss:$36 sps:$4 sm:$0xff]  }
 0x4bc   :  { %v7272_v55 = vmax.f32 %v24965_v9, %v25051_v54  ;;  %10277 = vmatpush1.bf16.msra.mxu1 %v23487_v43  ;;  %v6940_v56 = vpop.f32.mrb[30].mxu1  ;;  %10132 = vmatprep.subr.bf16.mxu0 %v23498_v50  ;;  %v23531_v50 = vld [vmem:[#allocation5 + $0x2844] ss:$36 sps:$4 sm:$0xff]   ;;  %v24100_v6 = vld [vmem:[#allocation5 + $0x3378] ss:$36 sps:$4 sm:$0xff]  }
 0x4bd   :  { %v6941_v61 = vpop.f32.mrb[31].mxu1  ;;  %10278 = vmatprep.subr.bf16.mxu1 %v23495_v45  ;;  %v23526_v45 = vld [vmem:[#allocation5 + $0x1c30] ss:$36 sps:$4 sm:$0xff]   ;;  %v23534_v56 = vld [vmem:[#allocation5 + $0x1c7c] ss:$36 sps:$4 sm:$0xff]  }
 0x4be   :  { %v23529_v61 = vld [vmem:[#allocation5 + $0x2840] ss:$36 sps:$4 sm:$0xff]   ;;  %v24103_v51 = vld [vmem:[#allocation5 + $0x3458] ss:$36 sps:$4 sm:$0xff]  }
 0x4bf   :  { %10133 = vmatpush1.bf16.msra.mxu0 %v23496_v60  ;;  %v24106_v9 = vld [vmem:[#allocation5 + $0x33c0] ss:$36 sps:$4 sm:$0xff]  }
 0x4c0   :  { %10279 = vmatpush1.bf16.msra.mxu1 %v23493_v57  ;;  %10143 = vmatprep.subr.bf16.mxu0 %v23510_v2  ;;  %v24109_v54 = vld [vmem:[#allocation5 + $0x34a0] ss:$36 sps:$4 sm:$0xff]  }
 0x4c1   :  { %10280 = vmatprep.subr.bf16.mxu1 %v23501_v62  ;;  %v23532_v62 = vld [vmem:[#allocation5 + $0x1c78] ss:$36 sps:$4 sm:$0xff]  }
 0x4c2   :  { %10135 = vmatmul.mubr.bf16.vlgmr.msra.gmra.mrb[32].mxu0 %v24897_v23 }
 0x4c3   :  { %10144 = vmatpush1.bf16.msra.mxu0 %v23508_v11  ;;  %10175 = vmatprep.mubr.bf16.mxu0 %v24735_v0  ;;  %v23540_v11 = vld [vmem:[#allocation5 + $0x1cc4] ss:$36 sps:$4 sm:$0xff]  }
 0x4c4   :  { %10281 = vmatpush1.bf16.msra.mxu1 %v23499_v58  ;;  %10348 = vmatprep.subr.bf16.mxu0 %v23516_v59  ;;  %v23537_v58 = vld [vmem:[#allocation5 + $0x288c] ss:$36 sps:$4 sm:$0xff]  }
 0x4c5   :  { %10282 = vmatprep.subr.bf16.mxu1 %v23504_v12 }
 0x4c8   :  { %10283 = vmatpush1.bf16.msra.mxu1 %v23502_v16 }
 0x4c9   :  { %10284 = vmatprep.subr.bf16.mxu1 %v23507_v20 }
 0x4cc   :  { %10285 = vmatpush1.bf16.msra.mxu1 %v23505_v21 }
 0x4cd   :  { %10286 = vmatprep.subr.bf16.mxu1 %v23513_v22  ;;  %v21476_v18 = vpop.f32.mrb[24].mxu0  ;;  %v23535_v22 = vld [vmem:[#allocation5 + $0x2888] ss:$36 sps:$4 sm:$0xff]  }
 0x4ce   :  { %20325 = vmatmul.mubr.msk.bf16.vlgmr.msra.gmra.mrb[32].mxu0 %vm2887_vm0, %v25057_v33  ;;  %v21477_v36 = vpop.f32.mrb[25].mxu0 }
 0x4cf   :  { %10349 = vmatpush1.bf16.msra.mxu0 %v23514_v46  ;;  %v21478_v39 = vadd.f32 %v21477_v36, %v21476_v18  ;;  %v21479_v40 = vpop.f32.mrb[26].mxu0  ;;  %10380 = vmatprep.mubr.bf16.mxu0 %v24865_v52  ;;  %v23541_v36 = vld [vmem:[#allocation5 + $0x28d0] ss:$36 sps:$4 sm:$0xff]  }
 0x4d0   :  { %10287 = vmatpush1.bf16.msra.mxu1 %v23511_v24  ;;  %10350 = vmatprep.subr.bf16.mxu0 %v23522_v30  ;;  %v21480_v43 = vpop.f32.mrb[27].mxu0  ;;  %v23538_v24 = vld [vmem:[#allocation5 + $0x1cc0] ss:$36 sps:$4 sm:$0xff]   ;;  %v23546_v30 = vld [vmem:[#allocation5 + $0x1d0c] ss:$36 sps:$4 sm:$0xff]  }
 0x4d1   :  { %10288 = vmatprep.subr.bf16.mxu1 %v23519_v25  ;;  %v23543_v25 = vld [vmem:[#allocation5 + $0x28d4] ss:$36 sps:$4 sm:$0xff]   ;;  %v23555_v43 = vld [vmem:[#allocation5 + $0x1d9c] ss:$36 sps:$4 sm:$0xff]  }
 0x4d2   :  { %v23552_v40 = vld [vmem:[#allocation5 + $0x1d54] ss:$36 sps:$4 sm:$0xff]  }
 0x4d3   :  { %10351 = vmatpush1.bf16.msra.mxu0 %v23520_v38  ;;  %v23549_v38 = vld [vmem:[#allocation5 + $0x291c] ss:$36 sps:$4 sm:$0xff]  }
 0x4d4   :  { %10289 = vmatpush1.bf16.msra.mxu1 %v23517_v37  ;;  %10352 = vmatprep.subr.bf16.mxu0 %v23528_v42  ;;  %v23544_v37 = vld [vmem:[#allocation5 + $0x1d08] ss:$36 sps:$4 sm:$0xff]   ;;  %v23550_v42 = vld [vmem:[#allocation5 + $0x1d50] ss:$36 sps:$4 sm:$0xff]  }
 0x4d5   :  { %10290 = vmatprep.subr.bf16.mxu1 %v23525_v41  ;;  %v25062_v57 = vpop.f32.mrb[28].mxu0  ;;  %v23547_v41 = vld [vmem:[#allocation5 + $0x2918] ss:$36 sps:$4 sm:$0xff]  }
 0x4d6   :  { %v21674_v60 = vpop.f32.mrb[29].mxu0 }
 0x4d7   :  { %10353 = vmatpush1.bf16.msra.mxu0 %v23526_v45  ;;  %v7264_v2 = vpop.f32.mrb[30].mxu0  ;;  %v23558_v45 = vld [vmem:[#allocation5 + $0x1de4] ss:$36 sps:$4 sm:$0xff]  }
 0x4d8   :  { %10291 = vmatpush1.bf16.msra.mxu1 %v23523_v44  ;;  %10354 = vmatprep.subr.bf16.mxu0 %v23534_v56  ;;  %v21675_v12 = vpop.f32.mrb[31].mxu0  ;;  %v23561_v44 = vld [vmem:[#allocation5 + $0x1bac] ss:$36 sps:$4 sm:$0xff]   ;;  %v23570_v2 = vld [vmem:[#allocation5 + $0x1e74] ss:$36 sps:$4 sm:$0xff]  }
 0x4d9   :  { %10292 = vmatprep.subr.bf16.mxu1 %v23531_v50  ;;  %v23556_v50 = vld [vmem:[#allocation5 + $0x1de0] ss:$36 sps:$4 sm:$0xff]   ;;  %v23564_v56 = vld [vmem:[#allocation5 + $0x1e2c] ss:$36 sps:$4 sm:$0xff]  }
 0x4da   :  { %v21454_v59 = vpop.f32.mrb[32].mxu1  ;;  %v23559_v60 = vld [vmem:[#allocation5 + $0x1ba8] ss:$36 sps:$4 sm:$0xff]   ;;  %v23573_v12 = vld [vmem:[#allocation5 + $0x1c3c] ss:$36 sps:$4 sm:$0xff]  }
 0x4db   :  { %v21455_v16 = vpop.f32.mrb[33].mxu1  ;;  %10355 = vmatpush1.bf16.msra.mxu0 %v23532_v62  ;;  %v23567_v62 = vld [vmem:[#allocation5 + $0x1bf4] ss:$36 sps:$4 sm:$0xff]  }
 0x4dc   :  { %v21456_v20 = vadd.f32 %v21455_v16, %v21454_v59  ;;  %v21457_v21 = vpop.f32.mrb[34].mxu1  ;;  %10293 = vmatpush1.bf16.msra.mxu1 %v23529_v61  ;;  %10356 = vmatprep.subr.bf16.mxu0 %v23540_v11  ;;  %v23562_v61 = vld [vmem:[#allocation5 + $0x1e28] ss:$36 sps:$4 sm:$0xff]   ;;  %v23568_v11 = vld [vmem:[#allocation5 + $0x1e70] ss:$36 sps:$4 sm:$0xff]  }
 0x4dd   :  { %v21458_v46 = vpop.f32.mrb[35].mxu1  ;;  %10294 = vmatprep.subr.bf16.mxu1 %v23537_v58  ;;  %v23565_v58 = vld [vmem:[#allocation5 + $0x1bf0] ss:$36 sps:$4 sm:$0xff]   ;;  %v23576_v59 = vld [vmem:[#allocation5 + $0x1ebc] ss:$36 sps:$4 sm:$0xff]  }
 0x4de   :  { %v25064_v18 = vadd.f32 %v21478_v39, %v21456_v20  ;;  %v23553_v39 = vld [vmem:[#allocation5 + $0x1d98] ss:$36 sps:$4 sm:$0xff]   ;;  %v23579_v21 = vld [vmem:[#allocation5 + $0x1c84] ss:$36 sps:$4 sm:$0xff]  }
 0x4df   :  { %10357 = vmatpush1.bf16.msra.mxu0 %v23538_v24  ;;  %v23571_v16 = vld [vmem:[#allocation5 + $0x1c38] ss:$36 sps:$4 sm:$0xff]  }
 0x4e0   :  { %10295 = vmatpush1.bf16.msra.mxu1 %v23535_v22  ;;  %10358 = vmatprep.subr.bf16.mxu0 %v23546_v30  ;;  %v23574_v20 = vld [vmem:[#allocation5 + $0x1eb8] ss:$36 sps:$4 sm:$0xff]   ;;  %v23582_v22 = vld [vmem:[#allocation5 + $0x1f04] ss:$36 sps:$4 sm:$0xff]  }
 0x4e1   :  { %10296 = vmatprep.subr.bf16.mxu1 %v23543_v25 }
 0x4e3   :  { %10359 = vmatpush1.bf16.msra.mxu0 %v23544_v37  ;;  %v23580_v37 = vld [vmem:[#allocation5 + $0x1f00] ss:$36 sps:$4 sm:$0xff]  }
 0x4e4   :  { %10297 = vmatpush1.bf16.msra.mxu1 %v23541_v36  ;;  %10360 = vmatprep.subr.bf16.mxu0 %v23552_v40  ;;  %v23577_v36 = vld [vmem:[#allocation5 + $0x1c80] ss:$36 sps:$4 sm:$0xff]   ;;  %v23585_v40 = vld [vmem:[#allocation5 + $0x1ccc] ss:$36 sps:$4 sm:$0xff]  }
 0x4e5   :  { %10307 = vmatprep.subr.bf16.mxu1 %v23549_v38 }
 0x4e7   :  { %10299 = vmatmul.mubr.bf16.vlgmr.msra.gmra.mrb[40].mxu1 %v24897_v23  ;;  %10361 = vmatpush1.bf16.msra.mxu0 %v23550_v42 }
 0x4e8   :  { %10308 = vmatpush1.bf16.msra.mxu1 %v23547_v41  ;;  %10362 = vmatprep.subr.bf16.mxu0 %v23555_v43  ;;  %v23588_v41 = vld [vmem:[#allocation5 + $0x1f4c] ss:$36 sps:$4 sm:$0xff]  }
 0x4e9   :  { %10339 = vmatprep.mubr.bf16.mxu1 %v24735_v0  ;;  %10512 = vmatprep.subr.bf16.mxu1 %v23561_v44  ;;  %v23583_v44 = vld [vmem:[#allocation5 + $0x1cc8] ss:$36 sps:$4 sm:$0xff]  }
 0x4eb   :  { %10363 = vmatpush1.bf16.msra.mxu0 %v23553_v39  ;;  %v23586_v39 = vld [vmem:[#allocation5 + $0x1f48] ss:$36 sps:$4 sm:$0xff]  }
 0x4ec   :  { %10364 = vmatprep.subr.bf16.mxu0 %v23558_v45  ;;  %v23591_v45 = vld [vmem:[#allocation5 + $0x1d14] ss:$36 sps:$4 sm:$0xff]  }
 0x4ef   :  { %10365 = vmatpush1.bf16.msra.mxu0 %v23556_v50  ;;  %v23594_v50 = vld [vmem:[#allocation5 + $0x1f94] ss:$36 sps:$4 sm:$0xff]  }
 0x4f0   :  { %10366 = vmatprep.subr.bf16.mxu0 %v23564_v56 }
 0x4f3   :  { %20326 = vmatmul.mubr.msk.bf16.vlgmr.msra.gmra.mrb[40].mxu1 %vm2887_vm0, %v25057_v33  ;;  %10367 = vmatpush1.bf16.msra.mxu0 %v23562_v61  ;;  %v23592_v61 = vld [vmem:[#allocation5 + $0x1f90] ss:$36 sps:$4 sm:$0xff]  }
 0x4f4   :  { %10513 = vmatpush1.bf16.msra.mxu1 %v23559_v60  ;;  %10368 = vmatprep.subr.bf16.mxu0 %v23570_v2  ;;  %v23589_v60 = vld [vmem:[#allocation5 + $0x1d10] ss:$36 sps:$4 sm:$0xff]   ;;  %v23598_v2 = vld [vmem:[#allocation5 + $0x1fd8] ss:$36 sps:$4 sm:$0xff]  }
 0x4f5   :  { %10514 = vmatprep.subr.bf16.mxu1 %v23567_v62  ;;  %10544 = vmatprep.mubr.bf16.mxu1 %v24865_v52  ;;  %v23595_v62 = vld [vmem:[#allocation5 + $0x1d58] ss:$36 sps:$4 sm:$0xff]  }
 0x4f7   :  { %10369 = vmatpush1.bf16.msra.mxu0 %v23568_v11  ;;  %v23606_v11 = vld [vmem:[#allocation5 + $0x2024] ss:$36 sps:$4 sm:$0xff]  }
 0x4f8   :  { %10515 = vmatpush1.bf16.msra.mxu1 %v23565_v58  ;;  %10370 = vmatprep.subr.bf16.mxu0 %v23576_v59  ;;  %v23603_v58 = vld [vmem:[#allocation5 + $0x1da4] ss:$36 sps:$4 sm:$0xff]  }
 0x4f9   :  { %10516 = vmatprep.subr.bf16.mxu1 %v23573_v12  ;;  %v23601_v12 = vld [vmem:[#allocation5 + $0x1da0] ss:$36 sps:$4 sm:$0xff]  }
 0x4fa   :  { %v21498_v24 = vpop.f32.mrb[36].mxu1  ;;  %v23604_v59 = vld [vmem:[#allocation5 + $0x2020] ss:$36 sps:$4 sm:$0xff]  }
 0x4fb   :  { %v21499_v46 = vpop.f32.mrb[37].mxu1  ;;  %10371 = vmatpush1.bf16.msra.mxu0 %v23574_v20  ;;  %v23612_v20 = vld [vmem:[#allocation5 + $0x206c] ss:$36 sps:$4 sm:$0xff]  }
 0x4fc   :  { %v21500_v25 = vadd.f32 %v21499_v46, %v21498_v24  ;;  %10517 = vmatpush1.bf16.msra.mxu1 %v23571_v16  ;;  %v21501_v30 = vpop.f32.mrb[38].mxu1  ;;  %10372 = vmatprep.subr.bf16.mxu0 %v23582_v22  ;;  %v23609_v16 = vld [vmem:[#allocation5 + $0x1dec] ss:$36 sps:$4 sm:$0xff]   ;;  %v23615_v24 = vld [vmem:[#allocation5 + $0x1e34] ss:$36 sps:$4 sm:$0xff]  }
 0x4fd   :  { %v21502_v38 = vpop.f32.mrb[39].mxu1  ;;  %10518 = vmatprep.subr.bf16.mxu1 %v23579_v21  ;;  %v23607_v21 = vld [vmem:[#allocation5 + $0x1de8] ss:$36 sps:$4 sm:$0xff]   ;;  %v23618_v46 = vld [vmem:[#allocation5 + $0x20b4] ss:$36 sps:$4 sm:$0xff]  }
 0x4fe   :  { %v7222_v42 = vadd.f32 %v21500_v25, %v25064_v18  ;;  %v23597_v18 = vld [vmem:[#allocation5 + $0x1d5c] ss:$36 sps:$4 sm:$0xff]   ;;  %v23610_v22 = vld [vmem:[#allocation5 + $0x2068] ss:$36 sps:$4 sm:$0xff]   ;;  %v23613_v25 = vld [vmem:[#allocation5 + $0x1e30] ss:$36 sps:$4 sm:$0xff]  }
 0x4ff   :  { %10373 = vmatpush1.bf16.msra.mxu0 %v23580_v37  ;;  %v23616_v30 = vld [vmem:[#allocation5 + $0x20b0] ss:$36 sps:$4 sm:$0xff]   ;;  %v23624_v37 = vld [vmem:[#allocation5 + $0x20fc] ss:$36 sps:$4 sm:$0xff]  }
 0x500   :  { %v25073_v43 = vadd.f32 %v25062_v57, %v7222_v42  ;;  %10519 = vmatpush1.bf16.msra.mxu1 %v23577_v36  ;;  %10374 = vmatprep.subr.bf16.mxu0 %v23588_v41  ;;  %v23600_v57 = vld [vmem:[#allocation5 + $0x1fdc] ss:$36 sps:$4 sm:$0xff]   ;;  %v23627_v41 = vld [vmem:[#allocation5 + $0x1ec4] ss:$36 sps:$4 sm:$0xff]  }
 0x501   :  { %10520 = vmatprep.subr.bf16.mxu1 %v23585_v40  ;;  %v23621_v36 = vld [vmem:[#allocation5 + $0x1e7c] ss:$36 sps:$4 sm:$0xff]   ;;  %v23630_v42 = vld [vmem:[#allocation5 + $0x2144] ss:$36 sps:$4 sm:$0xff]  }
 0x502   :  { %v7275_v56 = vmax.f32 %v24982_v3, %v25073_v43  ;;  %v23619_v38 = vld [vmem:[#allocation5 + $0x1e78] ss:$36 sps:$4 sm:$0xff]  }
 0x503   :  { %10375 = vmatpush1.bf16.msra.mxu0 %v23586_v39  ;;  %v23622_v40 = vld [vmem:[#allocation5 + $0x20f8] ss:$36 sps:$4 sm:$0xff]   ;;  %v23628_v39 = vld [vmem:[#allocation5 + $0x2140] ss:$36 sps:$4 sm:$0xff]  }
 0x504   :  { %10521 = vmatpush1.bf16.msra.mxu1 %v23583_v44  ;;  %10376 = vmatprep.subr.bf16.mxu0 %v23594_v50  ;;  %v23625_v44 = vld [vmem:[#allocation5 + $0x1ec0] ss:$36 sps:$4 sm:$0xff]   ;;  %v23636_v50 = vld [vmem:[#allocation5 + $0x218c] ss:$36 sps:$4 sm:$0xff]  }
 0x505   :  { %10522 = vmatprep.subr.bf16.mxu1 %v23591_v45  ;;  %v23633_v45 = vld [vmem:[#allocation5 + $0x1f0c] ss:$36 sps:$4 sm:$0xff]   ;;  %v24216_v3 = vld [vmem:[#allocation5 + $0x2b1c] ss:$36 sps:$4 sm:$0xff]  }
 0x506   :  { %v24219_v43 = vld [vmem:[#allocation5 + $0x2bfc] ss:$36 sps:$4 sm:$0xff]  }
 0x507   :  { %10377 = vmatpush1.bf16.msra.mxu0 %v23592_v61  ;;  %v23634_v61 = vld [vmem:[#allocation5 + $0x2188] ss:$36 sps:$4 sm:$0xff]  }
 0x508   :  { %10523 = vmatpush1.bf16.msra.mxu1 %v23589_v60  ;;  %10378 = vmatprep.subr.bf16.mxu0 %v23600_v57  ;;  %v23631_v60 = vld [vmem:[#allocation5 + $0x1f08] ss:$36 sps:$4 sm:$0xff]   ;;  %v23642_v57 = vld [vmem:[#allocation5 + $0x21d4] ss:$36 sps:$4 sm:$0xff]  }
 0x509   :  { %10524 = vmatprep.subr.bf16.mxu1 %v23597_v18  ;;  %v23639_v18 = vld [vmem:[#allocation5 + $0x1f54] ss:$36 sps:$4 sm:$0xff]  }
 0x50b   :  { %10379 = vmatpush1.bf16.msra.mxu0 %v23598_v2  ;;  %v23640_v2 = vld [vmem:[#allocation5 + $0x21d0] ss:$36 sps:$4 sm:$0xff]  }
 0x50c   :  { %10525 = vmatpush1.bf16.msra.mxu1 %v23595_v62  ;;  %10389 = vmatprep.subr.bf16.mxu0 %v23606_v11  ;;  %v23637_v62 = vld [vmem:[#allocation5 + $0x1f50] ss:$36 sps:$4 sm:$0xff]   ;;  %v23648_v11 = vld [vmem:[#allocation5 + $0x221c] ss:$36 sps:$4 sm:$0xff]  }
 0x50d   :  { %10526 = vmatprep.subr.bf16.mxu1 %v23603_v58  ;;  %v23645_v58 = vld [vmem:[#allocation5 + $0x1f9c] ss:$36 sps:$4 sm:$0xff]  }
 0x50e   :  { %10381 = vmatmul.mubr.bf16.vlgmr.msra.gmra.mrb[36].mxu0 %v24869_v8 }
 0x50f   :  { %10390 = vmatpush1.bf16.msra.mxu0 %v23604_v59  ;;  %10421 = vmatprep.mubr.bf16.mxu0 %v24877_v35  ;;  %v23646_v59 = vld [vmem:[#allocation5 + $0x2218] ss:$36 sps:$4 sm:$0xff]  }
 0x510   :  { %10527 = vmatpush1.bf16.msra.mxu1 %v23601_v12  ;;  %10391 = vmatprep.subr.bf16.mxu0 %v23612_v20  ;;  %v23643_v12 = vld [vmem:[#allocation5 + $0x1f98] ss:$36 sps:$4 sm:$0xff]   ;;  %v23654_v20 = vld [vmem:[#allocation5 + $0x2264] ss:$36 sps:$4 sm:$0xff]  }
 0x511   :  { %10528 = vmatprep.subr.bf16.mxu1 %v23609_v16  ;;  %v23651_v16 = vld [vmem:[#allocation5 + $0x1fe4] ss:$36 sps:$4 sm:$0xff]  }
 0x513   :  { %10392 = vmatpush1.bf16.msra.mxu0 %v23610_v22  ;;  %v23652_v22 = vld [vmem:[#allocation5 + $0x2260] ss:$36 sps:$4 sm:$0xff]  }
 0x514   :  { %10529 = vmatpush1.bf16.msra.mxu1 %v23607_v21  ;;  %10393 = vmatprep.subr.bf16.mxu0 %v23618_v46  ;;  %v23649_v21 = vld [vmem:[#allocation5 + $0x1fe0] ss:$36 sps:$4 sm:$0xff]   ;;  %v23660_v46 = vld [vmem:[#allocation5 + $0x22ac] ss:$36 sps:$4 sm:$0xff]  }
 0x515   :  { %10530 = vmatprep.subr.bf16.mxu1 %v23615_v24  ;;  %v23657_v24 = vld [vmem:[#allocation5 + $0x202c] ss:$36 sps:$4 sm:$0xff]  }
 0x517   :  { %10394 = vmatpush1.bf16.msra.mxu0 %v23616_v30  ;;  %v23658_v30 = vld [vmem:[#allocation5 + $0x22a8] ss:$36 sps:$4 sm:$0xff]  }
 0x518   :  { %10531 = vmatpush1.bf16.msra.mxu1 %v23613_v25  ;;  %10395 = vmatprep.subr.bf16.mxu0 %v23624_v37  ;;  %v23655_v25 = vld [vmem:[#allocation5 + $0x2028] ss:$36 sps:$4 sm:$0xff]   ;;  %v23666_v37 = vld [vmem:[#allocation5 + $0x22f4] ss:$36 sps:$4 sm:$0xff]  }
 0x519   :  { %10532 = vmatprep.subr.bf16.mxu1 %v23621_v36  ;;  %v23663_v36 = vld [vmem:[#allocation5 + $0x2074] ss:$36 sps:$4 sm:$0xff]  }
 0x51b   :  { %10396 = vmatpush1.bf16.msra.mxu0 %v23622_v40  ;;  %v23664_v40 = vld [vmem:[#allocation5 + $0x22f0] ss:$36 sps:$4 sm:$0xff]  }
 0x51c   :  { %10533 = vmatpush1.bf16.msra.mxu1 %v23619_v38  ;;  %10397 = vmatprep.subr.bf16.mxu0 %v23630_v42  ;;  %v23661_v38 = vld [vmem:[#allocation5 + $0x2070] ss:$36 sps:$4 sm:$0xff]   ;;  %v23672_v42 = vld [vmem:[#allocation5 + $0x233c] ss:$36 sps:$4 sm:$0xff]  }
 0x51d   :  { %10534 = vmatprep.subr.bf16.mxu1 %v23627_v41  ;;  %v23669_v41 = vld [vmem:[#allocation5 + $0x20bc] ss:$36 sps:$4 sm:$0xff]  }
 0x51f   :  { %10398 = vmatpush1.bf16.msra.mxu0 %v23628_v39  ;;  %v23670_v39 = vld [vmem:[#allocation5 + $0x2338] ss:$36 sps:$4 sm:$0xff]  }
 0x520   :  { %10535 = vmatpush1.bf16.msra.mxu1 %v23625_v44  ;;  %10399 = vmatprep.subr.bf16.mxu0 %v23636_v50  ;;  %v23667_v44 = vld [vmem:[#allocation5 + $0x20b8] ss:$36 sps:$4 sm:$0xff]   ;;  %v23678_v50 = vld [vmem:[#allocation5 + $0x2384] ss:$36 sps:$4 sm:$0xff]  }
 0x521   :  { %10536 = vmatprep.subr.bf16.mxu1 %v23633_v45  ;;  %v23675_v45 = vld [vmem:[#allocation5 + $0x2104] ss:$36 sps:$4 sm:$0xff]  }
 0x523   :  { %10400 = vmatpush1.bf16.msra.mxu0 %v23634_v61  ;;  %v23676_v61 = vld [vmem:[#allocation5 + $0x2380] ss:$36 sps:$4 sm:$0xff]  }
 0x524   :  { %10537 = vmatpush1.bf16.msra.mxu1 %v23631_v60  ;;  %10401 = vmatprep.subr.bf16.mxu0 %v23642_v57  ;;  %v23673_v60 = vld [vmem:[#allocation5 + $0x2100] ss:$36 sps:$4 sm:$0xff]   ;;  %v23684_v57 = vld [vmem:[#allocation5 + $0x23cc] ss:$36 sps:$4 sm:$0xff]  }
 0x525   :  { %10538 = vmatprep.subr.bf16.mxu1 %v23639_v18  ;;  %v23681_v18 = vld [vmem:[#allocation5 + $0x214c] ss:$36 sps:$4 sm:$0xff]  }
 0x527   :  { %10402 = vmatpush1.bf16.msra.mxu0 %v23640_v2  ;;  %v23682_v2 = vld [vmem:[#allocation5 + $0x23c8] ss:$36 sps:$4 sm:$0xff]  }
 0x528   :  { %10539 = vmatpush1.bf16.msra.mxu1 %v23637_v62  ;;  %10403 = vmatprep.subr.bf16.mxu0 %v23648_v11  ;;  %v23679_v62 = vld [vmem:[#allocation5 + $0x2148] ss:$36 sps:$4 sm:$0xff]   ;;  %v23690_v11 = vld [vmem:[#allocation5 + $0x2414] ss:$36 sps:$4 sm:$0xff]  }
 0x529   :  { %10540 = vmatprep.subr.bf16.mxu1 %v23645_v58  ;;  %v23687_v58 = vld [vmem:[#allocation5 + $0x2194] ss:$36 sps:$4 sm:$0xff]  }
 0x52b   :  { %10404 = vmatpush1.bf16.msra.mxu0 %v23646_v59  ;;  %v23688_v59 = vld [vmem:[#allocation5 + $0x2410] ss:$36 sps:$4 sm:$0xff]  }
 0x52c   :  { %10541 = vmatpush1.bf16.msra.mxu1 %v23643_v12  ;;  %10405 = vmatprep.subr.bf16.mxu0 %v23654_v20  ;;  %v23685_v12 = vld [vmem:[#allocation5 + $0x2190] ss:$36 sps:$4 sm:$0xff]   ;;  %v23696_v20 = vld [vmem:[#allocation5 + $0x245c] ss:$36 sps:$4 sm:$0xff]  }
 0x52d   :  { %10542 = vmatprep.subr.bf16.mxu1 %v23651_v16  ;;  %v23693_v16 = vld [vmem:[#allocation5 + $0x21dc] ss:$36 sps:$4 sm:$0xff]  }
 0x52f   :  { %10406 = vmatpush1.bf16.msra.mxu0 %v23652_v22  ;;  %v23694_v22 = vld [vmem:[#allocation5 + $0x2458] ss:$36 sps:$4 sm:$0xff]  }
 0x530   :  { %10543 = vmatpush1.bf16.msra.mxu1 %v23649_v21  ;;  %10407 = vmatprep.subr.bf16.mxu0 %v23660_v46  ;;  %v23691_v21 = vld [vmem:[#allocation5 + $0x21d8] ss:$36 sps:$4 sm:$0xff]   ;;  %v23702_v46 = vld [vmem:[#allocation5 + $0x24a4] ss:$36 sps:$4 sm:$0xff]  }
 0x531   :  { %10553 = vmatprep.subr.bf16.mxu1 %v23657_v24  ;;  %v23699_v24 = vld [vmem:[#allocation5 + $0x2224] ss:$36 sps:$4 sm:$0xff]  }
 0x533   :  { %10545 = vmatmul.mubr.bf16.vlgmr.msra.gmra.mrb[44].mxu1 %v24869_v8  ;;  %10408 = vmatpush1.bf16.msra.mxu0 %v23658_v30  ;;  %v23700_v30 = vld [vmem:[#allocation5 + $0x24a0] ss:$36 sps:$4 sm:$0xff]  }
 0x534   :  { %10554 = vmatpush1.bf16.msra.mxu1 %v23655_v25  ;;  %10409 = vmatprep.subr.bf16.mxu0 %v23666_v37  ;;  %v23697_v25 = vld [vmem:[#allocation5 + $0x2220] ss:$36 sps:$4 sm:$0xff]   ;;  %v23708_v37 = vld [vmem:[#allocation5 + $0x24ec] ss:$36 sps:$4 sm:$0xff]  }
 0x535   :  { %10555 = vmatprep.subr.bf16.mxu1 %v23663_v36  ;;  %10585 = vmatprep.mubr.bf16.mxu1 %v24877_v35  ;;  %v23705_v36 = vld [vmem:[#allocation5 + $0x226c] ss:$36 sps:$4 sm:$0xff]  }
 0x537   :  { %10410 = vmatpush1.bf16.msra.mxu0 %v23664_v40  ;;  %v23706_v40 = vld [vmem:[#allocation5 + $0x24e8] ss:$36 sps:$4 sm:$0xff]  }
 0x538   :  { %10556 = vmatpush1.bf16.msra.mxu1 %v23661_v38  ;;  %10411 = vmatprep.subr.bf16.mxu0 %v23672_v42  ;;  %v23703_v38 = vld [vmem:[#allocation5 + $0x2268] ss:$36 sps:$4 sm:$0xff]   ;;  %v23714_v42 = vld [vmem:[#allocation5 + $0x2534] ss:$36 sps:$4 sm:$0xff]  }
 0x539   :  { %10557 = vmatprep.subr.bf16.mxu1 %v23669_v41  ;;  %v23711_v41 = vld [vmem:[#allocation5 + $0x22b4] ss:$36 sps:$4 sm:$0xff]  }
 0x53b   :  { %10412 = vmatpush1.bf16.msra.mxu0 %v23670_v39  ;;  %v23712_v39 = vld [vmem:[#allocation5 + $0x2530] ss:$36 sps:$4 sm:$0xff]  }
 0x53c   :  { %10558 = vmatpush1.bf16.msra.mxu1 %v23667_v44  ;;  %10413 = vmatprep.subr.bf16.mxu0 %v23678_v50  ;;  %v23709_v44 = vld [vmem:[#allocation5 + $0x22b0] ss:$36 sps:$4 sm:$0xff]   ;;  %v23720_v50 = vld [vmem:[#allocation5 + $0x257c] ss:$36 sps:$4 sm:$0xff]  }
 0x53d   :  { %10559 = vmatprep.subr.bf16.mxu1 %v23675_v45  ;;  %v23717_v45 = vld [vmem:[#allocation5 + $0x22fc] ss:$36 sps:$4 sm:$0xff]  }
 0x53f   :  { %10414 = vmatpush1.bf16.msra.mxu0 %v23676_v61  ;;  %v23718_v61 = vld [vmem:[#allocation5 + $0x2578] ss:$36 sps:$4 sm:$0xff]  }
 0x540   :  { %10560 = vmatpush1.bf16.msra.mxu1 %v23673_v60  ;;  %10415 = vmatprep.subr.bf16.mxu0 %v23684_v57  ;;  %v23715_v60 = vld [vmem:[#allocation5 + $0x22f8] ss:$36 sps:$4 sm:$0xff]   ;;  %v23726_v57 = vld [vmem:[#allocation5 + $0x25c4] ss:$36 sps:$4 sm:$0xff]  }
 0x541   :  { %10561 = vmatprep.subr.bf16.mxu1 %v23681_v18  ;;  %v23723_v18 = vld [vmem:[#allocation5 + $0x2344] ss:$36 sps:$4 sm:$0xff]  }
 0x543   :  { %10416 = vmatpush1.bf16.msra.mxu0 %v23682_v2  ;;  %v23724_v2 = vld [vmem:[#allocation5 + $0x25c0] ss:$36 sps:$4 sm:$0xff]  }
 0x544   :  { %10562 = vmatpush1.bf16.msra.mxu1 %v23679_v62  ;;  %10417 = vmatprep.subr.bf16.mxu0 %v23690_v11  ;;  %v23721_v62 = vld [vmem:[#allocation5 + $0x2340] ss:$36 sps:$4 sm:$0xff]   ;;  %v23732_v11 = vld [vmem:[#allocation5 + $0x260c] ss:$36 sps:$4 sm:$0xff]  }
 0x545   :  { %10563 = vmatprep.subr.bf16.mxu1 %v23687_v58  ;;  %v23729_v58 = vld [vmem:[#allocation5 + $0x238c] ss:$36 sps:$4 sm:$0xff]  }
 0x547   :  { %10418 = vmatpush1.bf16.msra.mxu0 %v23688_v59  ;;  %v23730_v59 = vld [vmem:[#allocation5 + $0x2608] ss:$36 sps:$4 sm:$0xff]  }
 0x548   :  { %10564 = vmatpush1.bf16.msra.mxu1 %v23685_v12  ;;  %10419 = vmatprep.subr.bf16.mxu0 %v23696_v20  ;;  %v23727_v12 = vld [vmem:[#allocation5 + $0x2388] ss:$36 sps:$4 sm:$0xff]   ;;  %v23738_v20 = vld [vmem:[#allocation5 + $0x2654] ss:$36 sps:$4 sm:$0xff]  }
 0x549   :  { %10565 = vmatprep.subr.bf16.mxu1 %v23693_v16  ;;  %v23735_v16 = vld [vmem:[#allocation5 + $0x23d4] ss:$36 sps:$4 sm:$0xff]  }
 0x54b   :  { %10420 = vmatpush1.bf16.msra.mxu0 %v23694_v22  ;;  %v23736_v22 = vld [vmem:[#allocation5 + $0x2650] ss:$36 sps:$4 sm:$0xff]  }
 0x54c   :  { %10566 = vmatpush1.bf16.msra.mxu1 %v23691_v21  ;;  %10430 = vmatprep.subr.bf16.mxu0 %v23702_v46  ;;  %v23733_v21 = vld [vmem:[#allocation5 + $0x23d0] ss:$36 sps:$4 sm:$0xff]   ;;  %v23744_v46 = vld [vmem:[#allocation5 + $0x269c] ss:$36 sps:$4 sm:$0xff]  }
 0x54d   :  { %10567 = vmatprep.subr.bf16.mxu1 %v23699_v24  ;;  %v23741_v24 = vld [vmem:[#allocation5 + $0x241c] ss:$36 sps:$4 sm:$0xff]  }
 0x54e   :  { %10422 = vmatmul.mubr.bf16.vlgmr.msra.gmra.mrb[36].mxu0 %v24883_v15 }
 0x54f   :  { %10431 = vmatpush1.bf16.msra.mxu0 %v23700_v30  ;;  %10462 = vmatprep.mubr.bf16.mxu0 %v24889_v19  ;;  %v23742_v30 = vld [vmem:[#allocation5 + $0x2698] ss:$36 sps:$4 sm:$0xff]  }
 0x550   :  { %10568 = vmatpush1.bf16.msra.mxu1 %v23697_v25  ;;  %10432 = vmatprep.subr.bf16.mxu0 %v23708_v37  ;;  %v23739_v25 = vld [vmem:[#allocation5 + $0x2418] ss:$36 sps:$4 sm:$0xff]   ;;  %v23750_v37 = vld [vmem:[#allocation5 + $0x26e4] ss:$36 sps:$4 sm:$0xff]  }
 0x551   :  { %10569 = vmatprep.subr.bf16.mxu1 %v23705_v36  ;;  %v23747_v36 = vld [vmem:[#allocation5 + $0x2464] ss:$36 sps:$4 sm:$0xff]  }
 0x553   :  { %10433 = vmatpush1.bf16.msra.mxu0 %v23706_v40  ;;  %v23748_v40 = vld [vmem:[#allocation5 + $0x26e0] ss:$36 sps:$4 sm:$0xff]  }
 0x554   :  { %10570 = vmatpush1.bf16.msra.mxu1 %v23703_v38  ;;  %10434 = vmatprep.subr.bf16.mxu0 %v23714_v42  ;;  %v23745_v38 = vld [vmem:[#allocation5 + $0x2460] ss:$36 sps:$4 sm:$0xff]   ;;  %v23756_v42 = vld [vmem:[#allocation5 + $0x272c] ss:$36 sps:$4 sm:$0xff]  }
 0x555   :  { %10571 = vmatprep.subr.bf16.mxu1 %v23711_v41  ;;  %v23753_v41 = vld [vmem:[#allocation5 + $0x24ac] ss:$36 sps:$4 sm:$0xff]  }
 0x557   :  { %10435 = vmatpush1.bf16.msra.mxu0 %v23712_v39  ;;  %v23754_v39 = vld [vmem:[#allocation5 + $0x2728] ss:$36 sps:$4 sm:$0xff]  }
 0x558   :  { %10572 = vmatpush1.bf16.msra.mxu1 %v23709_v44  ;;  %10436 = vmatprep.subr.bf16.mxu0 %v23720_v50  ;;  %v23751_v44 = vld [vmem:[#allocation5 + $0x24a8] ss:$36 sps:$4 sm:$0xff]   ;;  %v23762_v50 = vld [vmem:[#allocation5 + $0x2774] ss:$36 sps:$4 sm:$0xff]  }
 0x559   :  { %10573 = vmatprep.subr.bf16.mxu1 %v23717_v45  ;;  %v23759_v45 = vld [vmem:[#allocation5 + $0x24f4] ss:$36 sps:$4 sm:$0xff]  }
 0x55b   :  { %10437 = vmatpush1.bf16.msra.mxu0 %v23718_v61  ;;  %v23760_v61 = vld [vmem:[#allocation5 + $0x2770] ss:$36 sps:$4 sm:$0xff]  }
 0x55c   :  { %10574 = vmatpush1.bf16.msra.mxu1 %v23715_v60  ;;  %10438 = vmatprep.subr.bf16.mxu0 %v23726_v57  ;;  %v23757_v60 = vld [vmem:[#allocation5 + $0x24f0] ss:$36 sps:$4 sm:$0xff]   ;;  %v23768_v57 = vld [vmem:[#allocation5 + $0x27bc] ss:$36 sps:$4 sm:$0xff]  }
 0x55d   :  { %10575 = vmatprep.subr.bf16.mxu1 %v23723_v18  ;;  %v23765_v18 = vld [vmem:[#allocation5 + $0x253c] ss:$36 sps:$4 sm:$0xff]  }
 0x55f   :  { %10439 = vmatpush1.bf16.msra.mxu0 %v23724_v2  ;;  %v23766_v2 = vld [vmem:[#allocation5 + $0x27b8] ss:$36 sps:$4 sm:$0xff]  }
 0x560   :  { %10576 = vmatpush1.bf16.msra.mxu1 %v23721_v62  ;;  %10440 = vmatprep.subr.bf16.mxu0 %v23732_v11  ;;  %v23763_v62 = vld [vmem:[#allocation5 + $0x2538] ss:$36 sps:$4 sm:$0xff]   ;;  %v23774_v11 = vld [vmem:[#allocation5 + $0x2804] ss:$36 sps:$4 sm:$0xff]  }
 0x561   :  { %10577 = vmatprep.subr.bf16.mxu1 %v23729_v58  ;;  %v23771_v58 = vld [vmem:[#allocation5 + $0x2584] ss:$36 sps:$4 sm:$0xff]  }
 0x563   :  { %10441 = vmatpush1.bf16.msra.mxu0 %v23730_v59  ;;  %v23772_v59 = vld [vmem:[#allocation5 + $0x2800] ss:$36 sps:$4 sm:$0xff]  }
 0x564   :  { %10578 = vmatpush1.bf16.msra.mxu1 %v23727_v12  ;;  %10442 = vmatprep.subr.bf16.mxu0 %v23738_v20  ;;  %v23769_v12 = vld [vmem:[#allocation5 + $0x2580] ss:$36 sps:$4 sm:$0xff]   ;;  %v23780_v20 = vld [vmem:[#allocation5 + $0x284c] ss:$36 sps:$4 sm:$0xff]  }
 0x565   :  { %10579 = vmatprep.subr.bf16.mxu1 %v23735_v16  ;;  %v23777_v16 = vld [vmem:[#allocation5 + $0x25cc] ss:$36 sps:$4 sm:$0xff]  }
 0x567   :  { %10443 = vmatpush1.bf16.msra.mxu0 %v23736_v22  ;;  %v23778_v22 = vld [vmem:[#allocation5 + $0x2848] ss:$36 sps:$4 sm:$0xff]  }
 0x568   :  { %10580 = vmatpush1.bf16.msra.mxu1 %v23733_v21  ;;  %10444 = vmatprep.subr.bf16.mxu0 %v23744_v46  ;;  %v23775_v21 = vld [vmem:[#allocation5 + $0x25c8] ss:$36 sps:$4 sm:$0xff]   ;;  %v23786_v46 = vld [vmem:[#allocation5 + $0x2894] ss:$36 sps:$4 sm:$0xff]  }
 0x569   :  { %10581 = vmatprep.subr.bf16.mxu1 %v23741_v24  ;;  %v23783_v24 = vld [vmem:[#allocation5 + $0x2614] ss:$36 sps:$4 sm:$0xff]  }
 0x56b   :  { %10445 = vmatpush1.bf16.msra.mxu0 %v23742_v30  ;;  %v23784_v30 = vld [vmem:[#allocation5 + $0x2890] ss:$36 sps:$4 sm:$0xff]  }
 0x56c   :  { %10582 = vmatpush1.bf16.msra.mxu1 %v23739_v25  ;;  %10446 = vmatprep.subr.bf16.mxu0 %v23750_v37  ;;  %v23781_v25 = vld [vmem:[#allocation5 + $0x2610] ss:$36 sps:$4 sm:$0xff]   ;;  %v23792_v37 = vld [vmem:[#allocation5 + $0x28dc] ss:$36 sps:$4 sm:$0xff]  }
 0x56d   :  { %10583 = vmatprep.subr.bf16.mxu1 %v23747_v36  ;;  %v23789_v36 = vld [vmem:[#allocation5 + $0x265c] ss:$36 sps:$4 sm:$0xff]  }
 0x56f   :  { %10447 = vmatpush1.bf16.msra.mxu0 %v23748_v40  ;;  %v23790_v40 = vld [vmem:[#allocation5 + $0x28d8] ss:$36 sps:$4 sm:$0xff]  }
 0x570   :  { %10584 = vmatpush1.bf16.msra.mxu1 %v23745_v38  ;;  %10448 = vmatprep.subr.bf16.mxu0 %v23756_v42  ;;  %v23787_v38 = vld [vmem:[#allocation5 + $0x2658] ss:$36 sps:$4 sm:$0xff]   ;;  %v23804_v42 = vld [vmem:[#allocation5 + $0x2924] ss:$36 sps:$4 sm:$0xff]  }
 0x571   :  { %10594 = vmatprep.subr.bf16.mxu1 %v23753_v41  ;;  %v23795_v41 = vld [vmem:[#allocation5 + $0x26a4] ss:$36 sps:$4 sm:$0xff]  }
 0x573   :  { %10586 = vmatmul.mubr.bf16.vlgmr.msra.gmra.mrb[44].mxu1 %v24883_v15  ;;  %10449 = vmatpush1.bf16.msra.mxu0 %v23754_v39  ;;  %v23802_v39 = vld [vmem:[#allocation5 + $0x2920] ss:$36 sps:$4 sm:$0xff]  }
 0x574   :  { %10595 = vmatpush1.bf16.msra.mxu1 %v23751_v44  ;;  %10450 = vmatprep.subr.bf16.mxu0 %v23762_v50  ;;  %v23793_v44 = vld [vmem:[#allocation5 + $0x26a0] ss:$36 sps:$4 sm:$0xff]   ;;  %v23808_v50 = vld [vmem:[#allocation5 + $0x1df0] ss:$36 sps:$4 sm:$0xff]  }
 0x575   :  { %10596 = vmatprep.subr.bf16.mxu1 %v23759_v45  ;;  %10626 = vmatprep.mubr.bf16.mxu1 %v24889_v19  ;;  %v23798_v45 = vld [vmem:[#allocation5 + $0x26ec] ss:$36 sps:$4 sm:$0xff]  }
 0x577   :  { %10451 = vmatpush1.bf16.msra.mxu0 %v23760_v61  ;;  %v23801_v61 = vld [vmem:[#allocation5 + $0x2734] ss:$36 sps:$4 sm:$0xff]  }
 0x578   :  { %10597 = vmatpush1.bf16.msra.mxu1 %v23757_v60  ;;  %10452 = vmatprep.subr.bf16.mxu0 %v23768_v57  ;;  %v23796_v60 = vld [vmem:[#allocation5 + $0x26e8] ss:$36 sps:$4 sm:$0xff]   ;;  %v23807_v57 = vld [vmem:[#allocation5 + $0x277c] ss:$36 sps:$4 sm:$0xff]  }
 0x579   :  { %10598 = vmatprep.subr.bf16.mxu1 %v23765_v18  ;;  %v23799_v18 = vld [vmem:[#allocation5 + $0x2730] ss:$36 sps:$4 sm:$0xff]  }
 0x57b   :  { %10453 = vmatpush1.bf16.msra.mxu0 %v23766_v2  ;;  %v23809_v2 = vld [vmem:[#allocation5 + $0x1bb0] ss:$36 sps:$4 sm:$0xff]  }
 0x57c   :  { %10599 = vmatpush1.bf16.msra.mxu1 %v23763_v62  ;;  %10454 = vmatprep.subr.bf16.mxu0 %v23774_v11  ;;  %v23805_v62 = vld [vmem:[#allocation5 + $0x2778] ss:$36 sps:$4 sm:$0xff]  }
 0x57d   :  { %10600 = vmatprep.subr.bf16.mxu1 %v23771_v58  ;;  %v23812_v58 = vld [vmem:[#allocation5 + $0x27c4] ss:$36 sps:$4 sm:$0xff]   ;;  %v23813_v11 = vld [vmem:[#allocation5 + $0x1e38] ss:$36 sps:$4 sm:$0xff]  }
 0x57f   :  { %10455 = vmatpush1.bf16.msra.mxu0 %v23772_v59  ;;  %v23814_v59 = vld [vmem:[#allocation5 + $0x1bf8] ss:$36 sps:$4 sm:$0xff]  }
 0x580   :  { %10601 = vmatpush1.bf16.msra.mxu1 %v23769_v12  ;;  %10456 = vmatprep.subr.bf16.mxu0 %v23780_v20  ;;  %v23810_v12 = vld [vmem:[#allocation5 + $0x27c0] ss:$36 sps:$4 sm:$0xff]  }
 0x581   :  { %10602 = vmatprep.subr.bf16.mxu1 %v23777_v16  ;;  %v23817_v16 = vld [vmem:[#allocation5 + $0x280c] ss:$36 sps:$4 sm:$0xff]   ;;  %v23818_v20 = vld [vmem:[#allocation5 + $0x1e80] ss:$36 sps:$4 sm:$0xff]  }
 0x583   :  { %10457 = vmatpush1.bf16.msra.mxu0 %v23778_v22  ;;  %v23819_v22 = vld [vmem:[#allocation5 + $0x1c40] ss:$36 sps:$4 sm:$0xff]  }
 0x584   :  { %10603 = vmatpush1.bf16.msra.mxu1 %v23775_v21  ;;  %10458 = vmatprep.subr.bf16.mxu0 %v23786_v46  ;;  %v23815_v21 = vld [vmem:[#allocation5 + $0x2808] ss:$36 sps:$4 sm:$0xff]  }
 0x585   :  { %10604 = vmatprep.subr.bf16.mxu1 %v23783_v24  ;;  %v23822_v24 = vld [vmem:[#allocation5 + $0x2854] ss:$36 sps:$4 sm:$0xff]   ;;  %v23823_v46 = vld [vmem:[#allocation5 + $0x1ec8] ss:$36 sps:$4 sm:$0xff]  }
 0x587   :  { %10459 = vmatpush1.bf16.msra.mxu0 %v23784_v30 }
 0x588   :  { %10605 = vmatpush1.bf16.msra.mxu1 %v23781_v25  ;;  %10460 = vmatprep.subr.bf16.mxu0 %v23792_v37 }
 0x589   :  { %10606 = vmatprep.subr.bf16.mxu1 %v23789_v36 }
 0x58b   :  { %10461 = vmatpush1.bf16.msra.mxu0 %v23790_v40  ;;  %v23820_v40 = vld [vmem:[#allocation5 + $0x2850] ss:$36 sps:$4 sm:$0xff]  }
 0x58c   :  { %10607 = vmatpush1.bf16.msra.mxu1 %v23787_v38  ;;  %10471 = vmatprep.subr.bf16.mxu0 %v23804_v42 }
 0x58d   :  { %10608 = vmatprep.subr.bf16.mxu1 %v23795_v41  ;;  %v23824_v41 = vld [vmem:[#allocation5 + $0x1c88] ss:$36 sps:$4 sm:$0xff]  }
 0x58e   :  { %10463 = vmatmul.mubr.bf16.vlgmr.msra.gmra.mrb[36].mxu0 %v24897_v23 }
 0x58f   :  { %10472 = vmatpush1.bf16.msra.mxu0 %v23802_v39  ;;  %10503 = vmatprep.mubr.bf16.mxu0 %v24735_v0  ;;  %v23828_v39 = vld [vmem:[#allocation5 + $0x1f10] ss:$36 sps:$4 sm:$0xff]  }
 0x590   :  { %10609 = vmatpush1.bf16.msra.mxu1 %v23793_v44  ;;  %21506 = vmatprep.subr.bf16.mxu0 %v23808_v50  ;;  %v23827_v44 = vld [vmem:[#allocation5 + $0x289c] ss:$36 sps:$4 sm:$0xff]  }
 0x591   :  { %10610 = vmatprep.subr.bf16.mxu1 %v23798_v45  ;;  %v23833_v45 = vld [vmem:[#allocation5 + $0x1f58] ss:$36 sps:$4 sm:$0xff]   ;;  %v23838_v50 = vld [vmem:[#allocation5 + $0x1fa0] ss:$36 sps:$4 sm:$0xff]  }
 0x594   :  { %10611 = vmatpush1.bf16.msra.mxu1 %v23796_v60  ;;  %v23835_v60 = vld [vmem:[#allocation5 + $0x2928] ss:$36 sps:$4 sm:$0xff]  }
 0x595   :  { %10612 = vmatprep.subr.bf16.mxu1 %v23801_v61  ;;  %v23839_v61 = vld [vmem:[#allocation5 + $0x1d60] ss:$36 sps:$4 sm:$0xff]  }
 0x598   :  { %10613 = vmatpush1.bf16.msra.mxu1 %v23799_v18  ;;  %v23840_v18 = vld [vmem:[#allocation5 + $0x1fe8] ss:$36 sps:$4 sm:$0xff]  }
 0x599   :  { %10614 = vmatprep.subr.bf16.mxu1 %v23807_v57  ;;  %v23844_v57 = vld [vmem:[#allocation5 + $0x2270] ss:$36 sps:$4 sm:$0xff]  }
 0x59a   :  { %20327 = vmatmul.mubr.msk.bf16.vlgmr.msra.gmra.mrb[36].mxu0 %vm2887_vm0, %v25057_v33 }
 0x59b   :  { %21507 = vmatpush3.bf16.msra.mxu0 %v23809_v2  ;;  %10708 = vmatprep.mubr.bf16.mxu0 %v24865_v52  ;;  %v23842_v2 = vld [vmem:[#allocation5 + $0x26f0] ss:$36 sps:$4 sm:$0xff]  }
 0x59c   :  { %10615 = vmatpush1.bf16.msra.mxu1 %v23805_v62  ;;  %21508 = vmatprep.subr.bf16.mxu0 %v23813_v11  ;;  %v23841_v62 = vld [vmem:[#allocation5 + $0x1da8] ss:$36 sps:$4 sm:$0xff]   ;;  %v23846_v11 = vld [vmem:[#allocation5 + $0x2738] ss:$36 sps:$4 sm:$0xff]  }
 0x59d   :  { %10616 = vmatprep.subr.bf16.mxu1 %v23812_v58  ;;  %v23843_v58 = vld [vmem:[#allocation5 + $0x24b0] ss:$36 sps:$4 sm:$0xff]  }
 0x59f   :  { %21509 = vmatpush3.bf16.msra.mxu0 %v23814_v59  ;;  %v23847_v59 = vld [vmem:[#allocation5 + $0x24f8] ss:$36 sps:$4 sm:$0xff]  }
 0x5a0   :  { %10617 = vmatpush1.bf16.msra.mxu1 %v23810_v12  ;;  %21510 = vmatprep.subr.bf16.mxu0 %v23818_v20  ;;  %v23845_v12 = vld [vmem:[#allocation5 + $0x2030] ss:$36 sps:$4 sm:$0xff]   ;;  %v23850_v20 = vld [vmem:[#allocation5 + $0x2780] ss:$36 sps:$4 sm:$0xff]  }
 0x5a1   :  { %10618 = vmatprep.subr.bf16.mxu1 %v23817_v16  ;;  %v10177_v25 = vpop.f32.mrb[32].mxu0  ;;  %v23848_v16 = vld [vmem:[#allocation5 + $0x22b8] ss:$36 sps:$4 sm:$0xff]  }
 0x5a2   :  { %v25093_v30 = vmax.f32 %v7267_v28, %v10177_v25  ;;  %v10179_v36 = vpop.f32.mrb[33].mxu0  ;;  %v23832_v28 = vld [vmem:[#allocation5 + $0x28e4] ss:$36 sps:$4 sm:$0xff]  }
 0x5a3   :  { %21511 = vmatpush3.bf16.msra.mxu0 %v23819_v22  ;;  %v25098_v37 = vmax.f32 %v7268_v31, %v10179_v36  ;;  %v10181_v38 = vpop.f32.mrb[34].mxu0  ;;  %v23837_v31 = vld [vmem:[#allocation5 + $0x292c] ss:$36 sps:$4 sm:$0xff]   ;;  %v23851_v22 = vld [vmem:[#allocation5 + $0x2540] ss:$36 sps:$4 sm:$0xff]  }
 0x5a4   :  { %10619 = vmatpush1.bf16.msra.mxu1 %v23815_v21  ;;  %v10182_v42 = vpop.f32.mrb[35].mxu0  ;;  %21512 = vmatprep.subr.bf16.mxu0 %v23823_v46  ;;  %v23849_v21 = vld [vmem:[#allocation5 + $0x2078] ss:$36 sps:$4 sm:$0xff]   ;;  %v23854_v46 = vld [vmem:[#allocation5 + $0x27c8] ss:$36 sps:$4 sm:$0xff]  }
 0x5a5   :  { %10620 = vmatprep.subr.bf16.mxu1 %v23822_v24  ;;  %v23852_v24 = vld [vmem:[#allocation5 + $0x2300] ss:$36 sps:$4 sm:$0xff]   ;;  %v23855_v36 = vld [vmem:[#allocation5 + $0x2588] ss:$36 sps:$4 sm:$0xff]  }
 0x5a6   :  { %v23853_v25 = vld [vmem:[#allocation5 + $0x20c0] ss:$36 sps:$4 sm:$0xff]   ;;  %v23856_v38 = vld [vmem:[#allocation5 + $0x2348] ss:$36 sps:$4 sm:$0xff]  }
 0x5a7   :  { %21513 = vmatpush3.bf16.msra.mxu0 %v23824_v41 }
 0x5a8   :  { %10621 = vmatpush1.bf16.msra.mxu1 %v23820_v40  ;;  %21514 = vmatprep.subr.bf16.mxu0 %v23828_v39  ;;  %v23858_v40 = vld [vmem:[#allocation5 + $0x2810] ss:$36 sps:$4 sm:$0xff]  }
 0x5a9   :  { %10622 = vmatprep.subr.bf16.mxu1 %v23827_v44 }
 0x5ab   :  { %21515 = vmatpush3.bf16.msra.mxu0 %v23829_v48  ;;  %v23859_v48 = vld [vmem:[#allocation5 + $0x25d0] ss:$36 sps:$4 sm:$0xff]  }
 0x5ac   :  { %10623 = vmatpush1.bf16.msra.mxu1 %v23825_v14  ;;  %21516 = vmatprep.subr.bf16.mxu0 %v23833_v45  ;;  %v23857_v14 = vld [vmem:[#allocation5 + $0x2108] ss:$36 sps:$4 sm:$0xff]   ;;  %v23860_v45 = vld [vmem:[#allocation5 + $0x2390] ss:$36 sps:$4 sm:$0xff]  }
 0x5ad   :  { %10624 = vmatprep.subr.bf16.mxu1 %v23832_v28 }
 0x5af   :  { %21517 = vmatpush3.bf16.msra.mxu0 %v23834_v29  ;;  %v23866_v29 = vld [vmem:[#allocation5 + $0x28a0] ss:$36 sps:$4 sm:$0xff]  }
 0x5b0   :  { %10625 = vmatpush1.bf16.msra.mxu1 %v23830_v17  ;;  %21518 = vmatprep.subr.bf16.mxu0 %v23838_v50  ;;  %v23862_v17 = vld [vmem:[#allocation5 + $0x2858] ss:$36 sps:$4 sm:$0xff]   ;;  %v23869_v50 = vld [vmem:[#allocation5 + $0x21e0] ss:$36 sps:$4 sm:$0xff]  }
 0x5b1   :  { %10635 = vmatprep.subr.bf16.mxu1 %v23837_v31  ;;  %v23870_v31 = vld [vmem:[#allocation5 + $0x28e8] ss:$36 sps:$4 sm:$0xff]  }
 0x5b3   :  { %10627 = vmatmul.mubr.bf16.vlgmr.msra.gmra.mrb[44].mxu1 %v24897_v23  ;;  %21519 = vmatpush3.bf16.msra.mxu0 %v23839_v61  ;;  %v23872_v61 = vld [vmem:[#allocation5 + $0x2468] ss:$36 sps:$4 sm:$0xff]  }
 0x5b4   :  { %10636 = vmatpush1.bf16.msra.mxu1 %v23835_v60  ;;  %21520 = vmatprep.subr.bf16.mxu0 %v23840_v18  ;;  %v23871_v60 = vld [vmem:[#allocation5 + $0x26a8] ss:$36 sps:$4 sm:$0xff]  }
 0x5b5   :  { %10667 = vmatprep.mubr.bf16.mxu1 %v24735_v0  ;;  %21528 = vmatprep.subr.bf16.mxu1 %v23844_v57  ;;  %v23876_v18 = vld [vmem:[#allocation5 + $0x2964] ss:$36 sps:$4 sm:$0xff]  }
 0x5b6   :  { %v23873_v57 = vld [vmem:[#allocation5 + $0x2228] ss:$36 sps:$4 sm:$0xff]  }
 0x5b7   :  { %21521 = vmatpush3.bf16.msra.mxu0 %v23841_v62  ;;  %v23874_v62 = vld [vmem:[#allocation5 + $0x2960] ss:$36 sps:$4 sm:$0xff]  }
 0x5b8   :  { %21550 = vmatprep.subr.bf16.mxu0 %v23842_v2  ;;  %v23880_v2 = vld [vmem:[#allocation5 + $0x29ac] ss:$36 sps:$4 sm:$0xff]  }
 0x5ba   :  { %10709 = vmatmul.mubr.bf16.vlgmr.msra.gmra.mrb[40].mxu0 %v24869_v8 }
 0x5bb   :  { %21551 = vmatpush3.bf16.msra.mxu0 %v23843_v58  ;;  %10788 = vmatprep.mubr.bf16.mxu0 %v24889_v19  ;;  %v23877_v58 = vld [vmem:[#allocation5 + $0x2930] ss:$36 sps:$4 sm:$0xff]  }
 0x5bc   :  { %21552 = vmatprep.subr.bf16.mxu0 %v23846_v11  ;;  %v23878_v11 = vld [vmem:[#allocation5 + $0x29a8] ss:$36 sps:$4 sm:$0xff]  }
 0x5bf   :  { %20328 = vmatmul.mubr.msk.bf16.vlgmr.msra.gmra.mrb[44].mxu1 %vm2887_vm0, %v25057_v33  ;;  %21553 = vmatpush3.bf16.msra.mxu0 %v23847_v59  ;;  %v23886_v59 = vld [vmem:[#allocation5 + $0x295c] ss:$36 sps:$4 sm:$0xff]  }
 0x5c0   :  { %21529 = vmatpush3.bf16.msra.mxu1 %v23845_v12  ;;  %21554 = vmatprep.subr.bf16.mxu0 %v23850_v20  ;;  %v23883_v12 = vld [vmem:[#allocation5 + $0x29f4] ss:$36 sps:$4 sm:$0xff]   ;;  %v23889_v20 = vld [vmem:[#allocation5 + $0x2a3c] ss:$36 sps:$4 sm:$0xff]  }
 0x5c1   :  { %21530 = vmatprep.subr.bf16.mxu1 %v23848_v16  ;;  %10748 = vmatprep.mubr.bf16.mxu1 %v24877_v35  ;;  %v23881_v16 = vld [vmem:[#allocation5 + $0x29f0] ss:$36 sps:$4 sm:$0xff]  }
 0x5c3   :  { %21555 = vmatpush3.bf16.msra.mxu0 %v23851_v22  ;;  %v23887_v22 = vld [vmem:[#allocation5 + $0x2a38] ss:$36 sps:$4 sm:$0xff]  }
 0x5c4   :  { %21531 = vmatpush3.bf16.msra.mxu1 %v23849_v21  ;;  %21556 = vmatprep.subr.bf16.mxu0 %v23854_v46  ;;  %v23884_v21 = vld [vmem:[#allocation5 + $0x2958] ss:$36 sps:$4 sm:$0xff]   ;;  %v23895_v46 = vld [vmem:[#allocation5 + $0x2a84] ss:$36 sps:$4 sm:$0xff]  }
 0x5c5   :  { %21532 = vmatprep.subr.bf16.mxu1 %v23852_v24  ;;  %v23892_v24 = vld [vmem:[#allocation5 + $0x29a4] ss:$36 sps:$4 sm:$0xff]  }
 0x5c6   :  { %v10341_v41 = vpop.f32.mrb[40].mxu1 }
 0x5c7   :  { %v25110_v33 = vmax.f32 %v7269_v5, %v10341_v41  ;;  %v10343_v42 = vpop.f32.mrb[41].mxu1  ;;  %21557 = vmatpush3.bf16.msra.mxu0 %v23855_v36  ;;  %v23864_v5 = vld [vmem:[#allocation5 + $0x23d8] ss:$36 sps:$4 sm:$0xff]   ;;  %v23890_v36 = vld [vmem:[#allocation5 + $0x29a0] ss:$36 sps:$4 sm:$0xff]  }
 0x5c8   :  { %21533 = vmatpush3.bf16.msra.mxu1 %v23853_v25  ;;  %v25115_v44 = vmax.f32 %v7270_v10, %v10343_v42  ;;  %v10345_v39 = vpop.f32.mrb[42].mxu1  ;;  %21558 = vmatprep.subr.bf16.mxu0 %v23858_v40  ;;  %v23868_v10 = vld [vmem:[#allocation5 + $0x2420] ss:$36 sps:$4 sm:$0xff]   ;;  %v25123_v25 = vld [vmem:[#allocation2 + $0x18] ss:$0 sps:$4 sm:$0xff]  }
 0x5c9   :  { %v10346_v28 = vpop.f32.mrb[43].mxu1  ;;  %21534 = vmatprep.subr.bf16.mxu1 %v23856_v38  ;;  %v23893_v38 = vld [vmem:[#allocation5 + $0x2a80] ss:$36 sps:$4 sm:$0xff]   ;;  %v23898_v40 = vld [vmem:[#allocation5 + $0x29ec] ss:$36 sps:$4 sm:$0xff]  }
 0x5ca   :  { %v23901_v41 = vld [vmem:[#allocation5 + $0x2acc] ss:$36 sps:$4 sm:$0xff]  }
 0x5cb   :  { %21559 = vmatpush3.bf16.msra.mxu0 %v23859_v48  ;;  %v23896_v42 = vld [vmem:[#allocation5 + $0x29e8] ss:$36 sps:$4 sm:$0xff]   ;;  %v23907_v48 = vld [vmem:[#allocation5 + $0x2b14] ss:$36 sps:$4 sm:$0xff]  }
 0x5cc   :  { %21535 = vmatpush3.bf16.msra.mxu1 %v23857_v14  ;;  %21560 = vmatprep.subr.bf16.mxu0 %v23862_v17  ;;  %v23899_v39 = vld [vmem:[#allocation5 + $0x2ac8] ss:$36 sps:$4 sm:$0xff]   ;;  %v23904_v14 = vld [vmem:[#allocation5 + $0x2a34] ss:$36 sps:$4 sm:$0xff]   ;;  %v23910_v17 = vld [vmem:[#allocation5 + $0x2a7c] ss:$36 sps:$4 sm:$0xff]  }
 0x5cd   :  { %21536 = vmatprep.subr.bf16.mxu1 %v23860_v45  ;;  %v23902_v28 = vld [vmem:[#allocation5 + $0x2a30] ss:$36 sps:$4 sm:$0xff]  }
 0x5ce   :  { %v23905_v45 = vld [vmem:[#allocation5 + $0x2b10] ss:$36 sps:$4 sm:$0xff]  }
 0x5cf   :  { %21561 = vmatpush3.bf16.msra.mxu0 %v23863_v4  ;;  %v23908_v4 = vld [vmem:[#allocation5 + $0x2a78] ss:$36 sps:$4 sm:$0xff]  }
 0x5d0   :  { %21537 = vmatpush3.bf16.msra.mxu1 %v23861_v32  ;;  %21562 = vmatprep.subr.bf16.mxu0 %v23866_v29  ;;  %v23913_v32 = vld [vmem:[#allocation5 + $0x2b5c] ss:$36 sps:$4 sm:$0xff]   ;;  %v23916_v29 = vld [vmem:[#allocation5 + $0x2ac4] ss:$36 sps:$4 sm:$0xff]  }
 0x5d1   :  { %21538 = vmatprep.subr.bf16.mxu1 %v23864_v5  ;;  %v23911_v5 = vld [vmem:[#allocation5 + $0x2b58] ss:$36 sps:$4 sm:$0xff]  }
 0x5d3   :  { %21563 = vmatpush3.bf16.msra.mxu0 %v23867_v7  ;;  %v23914_v7 = vld [vmem:[#allocation5 + $0x2ac0] ss:$36 sps:$4 sm:$0xff]  }
 0x5d4   :  { %21539 = vmatpush3.bf16.msra.mxu1 %v23865_v34  ;;  %21564 = vmatprep.subr.bf16.mxu0 %v23870_v31  ;;  %v23919_v34 = vld [vmem:[#allocation5 + $0x2ba4] ss:$36 sps:$4 sm:$0xff]   ;;  %v23922_v31 = vld [vmem:[#allocation5 + $0x2b0c] ss:$36 sps:$4 sm:$0xff]  }
 0x5d5   :  { %21540 = vmatprep.subr.bf16.mxu1 %v23868_v10  ;;  %v23917_v10 = vld [vmem:[#allocation5 + $0x2ba0] ss:$36 sps:$4 sm:$0xff]  }
 0x5d7   :  { %21565 = vmatpush3.bf16.msra.mxu0 %v23871_v60  ;;  %v23920_v60 = vld [vmem:[#allocation5 + $0x2b08] ss:$36 sps:$4 sm:$0xff]  }
 0x5d8   :  { %21541 = vmatpush3.bf16.msra.mxu1 %v23869_v50  ;;  %13753 = vmatprep.subr.bf16.mxu0 %v23876_v18  ;;  %v23925_v50 = vld [vmem:[#allocation5 + $0x2bec] ss:$36 sps:$4 sm:$0xff]   ;;  %v23928_v18 = vld [vmem:[#allocation5 + $0x2b54] ss:$36 sps:$4 sm:$0xff]  }
 0x5d9   :  { %21542 = vmatprep.subr.bf16.mxu1 %v23872_v61  ;;  %v23923_v61 = vld [vmem:[#allocation5 + $0x2be8] ss:$36 sps:$4 sm:$0xff]  }
 0x5da   :  { %10789 = vmatmul.mubr.bf16.vlgmr.msra.gmra.mrb[44].mxu0 %v24897_v23 }
 0x5db   :  { %13754 = vmatpush1.bf16.msra.mxu0 %v23874_v62  ;;  %13785 = vmatprep.mubr.bf16.mxu0 %v24865_v52  ;;  %v23926_v62 = vld [vmem:[#allocation5 + $0x2b50] ss:$36 sps:$4 sm:$0xff]  }
 0x5dc   :  { %21543 = vmatpush3.bf16.msra.mxu1 %v23873_v57  ;;  %13755 = vmatprep.subr.bf16.mxu0 %v23880_v2  ;;  %v23931_v57 = vld [vmem:[#allocation5 + $0x2c34] ss:$36 sps:$4 sm:$0xff]  }
 0x5dd   :  { %21676 = vmatprep.subr.bf16.mxu1 %v24736_v13  ;;  %v23929_v2 = vld [vmem:[#allocation5 + $0x2c30] ss:$36 sps:$4 sm:$0xff]  }
 0x5df   :  { %10749 = vmatmul.mubr.bf16.vlgmr.msra.gmra.mrb[48].mxu1 %v24883_v15  ;;  %13756 = vmatpush1.bf16.msra.mxu0 %v23878_v11  ;;  %v23937_v11 = vld [vmem:[#allocation5 + $0x2c7c] ss:$36 sps:$4 sm:$0xff]  }
 0x5e0   :  { %21677 = vmatpush3.bf16.msra.mxu1 %v23877_v58  ;;  %13757 = vmatprep.subr.bf16.mxu0 %v23883_v12  ;;  %v23934_v58 = vld [vmem:[#allocation5 + $0x2b9c] ss:$36 sps:$4 sm:$0xff]  }
 0x5e1   :  { %21678 = vmatprep.mubr.msk.bf16.mxu1 %vm24737_vm1, %v24736_v13  ;;  %13589 = vmatprep.subr.bf16.mxu1 %v23886_v59  ;;  %v23932_v12 = vld [vmem:[#allocation5 + $0x2b98] ss:$36 sps:$4 sm:$0xff]  }
 0x5e2   :  { %v23935_v59 = vld [vmem:[#allocation5 + $0x2c78] ss:$36 sps:$4 sm:$0xff]  }
 0x5e3   :  { %13758 = vmatpush1.bf16.msra.mxu0 %v23881_v16  ;;  %v23940_v16 = vld [vmem:[#allocation5 + $0x2be4] ss:$36 sps:$4 sm:$0xff]  }
 0x5e4   :  { %13759 = vmatprep.subr.bf16.mxu0 %v23889_v20  ;;  %v23943_v20 = vld [vmem:[#allocation5 + $0x2cc4] ss:$36 sps:$4 sm:$0xff]  }
 0x5e7   :  { %21679 = vmatmul.mubr.msk.bf16.vlgmr.msra.gmra.mrb[52].mxu1 %vm2887_vm0, %v25123_v25  ;;  %13760 = vmatpush1.bf16.msra.mxu0 %v23887_v22  ;;  %v23941_v22 = vld [vmem:[#allocation5 + $0x2cc0] ss:$36 sps:$4 sm:$0xff]  }
 0x5e8   :  { %13590 = vmatpush1.bf16.msra.mxu1 %v23884_v21  ;;  %13761 = vmatprep.subr.bf16.mxu0 %v23895_v46  ;;  %v23938_v21 = vld [vmem:[#allocation5 + $0x2be0] ss:$36 sps:$4 sm:$0xff]   ;;  %v23949_v46 = vld [vmem:[#allocation5 + $0x2d0c] ss:$36 sps:$4 sm:$0xff]  }
 0x5e9   :  { %13591 = vmatprep.subr.bf16.mxu1 %v23892_v24  ;;  %13621 = vmatprep.mubr.bf16.mxu1 %v24865_v52  ;;  %v23946_v24 = vld [vmem:[#allocation5 + $0x2c2c] ss:$36 sps:$4 sm:$0xff]  }
 0x5eb   :  { %13762 = vmatpush1.bf16.msra.mxu0 %v23893_v38  ;;  %v23947_v38 = vld [vmem:[#allocation5 + $0x2d08] ss:$36 sps:$4 sm:$0xff]  }
 0x5ec   :  { %13592 = vmatpush1.bf16.msra.mxu1 %v23890_v36  ;;  %13763 = vmatprep.subr.bf16.mxu0 %v23901_v41  ;;  %v23944_v36 = vld [vmem:[#allocation5 + $0x2c28] ss:$36 sps:$4 sm:$0xff]   ;;  %v23955_v41 = vld [vmem:[#allocation5 + $0x2d54] ss:$36 sps:$4 sm:$0xff]  }
 0x5ed   :  { %13593 = vmatprep.subr.bf16.mxu1 %v23898_v40  ;;  %v23952_v40 = vld [vmem:[#allocation5 + $0x2c74] ss:$36 sps:$4 sm:$0xff]  }
 0x5ef   :  { %13764 = vmatpush1.bf16.msra.mxu0 %v23899_v39  ;;  %v23953_v39 = vld [vmem:[#allocation5 + $0x2d50] ss:$36 sps:$4 sm:$0xff]  }
 0x5f0   :  { %13594 = vmatpush1.bf16.msra.mxu1 %v23896_v42  ;;  %13765 = vmatprep.subr.bf16.mxu0 %v23907_v48  ;;  %v23950_v42 = vld [vmem:[#allocation5 + $0x2c70] ss:$36 sps:$4 sm:$0xff]   ;;  %v23961_v48 = vld [vmem:[#allocation5 + $0x2d9c] ss:$36 sps:$4 sm:$0xff]  }
 0x5f1   :  { %13595 = vmatprep.subr.bf16.mxu1 %v23904_v14  ;;  %v23958_v14 = vld [vmem:[#allocation5 + $0x2cbc] ss:$36 sps:$4 sm:$0xff]  }
 0x5f3   :  { %13766 = vmatpush1.bf16.msra.mxu0 %v23905_v45  ;;  %v23959_v45 = vld [vmem:[#allocation5 + $0x2d98] ss:$36 sps:$4 sm:$0xff]  }
 0x5f4   :  { %13596 = vmatpush1.bf16.msra.mxu1 %v23902_v28  ;;  %13767 = vmatprep.subr.bf16.mxu0 %v23913_v32  ;;  %v23956_v28 = vld [vmem:[#allocation5 + $0x2cb8] ss:$36 sps:$4 sm:$0xff]   ;;  %v23967_v32 = vld [vmem:[#allocation5 + $0x2de4] ss:$36 sps:$4 sm:$0xff]  }
 0x5f5   :  { %13597 = vmatprep.subr.bf16.mxu1 %v23910_v17  ;;  %v23964_v17 = vld [vmem:[#allocation5 + $0x2d04] ss:$36 sps:$4 sm:$0xff]  }
 0x5f7   :  { %13768 = vmatpush1.bf16.msra.mxu0 %v23911_v5  ;;  %v23965_v5 = vld [vmem:[#allocation5 + $0x2de0] ss:$36 sps:$4 sm:$0xff]  }
 0x5f8   :  { %13598 = vmatpush1.bf16.msra.mxu1 %v23908_v4  ;;  %13769 = vmatprep.subr.bf16.mxu0 %v23919_v34  ;;  %v23962_v4 = vld [vmem:[#allocation5 + $0x2d00] ss:$36 sps:$4 sm:$0xff]   ;;  %v23973_v34 = vld [vmem:[#allocation5 + $0x2e2c] ss:$36 sps:$4 sm:$0xff]  }
 0x5f9   :  { %13599 = vmatprep.subr.bf16.mxu1 %v23916_v29  ;;  %v23970_v29 = vld [vmem:[#allocation5 + $0x2d4c] ss:$36 sps:$4 sm:$0xff]  }
 0x5fb   :  { %13770 = vmatpush1.bf16.msra.mxu0 %v23917_v10  ;;  %v23971_v10 = vld [vmem:[#allocation5 + $0x2e28] ss:$36 sps:$4 sm:$0xff]  }
 0x5fc   :  { %13600 = vmatpush1.bf16.msra.mxu1 %v23914_v7  ;;  %13771 = vmatprep.subr.bf16.mxu0 %v23925_v50  ;;  %v23968_v7 = vld [vmem:[#allocation5 + $0x2d48] ss:$36 sps:$4 sm:$0xff]   ;;  %v23979_v50 = vld [vmem:[#allocation5 + $0x2e74] ss:$36 sps:$4 sm:$0xff]  }
 0x5fd   :  { %13601 = vmatprep.subr.bf16.mxu1 %v23922_v31  ;;  %v23976_v31 = vld [vmem:[#allocation5 + $0x2d94] ss:$36 sps:$4 sm:$0xff]  }
 0x5ff   :  { %13772 = vmatpush1.bf16.msra.mxu0 %v23923_v61  ;;  %v23977_v61 = vld [vmem:[#allocation5 + $0x2e70] ss:$36 sps:$4 sm:$0xff]  }
 0x600   :  { %13602 = vmatpush1.bf16.msra.mxu1 %v23920_v60  ;;  %13773 = vmatprep.subr.bf16.mxu0 %v23931_v57  ;;  %v23974_v60 = vld [vmem:[#allocation5 + $0x2d90] ss:$36 sps:$4 sm:$0xff]   ;;  %v23985_v57 = vld [vmem:[#allocation5 + $0x2ebc] ss:$36 sps:$4 sm:$0xff]  }
 0x601   :  { %13603 = vmatprep.subr.bf16.mxu1 %v23928_v18  ;;  %v23982_v18 = vld [vmem:[#allocation5 + $0x2ddc] ss:$36 sps:$4 sm:$0xff]  }
 0x603   :  { %13774 = vmatpush1.bf16.msra.mxu0 %v23929_v2  ;;  %v23983_v2 = vld [vmem:[#allocation5 + $0x2eb8] ss:$36 sps:$4 sm:$0xff]  }
 0x604   :  { %13604 = vmatpush1.bf16.msra.mxu1 %v23926_v62  ;;  %13775 = vmatprep.subr.bf16.mxu0 %v23937_v11  ;;  %v23980_v62 = vld [vmem:[#allocation5 + $0x2dd8] ss:$36 sps:$4 sm:$0xff]   ;;  %v23991_v11 = vld [vmem:[#allocation5 + $0x2f04] ss:$36 sps:$4 sm:$0xff]  }
 0x605   :  { %13605 = vmatprep.subr.bf16.mxu1 %v23934_v58  ;;  %v23988_v58 = vld [vmem:[#allocation5 + $0x2e24] ss:$36 sps:$4 sm:$0xff]  }
 0x607   :  { %13776 = vmatpush1.bf16.msra.mxu0 %v23935_v59  ;;  %v23989_v59 = vld [vmem:[#allocation5 + $0x2f00] ss:$36 sps:$4 sm:$0xff]  }
 0x608   :  { %13606 = vmatpush1.bf16.msra.mxu1 %v23932_v12  ;;  %13777 = vmatprep.subr.bf16.mxu0 %v23943_v20  ;;  %v23986_v12 = vld [vmem:[#allocation5 + $0x2e20] ss:$36 sps:$4 sm:$0xff]   ;;  %v23997_v20 = vld [vmem:[#allocation5 + $0x2f4c] ss:$36 sps:$4 sm:$0xff]  }
 0x609   :  { %13607 = vmatprep.subr.bf16.mxu1 %v23940_v16  ;;  %v23994_v16 = vld [vmem:[#allocation5 + $0x2e6c] ss:$36 sps:$4 sm:$0xff]  }
 0x60b   :  { %13778 = vmatpush1.bf16.msra.mxu0 %v23941_v22  ;;  %v23995_v22 = vld [vmem:[#allocation5 + $0x2f48] ss:$36 sps:$4 sm:$0xff]  }
 0x60c   :  { %13608 = vmatpush1.bf16.msra.mxu1 %v23938_v21  ;;  %13779 = vmatprep.subr.bf16.mxu0 %v23949_v46  ;;  %v23992_v21 = vld [vmem:[#allocation5 + $0x2e68] ss:$36 sps:$4 sm:$0xff]   ;;  %v24003_v46 = vld [vmem:[#allocation5 + $0x2f94] ss:$36 sps:$4 sm:$0xff]  }
 0x60d   :  { %13609 = vmatprep.subr.bf16.mxu1 %v23946_v24  ;;  %v24000_v24 = vld [vmem:[#allocation5 + $0x2eb4] ss:$36 sps:$4 sm:$0xff]  }
 0x60f   :  { %13780 = vmatpush1.bf16.msra.mxu0 %v23947_v38  ;;  %v24001_v38 = vld [vmem:[#allocation5 + $0x2f90] ss:$36 sps:$4 sm:$0xff]  }
 0x610   :  { %13610 = vmatpush1.bf16.msra.mxu1 %v23944_v36  ;;  %13781 = vmatprep.subr.bf16.mxu0 %v23955_v41  ;;  %v23998_v36 = vld [vmem:[#allocation5 + $0x2eb0] ss:$36 sps:$4 sm:$0xff]   ;;  %v24009_v41 = vld [vmem:[#allocation5 + $0x2fdc] ss:$36 sps:$4 sm:$0xff]  }
 0x611   :  { %13611 = vmatprep.subr.bf16.mxu1 %v23952_v40  ;;  %v24006_v40 = vld [vmem:[#allocation5 + $0x2efc] ss:$36 sps:$4 sm:$0xff]  }
 0x613   :  { %13782 = vmatpush1.bf16.msra.mxu0 %v23953_v39  ;;  %v24007_v39 = vld [vmem:[#allocation5 + $0x2fd8] ss:$36 sps:$4 sm:$0xff]  }
 0x614   :  { %13612 = vmatpush1.bf16.msra.mxu1 %v23950_v42  ;;  %13783 = vmatprep.subr.bf16.mxu0 %v23961_v48  ;;  %v24004_v42 = vld [vmem:[#allocation5 + $0x2ef8] ss:$36 sps:$4 sm:$0xff]   ;;  %v24015_v48 = vld [vmem:[#allocation5 + $0x3024] ss:$36 sps:$4 sm:$0xff]  }
 0x615   :  { %13613 = vmatprep.subr.bf16.mxu1 %v23958_v14  ;;  %v24012_v14 = vld [vmem:[#allocation5 + $0x2f44] ss:$36 sps:$4 sm:$0xff]  }
 0x617   :  { %13784 = vmatpush1.bf16.msra.mxu0 %v23959_v45  ;;  %v24013_v45 = vld [vmem:[#allocation5 + $0x3020] ss:$36 sps:$4 sm:$0xff]  }
 0x618   :  { %13614 = vmatpush1.bf16.msra.mxu1 %v23956_v28  ;;  %13794 = vmatprep.subr.bf16.mxu0 %v23967_v32  ;;  %v24010_v28 = vld [vmem:[#allocation5 + $0x2f40] ss:$36 sps:$4 sm:$0xff]   ;;  %v24021_v32 = vld [vmem:[#allocation5 + $0x306c] ss:$36 sps:$4 sm:$0xff]  }
 0x619   :  { %13615 = vmatprep.subr.bf16.mxu1 %v23964_v17  ;;  %v24018_v17 = vld [vmem:[#allocation5 + $0x2f8c] ss:$36 sps:$4 sm:$0xff]  }
 0x61a   :  { %13786 = vmatmul.mubr.bf16.vlgmr.msra.gmra.mrb[48].mxu0 %v24869_v8 }
 0x61b   :  { %13795 = vmatpush1.bf16.msra.mxu0 %v23965_v5  ;;  %13826 = vmatprep.mubr.bf16.mxu0 %v24877_v35  ;;  %v24019_v5 = vld [vmem:[#allocation5 + $0x3068] ss:$36 sps:$4 sm:$0xff]  }
 0x61c   :  { %13616 = vmatpush1.bf16.msra.mxu1 %v23962_v4  ;;  %13796 = vmatprep.subr.bf16.mxu0 %v23973_v34  ;;  %v24016_v4 = vld [vmem:[#allocation5 + $0x2f88] ss:$36 sps:$4 sm:$0xff]   ;;  %v24027_v34 = vld [vmem:[#allocation5 + $0x30b4] ss:$36 sps:$4 sm:$0xff]  }
 0x61d   :  { %13617 = vmatprep.subr.bf16.mxu1 %v23970_v29  ;;  %v24024_v29 = vld [vmem:[#allocation5 + $0x2fd4] ss:$36 sps:$4 sm:$0xff]  }
 0x61f   :  { %13797 = vmatpush1.bf16.msra.mxu0 %v23971_v10  ;;  %v24025_v10 = vld [vmem:[#allocation5 + $0x30b0] ss:$36 sps:$4 sm:$0xff]  }
 0x620   :  { %13618 = vmatpush1.bf16.msra.mxu1 %v23968_v7  ;;  %13798 = vmatprep.subr.bf16.mxu0 %v23979_v50  ;;  %v24022_v7 = vld [vmem:[#allocation5 + $0x2fd0] ss:$36 sps:$4 sm:$0xff]   ;;  %v24033_v50 = vld [vmem:[#allocation5 + $0x30fc] ss:$36 sps:$4 sm:$0xff]  }
 0x621   :  { %13619 = vmatprep.subr.bf16.mxu1 %v23976_v31  ;;  %v24030_v31 = vld [vmem:[#allocation5 + $0x301c] ss:$36 sps:$4 sm:$0xff]  }
 0x623   :  { %13799 = vmatpush1.bf16.msra.mxu0 %v23977_v61  ;;  %v24031_v61 = vld [vmem:[#allocation5 + $0x30f8] ss:$36 sps:$4 sm:$0xff]  }
 0x624   :  { %13620 = vmatpush1.bf16.msra.mxu1 %v23974_v60  ;;  %13800 = vmatprep.subr.bf16.mxu0 %v23985_v57  ;;  %v24028_v60 = vld [vmem:[#allocation5 + $0x3018] ss:$36 sps:$4 sm:$0xff]   ;;  %v24039_v57 = vld [vmem:[#allocation5 + $0x3144] ss:$36 sps:$4 sm:$0xff]  }
 0x625   :  { %13630 = vmatprep.subr.bf16.mxu1 %v23982_v18  ;;  %v24036_v18 = vld [vmem:[#allocation5 + $0x3064] ss:$36 sps:$4 sm:$0xff]  }
 0x627   :  { %13622 = vmatmul.mubr.bf16.vlgmr.msra.gmra.mrb[56].mxu1 %v24869_v8  ;;  %13801 = vmatpush1.bf16.msra.mxu0 %v23983_v2  ;;  %v24037_v2 = vld [vmem:[#allocation5 + $0x3140] ss:$36 sps:$4 sm:$0xff]  }
 0x628   :  { %13631 = vmatpush1.bf16.msra.mxu1 %v23980_v62  ;;  %13802 = vmatprep.subr.bf16.mxu0 %v23991_v11  ;;  %v24034_v62 = vld [vmem:[#allocation5 + $0x3060] ss:$36 sps:$4 sm:$0xff]   ;;  %v24045_v11 = vld [vmem:[#allocation5 + $0x318c] ss:$36 sps:$4 sm:$0xff]  }
 0x629   :  { %13632 = vmatprep.subr.bf16.mxu1 %v23988_v58  ;;  %13662 = vmatprep.mubr.bf16.mxu1 %v24877_v35  ;;  %v24042_v58 = vld [vmem:[#allocation5 + $0x30ac] ss:$36 sps:$4 sm:$0xff]  }
 0x62b   :  { %13803 = vmatpush1.bf16.msra.mxu0 %v23989_v59  ;;  %v24043_v59 = vld [vmem:[#allocation5 + $0x3188] ss:$36 sps:$4 sm:$0xff]  }
 0x62c   :  { %13633 = vmatpush1.bf16.msra.mxu1 %v23986_v12  ;;  %13804 = vmatprep.subr.bf16.mxu0 %v23997_v20  ;;  %v24040_v12 = vld [vmem:[#allocation5 + $0x30a8] ss:$36 sps:$4 sm:$0xff]   ;;  %v24051_v20 = vld [vmem:[#allocation5 + $0x31d4] ss:$36 sps:$4 sm:$0xff]  }
 0x62d   :  { %13634 = vmatprep.subr.bf16.mxu1 %v23994_v16  ;;  %v24048_v16 = vld [vmem:[#allocation5 + $0x30f4] ss:$36 sps:$4 sm:$0xff]  }
 0x62f   :  { %13805 = vmatpush1.bf16.msra.mxu0 %v23995_v22  ;;  %v24049_v22 = vld [vmem:[#allocation5 + $0x31d0] ss:$36 sps:$4 sm:$0xff]  }
 0x630   :  { %13635 = vmatpush1.bf16.msra.mxu1 %v23992_v21  ;;  %13806 = vmatprep.subr.bf16.mxu0 %v24003_v46  ;;  %v24046_v21 = vld [vmem:[#allocation5 + $0x30f0] ss:$36 sps:$4 sm:$0xff]   ;;  %v24057_v46 = vld [vmem:[#allocation5 + $0x321c] ss:$36 sps:$4 sm:$0xff]  }
 0x631   :  { %13636 = vmatprep.subr.bf16.mxu1 %v24000_v24  ;;  %v24054_v24 = vld [vmem:[#allocation5 + $0x313c] ss:$36 sps:$4 sm:$0xff]  }
 0x633   :  { %13807 = vmatpush1.bf16.msra.mxu0 %v24001_v38  ;;  %v24055_v38 = vld [vmem:[#allocation5 + $0x3218] ss:$36 sps:$4 sm:$0xff]  }
 0x634   :  { %13637 = vmatpush1.bf16.msra.mxu1 %v23998_v36  ;;  %13808 = vmatprep.subr.bf16.mxu0 %v24009_v41  ;;  %v24052_v36 = vld [vmem:[#allocation5 + $0x3138] ss:$36 sps:$4 sm:$0xff]   ;;  %v24063_v41 = vld [vmem:[#allocation5 + $0x3264] ss:$36 sps:$4 sm:$0xff]  }
 0x635   :  { %13638 = vmatprep.subr.bf16.mxu1 %v24006_v40  ;;  %v24060_v40 = vld [vmem:[#allocation5 + $0x3184] ss:$36 sps:$4 sm:$0xff]  }
 0x637   :  { %13809 = vmatpush1.bf16.msra.mxu0 %v24007_v39  ;;  %v24061_v39 = vld [vmem:[#allocation5 + $0x3260] ss:$36 sps:$4 sm:$0xff]  }
 0x638   :  { %13639 = vmatpush1.bf16.msra.mxu1 %v24004_v42  ;;  %13810 = vmatprep.subr.bf16.mxu0 %v24015_v48  ;;  %v24058_v42 = vld [vmem:[#allocation5 + $0x3180] ss:$36 sps:$4 sm:$0xff]   ;;  %v24069_v48 = vld [vmem:[#allocation5 + $0x32ac] ss:$36 sps:$4 sm:$0xff]  }
 0x639   :  { %13640 = vmatprep.subr.bf16.mxu1 %v24012_v14  ;;  %v24066_v14 = vld [vmem:[#allocation5 + $0x31cc] ss:$36 sps:$4 sm:$0xff]  }
 0x63b   :  { %13811 = vmatpush1.bf16.msra.mxu0 %v24013_v45  ;;  %v24067_v45 = vld [vmem:[#allocation5 + $0x32a8] ss:$36 sps:$4 sm:$0xff]  }
 0x63c   :  { %13641 = vmatpush1.bf16.msra.mxu1 %v24010_v28  ;;  %13812 = vmatprep.subr.bf16.mxu0 %v24021_v32  ;;  %v24064_v28 = vld [vmem:[#allocation5 + $0x31c8] ss:$36 sps:$4 sm:$0xff]   ;;  %v24075_v32 = vld [vmem:[#allocation5 + $0x32f4] ss:$36 sps:$4 sm:$0xff]  }
 0x63d   :  { %13642 = vmatprep.subr.bf16.mxu1 %v24018_v17  ;;  %v24072_v17 = vld [vmem:[#allocation5 + $0x3214] ss:$36 sps:$4 sm:$0xff]  }
 0x63f   :  { %13813 = vmatpush1.bf16.msra.mxu0 %v24019_v5  ;;  %v24073_v5 = vld [vmem:[#allocation5 + $0x32f0] ss:$36 sps:$4 sm:$0xff]  }
 0x640   :  { %13643 = vmatpush1.bf16.msra.mxu1 %v24016_v4  ;;  %13814 = vmatprep.subr.bf16.mxu0 %v24027_v34  ;;  %v24070_v4 = vld [vmem:[#allocation5 + $0x3210] ss:$36 sps:$4 sm:$0xff]   ;;  %v24081_v34 = vld [vmem:[#allocation5 + $0x333c] ss:$36 sps:$4 sm:$0xff]  }
 0x641   :  { %13644 = vmatprep.subr.bf16.mxu1 %v24024_v29  ;;  %v24078_v29 = vld [vmem:[#allocation5 + $0x325c] ss:$36 sps:$4 sm:$0xff]  }
 0x643   :  { %13815 = vmatpush1.bf16.msra.mxu0 %v24025_v10  ;;  %v24079_v10 = vld [vmem:[#allocation5 + $0x3338] ss:$36 sps:$4 sm:$0xff]  }
 0x644   :  { %13645 = vmatpush1.bf16.msra.mxu1 %v24022_v7  ;;  %13816 = vmatprep.subr.bf16.mxu0 %v24033_v50  ;;  %v24076_v7 = vld [vmem:[#allocation5 + $0x3258] ss:$36 sps:$4 sm:$0xff]   ;;  %v24087_v50 = vld [vmem:[#allocation5 + $0x3384] ss:$36 sps:$4 sm:$0xff]  }
 0x645   :  { %13646 = vmatprep.subr.bf16.mxu1 %v24030_v31  ;;  %v24084_v31 = vld [vmem:[#allocation5 + $0x32a4] ss:$36 sps:$4 sm:$0xff]  }
 0x647   :  { %13817 = vmatpush1.bf16.msra.mxu0 %v24031_v61  ;;  %v24085_v61 = vld [vmem:[#allocation5 + $0x3380] ss:$36 sps:$4 sm:$0xff]  }
 0x648   :  { %13647 = vmatpush1.bf16.msra.mxu1 %v24028_v60  ;;  %13818 = vmatprep.subr.bf16.mxu0 %v24039_v57  ;;  %v24082_v60 = vld [vmem:[#allocation5 + $0x32a0] ss:$36 sps:$4 sm:$0xff]   ;;  %v24093_v57 = vld [vmem:[#allocation5 + $0x33cc] ss:$36 sps:$4 sm:$0xff]  }
 0x649   :  { %13648 = vmatprep.subr.bf16.mxu1 %v24036_v18  ;;  %v24090_v18 = vld [vmem:[#allocation5 + $0x32ec] ss:$36 sps:$4 sm:$0xff]  }
 0x64b   :  { %13819 = vmatpush1.bf16.msra.mxu0 %v24037_v2  ;;  %v24091_v2 = vld [vmem:[#allocation5 + $0x33c8] ss:$36 sps:$4 sm:$0xff]  }
 0x64c   :  { %13649 = vmatpush1.bf16.msra.mxu1 %v24034_v62  ;;  %13820 = vmatprep.subr.bf16.mxu0 %v24045_v11  ;;  %v24088_v62 = vld [vmem:[#allocation5 + $0x32e8] ss:$36 sps:$4 sm:$0xff]   ;;  %v24099_v11 = vld [vmem:[#allocation5 + $0x3414] ss:$36 sps:$4 sm:$0xff]  }
 0x64d   :  { %13650 = vmatprep.subr.bf16.mxu1 %v24042_v58  ;;  %v24096_v58 = vld [vmem:[#allocation5 + $0x3334] ss:$36 sps:$4 sm:$0xff]  }
 0x64f   :  { %13821 = vmatpush1.bf16.msra.mxu0 %v24043_v59 }
 0x650   :  { %13651 = vmatpush1.bf16.msra.mxu1 %v24040_v12  ;;  %13822 = vmatprep.subr.bf16.mxu0 %v24051_v20 }
 0x651   :  { %13652 = vmatprep.subr.bf16.mxu1 %v24048_v16 }
 0x653   :  { %13823 = vmatpush1.bf16.msra.mxu0 %v24049_v22 }
 0x654   :  { %13653 = vmatpush1.bf16.msra.mxu1 %v24046_v21  ;;  %13824 = vmatprep.subr.bf16.mxu0 %v24057_v46  ;;  %v24094_v21 = vld [vmem:[#allocation5 + $0x3330] ss:$36 sps:$4 sm:$0xff]  }
 0x655   :  { %13654 = vmatprep.subr.bf16.mxu1 %v24054_v24  ;;  %v24097_v24 = vld [vmem:[#allocation5 + $0x3410] ss:$36 sps:$4 sm:$0xff]  }
 0x657   :  { %13825 = vmatpush1.bf16.msra.mxu0 %v24055_v38  ;;  %v24105_v38 = vld [vmem:[#allocation5 + $0x345c] ss:$36 sps:$4 sm:$0xff]  }
 0x658   :  { %13655 = vmatpush1.bf16.msra.mxu1 %v24052_v36  ;;  %13835 = vmatprep.subr.bf16.mxu0 %v24063_v41  ;;  %v24102_v36 = vld [vmem:[#allocation5 + $0x337c] ss:$36 sps:$4 sm:$0xff]   ;;  %v24117_v41 = vld [vmem:[#allocation5 + $0x34ec] ss:$36 sps:$4 sm:$0xff]  }
 0x659   :  { %13656 = vmatprep.subr.bf16.mxu1 %v24060_v40  ;;  %v24111_v40 = vld [vmem:[#allocation5 + $0x34a4] ss:$36 sps:$4 sm:$0xff]  }
 0x65a   :  { %13827 = vmatmul.mubr.bf16.vlgmr.msra.gmra.mrb[48].mxu0 %v24883_v15 }
 0x65b   :  { %13836 = vmatpush1.bf16.msra.mxu0 %v24061_v39  ;;  %13867 = vmatprep.mubr.bf16.mxu0 %v24889_v19  ;;  %v24115_v39 = vld [vmem:[#allocation5 + $0x34e8] ss:$36 sps:$4 sm:$0xff]  }
 0x65c   :  { %13657 = vmatpush1.bf16.msra.mxu1 %v24058_v42  ;;  %13837 = vmatprep.subr.bf16.mxu0 %v24069_v48  ;;  %v24112_v42 = vld [vmem:[#allocation5 + $0x3408] ss:$36 sps:$4 sm:$0xff]   ;;  %v24123_v48 = vld [vmem:[#allocation5 + $0x3534] ss:$36 sps:$4 sm:$0xff]  }
 0x65d   :  { %13658 = vmatprep.subr.bf16.mxu1 %v24066_v14  ;;  %v24120_v14 = vld [vmem:[#allocation5 + $0x3454] ss:$36 sps:$4 sm:$0xff]  }
 0x65f   :  { %13838 = vmatpush1.bf16.msra.mxu0 %v24067_v45  ;;  %v24121_v45 = vld [vmem:[#allocation5 + $0x3530] ss:$36 sps:$4 sm:$0xff]  }
 0x660   :  { %13659 = vmatpush1.bf16.msra.mxu1 %v24064_v28  ;;  %13839 = vmatprep.subr.bf16.mxu0 %v24075_v32  ;;  %v24118_v28 = vld [vmem:[#allocation5 + $0x3450] ss:$36 sps:$4 sm:$0xff]   ;;  %v24129_v32 = vld [vmem:[#allocation5 + $0x357c] ss:$36 sps:$4 sm:$0xff]  }
 0x661   :  { %13660 = vmatprep.subr.bf16.mxu1 %v24072_v17  ;;  %v24126_v17 = vld [vmem:[#allocation5 + $0x349c] ss:$36 sps:$4 sm:$0xff]  }
 0x663   :  { %13840 = vmatpush1.bf16.msra.mxu0 %v24073_v5  ;;  %v24127_v5 = vld [vmem:[#allocation5 + $0x3578] ss:$36 sps:$4 sm:$0xff]  }
 0x664   :  { %13661 = vmatpush1.bf16.msra.mxu1 %v24070_v4  ;;  %13841 = vmatprep.subr.bf16.mxu0 %v24081_v34  ;;  %v24124_v4 = vld [vmem:[#allocation5 + $0x3498] ss:$36 sps:$4 sm:$0xff]   ;;  %v24135_v34 = vld [vmem:[#allocation5 + $0x35c4] ss:$36 sps:$4 sm:$0xff]  }
 0x665   :  { %13671 = vmatprep.subr.bf16.mxu1 %v24078_v29  ;;  %v24132_v29 = vld [vmem:[#allocation5 + $0x34e4] ss:$36 sps:$4 sm:$0xff]  }
 0x667   :  { %13663 = vmatmul.mubr.bf16.vlgmr.msra.gmra.mrb[56].mxu1 %v24883_v15  ;;  %13842 = vmatpush1.bf16.msra.mxu0 %v24079_v10  ;;  %v24133_v10 = vld [vmem:[#allocation5 + $0x35c0] ss:$36 sps:$4 sm:$0xff]  }
 0x668   :  { %13672 = vmatpush1.bf16.msra.mxu1 %v24076_v7  ;;  %13843 = vmatprep.subr.bf16.mxu0 %v24087_v50  ;;  %v24130_v7 = vld [vmem:[#allocation5 + $0x34e0] ss:$36 sps:$4 sm:$0xff]   ;;  %v24141_v50 = vld [vmem:[#allocation5 + $0x360c] ss:$36 sps:$4 sm:$0xff]  }
 0x669   :  { %13673 = vmatprep.subr.bf16.mxu1 %v24084_v31  ;;  %13703 = vmatprep.mubr.bf16.mxu1 %v24889_v19  ;;  %v24138_v31 = vld [vmem:[#allocation5 + $0x352c] ss:$36 sps:$4 sm:$0xff]  }
 0x66b   :  { %13844 = vmatpush1.bf16.msra.mxu0 %v24085_v61  ;;  %v24139_v61 = vld [vmem:[#allocation5 + $0x3608] ss:$36 sps:$4 sm:$0xff]  }
 0x66c   :  { %13674 = vmatpush1.bf16.msra.mxu1 %v24082_v60  ;;  %13845 = vmatprep.subr.bf16.mxu0 %v24093_v57  ;;  %v24136_v60 = vld [vmem:[#allocation5 + $0x3528] ss:$36 sps:$4 sm:$0xff]   ;;  %v24147_v57 = vld [vmem:[#allocation5 + $0x3654] ss:$36 sps:$4 sm:$0xff]  }
 0x66d   :  { %13675 = vmatprep.subr.bf16.mxu1 %v24090_v18  ;;  %v10505_v12 = vpop.f32.mrb[36].mxu0  ;;  %v24144_v18 = vld [vmem:[#allocation5 + $0x3574] ss:$36 sps:$4 sm:$0xff]  }
 0x66e   :  { %v25139_v59 = vmax.f32 %v7271_v53, %v10505_v12  ;;  %v10507_v16 = vpop.f32.mrb[37].mxu0  ;;  %v24108_v53 = vld [vmem:[#allocation5 + $0x33c4] ss:$36 sps:$4 sm:$0xff]  }
 0x66f   :  { %v25144_v20 = vmax.f32 %v7272_v55, %v10507_v16  ;;  %13846 = vmatpush1.bf16.msra.mxu0 %v24091_v2  ;;  %v10509_v22 = vpop.f32.mrb[38].mxu0  ;;  %v24114_v55 = vld [vmem:[#allocation5 + $0x340c] ss:$36 sps:$4 sm:$0xff]  }
 0x670   :  { %13676 = vmatpush1.bf16.msra.mxu1 %v24088_v62  ;;  %v10510_v46 = vpop.f32.mrb[39].mxu0  ;;  %13847 = vmatprep.subr.bf16.mxu0 %v24099_v11  ;;  %v24145_v11 = vld [vmem:[#allocation5 + $0x3650] ss:$36 sps:$4 sm:$0xff]   ;;  %v24153_v22 = vld [vmem:[#allocation5 + $0x369c] ss:$36 sps:$4 sm:$0xff]  }
 0x671   :  { %13677 = vmatprep.subr.bf16.mxu1 %v24096_v58  ;;  %v24142_v58 = vld [vmem:[#allocation5 + $0x3570] ss:$36 sps:$4 sm:$0xff]  }
 0x673   :  { %13848 = vmatpush1.bf16.msra.mxu0 %v24097_v24 }
 0x674   :  { %13678 = vmatpush1.bf16.msra.mxu1 %v24094_v21  ;;  %13849 = vmatprep.subr.bf16.mxu0 %v24105_v38  ;;  %v24150_v21 = vld [vmem:[#allocation5 + $0x35bc] ss:$36 sps:$4 sm:$0xff]  }
 0x675   :  { %13679 = vmatprep.subr.bf16.mxu1 %v24102_v36 }
 0x677   :  { %13850 = vmatpush1.bf16.msra.mxu0 %v24103_v51 }
 0x678   :  { %13680 = vmatpush1.bf16.msra.mxu1 %v24100_v6  ;;  %13851 = vmatprep.subr.bf16.mxu0 %v24111_v40  ;;  %v24151_v40 = vld [vmem:[#allocation5 + $0x3698] ss:$36 sps:$4 sm:$0xff]  }
 0x679   :  { %13681 = vmatprep.subr.bf16.mxu1 %v24108_v53  ;;  %v24148_v53 = vld [vmem:[#allocation5 + $0x35b8] ss:$36 sps:$4 sm:$0xff]  }
 0x67b   :  { %13852 = vmatpush1.bf16.msra.mxu0 %v24109_v54  ;;  %v24156_v54 = vld [vmem:[#allocation5 + $0x3604] ss:$36 sps:$4 sm:$0xff]  }
 0x67c   :  { %13682 = vmatpush1.bf16.msra.mxu1 %v24106_v9  ;;  %13853 = vmatprep.subr.bf16.mxu0 %v24117_v41  ;;  %v24171_v41 = vld [vmem:[#allocation5 + $0x2974] ss:$36 sps:$4 sm:$0xff]  }
 0x67d   :  { %13683 = vmatprep.subr.bf16.mxu1 %v24114_v55  ;;  %v24165_v55 = vld [vmem:[#allocation5 + $0x36e4] ss:$36 sps:$4 sm:$0xff]  }
 0x67f   :  { %13854 = vmatpush1.bf16.msra.mxu0 %v24115_v39  ;;  %v24166_v39 = vld [vmem:[#allocation5 + $0x36d8] ss:$36 sps:$4 sm:$0xff]  }
 0x680   :  { %13684 = vmatpush1.bf16.msra.mxu1 %v24112_v42  ;;  %13855 = vmatprep.subr.bf16.mxu0 %v24123_v48  ;;  %v24168_v42 = vld [vmem:[#allocation5 + $0x36dc] ss:$36 sps:$4 sm:$0xff]  }
 0x681   :  { %13685 = vmatprep.subr.bf16.mxu1 %v24120_v14  ;;  %v24169_v14 = vld [vmem:[#allocation5 + $0x2970] ss:$36 sps:$4 sm:$0xff]   ;;  %v24174_v48 = vld [vmem:[#allocation5 + $0x29bc] ss:$36 sps:$4 sm:$0xff]  }
 0x683   :  { %13856 = vmatpush1.bf16.msra.mxu0 %v24121_v45  ;;  %v24172_v45 = vld [vmem:[#allocation5 + $0x29b8] ss:$36 sps:$4 sm:$0xff]  }
 0x684   :  { %13686 = vmatpush1.bf16.msra.mxu1 %v24118_v28  ;;  %13857 = vmatprep.subr.bf16.mxu0 %v24129_v32  ;;  %v24180_v28 = vld [vmem:[#allocation5 + $0x296c] ss:$36 sps:$4 sm:$0xff]   ;;  %v24175_v32 = vld [vmem:[#allocation5 + $0x2a00] ss:$36 sps:$4 sm:$0xff]  }
 0x685   :  { %13687 = vmatprep.subr.bf16.mxu1 %v24126_v17  ;;  %v24177_v17 = vld [vmem:[#allocation5 + $0x2a04] ss:$36 sps:$4 sm:$0xff]  }
 0x687   :  { %13858 = vmatpush1.bf16.msra.mxu0 %v24127_v5 }
 0x688   :  { %13688 = vmatpush1.bf16.msra.mxu1 %v24124_v4  ;;  %13859 = vmatprep.subr.bf16.mxu0 %v24135_v34  ;;  %v24183_v4 = vld [vmem:[#allocation5 + $0x2a4c] ss:$36 sps:$4 sm:$0xff]  }
 0x689   :  { %13689 = vmatprep.subr.bf16.mxu1 %v24132_v29  ;;  %v24178_v34 = vld [vmem:[#allocation5 + $0x2968] ss:$36 sps:$4 sm:$0xff]  }
 0x68b   :  { %13860 = vmatpush1.bf16.msra.mxu0 %v24133_v10 }
 0x68c   :  { %13690 = vmatpush1.bf16.msra.mxu1 %v24130_v7  ;;  %13861 = vmatprep.subr.bf16.mxu0 %v24141_v50  ;;  %v24181_v7 = vld [vmem:[#allocation5 + $0x2a48] ss:$36 sps:$4 sm:$0xff]   ;;  %v24186_v50 = vld [vmem:[#allocation5 + $0x29b4] ss:$36 sps:$4 sm:$0xff]  }
 0x68d   :  { %13691 = vmatprep.subr.bf16.mxu1 %v24138_v31  ;;  %v21522_v62 = vpop.f32.mrb[40].mxu0 }
 0x68e   :  { %v21523_v2 = vpop.f32.mrb[41].mxu0 }
 0x68f   :  { %13862 = vmatpush1.bf16.msra.mxu0 %v24139_v61  ;;  %v25146_v12 = vadd.f32 %v21523_v2, %v21522_v62  ;;  %v21525_v16 = vpop.f32.mrb[42].mxu0 }
 0x690   :  { %13692 = vmatpush1.bf16.msra.mxu1 %v24136_v60  ;;  %13863 = vmatprep.subr.bf16.mxu0 %v24147_v57  ;;  %v21526_v24 = vpop.f32.mrb[43].mxu0  ;;  %v24189_v60 = vld [vmem:[#allocation5 + $0x2a94] ss:$36 sps:$4 sm:$0xff]  }
 0x691   :  { %13693 = vmatprep.subr.bf16.mxu1 %v24144_v18 }
 0x692   :  { %v10669_v46 = vpop.f32.mrb[44].mxu1 }
 0x693   :  { %v25151_v36 = vmax.f32 %v7273_v26, %v10669_v46  ;;  %v10671_v38 = vpop.f32.mrb[45].mxu1  ;;  %13864 = vmatpush1.bf16.msra.mxu0 %v24145_v11  ;;  %v24159_v26 = vld [vmem:[#allocation5 + $0x364c] ss:$36 sps:$4 sm:$0xff]   ;;  %v24190_v46 = vld [vmem:[#allocation5 + $0x29f8] ss:$36 sps:$4 sm:$0xff]  }
 0x694   :  { %13694 = vmatpush1.bf16.msra.mxu1 %v24142_v58  ;;  %v25156_v6 = vmax.f32 %v7274_v27, %v10671_v38  ;;  %v10673_v51 = vpop.f32.mrb[46].mxu1  ;;  %13865 = vmatprep.subr.bf16.mxu0 %v24153_v22  ;;  %v24160_v27 = vld [vmem:[#allocation5 + $0x3690] ss:$36 sps:$4 sm:$0xff]   ;;  %v24195_v22 = vld [vmem:[#allocation5 + $0x2adc] ss:$36 sps:$4 sm:$0xff]  }
 0x695   :  { %v10674_v9 = vpop.f32.mrb[47].mxu1  ;;  %13695 = vmatprep.subr.bf16.mxu1 %v24150_v21  ;;  %v24184_v58 = vld [vmem:[#allocation5 + $0x29b0] ss:$36 sps:$4 sm:$0xff]   ;;  %v24192_v21 = vld [vmem:[#allocation5 + $0x29fc] ss:$36 sps:$4 sm:$0xff]  }
 0x696   :  { %v24187_v11 = vld [vmem:[#allocation5 + $0x2a90] ss:$36 sps:$4 sm:$0xff]   ;;  %v24193_v38 = vld [vmem:[#allocation5 + $0x2ad8] ss:$36 sps:$4 sm:$0xff]   ;;  %v24198_v51 = vld [vmem:[#allocation5 + $0x2a44] ss:$36 sps:$4 sm:$0xff]  }
 0x697   :  { %13866 = vmatpush1.bf16.msra.mxu0 %v24151_v40 }
 0x698   :  { %13696 = vmatpush1.bf16.msra.mxu1 %v24148_v53  ;;  %13876 = vmatprep.subr.bf16.mxu0 %v24165_v55  ;;  %v24201_v53 = vld [vmem:[#allocation5 + $0x2b24] ss:$36 sps:$4 sm:$0xff]  }
 0x699   :  { %13697 = vmatprep.subr.bf16.mxu1 %v24156_v54 }
 0x69a   :  { %13868 = vmatmul.mubr.bf16.vlgmr.msra.gmra.mrb[48].mxu0 %v24897_v23 }
 0x69b   :  { %13877 = vmatpush1.bf16.msra.mxu0 %v24163_v49  ;;  %13908 = vmatprep.mubr.bf16.mxu0 %v24735_v0  ;;  %v24199_v49 = vld [vmem:[#allocation5 + $0x2b20] ss:$36 sps:$4 sm:$0xff]  }
 0x69c   :  { %13698 = vmatpush1.bf16.msra.mxu1 %v24154_v63  ;;  %14081 = vmatprep.subr.bf16.mxu0 %v24171_v41  ;;  %v24196_v63 = vld [vmem:[#allocation5 + $0x2a40] ss:$36 sps:$4 sm:$0xff]   ;;  %v24204_v41 = vld [vmem:[#allocation5 + $0x2a8c] ss:$36 sps:$4 sm:$0xff]  }
 0x69d   :  { %13699 = vmatprep.subr.bf16.mxu1 %v24159_v26 }
 0x6a0   :  { %13700 = vmatpush1.bf16.msra.mxu1 %v24157_v1  ;;  %v24207_v1 = vld [vmem:[#allocation5 + $0x2b6c] ss:$36 sps:$4 sm:$0xff]  }
 0x6a1   :  { %13701 = vmatprep.subr.bf16.mxu1 %v24162_v47  ;;  %v24202_v47 = vld [vmem:[#allocation5 + $0x2a88] ss:$36 sps:$4 sm:$0xff]  }
 0x6a4   :  { %13702 = vmatpush1.bf16.msra.mxu1 %v24160_v27  ;;  %v24205_v27 = vld [vmem:[#allocation5 + $0x2b68] ss:$36 sps:$4 sm:$0xff]  }
 0x6a5   :  { %13712 = vmatprep.subr.bf16.mxu1 %v24168_v42  ;;  %v24210_v42 = vld [vmem:[#allocation5 + $0x2ad4] ss:$36 sps:$4 sm:$0xff]  }
 0x6a6   :  { %20772 = vmatmul.mubr.msk.bf16.vlgmr.msra.gmra.mrb[48].mxu0 %vm2887_vm0, %v25123_v25 }
 0x6a7   :  { %13704 = vmatmul.mubr.bf16.vlgmr.msra.gmra.mrb[56].mxu1 %v24897_v23  ;;  %14082 = vmatpush1.bf16.msra.mxu0 %v24169_v14  ;;  %v24208_v14 = vld [vmem:[#allocation5 + $0x2ad0] ss:$36 sps:$4 sm:$0xff]  }
 0x6a8   :  { %13713 = vmatpush1.bf16.msra.mxu1 %v24166_v39  ;;  %14083 = vmatprep.subr.bf16.mxu0 %v24174_v48  ;;  %v24213_v39 = vld [vmem:[#allocation5 + $0x2bb4] ss:$36 sps:$4 sm:$0xff]  }
 0x6a9   :  { %13744 = vmatprep.mubr.bf16.mxu1 %v24735_v0  ;;  %13917 = vmatprep.subr.bf16.mxu1 %v24180_v28  ;;  %v24211_v48 = vld [vmem:[#allocation5 + $0x2bb0] ss:$36 sps:$4 sm:$0xff]   ;;  %v24217_v28 = vld [vmem:[#allocation5 + $0x2bf8] ss:$36 sps:$4 sm:$0xff]  }
 0x6aa   :  { %14113 = vmatprep.mubr.bf16.mxu0 %v24865_v52 }
 0x6ab   :  { %14084 = vmatpush1.bf16.msra.mxu0 %v24172_v45  ;;  %v24222_v45 = vld [vmem:[#allocation5 + $0x2b64] ss:$36 sps:$4 sm:$0xff]  }
 0x6ac   :  { %14085 = vmatprep.subr.bf16.mxu0 %v24177_v17  ;;  %v24225_v17 = vld [vmem:[#allocation5 + $0x2c44] ss:$36 sps:$4 sm:$0xff]  }
 0x6ad   :  { %v21566_v5 = vpop.f32.mrb[44].mxu0 }
 0x6ae   :  { %v21567_v29 = vpop.f32.mrb[45].mxu0 }
 0x6af   :  { %14086 = vmatpush1.bf16.msra.mxu0 %v24175_v32  ;;  %v21568_v10 = vadd.f32 %v21567_v29, %v21566_v5  ;;  %v21569_v31 = vpop.f32.mrb[46].mxu0  ;;  %v24220_v32 = vld [vmem:[#allocation5 + $0x2b60] ss:$36 sps:$4 sm:$0xff]   ;;  %v24228_v5 = vld [vmem:[#allocation5 + $0x2bac] ss:$36 sps:$4 sm:$0xff]  }
 0x6b0   :  { %14087 = vmatprep.subr.bf16.mxu0 %v24183_v4  ;;  %v21570_v61 = vpop.f32.mrb[47].mxu0  ;;  %v24223_v4 = vld [vmem:[#allocation5 + $0x2c40] ss:$36 sps:$4 sm:$0xff]   ;;  %v24231_v29 = vld [vmem:[#allocation5 + $0x2c8c] ss:$36 sps:$4 sm:$0xff]  }
 0x6b1   :  { %v24237_v31 = vld [vmem:[#allocation5 + $0x2cd4] ss:$36 sps:$4 sm:$0xff]   ;;  %v24240_v61 = vld [vmem:[#allocation5 + $0x2c3c] ss:$36 sps:$4 sm:$0xff]  }
 0x6b2   :  { %v21544_v18 = vpop.f32.mrb[48].mxu1 }
 0x6b3   :  { %20771 = vmatmul.mubr.msk.bf16.vlgmr.msra.gmra.mrb[56].mxu1 %vm2887_vm0, %v25123_v25  ;;  %v21545_v57 = vpop.f32.mrb[49].mxu1  ;;  %14088 = vmatpush1.bf16.msra.mxu0 %v24181_v7  ;;  %v24229_v7 = vld [vmem:[#allocation5 + $0x2c88] ss:$36 sps:$4 sm:$0xff]  }
 0x6b4   :  { %13918 = vmatpush1.bf16.msra.mxu1 %v24178_v34  ;;  %v21546_v62 = vadd.f32 %v21545_v57, %v21544_v18  ;;  %v21547_v2 = vpop.f32.mrb[50].mxu1  ;;  %14089 = vmatprep.subr.bf16.mxu0 %v24189_v60  ;;  %v24226_v34 = vld [vmem:[#allocation5 + $0x2ba8] ss:$36 sps:$4 sm:$0xff]   ;;  %v24235_v60 = vld [vmem:[#allocation5 + $0x2cd0] ss:$36 sps:$4 sm:$0xff]  }
 0x6b5   :  { %v21548_v16 = vpop.f32.mrb[51].mxu1  ;;  %13919 = vmatprep.subr.bf16.mxu1 %v24186_v50  ;;  %13949 = vmatprep.mubr.bf16.mxu1 %v24865_v52  ;;  %v24232_v50 = vld [vmem:[#allocation5 + $0x2bf0] ss:$36 sps:$4 sm:$0xff]   ;;  %v24243_v18 = vld [vmem:[#allocation5 + $0x2d1c] ss:$36 sps:$4 sm:$0xff]  }
 0x6b6   :  { %v10751_v24 = vadd.f32 %v21546_v62, %v25146_v12  ;;  %v24238_v57 = vld [vmem:[#allocation5 + $0x2c38] ss:$36 sps:$4 sm:$0xff]   ;;  %v24246_v2 = vld [vmem:[#allocation5 + $0x2c84] ss:$36 sps:$4 sm:$0xff]  }
 0x6b7   :  { %14090 = vmatpush1.bf16.msra.mxu0 %v24187_v11  ;;  %v24241_v62 = vld [vmem:[#allocation5 + $0x2d18] ss:$36 sps:$4 sm:$0xff]   ;;  %v24244_v11 = vld [vmem:[#allocation5 + $0x2c80] ss:$36 sps:$4 sm:$0xff]  }
 0x6b8   :  { %13920 = vmatpush1.bf16.msra.mxu1 %v24184_v58  ;;  %v10791_v25 = vadd.f32 %v21568_v10, %v10751_v24  ;;  %14091 = vmatprep.subr.bf16.mxu0 %v24195_v22  ;;  %v24234_v10 = vld [vmem:[#allocation5 + $0x2bf4] ss:$36 sps:$4 sm:$0xff]   ;;  %v24249_v58 = vld [vmem:[#allocation5 + $0x2d64] ss:$36 sps:$4 sm:$0xff]   ;;  %v24255_v22 = vld [vmem:[#allocation5 + $0x2dac] ss:$36 sps:$4 sm:$0xff]  }
 0x6b9   :  { %13921 = vmatprep.subr.bf16.mxu1 %v24192_v21  ;;  %v24247_v16 = vld [vmem:[#allocation5 + $0x2d60] ss:$36 sps:$4 sm:$0xff]   ;;  %v24252_v21 = vld [vmem:[#allocation5 + $0x2ccc] ss:$36 sps:$4 sm:$0xff]  }
 0x6ba   :  { %v10830_v40 = vpop.f32.mrb[52].mxu1  ;;  %v24250_v24 = vld [vmem:[#allocation5 + $0x2cc8] ss:$36 sps:$4 sm:$0xff]  }
 0x6bb   :  { %v10831_v9 = vadd.f32 %v10830_v40, %v10791_v25  ;;  %v21680_v54 = vpop.f32.mrb[53].mxu1  ;;  %14092 = vmatpush1.bf16.msra.mxu0 %v24193_v38  ;;  %v24258_v25 = vld [vmem:[#allocation5 + $0x2d14] ss:$36 sps:$4 sm:$0xff]   ;;  %v24264_v40 = vld [vmem:[#allocation5 + $0x2d5c] ss:$36 sps:$4 sm:$0xff]  }
 0x6bc   :  { %13922 = vmatpush1.bf16.msra.mxu1 %v24190_v46  ;;  %v10833_v55 = vpop.f32.mrb[54].mxu1  ;;  %14093 = vmatprep.subr.bf16.mxu0 %v24201_v53  ;;  %v24253_v46 = vld [vmem:[#allocation5 + $0x2da8] ss:$36 sps:$4 sm:$0xff]   ;;  %v24261_v38 = vld [vmem:[#allocation5 + $0x2df4] ss:$36 sps:$4 sm:$0xff]  }
 0x6bd   :  { %v25172_v12 = vmax.f32 %v7275_v56, %v10831_v9  ;;  %v21681_v26 = vpop.f32.mrb[55].mxu1  ;;  %13923 = vmatprep.subr.bf16.mxu1 %v24198_v51  ;;  %v24214_v56 = vld [vmem:[#allocation5 + $0x2b18] ss:$36 sps:$4 sm:$0xff]   ;;  %v24256_v51 = vld [vmem:[#allocation5 + $0x2d10] ss:$36 sps:$4 sm:$0xff]  }
 0x6be   :  { %v24259_v53 = vld [vmem:[#allocation5 + $0x2df0] ss:$36 sps:$4 sm:$0xff]   ;;  %v24267_v9 = vld [vmem:[#allocation5 + $0x2e3c] ss:$36 sps:$4 sm:$0xff]  }
 0x6bf   :  { %14094 = vmatpush1.bf16.msra.mxu0 %v24199_v49  ;;  %v24262_v54 = vld [vmem:[#allocation5 + $0x2d58] ss:$36 sps:$4 sm:$0xff]   ;;  %v24273_v49 = vld [vmem:[#allocation5 + $0x2e84] ss:$36 sps:$4 sm:$0xff]  }
 0x6c0   :  { %13924 = vmatpush1.bf16.msra.mxu1 %v24196_v63  ;;  %14095 = vmatprep.subr.bf16.mxu0 %v24207_v1  ;;  %v24265_v55 = vld [vmem:[#allocation5 + $0x2e38] ss:$36 sps:$4 sm:$0xff]   ;;  %v24270_v63 = vld [vmem:[#allocation5 + $0x2da4] ss:$36 sps:$4 sm:$0xff]   ;;  %v24276_v1 = vld [vmem:[#allocation5 + $0x2dec] ss:$36 sps:$4 sm:$0xff]  }
 0x6c1   :  { %13925 = vmatprep.subr.bf16.mxu1 %v24204_v41  ;;  %v24268_v26 = vld [vmem:[#allocation5 + $0x2da0] ss:$36 sps:$4 sm:$0xff]  }
 0x6c2   :  { %v24271_v41 = vld [vmem:[#allocation5 + $0x2e80] ss:$36 sps:$4 sm:$0xff]  }
 0x6c3   :  { %14096 = vmatpush1.bf16.msra.mxu0 %v24205_v27  ;;  %v24274_v27 = vld [vmem:[#allocation5 + $0x2de8] ss:$36 sps:$4 sm:$0xff]  }
 0x6c4   :  { %13926 = vmatpush1.bf16.msra.mxu1 %v24202_v47  ;;  %14097 = vmatprep.subr.bf16.mxu0 %v24213_v39  ;;  %v24279_v47 = vld [vmem:[#allocation5 + $0x2ecc] ss:$36 sps:$4 sm:$0xff]   ;;  %v24282_v39 = vld [vmem:[#allocation5 + $0x2e34] ss:$36 sps:$4 sm:$0xff]  }
 0x6c5   :  { %13927 = vmatprep.subr.bf16.mxu1 %v24210_v42  ;;  %v24277_v42 = vld [vmem:[#allocation5 + $0x2ec8] ss:$36 sps:$4 sm:$0xff]  }
 0x6c7   :  { %14098 = vmatpush1.bf16.msra.mxu0 %v24211_v48  ;;  %v24280_v48 = vld [vmem:[#allocation5 + $0x2e30] ss:$36 sps:$4 sm:$0xff]  }
 0x6c8   :  { %13928 = vmatpush1.bf16.msra.mxu1 %v24208_v14  ;;  %14099 = vmatprep.subr.bf16.mxu0 %v24219_v43  ;;  %v24285_v14 = vld [vmem:[#allocation5 + $0x2f14] ss:$36 sps:$4 sm:$0xff]   ;;  %v24288_v43 = vld [vmem:[#allocation5 + $0x2e7c] ss:$36 sps:$4 sm:$0xff]  }
 0x6c9   :  { %13929 = vmatprep.subr.bf16.mxu1 %v24216_v3  ;;  %v24283_v3 = vld [vmem:[#allocation5 + $0x2f10] ss:$36 sps:$4 sm:$0xff]  }
 0x6cb   :  { %14100 = vmatpush1.bf16.msra.mxu0 %v24217_v28  ;;  %v24286_v28 = vld [vmem:[#allocation5 + $0x2e78] ss:$36 sps:$4 sm:$0xff]  }
 0x6cc   :  { %13930 = vmatpush1.bf16.msra.mxu1 %v24214_v56  ;;  %14101 = vmatprep.subr.bf16.mxu0 %v24225_v17  ;;  %v24291_v56 = vld [vmem:[#allocation5 + $0x2f5c] ss:$36 sps:$4 sm:$0xff]   ;;  %v24294_v17 = vld [vmem:[#allocation5 + $0x2ec4] ss:$36 sps:$4 sm:$0xff]  }
 0x6cd   :  { %13931 = vmatprep.subr.bf16.mxu1 %v24222_v45  ;;  %v24289_v45 = vld [vmem:[#allocation5 + $0x2f58] ss:$36 sps:$4 sm:$0xff]  }
 0x6cf   :  { %14102 = vmatpush1.bf16.msra.mxu0 %v24223_v4  ;;  %v24292_v4 = vld [vmem:[#allocation5 + $0x2ec0] ss:$36 sps:$4 sm:$0xff]  }
 0x6d0   :  { %13932 = vmatpush1.bf16.msra.mxu1 %v24220_v32  ;;  %14103 = vmatprep.subr.bf16.mxu0 %v24231_v29  ;;  %v24297_v32 = vld [vmem:[#allocation5 + $0x2fa4] ss:$36 sps:$4 sm:$0xff]   ;;  %v24300_v29 = vld [vmem:[#allocation5 + $0x2f0c] ss:$36 sps:$4 sm:$0xff]  }
 0x6d1   :  { %13933 = vmatprep.subr.bf16.mxu1 %v24228_v5  ;;  %v24295_v5 = vld [vmem:[#allocation5 + $0x2fa0] ss:$36 sps:$4 sm:$0xff]  }
 0x6d3   :  { %14104 = vmatpush1.bf16.msra.mxu0 %v24229_v7  ;;  %v24298_v7 = vld [vmem:[#allocation5 + $0x2f08] ss:$36 sps:$4 sm:$0xff]  }
 0x6d4   :  { %13934 = vmatpush1.bf16.msra.mxu1 %v24226_v34  ;;  %14105 = vmatprep.subr.bf16.mxu0 %v24237_v31  ;;  %v24303_v34 = vld [vmem:[#allocation5 + $0x2fec] ss:$36 sps:$4 sm:$0xff]   ;;  %v24306_v31 = vld [vmem:[#allocation5 + $0x2f54] ss:$36 sps:$4 sm:$0xff]  }
 0x6d5   :  { %13935 = vmatprep.subr.bf16.mxu1 %v24234_v10  ;;  %v24301_v10 = vld [vmem:[#allocation5 + $0x2fe8] ss:$36 sps:$4 sm:$0xff]  }
 0x6d7   :  { %14106 = vmatpush1.bf16.msra.mxu0 %v24235_v60  ;;  %v24304_v60 = vld [vmem:[#allocation5 + $0x2f50] ss:$36 sps:$4 sm:$0xff]  }
 0x6d8   :  { %13936 = vmatpush1.bf16.msra.mxu1 %v24232_v50  ;;  %14107 = vmatprep.subr.bf16.mxu0 %v24243_v18  ;;  %v24309_v50 = vld [vmem:[#allocation5 + $0x3034] ss:$36 sps:$4 sm:$0xff]   ;;  %v24312_v18 = vld [vmem:[#allocation5 + $0x2f9c] ss:$36 sps:$4 sm:$0xff]  }
 0x6d9   :  { %13937 = vmatprep.subr.bf16.mxu1 %v24240_v61  ;;  %v24307_v61 = vld [vmem:[#allocation5 + $0x3030] ss:$36 sps:$4 sm:$0xff]  }
 0x6db   :  { %14108 = vmatpush1.bf16.msra.mxu0 %v24241_v62  ;;  %v24310_v62 = vld [vmem:[#allocation5 + $0x2f98] ss:$36 sps:$4 sm:$0xff]  }
 0x6dc   :  { %13938 = vmatpush1.bf16.msra.mxu1 %v24238_v57  ;;  %14109 = vmatprep.subr.bf16.mxu0 %v24249_v58  ;;  %v24315_v57 = vld [vmem:[#allocation5 + $0x307c] ss:$36 sps:$4 sm:$0xff]   ;;  %v24318_v58 = vld [vmem:[#allocation5 + $0x2fe4] ss:$36 sps:$4 sm:$0xff]  }
 0x6dd   :  { %13939 = vmatprep.subr.bf16.mxu1 %v24246_v2  ;;  %v24313_v2 = vld [vmem:[#allocation5 + $0x3078] ss:$36 sps:$4 sm:$0xff]  }
 0x6df   :  { %14110 = vmatpush1.bf16.msra.mxu0 %v24247_v16  ;;  %v24316_v16 = vld [vmem:[#allocation5 + $0x2fe0] ss:$36 sps:$4 sm:$0xff]  }
 0x6e0   :  { %13940 = vmatpush1.bf16.msra.mxu1 %v24244_v11  ;;  %14111 = vmatprep.subr.bf16.mxu0 %v24255_v22  ;;  %v24321_v11 = vld [vmem:[#allocation5 + $0x30c4] ss:$36 sps:$4 sm:$0xff]   ;;  %v24324_v22 = vld [vmem:[#allocation5 + $0x302c] ss:$36 sps:$4 sm:$0xff]  }
 0x6e1   :  { %13941 = vmatprep.subr.bf16.mxu1 %v24252_v21  ;;  %v24319_v21 = vld [vmem:[#allocation5 + $0x30c0] ss:$36 sps:$4 sm:$0xff]  }
 0x6e3   :  { %14112 = vmatpush1.bf16.msra.mxu0 %v24253_v46  ;;  %v24322_v46 = vld [vmem:[#allocation5 + $0x3028] ss:$36 sps:$4 sm:$0xff]  }
 0x6e4   :  { %13942 = vmatpush1.bf16.msra.mxu1 %v24250_v24  ;;  %14122 = vmatprep.subr.bf16.mxu0 %v24261_v38  ;;  %v24327_v24 = vld [vmem:[#allocation5 + $0x310c] ss:$36 sps:$4 sm:$0xff]   ;;  %v24330_v38 = vld [vmem:[#allocation5 + $0x3074] ss:$36 sps:$4 sm:$0xff]  }
 0x6e5   :  { %13943 = vmatprep.subr.bf16.mxu1 %v24258_v25  ;;  %v24325_v25 = vld [vmem:[#allocation5 + $0x3108] ss:$36 sps:$4 sm:$0xff]  }
 0x6e6   :  { %14114 = vmatmul.mubr.bf16.vlgmr.msra.gmra.mrb[52].mxu0 %v24869_v8 }
 0x6e7   :  { %14123 = vmatpush1.bf16.msra.mxu0 %v24259_v53  ;;  %14154 = vmatprep.mubr.bf16.mxu0 %v24877_v35  ;;  %v24328_v53 = vld [vmem:[#allocation5 + $0x3070] ss:$36 sps:$4 sm:$0xff]  }
 0x6e8   :  { %13944 = vmatpush1.bf16.msra.mxu1 %v24256_v51  ;;  %14124 = vmatprep.subr.bf16.mxu0 %v24267_v9  ;;  %v24333_v51 = vld [vmem:[#allocation5 + $0x3154] ss:$36 sps:$4 sm:$0xff]   ;;  %v24336_v9 = vld [vmem:[#allocation5 + $0x30bc] ss:$36 sps:$4 sm:$0xff]  }
 0x6e9   :  { %13945 = vmatprep.subr.bf16.mxu1 %v24264_v40  ;;  %v24331_v40 = vld [vmem:[#allocation5 + $0x3150] ss:$36 sps:$4 sm:$0xff]  }
 0x6eb   :  { %14125 = vmatpush1.bf16.msra.mxu0 %v24265_v55  ;;  %v24334_v55 = vld [vmem:[#allocation5 + $0x30b8] ss:$36 sps:$4 sm:$0xff]  }
 0x6ec   :  { %13946 = vmatpush1.bf16.msra.mxu1 %v24262_v54  ;;  %14126 = vmatprep.subr.bf16.mxu0 %v24273_v49  ;;  %v24339_v54 = vld [vmem:[#allocation5 + $0x319c] ss:$36 sps:$4 sm:$0xff]   ;;  %v24342_v49 = vld [vmem:[#allocation5 + $0x3104] ss:$36 sps:$4 sm:$0xff]  }
 0x6ed   :  { %13947 = vmatprep.subr.bf16.mxu1 %v24270_v63  ;;  %v24337_v63 = vld [vmem:[#allocation5 + $0x3198] ss:$36 sps:$4 sm:$0xff]  }
 0x6ef   :  { %14127 = vmatpush1.bf16.msra.mxu0 %v24271_v41  ;;  %v24340_v41 = vld [vmem:[#allocation5 + $0x3100] ss:$36 sps:$4 sm:$0xff]  }
 0x6f0   :  { %13948 = vmatpush1.bf16.msra.mxu1 %v24268_v26  ;;  %14128 = vmatprep.subr.bf16.mxu0 %v24279_v47  ;;  %v24345_v26 = vld [vmem:[#allocation5 + $0x31e4] ss:$36 sps:$4 sm:$0xff]   ;;  %v24348_v47 = vld [vmem:[#allocation5 + $0x314c] ss:$36 sps:$4 sm:$0xff]  }
 0x6f1   :  { %13958 = vmatprep.subr.bf16.mxu1 %v24276_v1  ;;  %v24343_v1 = vld [vmem:[#allocation5 + $0x31e0] ss:$36 sps:$4 sm:$0xff]  }
 0x6f3   :  { %13950 = vmatmul.mubr.bf16.vlgmr.msra.gmra.mrb[60].mxu1 %v24869_v8  ;;  %14129 = vmatpush1.bf16.msra.mxu0 %v24277_v42  ;;  %v24346_v42 = vld [vmem:[#allocation5 + $0x3148] ss:$36 sps:$4 sm:$0xff]  }
 0x6f4   :  { %13959 = vmatpush1.bf16.msra.mxu1 %v24274_v27  ;;  %14130 = vmatprep.subr.bf16.mxu0 %v24285_v14  ;;  %v24351_v27 = vld [vmem:[#allocation5 + $0x322c] ss:$36 sps:$4 sm:$0xff]   ;;  %v24354_v14 = vld [vmem:[#allocation5 + $0x3194] ss:$36 sps:$4 sm:$0xff]  }
 0x6f5   :  { %13960 = vmatprep.subr.bf16.mxu1 %v24282_v39  ;;  %13990 = vmatprep.mubr.bf16.mxu1 %v24877_v35  ;;  %v24349_v39 = vld [vmem:[#allocation5 + $0x3228] ss:$36 sps:$4 sm:$0xff]  }
 0x6f7   :  { %14131 = vmatpush1.bf16.msra.mxu0 %v24283_v3  ;;  %v24352_v3 = vld [vmem:[#allocation5 + $0x3190] ss:$36 sps:$4 sm:$0xff]  }
 0x6f8   :  { %13961 = vmatpush1.bf16.msra.mxu1 %v24280_v48  ;;  %14132 = vmatprep.subr.bf16.mxu0 %v24291_v56  ;;  %v24357_v48 = vld [vmem:[#allocation5 + $0x3274] ss:$36 sps:$4 sm:$0xff]   ;;  %v24360_v56 = vld [vmem:[#allocation5 + $0x31dc] ss:$36 sps:$4 sm:$0xff]  }
 0x6f9   :  { %13962 = vmatprep.subr.bf16.mxu1 %v24288_v43  ;;  %v24355_v43 = vld [vmem:[#allocation5 + $0x3270] ss:$36 sps:$4 sm:$0xff]  }
 0x6fb   :  { %14133 = vmatpush1.bf16.msra.mxu0 %v24289_v45  ;;  %v24358_v45 = vld [vmem:[#allocation5 + $0x31d8] ss:$36 sps:$4 sm:$0xff]  }
 0x6fc   :  { %13963 = vmatpush1.bf16.msra.mxu1 %v24286_v28  ;;  %14134 = vmatprep.subr.bf16.mxu0 %v24297_v32  ;;  %v24363_v28 = vld [vmem:[#allocation5 + $0x32bc] ss:$36 sps:$4 sm:$0xff]   ;;  %v24366_v32 = vld [vmem:[#allocation5 + $0x3224] ss:$36 sps:$4 sm:$0xff]  }
 0x6fd   :  { %13964 = vmatprep.subr.bf16.mxu1 %v24294_v17  ;;  %v24361_v17 = vld [vmem:[#allocation5 + $0x32b8] ss:$36 sps:$4 sm:$0xff]  }
 0x6ff   :  { %14135 = vmatpush1.bf16.msra.mxu0 %v24295_v5  ;;  %v24364_v5 = vld [vmem:[#allocation5 + $0x3220] ss:$36 sps:$4 sm:$0xff]  }
 0x700   :  { %13965 = vmatpush1.bf16.msra.mxu1 %v24292_v4  ;;  %14136 = vmatprep.subr.bf16.mxu0 %v24303_v34  ;;  %v24369_v4 = vld [vmem:[#allocation5 + $0x3304] ss:$36 sps:$4 sm:$0xff]   ;;  %v24372_v34 = vld [vmem:[#allocation5 + $0x326c] ss:$36 sps:$4 sm:$0xff]  }
 0x701   :  { %13966 = vmatprep.subr.bf16.mxu1 %v24300_v29  ;;  %v24367_v29 = vld [vmem:[#allocation5 + $0x3300] ss:$36 sps:$4 sm:$0xff]  }
 0x703   :  { %14137 = vmatpush1.bf16.msra.mxu0 %v24301_v10  ;;  %v24370_v10 = vld [vmem:[#allocation5 + $0x3268] ss:$36 sps:$4 sm:$0xff]  }
 0x704   :  { %13967 = vmatpush1.bf16.msra.mxu1 %v24298_v7  ;;  %14138 = vmatprep.subr.bf16.mxu0 %v24309_v50  ;;  %v24375_v7 = vld [vmem:[#allocation5 + $0x334c] ss:$36 sps:$4 sm:$0xff]   ;;  %v24378_v50 = vld [vmem:[#allocation5 + $0x32b4] ss:$36 sps:$4 sm:$0xff]  }
 0x705   :  { %13968 = vmatprep.subr.bf16.mxu1 %v24306_v31  ;;  %v24373_v31 = vld [vmem:[#allocation5 + $0x3348] ss:$36 sps:$4 sm:$0xff]  }
 0x707   :  { %14139 = vmatpush1.bf16.msra.mxu0 %v24307_v61  ;;  %v24376_v61 = vld [vmem:[#allocation5 + $0x32b0] ss:$36 sps:$4 sm:$0xff]  }
 0x708   :  { %13969 = vmatpush1.bf16.msra.mxu1 %v24304_v60  ;;  %14140 = vmatprep.subr.bf16.mxu0 %v24315_v57  ;;  %v24381_v60 = vld [vmem:[#allocation5 + $0x3394] ss:$36 sps:$4 sm:$0xff]   ;;  %v24384_v57 = vld [vmem:[#allocation5 + $0x32fc] ss:$36 sps:$4 sm:$0xff]  }
 0x709   :  { %13970 = vmatprep.subr.bf16.mxu1 %v24312_v18  ;;  %v24379_v18 = vld [vmem:[#allocation5 + $0x3390] ss:$36 sps:$4 sm:$0xff]  }
 0x70b   :  { %14141 = vmatpush1.bf16.msra.mxu0 %v24313_v2  ;;  %v24382_v2 = vld [vmem:[#allocation5 + $0x32f8] ss:$36 sps:$4 sm:$0xff]  }
 0x70c   :  { %13971 = vmatpush1.bf16.msra.mxu1 %v24310_v62  ;;  %14142 = vmatprep.subr.bf16.mxu0 %v24321_v11  ;;  %v24387_v62 = vld [vmem:[#allocation5 + $0x33dc] ss:$36 sps:$4 sm:$0xff]   ;;  %v24390_v11 = vld [vmem:[#allocation5 + $0x3344] ss:$36 sps:$4 sm:$0xff]  }
 0x70d   :  { %13972 = vmatprep.subr.bf16.mxu1 %v24318_v58  ;;  %v24385_v58 = vld [vmem:[#allocation5 + $0x33d8] ss:$36 sps:$4 sm:$0xff]  }
 0x70f   :  { %14143 = vmatpush1.bf16.msra.mxu0 %v24319_v21  ;;  %v24388_v21 = vld [vmem:[#allocation5 + $0x3340] ss:$36 sps:$4 sm:$0xff]  }
 0x710   :  { %13973 = vmatpush1.bf16.msra.mxu1 %v24316_v16  ;;  %14144 = vmatprep.subr.bf16.mxu0 %v24327_v24  ;;  %v24393_v16 = vld [vmem:[#allocation5 + $0x3424] ss:$36 sps:$4 sm:$0xff]   ;;  %v24396_v24 = vld [vmem:[#allocation5 + $0x338c] ss:$36 sps:$4 sm:$0xff]  }
 0x711   :  { %13974 = vmatprep.subr.bf16.mxu1 %v24324_v22  ;;  %v24391_v22 = vld [vmem:[#allocation5 + $0x3420] ss:$36 sps:$4 sm:$0xff]  }
 0x713   :  { %14145 = vmatpush1.bf16.msra.mxu0 %v24325_v25  ;;  %v24394_v25 = vld [vmem:[#allocation5 + $0x3388] ss:$36 sps:$4 sm:$0xff]  }
 0x714   :  { %13975 = vmatpush1.bf16.msra.mxu1 %v24322_v46  ;;  %14146 = vmatprep.subr.bf16.mxu0 %v24333_v51  ;;  %v24399_v46 = vld [vmem:[#allocation5 + $0x346c] ss:$36 sps:$4 sm:$0xff]   ;;  %v24402_v51 = vld [vmem:[#allocation5 + $0x33d4] ss:$36 sps:$4 sm:$0xff]  }
 0x715   :  { %13976 = vmatprep.subr.bf16.mxu1 %v24330_v38  ;;  %v24397_v38 = vld [vmem:[#allocation5 + $0x3468] ss:$36 sps:$4 sm:$0xff]  }
 0x717   :  { %14147 = vmatpush1.bf16.msra.mxu0 %v24331_v40  ;;  %v24400_v40 = vld [vmem:[#allocation5 + $0x33d0] ss:$36 sps:$4 sm:$0xff]  }
 0x718   :  { %13977 = vmatpush1.bf16.msra.mxu1 %v24328_v53  ;;  %14148 = vmatprep.subr.bf16.mxu0 %v24339_v54  ;;  %v24405_v53 = vld [vmem:[#allocation5 + $0x34b4] ss:$36 sps:$4 sm:$0xff]   ;;  %v24408_v54 = vld [vmem:[#allocation5 + $0x341c] ss:$36 sps:$4 sm:$0xff]  }
 0x719   :  { %13978 = vmatprep.subr.bf16.mxu1 %v24336_v9  ;;  %v24403_v9 = vld [vmem:[#allocation5 + $0x34b0] ss:$36 sps:$4 sm:$0xff]  }
 0x71b   :  { %14149 = vmatpush1.bf16.msra.mxu0 %v24337_v63  ;;  %v24406_v63 = vld [vmem:[#allocation5 + $0x3418] ss:$36 sps:$4 sm:$0xff]  }
 0x71c   :  { %13979 = vmatpush1.bf16.msra.mxu1 %v24334_v55  ;;  %14150 = vmatprep.subr.bf16.mxu0 %v24345_v26  ;;  %v24411_v55 = vld [vmem:[#allocation5 + $0x34fc] ss:$36 sps:$4 sm:$0xff]   ;;  %v24414_v26 = vld [vmem:[#allocation5 + $0x3464] ss:$36 sps:$4 sm:$0xff]  }
 0x71d   :  { %13980 = vmatprep.subr.bf16.mxu1 %v24342_v49  ;;  %v24409_v49 = vld [vmem:[#allocation5 + $0x34f8] ss:$36 sps:$4 sm:$0xff]  }
 0x71f   :  { %14151 = vmatpush1.bf16.msra.mxu0 %v24343_v1  ;;  %v24412_v1 = vld [vmem:[#allocation5 + $0x3460] ss:$36 sps:$4 sm:$0xff]  }
 0x720   :  { %13981 = vmatpush1.bf16.msra.mxu1 %v24340_v41  ;;  %14152 = vmatprep.subr.bf16.mxu0 %v24351_v27  ;;  %v24417_v41 = vld [vmem:[#allocation5 + $0x3544] ss:$36 sps:$4 sm:$0xff]   ;;  %v24420_v27 = vld [vmem:[#allocation5 + $0x34ac] ss:$36 sps:$4 sm:$0xff]  }
 0x721   :  { %13982 = vmatprep.subr.bf16.mxu1 %v24348_v47  ;;  %v24415_v47 = vld [vmem:[#allocation5 + $0x3540] ss:$36 sps:$4 sm:$0xff]  }
 0x723   :  { %14153 = vmatpush1.bf16.msra.mxu0 %v24349_v39  ;;  %v24418_v39 = vld [vmem:[#allocation5 + $0x34a8] ss:$36 sps:$4 sm:$0xff]  }
 0x724   :  { %13983 = vmatpush1.bf16.msra.mxu1 %v24346_v42  ;;  %14163 = vmatprep.subr.bf16.mxu0 %v24357_v48  ;;  %v24423_v42 = vld [vmem:[#allocation5 + $0x358c] ss:$36 sps:$4 sm:$0xff]   ;;  %v24426_v48 = vld [vmem:[#allocation5 + $0x34f4] ss:$36 sps:$4 sm:$0xff]  }
 0x725   :  { %13984 = vmatprep.subr.bf16.mxu1 %v24354_v14  ;;  %v24421_v14 = vld [vmem:[#allocation5 + $0x3588] ss:$36 sps:$4 sm:$0xff]  }
 0x726   :  { %14155 = vmatmul.mubr.bf16.vlgmr.msra.gmra.mrb[52].mxu0 %v24883_v15 }
 0x727   :  { %14164 = vmatpush1.bf16.msra.mxu0 %v24355_v43  ;;  %14195 = vmatprep.mubr.bf16.mxu0 %v24889_v19  ;;  %v24424_v43 = vld [vmem:[#allocation5 + $0x34f0] ss:$36 sps:$4 sm:$0xff]  }
 0x728   :  { %13985 = vmatpush1.bf16.msra.mxu1 %v24352_v3  ;;  %14165 = vmatprep.subr.bf16.mxu0 %v24363_v28  ;;  %v24429_v3 = vld [vmem:[#allocation5 + $0x35d4] ss:$36 sps:$4 sm:$0xff]   ;;  %v24432_v28 = vld [vmem:[#allocation5 + $0x353c] ss:$36 sps:$4 sm:$0xff]  }
 0x729   :  { %13986 = vmatprep.subr.bf16.mxu1 %v24360_v56  ;;  %v24427_v56 = vld [vmem:[#allocation5 + $0x35d0] ss:$36 sps:$4 sm:$0xff]  }
 0x72b   :  { %14166 = vmatpush1.bf16.msra.mxu0 %v24361_v17  ;;  %v24430_v17 = vld [vmem:[#allocation5 + $0x3538] ss:$36 sps:$4 sm:$0xff]  }
 0x72c   :  { %13987 = vmatpush1.bf16.msra.mxu1 %v24358_v45  ;;  %14167 = vmatprep.subr.bf16.mxu0 %v24369_v4  ;;  %v24435_v45 = vld [vmem:[#allocation5 + $0x361c] ss:$36 sps:$4 sm:$0xff]   ;;  %v24438_v4 = vld [vmem:[#allocation5 + $0x3584] ss:$36 sps:$4 sm:$0xff]  }
 0x72d   :  { %13988 = vmatprep.subr.bf16.mxu1 %v24366_v32  ;;  %v24433_v32 = vld [vmem:[#allocation5 + $0x3618] ss:$36 sps:$4 sm:$0xff]  }
 0x72f   :  { %14168 = vmatpush1.bf16.msra.mxu0 %v24367_v29  ;;  %v24436_v29 = vld [vmem:[#allocation5 + $0x3580] ss:$36 sps:$4 sm:$0xff]  }
 0x730   :  { %13989 = vmatpush1.bf16.msra.mxu1 %v24364_v5  ;;  %14169 = vmatprep.subr.bf16.mxu0 %v24375_v7  ;;  %v24441_v5 = vld [vmem:[#allocation5 + $0x3664] ss:$36 sps:$4 sm:$0xff]   ;;  %v24444_v7 = vld [vmem:[#allocation5 + $0x35cc] ss:$36 sps:$4 sm:$0xff]  }
 0x731   :  { %13999 = vmatprep.subr.bf16.mxu1 %v24372_v34  ;;  %v24439_v34 = vld [vmem:[#allocation5 + $0x3660] ss:$36 sps:$4 sm:$0xff]  }
 0x733   :  { %13991 = vmatmul.mubr.bf16.vlgmr.msra.gmra.mrb[60].mxu1 %v24883_v15  ;;  %14170 = vmatpush1.bf16.msra.mxu0 %v24373_v31  ;;  %v24442_v31 = vld [vmem:[#allocation5 + $0x35c8] ss:$36 sps:$4 sm:$0xff]  }
 0x734   :  { %14000 = vmatpush1.bf16.msra.mxu1 %v24370_v10  ;;  %14171 = vmatprep.subr.bf16.mxu0 %v24381_v60  ;;  %v24447_v10 = vld [vmem:[#allocation5 + $0x36ac] ss:$36 sps:$4 sm:$0xff]   ;;  %v24450_v60 = vld [vmem:[#allocation5 + $0x3614] ss:$36 sps:$4 sm:$0xff]  }
 0x735   :  { %14001 = vmatprep.subr.bf16.mxu1 %v24378_v50  ;;  %14031 = vmatprep.mubr.bf16.mxu1 %v24889_v19  ;;  %v24445_v50 = vld [vmem:[#allocation5 + $0x36a8] ss:$36 sps:$4 sm:$0xff]  }
 0x737   :  { %14172 = vmatpush1.bf16.msra.mxu0 %v24379_v18  ;;  %v24448_v18 = vld [vmem:[#allocation5 + $0x3610] ss:$36 sps:$4 sm:$0xff]  }
 0x738   :  { %14002 = vmatpush1.bf16.msra.mxu1 %v24376_v61  ;;  %14173 = vmatprep.subr.bf16.mxu0 %v24387_v62  ;;  %v24459_v61 = vld [vmem:[#allocation5 + $0x36f4] ss:$36 sps:$4 sm:$0xff]   ;;  %v24453_v62 = vld [vmem:[#allocation5 + $0x365c] ss:$36 sps:$4 sm:$0xff]  }
 0x739   :  { %14003 = vmatprep.subr.bf16.mxu1 %v24384_v57  ;;  %v24457_v57 = vld [vmem:[#allocation5 + $0x36f0] ss:$36 sps:$4 sm:$0xff]  }
 0x73b   :  { %14174 = vmatpush1.bf16.msra.mxu0 %v24385_v58  ;;  %v24451_v58 = vld [vmem:[#allocation5 + $0x3658] ss:$36 sps:$4 sm:$0xff]  }
 0x73c   :  { %14004 = vmatpush1.bf16.msra.mxu1 %v24382_v2  ;;  %14175 = vmatprep.subr.bf16.mxu0 %v24393_v16  ;;  %v24463_v2 = vld [vmem:[#allocation5 + $0x3038] ss:$36 sps:$4 sm:$0xff]   ;;  %v24454_v16 = vld [vmem:[#allocation5 + $0x36a0] ss:$36 sps:$4 sm:$0xff]  }
 0x73d   :  { %14005 = vmatprep.subr.bf16.mxu1 %v24390_v11  ;;  %v24456_v11 = vld [vmem:[#allocation5 + $0x36a4] ss:$36 sps:$4 sm:$0xff]  }
 0x73f   :  { %14176 = vmatpush1.bf16.msra.mxu0 %v24391_v22  ;;  %v24460_v22 = vld [vmem:[#allocation5 + $0x36e8] ss:$36 sps:$4 sm:$0xff]  }
 0x740   :  { %14006 = vmatpush1.bf16.msra.mxu1 %v24388_v21  ;;  %14177 = vmatprep.subr.bf16.mxu0 %v24399_v46  ;;  %v24462_v21 = vld [vmem:[#allocation5 + $0x36ec] ss:$36 sps:$4 sm:$0xff]   ;;  %v24465_v46 = vld [vmem:[#allocation5 + $0x3080] ss:$36 sps:$4 sm:$0xff]  }
 0x741   :  { %14007 = vmatprep.subr.bf16.mxu1 %v24396_v24  ;;  %v24464_v24 = vld [vmem:[#allocation5 + $0x2df8] ss:$36 sps:$4 sm:$0xff]  }
 0x743   :  { %14178 = vmatpush1.bf16.msra.mxu0 %v24397_v38  ;;  %v25185_v38 = vld [vmem:[#allocation2 + $0x18] ss:$0 sps:$4 sm:$0xff]  }
 0x744   :  { %14008 = vmatpush1.bf16.msra.mxu1 %v24394_v25  ;;  %14179 = vmatprep.subr.bf16.mxu0 %v24405_v53  ;;  %v24468_v25 = vld [vmem:[#allocation5 + $0x2bb8] ss:$36 sps:$4 sm:$0xff]   ;;  %v24467_v53 = vld [vmem:[#allocation5 + $0x30c8] ss:$36 sps:$4 sm:$0xff]  }
 0x745   :  { %14009 = vmatprep.subr.bf16.mxu1 %v24402_v51  ;;  %v24466_v51 = vld [vmem:[#allocation5 + $0x2e40] ss:$36 sps:$4 sm:$0xff]  }
 0x747   :  { %14180 = vmatpush1.bf16.msra.mxu0 %v24403_v9  ;;  %v24471_v9 = vld [vmem:[#allocation5 + $0x3110] ss:$36 sps:$4 sm:$0xff]  }
 0x748   :  { %14010 = vmatpush1.bf16.msra.mxu1 %v24400_v40  ;;  %14181 = vmatprep.subr.bf16.mxu0 %v24411_v55  ;;  %v24469_v40 = vld [vmem:[#allocation5 + $0x2e88] ss:$36 sps:$4 sm:$0xff]  }
 0x749   :  { %14011 = vmatprep.subr.bf16.mxu1 %v24408_v54 }
 0x74b   :  { %14182 = vmatpush1.bf16.msra.mxu0 %v24409_v49 }
 0x74c   :  { %14012 = vmatpush1.bf16.msra.mxu1 %v24406_v63  ;;  %14183 = vmatprep.subr.bf16.mxu0 %v24417_v41 }
 0x74d   :  { %14013 = vmatprep.subr.bf16.mxu1 %v24414_v26  ;;  %v24470_v26 = vld [vmem:[#allocation5 + $0x2978] ss:$36 sps:$4 sm:$0xff]  }
 0x74f   :  { %14184 = vmatpush1.bf16.msra.mxu0 %v24415_v47 }
 0x750   :  { %14014 = vmatpush1.bf16.msra.mxu1 %v24412_v1  ;;  %14185 = vmatprep.subr.bf16.mxu0 %v24423_v42  ;;  %v24473_v1 = vld [vmem:[#allocation5 + $0x2ed0] ss:$36 sps:$4 sm:$0xff]   ;;  %v24474_v42 = vld [vmem:[#allocation5 + $0x29c0] ss:$36 sps:$4 sm:$0xff]  }
 0x751   :  { %14015 = vmatprep.subr.bf16.mxu1 %v24420_v27  ;;  %v24475_v27 = vld [vmem:[#allocation5 + $0x3158] ss:$36 sps:$4 sm:$0xff]  }
 0x753   :  { %14186 = vmatpush1.bf16.msra.mxu0 %v24421_v14  ;;  %v24476_v14 = vld [vmem:[#allocation5 + $0x2c48] ss:$36 sps:$4 sm:$0xff]  }
 0x754   :  { %14016 = vmatpush1.bf16.msra.mxu1 %v24418_v39  ;;  %14187 = vmatprep.subr.bf16.mxu0 %v24429_v3  ;;  %v24477_v39 = vld [vmem:[#allocation5 + $0x2f18] ss:$36 sps:$4 sm:$0xff]   ;;  %v24478_v3 = vld [vmem:[#allocation5 + $0x2a08] ss:$36 sps:$4 sm:$0xff]  }
 0x755   :  { %14017 = vmatprep.subr.bf16.mxu1 %v24426_v48  ;;  %v24479_v48 = vld [vmem:[#allocation5 + $0x31a0] ss:$36 sps:$4 sm:$0xff]  }
 0x757   :  { %14188 = vmatpush1.bf16.msra.mxu0 %v24427_v56  ;;  %v14418_v56 = vlaneseq }
 0x758   :  { %14018 = vmatpush1.bf16.msra.mxu1 %v24424_v43  ;;  %14189 = vmatprep.subr.bf16.mxu0 %v24435_v45  ;;  %v24481_v43 = vld [vmem:[#allocation5 + $0x2f60] ss:$36 sps:$4 sm:$0xff]   ;;  %v24483_v45 = vld [vmem:[#allocation5 + $0x31e8] ss:$36 sps:$4 sm:$0xff]  }
 0x759   :  { %14019 = vmatprep.subr.bf16.mxu1 %v24432_v28  ;;  %v24480_v28 = vld [vmem:[#allocation5 + $0x2c90] ss:$36 sps:$4 sm:$0xff]  }
 0x75b   :  { %14190 = vmatpush1.bf16.msra.mxu0 %v24433_v32 }
 0x75c   :  { %14020 = vmatpush1.bf16.msra.mxu1 %v24430_v17  ;;  %14191 = vmatprep.subr.bf16.mxu0 %v24441_v5 }
 0x75d   :  { %14021 = vmatprep.subr.bf16.mxu1 %v24438_v4 }
 0x75f   :  { %14192 = vmatpush1.bf16.msra.mxu0 %v24439_v34  ;;  %v24485_v34 = vld [vmem:[#allocation5 + $0x2fa8] ss:$36 sps:$4 sm:$0xff]  }
 0x760   :  { %14022 = vmatpush1.bf16.msra.mxu1 %v24436_v29  ;;  %14193 = vmatprep.subr.bf16.mxu0 %v24447_v10 }
 0x761   :  { %14023 = vmatprep.subr.bf16.mxu1 %v24444_v7  ;;  %v25207_v7 = vshrl.u32 %v14418_v56, 7 }
 0x763   :  { %14194 = vmatpush1.bf16.msra.mxu0 %v24445_v50  ;;  %v24487_v50 = vld [vmem:[#allocation5 + $0x3230] ss:$36 sps:$4 sm:$0xff]  }
 0x764   :  { %14024 = vmatpush1.bf16.msra.mxu1 %v24442_v31  ;;  %14204 = vmatprep.subr.bf16.mxu0 %v24459_v61  ;;  %v24484_v31 = vld [vmem:[#allocation5 + $0x2cd8] ss:$36 sps:$4 sm:$0xff]  }
 0x765   :  { %14025 = vmatprep.subr.bf16.mxu1 %v24450_v60  ;;  %v14424_v60 = vsub.s32 1, %v25207_v7  ;;  %v24486_v61 = vld [vmem:[#allocation5 + $0x2a98] ss:$36 sps:$4 sm:$0xff]  }
 0x766   :  { %14196 = vmatmul.mubr.bf16.vlgmr.msra.gmra.mrb[52].mxu0 %v24897_v23 }
 0x767   :  { %14205 = vmatpush1.bf16.msra.mxu0 %v24457_v57  ;;  %14236 = vmatprep.mubr.bf16.mxu0 %v24735_v0  ;;  %v25210_v57 = vld [vmem:[#allocation7] sm:$0xff] }
 0x768   :  { %14026 = vmatpush1.bf16.msra.mxu1 %v24448_v18  ;;  %21596 = vmatprep.subr.bf16.mxu0 %v24463_v2  ;;  %v24489_v18 = vld [vmem:[#allocation5 + $0x2ff0] ss:$36 sps:$4 sm:$0xff]  }
 0x769   :  { %14027 = vmatprep.subr.bf16.mxu1 %v24453_v62  ;;  %v14425_v62 = vrot.slane %v25210_v57, %v14424_v60  ;;  %v14490_v2 = vld [vmem:[#allocation8] sm:$0xff] }
 0x76c   :  { %14028 = vmatpush1.bf16.msra.mxu1 %v24451_v58  ;;  %v14494_v58 = vld [vmem:[#allocation8 + $0x20] sm:$0xff] }
 0x76d   :  { %14029 = vmatprep.subr.bf16.mxu1 %v24456_v11  ;;  %v24490_v11 = vld [vmem:[#allocation5 + $0x2ae0] ss:$36 sps:$4 sm:$0xff]  }
 0x770   :  { %14030 = vmatpush1.bf16.msra.mxu1 %v24454_v16  ;;  %v24493_v16 = vld [vmem:[#allocation5 + $0x36f8] ss:$36 sps:$4 sm:$0xff]  }
 0x771   :  { %14040 = vmatprep.subr.bf16.mxu1 %v24462_v21  ;;  %v24491_v21 = vld [vmem:[#allocation5 + $0x2d68] ss:$36 sps:$4 sm:$0xff]  }
 0x772   :  { %20774 = vmatmul.mubr.msk.bf16.vlgmr.msra.gmra.mrb[52].mxu0 %vm2887_vm0, %v25185_v38 }
 0x773   :  { %14032 = vmatmul.mubr.bf16.vlgmr.msra.gmra.mrb[60].mxu1 %v24897_v23  ;;  %21597 = vmatpush3.bf16.msra.mxu0 %v24464_v24 }
 0x774   :  { %14041 = vmatpush1.bf16.msra.mxu1 %v24460_v22  ;;  %21598 = vmatprep.subr.bf16.mxu0 %v24465_v46  ;;  %v20778_v22 = vcombine.high %v14490_v2, %v14494_v58  ;;  %v24492_v46 = vld [vmem:[#allocation5 + $0x2b28] ss:$36 sps:$4 sm:$0xff]  }
 0x775   :  { %14072 = vmatprep.mubr.bf16.mxu1 %v24735_v0  ;;  %21574 = vmatprep.subr.bf16.mxu1 %v24468_v25  ;;  %v24494_v25 = vld [vmem:[#allocation5 + $0x2db0] ss:$36 sps:$4 sm:$0xff]  }
 0x776   :  { %14317 = vmatprep.mubr.bf16.mxu0 %v24877_v35  ;;  %v24472_v35 = vld [vmem:[#allocation5 + $0x2c00] ss:$36 sps:$4 sm:$0xff]  }
 0x777   :  { %21599 = vmatpush3.bf16.msra.mxu0 %v24466_v51 }
 0x778   :  { %21600 = vmatprep.subr.bf16.mxu0 %v24467_v53  ;;  %v14498_v53 = vld [vmem:[#allocation8 + $0x40] sm:$0xff] }
 0x779   :  { %v25191_v54 = vpop.f32.mrb[48].mxu0 }
 0x77a   :  { %v14407_v55 = vmax.f32 %v25110_v33, %v25191_v54  ;;  %v25195_v63 = vpop.f32.mrb[49].mxu0  ;;  %v14758_v33 = vld [vmem:[#allocation8 + $0x860] sm:$0xff] }
 0x77b   :  { %21601 = vmatpush3.bf16.msra.mxu0 %v24469_v40  ;;  %v14408_v49 = vmax.f32 %v25115_v44, %v25195_v63  ;;  %v13914_v41 = vpop.f32.mrb[50].mxu0  ;;  %v14502_v40 = vld [vmem:[#allocation8 + $0x60] sm:$0xff] }
 0x77c   :  { %v13915_v47 = vpop.f32.mrb[51].mxu0  ;;  %21602 = vmatprep.subr.bf16.mxu0 %v24471_v9  ;;  %v24495_v9 = vld [vmem:[#allocation5 + $0x2b70] ss:$36 sps:$4 sm:$0xff]   ;;  %v24496_v41 = vld [vmem:[#allocation5 + $0x34b8] ss:$36 sps:$4 sm:$0xff]  }
 0x77d   :  { %v14506_v47 = vld [vmem:[#allocation8 + $0x80] sm:$0xff] }
 0x77f   :  { %20773 = vmatmul.mubr.msk.bf16.vlgmr.msra.gmra.mrb[60].mxu1 %vm2887_vm0, %v25185_v38  ;;  %21603 = vmatpush3.bf16.msra.mxu0 %v24473_v1  ;;  %v20786_v1 = vcombine.high %v14498_v53, %v14502_v40 }
 0x780   :  { %21575 = vmatpush3.bf16.msra.mxu1 %v24470_v26  ;;  %21604 = vmatprep.subr.bf16.mxu0 %v24475_v27  ;;  %v20777_v26 = vcombine.low %v14490_v2, %v14494_v58  ;;  %v20785_v27 = vcombine.low %v14498_v53, %v14502_v40  ;;  %v24506_v2 = vld [vmem:[#allocation5 + $0x3620] ss:$36 sps:$4 sm:$0xff]   ;;  %v24509_v53 = vld [vmem:[#allocation5 + $0x3428] ss:$36 sps:$4 sm:$0xff]  }
 0x781   :  { %21576 = vmatprep.subr.bf16.mxu1 %v24472_v35  ;;  %14277 = vmatprep.mubr.bf16.mxu1 %v24865_v52  ;;  %v24482_v52 = vld [vmem:[#allocation5 + $0x2a50] ss:$36 sps:$4 sm:$0xff]  }
 0x783   :  { %21605 = vmatpush3.bf16.msra.mxu0 %v24477_v39 }
 0x784   :  { %21577 = vmatpush3.bf16.msra.mxu1 %v24474_v42  ;;  %21606 = vmatprep.subr.bf16.mxu0 %v24479_v48  ;;  %v24498_v42 = vld [vmem:[#allocation5 + $0x3500] ss:$36 sps:$4 sm:$0xff]   ;;  %v14518_v48 = vld [vmem:[#allocation8 + $0xe0] sm:$0xff] }
 0x785   :  { %21578 = vmatprep.subr.bf16.mxu1 %v24476_v14  ;;  %v14514_v14 = vld [vmem:[#allocation8 + $0xc0] sm:$0xff] }
 0x786   :  { %v25202_v17 = vpop.f32.mrb[56].mxu1  ;;  %v20802_v56 = vcombine.high %v14514_v14, %v14518_v48 }
 0x787   :  { %v14405_v32 = vmax.f32 %v25093_v30, %v25202_v17  ;;  %v13748_v4 = vpop.f32.mrb[57].mxu1  ;;  %21607 = vmatpush3.bf16.msra.mxu0 %v24481_v43  ;;  %v14555_v17 = vld [vmem:[#allocation8 + $0x208] sm:$0xff] }
 0x788   :  { %21579 = vmatpush3.bf16.msra.mxu1 %v24478_v3  ;;  %v14406_v5 = vmax.f32 %v25098_v37, %v13748_v4  ;;  %v13750_v29 = vpop.f32.mrb[58].mxu1  ;;  %21608 = vmatprep.subr.bf16.mxu0 %v24483_v45  ;;  %v24488_v37 = vld [vmem:[#allocation5 + $0x2d20] ss:$36 sps:$4 sm:$0xff]   ;;  %v14526_v45 = vld [vmem:[#allocation8 + $0x120] sm:$0xff] }
 0x789   :  { %v13751_v10 = vpop.f32.mrb[59].mxu1  ;;  %21580 = vmatprep.subr.bf16.mxu1 %v24480_v28  ;;  %v24499_v3 = vld [vmem:[#allocation5 + $0x32c0] ss:$36 sps:$4 sm:$0xff]   ;;  %v14522_v28 = vld [vmem:[#allocation8 + $0x100] sm:$0xff] }
 0x78a   :  { %v14464_v24 = vadd.f32 %v14425_v62, %v14406_v5  ;;  %v24501_v4 = vld [vmem:[#allocation5 + $0x3308] ss:$36 sps:$4 sm:$0xff]   ;;  %v20801_v5 = vcombine.low %v14514_v14, %v14518_v48  ;;  %v24502_v29 = vld [vmem:[#allocation5 + $0x3590] ss:$36 sps:$4 sm:$0xff]  }
 0x78b   :  { %21609 = vmatpush3.bf16.msra.mxu0 %v24485_v34  ;;  %v14534_v34 = vld [vmem:[#allocation8 + $0x160] sm:$0xff]  ;;  %v14499_v14 = vld [vmem:[#allocation8 + $0x48] sm:$0xff] }
 0x78c   :  { %21581 = vmatpush3.bf16.msra.mxu1 %v24482_v52  ;;  %21610 = vmatprep.subr.bf16.mxu0 %v24487_v50  ;;  %v14473_v51 = vmax.f32 %v14464_v24, 0.0  ;;  %v14530_v52 = vld [vmem:[#allocation8 + $0x140] sm:$0xff]  ;;  %v24504_v50 = vld [vmem:[#allocation5 + $0x35d8] ss:$36 sps:$4 sm:$0xff]  }
 0x78d   :  { %21582 = vmatprep.subr.bf16.mxu1 %v24484_v31  ;;  %v24503_v10 = vld [vmem:[#allocation5 + $0x3350] ss:$36 sps:$4 sm:$0xff]   ;;  %v20809_v31 = vcombine.low %v14522_v28, %v14526_v45  ;;  %v20817_v62 = vcombine.low %v14530_v52, %v14534_v34  ;;  %v24508_v24 = vld [vmem:[#allocation5 + $0x3668] ss:$36 sps:$4 sm:$0xff]  }
 0x78e   :  { %v25219_v35 = vpack.c.bf16 %v14473_v51, %v14473_v51  ;;  %v14558_v51 = vld [vmem:[#allocation8 + $0x220] sm:$0xff]  ;;  %v14503_v48 = vld [vmem:[#allocation8 + $0x68] sm:$0xff] }
 0x78f   :  { %21611 = vmatpush3.bf16.msra.mxu0 %v24489_v18  ;;  %v14538_v18 = vld [vmem:[#allocation8 + $0x180] sm:$0xff] }
 0x790   :  { %21583 = vmatpush3.bf16.msra.mxu1 %v24486_v61  ;;  %21682 = vmatprep.subr.bf16.mxu0 %v24736_v13  ;;  %v20818_v61 = vcombine.high %v14530_v52, %v14534_v34  ;;  %v20787_v52 = vcombine.low %v14499_v14, %v14503_v48 }
 0x791   :  { %21584 = vmatprep.subr.bf16.mxu1 %v24488_v37  ;;  %v24505_v37 = vld [vmem:[#allocation5 + $0x3398] ss:$36 sps:$4 sm:$0xff]  }
 0x792   :  { %14318 = vmatmul.mubr.bf16.vlgmr.msra.gmra.mrb[56].mxu0 %v24883_v15  ;;  %v14510_v15 = vld [vmem:[#allocation8 + $0xa0] sm:$0xff] }
 0x793   :  { %21683 = vmatpush3.bf16.msra.mxu0 %v24493_v16  ;;  %21684 = vmatprep.mubr.msk.bf16.mxu0 %vm24737_vm1, %v24736_v13  ;;  %v24497_v13 = vld [vmem:[#allocation5 + $0x3278] ss:$36 sps:$4 sm:$0xff]   ;;  %v20794_v39 = vcombine.high %v14506_v47, %v14510_v15  ;;  %v20793_v43 = vcombine.low %v14506_v47, %v14510_v15  ;;  %v14550_v16 = vld [vmem:[#allocation8 + $0x1e0] sm:$0xff] }
 0x794   :  { %21585 = vmatpush3.bf16.msra.mxu1 %v24490_v11  ;;  %17946 = vmatprep.subr.bf16.mxu0 %v20778_v22  ;;  %v14546_v11 = vld [vmem:[#allocation8 + $0x1c0] sm:$0xff] }
 0x795   :  { %21586 = vmatprep.subr.bf16.mxu1 %v24491_v21  ;;  %v24507_v21 = vld [vmem:[#allocation5 + $0x33e0] ss:$36 sps:$4 sm:$0xff]   ;;  %v20833_v40 = vcombine.low %v14546_v11, %v14550_v16  ;;  %v14562_v47 = vld [vmem:[#allocation8 + $0x240] sm:$0xff] }
 0x796   :  { %v14566_v15 = vld [vmem:[#allocation8 + $0x260] sm:$0xff] }
 0x798   :  { %21587 = vmatpush3.bf16.msra.mxu1 %v24492_v46  ;;  %v20834_v46 = vcombine.high %v14546_v11, %v14550_v16  ;;  %v14527_v11 = vld [vmem:[#allocation8 + $0x128] sm:$0xff]  ;;  %v14594_v16 = vld [vmem:[#allocation8 + $0x340] sm:$0xff] }
 0x799   :  { %21588 = vmatprep.subr.bf16.mxu1 %v24494_v25  ;;  %v14554_v25 = vld [vmem:[#allocation8 + $0x200] sm:$0xff] }
 0x79a   :  { %21685 = vmatmul.mubr.msk.bf16.vlgmr.msra.gmra.mrb[60].mxu0 %vm2887_vm0, %v25185_v38  ;;  %v24500_v38 = vld [vmem:[#allocation5 + $0x3548] ss:$36 sps:$4 sm:$0xff]  }
 0x79b   :  { %17947 = vmatpush1.bf16.msra.mxu0 %v20777_v26  ;;  %17978 = vmatprep.mubr.bf16.mxu0 %v25219_v35  ;;  %v20842_v26 = vcombine.high %v14554_v25, %v14558_v51 }
 0x79c   :  { %21589 = vmatpush3.bf16.msra.mxu1 %v24495_v9  ;;  %17948 = vmatprep.subr.bf16.mxu0 %v20786_v1  ;;  %v24510_v9 = vld [vmem:[#allocation5 + $0x36b0] ss:$36 sps:$4 sm:$0xff]  }
 0x79d   :  { %21618 = vmatprep.subr.bf16.mxu1 %v24496_v41  ;;  %v14491_v41 = vld [vmem:[#allocation8 + $0x8] sm:$0xff] }
 0x79e   :  { %v14495_v1 = vld [vmem:[#allocation8 + $0x28] sm:$0xff] }
 0x79f   :  { %14278 = vmatmul.mubr.bf16.vlgmr.msra.gmra.mrb[64].mxu1 %v24869_v8  ;;  %17949 = vmatpush1.bf16.msra.mxu0 %v20785_v27  ;;  %v20810_v8 = vcombine.high %v14522_v28, %v14526_v45  ;;  %v20841_v27 = vcombine.low %v14554_v25, %v14558_v51  ;;  %v20788_v28 = vcombine.high %v14499_v14, %v14503_v48  ;;  %v14420_v25 = vsub.s32 0, %v25207_v7  ;;  %v14610_v48 = vld [vmem:[#allocation8 + $0x3c0] sm:$0xff] }
 0x7a0   :  { %21619 = vmatpush3.bf16.msra.mxu1 %v24497_v13  ;;  %17950 = vmatprep.subr.bf16.mxu0 %v20794_v39  ;;  %v24511_v13 = vld [vmem:[#allocation5 + $0x3470] ss:$36 sps:$4 sm:$0xff]   ;;  %v20850_v39 = vcombine.high %v14562_v47, %v14566_v15 }
 0x7a1   :  { %21620 = vmatprep.subr.bf16.mxu1 %v24498_v42  ;;  %14357 = vmatprep.mubr.bf16.mxu1 %v24889_v19  ;;  %v14542_v19 = vld [vmem:[#allocation8 + $0x1a0] sm:$0xff]  ;;  %v20780_v42 = vcombine.high %v14491_v41, %v14495_v1 }
 0x7a2   :  { %v20826_v58 = vcombine.high %v14538_v18, %v14542_v19  ;;  %v20825_v22 = vcombine.low %v14538_v18, %v14542_v19  ;;  %v14586_v18 = vld [vmem:[#allocation8 + $0x300] sm:$0xff] }
 0x7a3   :  { %17951 = vmatpush1.bf16.msra.mxu0 %v20793_v43  ;;  %v14574_v43 = vld [vmem:[#allocation8 + $0x2a0] sm:$0xff] }
 0x7a4   :  { %21621 = vmatpush3.bf16.msra.mxu1 %v24499_v3  ;;  %17952 = vmatprep.subr.bf16.mxu0 %v20802_v56  ;;  %v14570_v3 = vld [vmem:[#allocation8 + $0x280] sm:$0xff]  ;;  %v20849_v56 = vcombine.low %v14562_v47, %v14566_v15 }
 0x7a5   :  { %21622 = vmatprep.subr.bf16.mxu1 %v24500_v38  ;;  %v20779_v38 = vcombine.low %v14491_v41, %v14495_v1  ;;  %v20858_v45 = vcombine.high %v14570_v3, %v14574_v43  ;;  %v20857_v34 = vcombine.low %v14570_v3, %v14574_v43  ;;  %v14590_v19 = vld [vmem:[#allocation8 + $0x320] sm:$0xff] }
 0x7a6   :  { %v14606_v41 = vld [vmem:[#allocation8 + $0x3a0] sm:$0xff] }
 0x7a7   :  { %17953 = vmatpush1.bf16.msra.mxu0 %v20801_v5  ;;  %v14511_v5 = vld [vmem:[#allocation8 + $0xa8] sm:$0xff]  ;;  %v14614_v3 = vld [vmem:[#allocation8 + $0x3e0] sm:$0xff] }
 0x7a8   :  { %21623 = vmatpush3.bf16.msra.mxu1 %v24501_v4  ;;  %17954 = vmatprep.subr.bf16.mxu0 %v20810_v8  ;;  %v14507_v4 = vld [vmem:[#allocation8 + $0x88] sm:$0xff]  ;;  %v14582_v8 = vld [vmem:[#allocation8 + $0x2e0] sm:$0xff] }
 0x7a9   :  { %21624 = vmatprep.subr.bf16.mxu1 %v24502_v29  ;;  %v14578_v29 = vld [vmem:[#allocation8 + $0x2c0] sm:$0xff] }
 0x7ab   :  { %17955 = vmatpush1.bf16.msra.mxu0 %v20809_v31  ;;  %v20866_v31 = vcombine.high %v14578_v29, %v14582_v8 }
 0x7ac   :  { %21625 = vmatpush3.bf16.msra.mxu1 %v24503_v10  ;;  %17956 = vmatprep.subr.bf16.mxu0 %v20818_v61  ;;  %v20796_v10 = vcombine.high %v14507_v4, %v14511_v5  ;;  %v14519_v61 = vld [vmem:[#allocation8 + $0xe8] sm:$0xff] }
 0x7ad   :  { %21626 = vmatprep.subr.bf16.mxu1 %v24504_v50  ;;  %v14515_v50 = vld [vmem:[#allocation8 + $0xc8] sm:$0xff] }
 0x7af   :  { %17957 = vmatpush1.bf16.msra.mxu0 %v20817_v62  ;;  %v20804_v62 = vcombine.high %v14515_v50, %v14519_v61 }
 0x7b0   :  { %21627 = vmatpush3.bf16.msra.mxu1 %v24505_v37  ;;  %17958 = vmatprep.subr.bf16.mxu0 %v20826_v58  ;;  %v20795_v37 = vcombine.low %v14507_v4, %v14511_v5  ;;  %v14523_v58 = vld [vmem:[#allocation8 + $0x108] sm:$0xff] }
 0x7b1   :  { %21628 = vmatprep.subr.bf16.mxu1 %v24506_v2  ;;  %v20874_v2 = vcombine.high %v14586_v18, %v14590_v19  ;;  %v20811_v1 = vcombine.low %v14523_v58, %v14527_v11  ;;  %v14547_v4 = vld [vmem:[#allocation8 + $0x1c8] sm:$0xff] }
 0x7b2   :  { %v14551_v5 = vld [vmem:[#allocation8 + $0x1e8] sm:$0xff] }
 0x7b3   :  { %17959 = vmatpush1.bf16.msra.mxu0 %v20825_v22  ;;  %v20803_v22 = vcombine.low %v14515_v50, %v14519_v61  ;;  %v14559_v61 = vld [vmem:[#allocation8 + $0x228] sm:$0xff] }
 0x7b4   :  { %21629 = vmatpush3.bf16.msra.mxu1 %v24507_v21  ;;  %17960 = vmatprep.subr.bf16.mxu0 %v20834_v46  ;;  %v14598_v21 = vld [vmem:[#allocation8 + $0x360] sm:$0xff]  ;;  %v20812_v46 = vcombine.high %v14523_v58, %v14527_v11 }
 0x7b5   :  { %21630 = vmatprep.subr.bf16.mxu1 %v24508_v24  ;;  %v20873_v24 = vcombine.low %v14586_v18, %v14590_v19  ;;  %v20882_v51 = vcombine.high %v14594_v16, %v14598_v21  ;;  %v20881_v47 = vcombine.low %v14594_v16, %v14598_v21  ;;  %v14626_v18 = vld [vmem:[#allocation8 + $0x440] sm:$0xff]  ;;  %v20843_v21 = vcombine.low %v14555_v17, %v14559_v61 }
 0x7b6   :  { %v14630_v19 = vld [vmem:[#allocation8 + $0x460] sm:$0xff] }
 0x7b7   :  { %17961 = vmatpush1.bf16.msra.mxu0 %v20833_v40  ;;  %v14535_v40 = vld [vmem:[#allocation8 + $0x168] sm:$0xff]  ;;  %v14634_v11 = vld [vmem:[#allocation8 + $0x480] sm:$0xff] }
 0x7b8   :  { %21631 = vmatpush3.bf16.msra.mxu1 %v24509_v53  ;;  %17962 = vmatprep.subr.bf16.mxu0 %v20842_v26  ;;  %v14531_v53 = vld [vmem:[#allocation8 + $0x148] sm:$0xff]  ;;  %v14602_v26 = vld [vmem:[#allocation8 + $0x380] sm:$0xff] }
 0x7b9   :  { %21632 = vmatprep.subr.bf16.mxu1 %v24510_v9  ;;  %v14432_v9 = vsub.s32 3, %v25207_v7  ;;  %v20820_v15 = vcombine.high %v14531_v53, %v14535_v40  ;;  %v20819_v43 = vcombine.low %v14531_v53, %v14535_v40  ;;  %v14638_v16 = vld [vmem:[#allocation8 + $0x4a0] sm:$0xff]  ;;  %v14575_v53 = vld [vmem:[#allocation8 + $0x2a8] sm:$0xff] }
 0x7ba   :  { %v14642_v40 = vld [vmem:[#allocation8 + $0x4c0] sm:$0xff] }
 0x7bb   :  { %17963 = vmatpush1.bf16.msra.mxu0 %v20841_v27  ;;  %v20890_v27 = vcombine.high %v14602_v26, %v14606_v41  ;;  %v14433_v14 = vrot.slane %v25210_v57, %v14432_v9  ;;  %v14646_v9 = vld [vmem:[#allocation8 + $0x4e0] sm:$0xff] }
 0x7bc   :  { %21633 = vmatpush3.bf16.msra.mxu1 %v24511_v13  ;;  %17964 = vmatprep.subr.bf16.mxu0 %v20850_v39  ;;  %v14421_v13 = vrot.slane %v25210_v57, %v14420_v25  ;;  %v14543_v39 = vld [vmem:[#allocation8 + $0x1a8] sm:$0xff] }
 0x7bd   :  { %18151 = vmatprep.subr.bf16.mxu1 %v20780_v42  ;;  %v14539_v42 = vld [vmem:[#allocation8 + $0x188] sm:$0xff] }
 0x7bf   :  { %14358 = vmatmul.mubr.bf16.vlgmr.msra.gmra.mrb[68].mxu1 %v24897_v23  ;;  %17965 = vmatpush1.bf16.msra.mxu0 %v20849_v56  ;;  %v20865_v23 = vcombine.low %v14578_v29, %v14582_v8  ;;  %v20828_v56 = vcombine.high %v14539_v42, %v14543_v39  ;;  %v14466_v29 = vadd.f32 %v14433_v14, %v14408_v49  ;;  %v14618_v8 = vld [vmem:[#allocation8 + $0x400] sm:$0xff] }
 0x7c0   :  { %18152 = vmatpush1.bf16.msra.mxu1 %v20779_v38  ;;  %18183 = vmatprep.mubr.bf16.mxu1 %v25219_v35  ;;  %v20889_v38 = vcombine.low %v14602_v26, %v14606_v41  ;;  %v20844_v49 = vcombine.high %v14555_v17, %v14559_v61  ;;  %v20921_v41 = vcombine.low %v14634_v11, %v14638_v16  ;;  %v14607_v61 = vld [vmem:[#allocation8 + $0x3a8] sm:$0xff] }
 0x7c1   :  { %18153 = vmatprep.subr.bf16.mxu1 %v20788_v28  ;;  %17966 = vmatprep.subr.bf16.mxu0 %v20858_v45  ;;  %v14463_v28 = vadd.f32 %v14421_v13, %v14405_v32  ;;  %v20898_v45 = vcombine.high %v14610_v48, %v14614_v3  ;;  %v14475_v32 = vmax.f32 %v14466_v29, 0.0  ;;  %v14583_v13 = vld [vmem:[#allocation8 + $0x2e8] sm:$0xff]  ;;  %v20929_v14 = vcombine.low %v14642_v40, %v14646_v9 }
 0x7c3   :  { %17967 = vmatpush1.bf16.msra.mxu0 %v20857_v34  ;;  %v20827_v34 = vcombine.low %v14539_v42, %v14543_v39  ;;  %v14472_v50 = vmax.f32 %v14463_v28, 0.0  ;;  %v25242_v58 = vpack.c.bf16 %v14475_v32, %v14475_v32  ;;  %v14654_v42 = vld [vmem:[#allocation8 + $0x520] sm:$0xff]  ;;  %v14603_v32 = vld [vmem:[#allocation8 + $0x388] sm:$0xff] }
 0x7c4   :  { %18154 = vmatpush1.bf16.msra.mxu1 %v20787_v52  ;;  %17968 = vmatprep.subr.bf16.mxu0 %v20866_v31  ;;  %v14622_v52 = vld [vmem:[#allocation8 + $0x420] sm:$0xff]  ;;  %v20836_v31 = vcombine.high %v14547_v4, %v14551_v5 }
 0x7c5   :  { %18155 = vmatprep.subr.bf16.mxu1 %v20796_v10  ;;  %v20897_v10 = vcombine.low %v14610_v48, %v14614_v3  ;;  %v20906_v30 = vcombine.high %v14618_v8, %v14622_v52  ;;  %v20905_v44 = vcombine.low %v14618_v8, %v14622_v52  ;;  %v25240_v63 = vpack.c.bf16 %v14472_v50, %v14472_v50  ;;  %v14662_v28 = vld [vmem:[#allocation8 + $0x560] sm:$0xff]  ;;  %v14595_v8 = vld [vmem:[#allocation8 + $0x348] sm:$0xff] }
 0x7c6   :  { %v14599_v52 = vld [vmem:[#allocation8 + $0x368] sm:$0xff] }
 0x7c7   :  { %17969 = vmatpush1.bf16.msra.mxu0 %v20865_v23  ;;  %v20914_v23 = vcombine.high %v14626_v18, %v14630_v19 }
 0x7c8   :  { %18156 = vmatpush1.bf16.msra.mxu1 %v20795_v37  ;;  %17970 = vmatprep.subr.bf16.mxu0 %v20874_v2  ;;  %v20835_v37 = vcombine.low %v14547_v4, %v14551_v5  ;;  %v14567_v2 = vld [vmem:[#allocation8 + $0x268] sm:$0xff] }
 0x7c9   :  { %18157 = vmatprep.subr.bf16.mxu1 %v20804_v62  ;;  %v14563_v62 = vld [vmem:[#allocation8 + $0x248] sm:$0xff] }
 0x7ca   :  { %v20851_v26 = vcombine.low %v14563_v62, %v14567_v2 }
 0x7cb   :  { %17971 = vmatpush1.bf16.msra.mxu0 %v20873_v24  ;;  %v20852_v24 = vcombine.high %v14563_v62, %v14567_v2  ;;  %v14611_v62 = vld [vmem:[#allocation8 + $0x3c8] sm:$0xff] }
 0x7cc   :  { %18158 = vmatpush1.bf16.msra.mxu1 %v20803_v22  ;;  %17972 = vmatprep.subr.bf16.mxu0 %v20882_v51  ;;  %v20913_v22 = vcombine.low %v14626_v18, %v14630_v19  ;;  %v14571_v51 = vld [vmem:[#allocation8 + $0x288] sm:$0xff]  ;;  %v14674_v18 = vld [vmem:[#allocation8 + $0x5c0] sm:$0xff] }
 0x7cd   :  { %18159 = vmatprep.subr.bf16.mxu1 %v20812_v46  ;;  %v20922_v46 = vcombine.high %v14634_v11, %v14638_v16  ;;  %v20859_v39 = vcombine.low %v14571_v51, %v14575_v53  ;;  %v14678_v19 = vld [vmem:[#allocation8 + $0x5e0] sm:$0xff]  ;;  %v14615_v2 = vld [vmem:[#allocation8 + $0x3e8] sm:$0xff] }
 0x7ce   :  { %v14682_v11 = vld [vmem:[#allocation8 + $0x600] sm:$0xff] }
 0x7cf   :  { %17973 = vmatpush1.bf16.msra.mxu0 %v20881_v47  ;;  %v20930_v47 = vcombine.high %v14642_v40, %v14646_v9  ;;  %v14686_v16 = vld [vmem:[#allocation8 + $0x620] sm:$0xff] }
 0x7d0   :  { %18160 = vmatpush1.bf16.msra.mxu1 %v20811_v1  ;;  %17974 = vmatprep.subr.bf16.mxu0 %v20890_v27  ;;  %v20860_v1 = vcombine.high %v14571_v51, %v14575_v53  ;;  %v14650_v27 = vld [vmem:[#allocation8 + $0x500] sm:$0xff]  ;;  %v14619_v51 = vld [vmem:[#allocation8 + $0x408] sm:$0xff] }
 0x7d1   :  { %18161 = vmatprep.subr.bf16.mxu1 %v20820_v15  ;;  %v14579_v15 = vld [vmem:[#allocation8 + $0x2c8] sm:$0xff]  ;;  %v20938_v3 = vcombine.high %v14650_v27, %v14654_v42  ;;  %v20937_v4 = vcombine.low %v14650_v27, %v14654_v42  ;;  %v14690_v40 = vld [vmem:[#allocation8 + $0x640] sm:$0xff] }
 0x7d2   :  { %v20868_v48 = vcombine.high %v14579_v15, %v14583_v13  ;;  %v14623_v53 = vld [vmem:[#allocation8 + $0x428] sm:$0xff]  ;;  %v14694_v9 = vld [vmem:[#allocation8 + $0x660] sm:$0xff] }
 0x7d3   :  { %17975 = vmatpush1.bf16.msra.mxu0 %v20889_v38  ;;  %v14591_v38 = vld [vmem:[#allocation8 + $0x328] sm:$0xff]  ;;  %v14698_v27 = vld [vmem:[#allocation8 + $0x680] sm:$0xff] }
 0x7d4   :  { %18162 = vmatpush1.bf16.msra.mxu1 %v20819_v43  ;;  %17976 = vmatprep.subr.bf16.mxu0 %v20898_v45  ;;  %v14587_v43 = vld [vmem:[#allocation8 + $0x308] sm:$0xff]  ;;  %v20867_v45 = vcombine.low %v14579_v15, %v14583_v13  ;;  %v14702_v42 = vld [vmem:[#allocation8 + $0x6a0] sm:$0xff] }
 0x7d5   :  { %18163 = vmatprep.subr.bf16.mxu1 %v20828_v56  ;;  %v14658_v56 = vld [vmem:[#allocation8 + $0x540] sm:$0xff]  ;;  %v20876_v5 = vcombine.high %v14587_v43, %v14591_v38  ;;  %v14627_v15 = vld [vmem:[#allocation8 + $0x448] sm:$0xff] }
 0x7d6   :  { %v20946_v29 = vcombine.high %v14658_v56, %v14662_v28  ;;  %v20945_v50 = vcombine.low %v14658_v56, %v14662_v28  ;;  %v14631_v13 = vld [vmem:[#allocation8 + $0x468] sm:$0xff]  ;;  %v14706_v56 = vld [vmem:[#allocation8 + $0x6c0] sm:$0xff] }
 0x7d7   :  { %17977 = vmatpush1.bf16.msra.mxu0 %v20897_v10  ;;  %v14670_v10 = vld [vmem:[#allocation8 + $0x5a0] sm:$0xff] }
 0x7d8   :  { %18164 = vmatpush1.bf16.msra.mxu1 %v20827_v34  ;;  %17987 = vmatprep.subr.bf16.mxu0 %v20906_v30  ;;  %v14666_v34 = vld [vmem:[#allocation8 + $0x580] sm:$0xff]  ;;  %v20884_v30 = vcombine.high %v14595_v8, %v14599_v52 }
 0x7d9   :  { %18165 = vmatprep.subr.bf16.mxu1 %v20836_v31  ;;  %v20875_v31 = vcombine.low %v14587_v43, %v14591_v38  ;;  %v20954_v17 = vcombine.high %v14666_v34, %v14670_v10  ;;  %v14635_v43 = vld [vmem:[#allocation8 + $0x488] sm:$0xff]  ;;  %v14710_v28 = vld [vmem:[#allocation8 + $0x6e0] sm:$0xff] }
 0x7da   :  { %17979 = vmatmul.mubr.bf16.vlgmr.msra.gmra.mrb[64].mxu0 %v25240_v63  ;;  %v14639_v38 = vld [vmem:[#allocation8 + $0x4a8] sm:$0xff] }
 0x7db   :  { %17988 = vmatpush1.bf16.msra.mxu0 %v20905_v44  ;;  %18019 = vmatprep.mubr.bf16.mxu0 %v25242_v58  ;;  %v20953_v44 = vcombine.low %v14666_v34, %v14670_v10  ;;  %v14714_v34 = vld [vmem:[#allocation8 + $0x700] sm:$0xff] }
 0x7dc   :  { %18166 = vmatpush1.bf16.msra.mxu1 %v20835_v37  ;;  %17989 = vmatprep.subr.bf16.mxu0 %v20914_v23  ;;  %v20883_v37 = vcombine.low %v14595_v8, %v14599_v52  ;;  %v20962_v23 = vcombine.high %v14674_v18, %v14678_v19  ;;  %v14643_v8 = vld [vmem:[#allocation8 + $0x4c8] sm:$0xff]  ;;  %v14718_v10 = vld [vmem:[#allocation8 + $0x720] sm:$0xff] }
 0x7dd   :  { %18167 = vmatprep.subr.bf16.mxu1 %v20844_v49  ;;  %v20892_v49 = vcombine.high %v14603_v32, %v14607_v61  ;;  %v14647_v52 = vld [vmem:[#allocation8 + $0x4e8] sm:$0xff] }
 0x7df   :  { %17990 = vmatpush1.bf16.msra.mxu0 %v20913_v22  ;;  %v20961_v22 = vcombine.low %v14674_v18, %v14678_v19  ;;  %v14722_v18 = vld [vmem:[#allocation8 + $0x740] sm:$0xff] }
 0x7e0   :  { %18168 = vmatpush1.bf16.msra.mxu1 %v20843_v21  ;;  %17991 = vmatprep.subr.bf16.mxu0 %v20922_v46  ;;  %v20891_v21 = vcombine.low %v14603_v32, %v14607_v61  ;;  %v20970_v46 = vcombine.high %v14682_v11, %v14686_v16  ;;  %v14651_v32 = vld [vmem:[#allocation8 + $0x508] sm:$0xff]  ;;  %v14726_v19 = vld [vmem:[#allocation8 + $0x760] sm:$0xff] }
 0x7e1   :  { %18169 = vmatprep.subr.bf16.mxu1 %v20852_v24  ;;  %v20900_v24 = vcombine.high %v14611_v62, %v14615_v2  ;;  %v14655_v61 = vld [vmem:[#allocation8 + $0x528] sm:$0xff] }
 0x7e3   :  { %17992 = vmatpush1.bf16.msra.mxu0 %v20921_v41  ;;  %v20969_v41 = vcombine.low %v14682_v11, %v14686_v16  ;;  %v14663_v11 = vld [vmem:[#allocation8 + $0x568] sm:$0xff]  ;;  %v14730_v16 = vld [vmem:[#allocation8 + $0x780] sm:$0xff] }
 0x7e4   :  { %18170 = vmatpush1.bf16.msra.mxu1 %v20851_v26  ;;  %17993 = vmatprep.subr.bf16.mxu0 %v20930_v47  ;;  %v20899_v26 = vcombine.low %v14611_v62, %v14615_v2  ;;  %v20978_v47 = vcombine.high %v14690_v40, %v14694_v9  ;;  %v21010_v62 = vcombine.high %v14722_v18, %v14726_v19  ;;  %v14659_v2 = vld [vmem:[#allocation8 + $0x548] sm:$0xff] }
 0x7e5   :  { %18171 = vmatprep.subr.bf16.mxu1 %v20860_v1  ;;  %v20908_v1 = vcombine.high %v14619_v51, %v14623_v53 }
 0x7e7   :  { %17994 = vmatpush1.bf16.msra.mxu0 %v20929_v14  ;;  %v20977_v14 = vcombine.low %v14690_v40, %v14694_v9  ;;  %v14667_v40 = vld [vmem:[#allocation8 + $0x588] sm:$0xff] }
 0x7e8   :  { %18172 = vmatpush1.bf16.msra.mxu1 %v20859_v39  ;;  %17995 = vmatprep.subr.bf16.mxu0 %v20938_v3  ;;  %v20907_v39 = vcombine.low %v14619_v51, %v14623_v53  ;;  %v20986_v3 = vcombine.high %v14698_v27, %v14702_v42  ;;  %v14671_v9 = vld [vmem:[#allocation8 + $0x5a8] sm:$0xff] }
 0x7e9   :  { %18173 = vmatprep.subr.bf16.mxu1 %v20868_v48  ;;  %v20916_v48 = vcombine.high %v14627_v15, %v14631_v13 }
 0x7eb   :  { %17996 = vmatpush1.bf16.msra.mxu0 %v20937_v4  ;;  %v20985_v4 = vcombine.low %v14698_v27, %v14702_v42  ;;  %v14675_v42 = vld [vmem:[#allocation8 + $0x5c8] sm:$0xff] }
 0x7ec   :  { %18174 = vmatpush1.bf16.msra.mxu1 %v20867_v45  ;;  %17997 = vmatprep.subr.bf16.mxu0 %v20946_v29  ;;  %v20915_v45 = vcombine.low %v14627_v15, %v14631_v13  ;;  %v20994_v29 = vcombine.high %v14706_v56, %v14710_v28  ;;  %v20956_v15 = vcombine.high %v14667_v40, %v14671_v9 }
 0x7ed   :  { %18175 = vmatprep.subr.bf16.mxu1 %v20876_v5  ;;  %v20924_v5 = vcombine.high %v14635_v43, %v14639_v38 }
 0x7ef   :  { %17998 = vmatpush1.bf16.msra.mxu0 %v20945_v50  ;;  %v20993_v50 = vcombine.low %v14706_v56, %v14710_v28  ;;  %v14683_v28 = vld [vmem:[#allocation8 + $0x608] sm:$0xff] }
 0x7f0   :  { %18176 = vmatpush1.bf16.msra.mxu1 %v20875_v31  ;;  %17999 = vmatprep.subr.bf16.mxu0 %v20954_v17  ;;  %v20923_v31 = vcombine.low %v14635_v43, %v14639_v38  ;;  %v21002_v17 = vcombine.high %v14714_v34, %v14718_v10 }
 0x7f1   :  { %18177 = vmatprep.subr.bf16.mxu1 %v20884_v30  ;;  %v20932_v30 = vcombine.high %v14643_v8, %v14647_v52 }
 0x7f3   :  { %18000 = vmatpush1.bf16.msra.mxu0 %v20953_v44  ;;  %v21001_v44 = vcombine.low %v14714_v34, %v14718_v10  ;;  %v14695_v34 = vld [vmem:[#allocation8 + $0x668] sm:$0xff]  ;;  %v14762_v10 = vld [vmem:[#allocation8 + $0x880] sm:$0xff] }
 0x7f4   :  { %18178 = vmatpush1.bf16.msra.mxu1 %v20883_v37  ;;  %18001 = vmatprep.subr.bf16.mxu0 %v20962_v23  ;;  %v20931_v37 = vcombine.low %v14643_v8, %v14647_v52  ;;  %v14428_v23 = vsub.s32 2, %v25207_v7  ;;  %v14691_v52 = vld [vmem:[#allocation8 + $0x648] sm:$0xff] }
 0x7f5   :  { %18179 = vmatprep.subr.bf16.mxu1 %v20892_v49  ;;  %v20940_v49 = vcombine.high %v14651_v32, %v14655_v61 }
 0x7f6   :  { %v14429_v51 = vrot.slane %v25210_v57, %v14428_v23  ;;  %v14679_v57 = vld [vmem:[#allocation8 + $0x5e8] sm:$0xff] }
 0x7f7   :  { %18002 = vmatpush1.bf16.msra.mxu0 %v20961_v22  ;;  %v20939_v22 = vcombine.low %v14651_v32, %v14655_v61  ;;  %v20964_v43 = vcombine.high %v14675_v42, %v14679_v57  ;;  %v20963_v54 = vcombine.low %v14675_v42, %v14679_v57  ;;  %v14699_v61 = vld [vmem:[#allocation8 + $0x688] sm:$0xff]  ;;  %v14794_v42 = vld [vmem:[#allocation8 + $0x980] sm:$0xff] }
 0x7f8   :  { %18180 = vmatpush1.bf16.msra.mxu1 %v20891_v21  ;;  %18003 = vmatprep.subr.bf16.mxu0 %v20970_v46  ;;  %v14734_v21 = vld [vmem:[#allocation8 + $0x7a0] sm:$0xff]  ;;  %v20948_v46 = vcombine.high %v14659_v2, %v14663_v11  ;;  %v14465_v13 = vadd.f32 %v14429_v51, %v14407_v55 }
 0x7f9   :  { %18181 = vmatprep.subr.bf16.mxu1 %v20900_v24  ;;  %v21009_v24 = vcombine.low %v14722_v18, %v14726_v19  ;;  %v21018_v53 = vcombine.high %v14730_v16, %v14734_v21  ;;  %v14703_v18 = vld [vmem:[#allocation8 + $0x6a8] sm:$0xff]  ;;  %v14770_v19 = vld [vmem:[#allocation8 + $0x8c0] sm:$0xff] }
 0x7fa   :  { %v14474_v38 = vmax.f32 %v14465_v13, 0.0  ;;  %v20988_v23 = vcombine.high %v14699_v61, %v14703_v18  ;;  %v14723_v13 = vld [vmem:[#allocation8 + $0x748] sm:$0xff]  ;;  %v14798_v57 = vld [vmem:[#allocation8 + $0x9a0] sm:$0xff] }
 0x7fb   :  { %18004 = vmatpush1.bf16.msra.mxu0 %v20969_v41  ;;  %v14742_v41 = vld [vmem:[#allocation8 + $0x7e0] sm:$0xff] }
 0x7fc   :  { %18182 = vmatpush1.bf16.msra.mxu1 %v20899_v26  ;;  %18005 = vmatprep.subr.bf16.mxu0 %v20978_v47  ;;  %v14738_v26 = vld [vmem:[#allocation8 + $0x7c0] sm:$0xff]  ;;  %v21017_v47 = vcombine.low %v14730_v16, %v14734_v21 }
 0x7fd   :  { %18192 = vmatprep.subr.bf16.mxu1 %v20908_v1  ;;  %v20947_v1 = vcombine.low %v14659_v2, %v14663_v11  ;;  %v21026_v27 = vcombine.high %v14738_v26, %v14742_v41  ;;  %v14707_v2 = vld [vmem:[#allocation8 + $0x6c8] sm:$0xff]  ;;  %v14778_v16 = vld [vmem:[#allocation8 + $0x900] sm:$0xff] }
 0x7fe   :  { %v14711_v11 = vld [vmem:[#allocation8 + $0x6e8] sm:$0xff]  ;;  %v14782_v21 = vld [vmem:[#allocation8 + $0x920] sm:$0xff] }
 0x7ff   :  { %18184 = vmatmul.mubr.bf16.vlgmr.msra.gmra.mrb[72].mxu1 %v25240_v63  ;;  %18006 = vmatpush1.bf16.msra.mxu0 %v20977_v14  ;;  %v14750_v14 = vld [vmem:[#allocation8 + $0x820] sm:$0xff]  ;;  %v21066_v51 = vcombine.high %v14778_v16, %v14782_v21 }
 0x800   :  { %18193 = vmatpush1.bf16.msra.mxu1 %v20907_v39  ;;  %18224 = vmatprep.mubr.bf16.mxu1 %v25242_v58  ;;  %v14746_v39 = vld [vmem:[#allocation8 + $0x800] sm:$0xff] }
 0x801   :  { %18194 = vmatprep.subr.bf16.mxu1 %v20916_v48  ;;  %18007 = vmatprep.subr.bf16.mxu0 %v20986_v3  ;;  %v20955_v48 = vcombine.low %v14667_v40, %v14671_v9  ;;  %v21025_v3 = vcombine.low %v14738_v26, %v14742_v41  ;;  %v21034_v56 = vcombine.high %v14746_v39, %v14750_v14  ;;  %v14719_v40 = vld [vmem:[#allocation8 + $0x728] sm:$0xff]  ;;  %v14786_v9 = vld [vmem:[#allocation8 + $0x940] sm:$0xff] }
 0x802   :  { %v21033_v55 = vcombine.low %v14746_v39, %v14750_v14  ;;  %v14790_v26 = vld [vmem:[#allocation8 + $0x960] sm:$0xff]  ;;  %v20995_v41 = vcombine.low %v14707_v2, %v14711_v11 }
 0x803   :  { %18008 = vmatpush1.bf16.msra.mxu0 %v20985_v4  ;;  %v14754_v4 = vld [vmem:[#allocation8 + $0x840] sm:$0xff]  ;;  %v21073_v14 = vcombine.low %v14786_v9, %v14790_v26 }
 0x804   :  { %18195 = vmatpush1.bf16.msra.mxu1 %v20915_v45  ;;  %18009 = vmatprep.subr.bf16.mxu0 %v20994_v29  ;;  %v14687_v45 = vld [vmem:[#allocation8 + $0x628] sm:$0xff]  ;;  %v25253_v29 = vpack.c.bf16 %v14474_v38, %v14474_v38  ;;  %v21042_v8 = vcombine.high %v14754_v4, %v14758_v33 }
 0x805   :  { %18196 = vmatprep.subr.bf16.mxu1 %v20924_v5  ;;  %v20972_v5 = vcombine.high %v14683_v28, %v14687_v45  ;;  %v14735_v38 = vld [vmem:[#allocation8 + $0x7a8] sm:$0xff] }
 0x807   :  { %18010 = vmatpush1.bf16.msra.mxu0 %v20993_v50  ;;  %v20971_v50 = vcombine.low %v14683_v28, %v14687_v45  ;;  %v14806_v28 = vld [vmem:[#allocation8 + $0x9e0] sm:$0xff] }
 0x808   :  { %18197 = vmatpush1.bf16.msra.mxu1 %v20923_v31  ;;  %18011 = vmatprep.subr.bf16.mxu0 %v21002_v17  ;;  %v14766_v31 = vld [vmem:[#allocation8 + $0x8a0] sm:$0xff]  ;;  %v20980_v17 = vcombine.high %v14691_v52, %v14695_v34 }
 0x809   :  { %18198 = vmatprep.subr.bf16.mxu1 %v20932_v30  ;;  %v21041_v30 = vcombine.low %v14754_v4, %v14758_v33  ;;  %v21050_v32 = vcombine.high %v14762_v10, %v14766_v31  ;;  %v21081_v4 = vcombine.low %v14794_v42, %v14798_v57 }
 0x80b   :  { %18012 = vmatpush1.bf16.msra.mxu0 %v21001_v44  ;;  %v20979_v44 = vcombine.low %v14691_v52, %v14695_v34  ;;  %v14814_v52 = vld [vmem:[#allocation8 + $0xa20] sm:$0xff] }
 0x80c   :  { %18199 = vmatpush1.bf16.msra.mxu1 %v20931_v37  ;;  %18013 = vmatprep.subr.bf16.mxu0 %v21010_v62  ;;  %v14774_v37 = vld [vmem:[#allocation8 + $0x8e0] sm:$0xff] }
 0x80d   :  { %18200 = vmatprep.subr.bf16.mxu1 %v20940_v49  ;;  %v21049_v49 = vcombine.low %v14762_v10, %v14766_v31  ;;  %v21058_v62 = vcombine.high %v14770_v19, %v14774_v37 }
 0x80f   :  { %18014 = vmatpush1.bf16.msra.mxu0 %v21009_v24  ;;  %v21057_v24 = vcombine.low %v14770_v19, %v14774_v37 }
 0x810   :  { %18201 = vmatpush1.bf16.msra.mxu1 %v20939_v22  ;;  %18015 = vmatprep.subr.bf16.mxu0 %v21018_v53  ;;  %v20987_v22 = vcombine.low %v14699_v61, %v14703_v18  ;;  %v14715_v53 = vld [vmem:[#allocation8 + $0x708] sm:$0xff]  ;;  %v14822_v61 = vld [vmem:[#allocation8 + $0xa60] sm:$0xff] }
 0x811   :  { %18202 = vmatprep.subr.bf16.mxu1 %v20948_v46  ;;  %v20996_v46 = vcombine.high %v14707_v2, %v14711_v11  ;;  %v21003_v39 = vcombine.low %v14715_v53, %v14719_v40  ;;  %v14830_v2 = vld [vmem:[#allocation8 + $0xaa0] sm:$0xff] }
 0x813   :  { %18016 = vmatpush1.bf16.msra.mxu0 %v21017_v47  ;;  %v21004_v47 = vcombine.high %v14715_v53, %v14719_v40  ;;  %v14838_v53 = vld [vmem:[#allocation8 + $0xae0] sm:$0xff] }
 0x814   :  { %18203 = vmatpush1.bf16.msra.mxu1 %v20947_v1  ;;  %18017 = vmatprep.subr.bf16.mxu0 %v21026_v27  ;;  %v21065_v1 = vcombine.low %v14778_v16, %v14782_v21  ;;  %v14727_v27 = vld [vmem:[#allocation8 + $0x768] sm:$0xff] }
 0x815   :  { %18204 = vmatprep.subr.bf16.mxu1 %v20956_v15  ;;  %v21074_v15 = vcombine.high %v14786_v9, %v14790_v26  ;;  %v21011_v45 = vcombine.low %v14723_v13, %v14727_v27 }
 0x817   :  { %18018 = vmatpush1.bf16.msra.mxu0 %v21025_v3  ;;  %v21082_v3 = vcombine.high %v14794_v42, %v14798_v57 }
 0x818   :  { %18205 = vmatpush1.bf16.msra.mxu1 %v20955_v48  ;;  %18028 = vmatprep.subr.bf16.mxu0 %v21034_v56  ;;  %v21012_v48 = vcombine.high %v14723_v13, %v14727_v27  ;;  %v14802_v56 = vld [vmem:[#allocation8 + $0x9c0] sm:$0xff] }
 0x819   :  { %18206 = vmatprep.subr.bf16.mxu1 %v20964_v43  ;;  %v14731_v43 = vld [vmem:[#allocation8 + $0x788] sm:$0xff]  ;;  %v21089_v10 = vcombine.low %v14802_v56, %v14806_v28  ;;  %v14846_v13 = vld [vmem:[#allocation8 + $0xb20] sm:$0xff] }
 0x81a   :  { %18020 = vmatmul.mubr.bf16.vlgmr.msra.gmra.mrb[64].mxu0 %v25253_v29  ;;  %v21020_v33 = vcombine.high %v14731_v43, %v14735_v38  ;;  %v21019_v34 = vcombine.low %v14731_v43, %v14735_v38 }
 0x81b   :  { %18029 = vmatpush1.bf16.msra.mxu0 %v21033_v55  ;;  %v14739_v55 = vld [vmem:[#allocation8 + $0x7c8] sm:$0xff] }
 0x81c   :  { %18207 = vmatpush1.bf16.msra.mxu1 %v20963_v54  ;;  %18030 = vmatprep.subr.bf16.mxu0 %v21042_v8  ;;  %v21090_v54 = vcombine.high %v14802_v56, %v14806_v28  ;;  %v14810_v8 = vld [vmem:[#allocation8 + $0xa00] sm:$0xff] }
 0x81d   :  { %18208 = vmatprep.subr.bf16.mxu1 %v20972_v5  ;;  %v14743_v5 = vld [vmem:[#allocation8 + $0x7e8] sm:$0xff]  ;;  %v21097_v19 = vcombine.low %v14810_v8, %v14814_v52  ;;  %v14850_v56 = vld [vmem:[#allocation8 + $0xb40] sm:$0xff] }
 0x81e   :  { %v21028_v31 = vcombine.high %v14739_v55, %v14743_v5  ;;  %v21027_v18 = vcombine.low %v14739_v55, %v14743_v5  ;;  %v14854_v28 = vld [vmem:[#allocation8 + $0xb60] sm:$0xff] }
 0x81f   :  { %18031 = vmatpush1.bf16.msra.mxu0 %v21041_v30  ;;  %v14747_v30 = vld [vmem:[#allocation8 + $0x808] sm:$0xff] }
 0x820   :  { %18209 = vmatpush1.bf16.msra.mxu1 %v20971_v50  ;;  %18032 = vmatprep.subr.bf16.mxu0 %v21050_v32  ;;  %v21098_v50 = vcombine.high %v14810_v8, %v14814_v52  ;;  %v14818_v32 = vld [vmem:[#allocation8 + $0xa40] sm:$0xff]  ;;  %v21138_v8 = vcombine.high %v14850_v56, %v14854_v28  ;;  %v14787_v52 = vld [vmem:[#allocation8 + $0x948] sm:$0xff] }
 0x821   :  { %18210 = vmatprep.subr.bf16.mxu1 %v20980_v17  ;;  %v14751_v17 = vld [vmem:[#allocation8 + $0x828] sm:$0xff]  ;;  %v21105_v16 = vcombine.low %v14818_v32, %v14822_v61 }
 0x822   :  { %v21036_v37 = vcombine.high %v14747_v30, %v14751_v17  ;;  %v21035_v11 = vcombine.low %v14747_v30, %v14751_v17  ;;  %v14436_v17 = vsub.s32 4, %v25207_v7 }
 0x823   :  { %18033 = vmatpush1.bf16.msra.mxu0 %v21049_v49  ;;  %v14755_v49 = vld [vmem:[#allocation8 + $0x848] sm:$0xff] }
 0x824   :  { %18211 = vmatpush1.bf16.msra.mxu1 %v20979_v44  ;;  %18034 = vmatprep.subr.bf16.mxu0 %v21058_v62  ;;  %v21106_v44 = vcombine.high %v14818_v32, %v14822_v61  ;;  %v14826_v62 = vld [vmem:[#allocation8 + $0xa80] sm:$0xff]  ;;  %v14440_v61 = vsub.s32 5, %v25207_v7 }
 0x825   :  { %18212 = vmatprep.subr.bf16.mxu1 %v20988_v23  ;;  %v14759_v23 = vld [vmem:[#allocation8 + $0x868] sm:$0xff]  ;;  %v21113_v9 = vcombine.low %v14826_v62, %v14830_v2 }
 0x826   :  { %v21044_v21 = vcombine.high %v14755_v49, %v14759_v23  ;;  %v21043_v40 = vcombine.low %v14755_v49, %v14759_v23  ;;  %v14870_v49 = vld [vmem:[#allocation8 + $0xbe0] sm:$0xff]  ;;  %v25265_v23 = vld [vmem:[#allocation7] sm:$0xff] }
 0x827   :  { %18035 = vmatpush1.bf16.msra.mxu0 %v21057_v24  ;;  %v14763_v24 = vld [vmem:[#allocation8 + $0x888] sm:$0xff] }
 0x828   :  { %18213 = vmatpush1.bf16.msra.mxu1 %v20987_v22  ;;  %18036 = vmatprep.subr.bf16.mxu0 %v21066_v51  ;;  %v21114_v22 = vcombine.high %v14826_v62, %v14830_v2  ;;  %v14834_v51 = vld [vmem:[#allocation8 + $0xac0] sm:$0xff] }
 0x829   :  { %18214 = vmatprep.subr.bf16.mxu1 %v20996_v46  ;;  %v14767_v46 = vld [vmem:[#allocation8 + $0x8a8] sm:$0xff]  ;;  %v21121_v42 = vcombine.low %v14834_v51, %v14838_v53 }
 0x82a   :  { %v21052_v26 = vcombine.high %v14763_v24, %v14767_v46  ;;  %v21051_v27 = vcombine.low %v14763_v24, %v14767_v46  ;;  %v14441_v24 = vrot.slane %v25265_v23, %v14440_v61  ;;  %v14827_v61 = vld [vmem:[#allocation8 + $0xa88] sm:$0xff] }
 0x82b   :  { %18037 = vmatpush1.bf16.msra.mxu0 %v21065_v1  ;;  %v14771_v1 = vld [vmem:[#allocation8 + $0x8c8] sm:$0xff] }
 0x82c   :  { %18215 = vmatpush1.bf16.msra.mxu1 %v20995_v41  ;;  %18038 = vmatprep.subr.bf16.mxu0 %v21074_v15  ;;  %v21122_v41 = vcombine.high %v14834_v51, %v14838_v53  ;;  %v14842_v15 = vld [vmem:[#allocation8 + $0xb00] sm:$0xff]  ;;  %v14803_v51 = vld [vmem:[#allocation8 + $0x9c8] sm:$0xff] }
 0x82d   :  { %18216 = vmatprep.subr.bf16.mxu1 %v21004_v47  ;;  %v14775_v47 = vld [vmem:[#allocation8 + $0x8e8] sm:$0xff]  ;;  %v21129_v55 = vcombine.low %v14842_v15, %v14846_v13 }
 0x82e   :  { %v21060_v57 = vcombine.high %v14771_v1, %v14775_v47  ;;  %v14807_v53 = vld [vmem:[#allocation8 + $0x9e8] sm:$0xff] }
 0x82f   :  { %18039 = vmatpush1.bf16.msra.mxu0 %v21073_v14  ;;  %v21130_v14 = vcombine.high %v14842_v15, %v14846_v13 }
 0x830   :  { %18217 = vmatpush1.bf16.msra.mxu1 %v21003_v39  ;;  %18040 = vmatprep.subr.bf16.mxu0 %v21082_v3  ;;  %v14783_v3 = vld [vmem:[#allocation8 + $0x928] sm:$0xff] }
 0x831   :  { %18218 = vmatprep.subr.bf16.mxu1 %v21012_v48  ;;  %v14779_v48 = vld [vmem:[#allocation8 + $0x908] sm:$0xff] }
 0x832   :  { %v21068_v5 = vcombine.high %v14779_v48, %v14783_v3  ;;  %v21067_v30 = vcombine.low %v14779_v48, %v14783_v3 }
 0x833   :  { %18041 = vmatpush1.bf16.msra.mxu0 %v21081_v4  ;;  %v21059_v4 = vcombine.low %v14771_v1, %v14775_v47 }
 0x834   :  { %18219 = vmatpush1.bf16.msra.mxu1 %v21011_v45  ;;  %18042 = vmatprep.subr.bf16.mxu0 %v21090_v54 }
 0x835   :  { %18220 = vmatprep.subr.bf16.mxu1 %v21020_v33 }
 0x837   :  { %18043 = vmatpush1.bf16.msra.mxu0 %v21089_v10  ;;  %v14858_v10 = vld [vmem:[#allocation8 + $0xb80] sm:$0xff] }
 0x838   :  { %18221 = vmatpush1.bf16.msra.mxu1 %v21019_v34  ;;  %18044 = vmatprep.subr.bf16.mxu0 %v21098_v50  ;;  %v14791_v34 = vld [vmem:[#allocation8 + $0x968] sm:$0xff]  ;;  %v14448_v50 = vsub.s32 7, %v25207_v7 }
 0x839   :  { %18222 = vmatprep.subr.bf16.mxu1 %v21028_v31  ;;  %v14862_v31 = vld [vmem:[#allocation8 + $0xba0] sm:$0xff]  ;;  %v21076_v32 = vcombine.high %v14787_v52, %v14791_v34  ;;  %v21075_v2 = vcombine.low %v14787_v52, %v14791_v34 }
 0x83a   :  { %v14449_v62 = vrot.slane %v25265_v23, %v14448_v50 }
 0x83b   :  { %18045 = vmatpush1.bf16.msra.mxu0 %v21097_v19  ;;  %v14795_v19 = vld [vmem:[#allocation8 + $0x988] sm:$0xff] }
 0x83c   :  { %18223 = vmatpush1.bf16.msra.mxu1 %v21027_v18  ;;  %18046 = vmatprep.subr.bf16.mxu0 %v21106_v44  ;;  %v21146_v18 = vcombine.high %v14858_v10, %v14862_v31  ;;  %v14866_v44 = vld [vmem:[#allocation8 + $0xbc0] sm:$0xff] }
 0x83d   :  { %18233 = vmatprep.subr.bf16.mxu1 %v21036_v37  ;;  %v14799_v37 = vld [vmem:[#allocation8 + $0x9a8] sm:$0xff]  ;;  %v21154_v46 = vcombine.high %v14866_v44, %v14870_v49 }
 0x83e   :  { %v21083_v13 = vcombine.low %v14795_v19, %v14799_v37 }
 0x83f   :  { %18225 = vmatmul.mubr.bf16.vlgmr.msra.gmra.mrb[72].mxu1 %v25253_v29  ;;  %18047 = vmatpush1.bf16.msra.mxu0 %v21105_v16  ;;  %v21145_v16 = vcombine.low %v14858_v10, %v14862_v31 }
 0x840   :  { %18234 = vmatpush1.bf16.msra.mxu1 %v21035_v11  ;;  %18048 = vmatprep.subr.bf16.mxu0 %v21114_v22  ;;  %v14437_v11 = vrot.slane %v25265_v23, %v14436_v17 }
 0x841   :  { %18235 = vmatprep.subr.bf16.mxu1 %v21044_v21  ;;  %v21084_v21 = vcombine.high %v14795_v19, %v14799_v37 }
 0x843   :  { %18049 = vmatpush1.bf16.msra.mxu0 %v21113_v9 }
 0x844   :  { %18236 = vmatpush1.bf16.msra.mxu1 %v21043_v40  ;;  %18050 = vmatprep.subr.bf16.mxu0 %v21122_v41  ;;  %v14878_v41 = vld [vmem:[#allocation8 + $0xc20] sm:$0xff] }
 0x845   :  { %18237 = vmatprep.subr.bf16.mxu1 %v21052_v26  ;;  %v25257_v39 = vpop.f32.mrb[52].mxu0  ;;  %v14874_v26 = vld [vmem:[#allocation8 + $0xc00] sm:$0xff] }
 0x846   :  { %v14411_v43 = vmax.f32 %v25151_v36, %v25257_v39  ;;  %v14240_v38 = vpop.f32.mrb[53].mxu0  ;;  %v21162_v3 = vcombine.high %v14874_v26, %v14878_v41 }
 0x847   :  { %v14412_v45 = vmax.f32 %v25156_v6, %v14240_v38  ;;  %v14242_v33 = vpop.f32.mrb[54].mxu0  ;;  %18051 = vmatpush1.bf16.msra.mxu0 %v21121_v42  ;;  %v21137_v6 = vcombine.low %v14850_v56, %v14854_v28 }
 0x848   :  { %18238 = vmatpush1.bf16.msra.mxu1 %v21051_v27  ;;  %v14243_v54 = vpop.f32.mrb[55].mxu0  ;;  %18052 = vmatprep.subr.bf16.mxu0 %v21130_v14  ;;  %v21092_v14 = vcombine.high %v14803_v51, %v14807_v53  ;;  %v14886_v33 = vld [vmem:[#allocation8 + $0xc60] sm:$0xff] }
 0x849   :  { %18239 = vmatprep.subr.bf16.mxu1 %v21060_v57  ;;  %v14470_v1 = vadd.f32 %v14449_v62, %v14412_v45  ;;  %v21153_v57 = vcombine.low %v14866_v44, %v14870_v49  ;;  %v21091_v45 = vcombine.low %v14803_v51, %v14807_v53  ;;  %v14898_v44 = vld [vmem:[#allocation8 + $0xcc0] sm:$0xff] }
 0x84a   :  { %v14902_v49 = vld [vmem:[#allocation8 + $0xce0] sm:$0xff] }
 0x84b   :  { %18053 = vmatpush1.bf16.msra.mxu0 %v21129_v55  ;;  %v14479_v56 = vmax.f32 %v14470_v1, 0.0  ;;  %v21161_v55 = vcombine.low %v14874_v26, %v14878_v41  ;;  %v21185_v53 = vcombine.low %v14898_v44, %v14902_v49 }
 0x84c   :  { %18240 = vmatpush1.bf16.msra.mxu1 %v21059_v4  ;;  %18054 = vmatprep.subr.bf16.mxu0 %v21138_v8  ;;  %v14815_v4 = vld [vmem:[#allocation8 + $0xa28] sm:$0xff] }
 0x84d   :  { %18241 = vmatprep.subr.bf16.mxu1 %v21068_v5  ;;  %v14819_v5 = vld [vmem:[#allocation8 + $0xa48] sm:$0xff]  ;;  %v25276_v31 = vpack.c.bf16 %v14479_v56, %v14479_v56 }
 0x84e   :  { %v14823_v8 = vld [vmem:[#allocation8 + $0xa68] sm:$0xff] }
 0x84f   :  { %18055 = vmatpush1.bf16.msra.mxu0 %v21137_v6  ;;  %v14894_v6 = vld [vmem:[#allocation8 + $0xca0] sm:$0xff]  ;;  %v21108_v17 = vcombine.high %v14819_v5, %v14823_v8  ;;  %v21107_v37 = vcombine.low %v14819_v5, %v14823_v8 }
 0x850   :  { %18242 = vmatpush1.bf16.msra.mxu1 %v21067_v30  ;;  %18056 = vmatprep.subr.bf16.mxu0 %v21146_v18  ;;  %v14890_v30 = vld [vmem:[#allocation8 + $0xc80] sm:$0xff]  ;;  %v14831_v18 = vld [vmem:[#allocation8 + $0xaa8] sm:$0xff] }
 0x851   :  { %18243 = vmatprep.subr.bf16.mxu1 %v21076_v32  ;;  %v21178_v19 = vcombine.high %v14890_v30, %v14894_v6  ;;  %v21116_v62 = vcombine.high %v14827_v61, %v14831_v18 }
 0x852   :  { %v14074_v22 = vpop.f32.mrb[60].mxu1 }
 0x853   :  { %v14409_v40 = vmax.f32 %v25139_v59, %v14074_v22  ;;  %v14076_v9 = vpop.f32.mrb[61].mxu1  ;;  %18057 = vmatpush1.bf16.msra.mxu0 %v21145_v16  ;;  %v14811_v59 = vld [vmem:[#allocation8 + $0xa08] sm:$0xff]  ;;  %v21115_v22 = vcombine.low %v14827_v61, %v14831_v18 }
 0x854   :  { %v14410_v47 = vmax.f32 %v25144_v20, %v14076_v9  ;;  %18244 = vmatpush1.bf16.msra.mxu1 %v21075_v2  ;;  %v14078_v15 = vpop.f32.mrb[62].mxu1  ;;  %18058 = vmatprep.subr.bf16.mxu0 %v21154_v46  ;;  %v14882_v20 = vld [vmem:[#allocation8 + $0xc40] sm:$0xff]  ;;  %v21100_v34 = vcombine.high %v14811_v59, %v14815_v4  ;;  %v21099_v50 = vcombine.low %v14811_v59, %v14815_v4  ;;  %v14839_v16 = vld [vmem:[#allocation8 + $0xae8] sm:$0xff] }
 0x855   :  { %v14467_v27 = vadd.f32 %v14437_v11, %v14409_v40  ;;  %v14079_v42 = vpop.f32.mrb[63].mxu1  ;;  %18245 = vmatprep.subr.bf16.mxu1 %v21084_v21  ;;  %v21170_v10 = vcombine.high %v14882_v20, %v14886_v33  ;;  %v21169_v32 = vcombine.low %v14882_v20, %v14886_v33  ;;  %v21177_v2 = vcombine.low %v14890_v30, %v14894_v6  ;;  %v14835_v11 = vld [vmem:[#allocation8 + $0xac8] sm:$0xff]  ;;  %v14910_v46 = vld [vmem:[#allocation8 + $0xd20] sm:$0xff] }
 0x856   :  { %v14468_v48 = vadd.f32 %v14441_v24, %v14410_v47  ;;  %v21186_v21 = vcombine.high %v14898_v44, %v14902_v49  ;;  %v14906_v24 = vld [vmem:[#allocation8 + $0xd00] sm:$0xff]  ;;  %v21124_v51 = vcombine.high %v14835_v11, %v14839_v16  ;;  %v14843_v40 = vld [vmem:[#allocation8 + $0xb08] sm:$0xff]  ;;  %v21123_v47 = vcombine.low %v14835_v11, %v14839_v16 }
 0x857   :  { %v14476_v38 = vmax.f32 %v14467_v27, 0.0  ;;  %18059 = vmatpush1.bf16.msra.mxu0 %v21153_v57  ;;  %v14847_v9 = vld [vmem:[#allocation8 + $0xb28] sm:$0xff]  ;;  %v21194_v41 = vcombine.high %v14906_v24, %v14910_v46  ;;  %v14914_v15 = vld [vmem:[#allocation8 + $0xd40] sm:$0xff] }
 0x858   :  { %v14477_v28 = vmax.f32 %v14468_v48, 0.0  ;;  %18246 = vmatpush1.bf16.msra.mxu1 %v21083_v13  ;;  %18069 = vmatprep.subr.bf16.mxu0 %v21162_v3  ;;  %v14918_v13 = vld [vmem:[#allocation8 + $0xd60] sm:$0xff]  ;;  %v21132_v57 = vcombine.high %v14843_v40, %v14847_v9  ;;  %v21193_v48 = vcombine.low %v14906_v24, %v14910_v46  ;;  %v14851_v3 = vld [vmem:[#allocation8 + $0xb48] sm:$0xff]  ;;  %v21131_v56 = vcombine.low %v14843_v40, %v14847_v9 }
 0x859   :  { %18247 = vmatprep.subr.bf16.mxu1 %v21092_v14  ;;  %v25274_v52 = vpack.c.bf16 %v14476_v38, %v14476_v38  ;;  %v14855_v38 = vld [vmem:[#allocation8 + $0xb68] sm:$0xff]  ;;  %v21202_v59 = vcombine.high %v14914_v15, %v14918_v13  ;;  %v21201_v20 = vcombine.low %v14914_v15, %v14918_v13  ;;  %v14934_v30 = vld [vmem:[#allocation8 + $0xde0] sm:$0xff] }
 0x85a   :  { %v25272_v54 = vpack.c.bf16 %v14477_v28, %v14477_v28  ;;  %v14922_v28 = vld [vmem:[#allocation8 + $0xd80] sm:$0xff]  ;;  %v21140_v4 = vcombine.high %v14851_v3, %v14855_v38  ;;  %v14859_v33 = vld [vmem:[#allocation8 + $0xb88] sm:$0xff] }
 0x85b   :  { %v14938_v16 = vld [vmem:[#allocation8 + $0xe00] sm:$0xff]  ;;  %v14879_v40 = vld [vmem:[#allocation8 + $0xc28] sm:$0xff] }
 0x85c   :  { %18248 = vmatpush1.bf16.msra.mxu1 %v21091_v45  ;;  %18060 = vmatprep.mubr.bf16.mxu0 %v25272_v54  ;;  %v14926_v45 = vld [vmem:[#allocation8 + $0xda0] sm:$0xff]  ;;  %v14883_v13 = vld [vmem:[#allocation8 + $0xc48] sm:$0xff] }
 0x85d   :  { %18265 = vmatprep.mubr.bf16.mxu1 %v25272_v54  ;;  %18061 = vmatmul.mubr.bf16.vlgmr.msra.gmra.mrb[64].mxu0 %v25274_v52  ;;  %v21210_v8 = vcombine.high %v14922_v28, %v14926_v45  ;;  %v21209_v18 = vcombine.low %v14922_v28, %v14926_v45 }
 0x85e   :  { %18070 = vmatpush1.bf16.msra.mxu0 %v21161_v55  ;;  %18101 = vmatprep.mubr.bf16.mxu0 %v25276_v31  ;;  %v14863_v55 = vld [vmem:[#allocation8 + $0xba8] sm:$0xff] }
 0x85f   :  { %18249 = vmatprep.subr.bf16.mxu1 %v21100_v34  ;;  %18071 = vmatprep.subr.bf16.mxu0 %v21170_v10  ;;  %v21139_v10 = vcombine.low %v14851_v3, %v14855_v38  ;;  %v21147_v11 = vcombine.low %v14859_v33, %v14863_v55 }
 0x860   :  { %18250 = vmatpush1.bf16.msra.mxu1 %v21099_v50  ;;  %v14930_v50 = vld [vmem:[#allocation8 + $0xdc0] sm:$0xff] }
 0x861   :  { %18251 = vmatprep.subr.bf16.mxu1 %v21108_v17  ;;  %v21148_v17 = vcombine.high %v14859_v33, %v14863_v55  ;;  %v21218_v49 = vcombine.high %v14930_v50, %v14934_v30 }
 0x862   :  { %18072 = vmatpush1.bf16.msra.mxu0 %v21169_v32 }
 0x863   :  { %18073 = vmatprep.subr.bf16.mxu0 %v21178_v19  ;;  %v14867_v19 = vld [vmem:[#allocation8 + $0xbc8] sm:$0xff] }
 0x864   :  { %18252 = vmatpush1.bf16.msra.mxu1 %v21107_v37  ;;  %v14871_v37 = vld [vmem:[#allocation8 + $0xbe8] sm:$0xff] }
 0x865   :  { %18253 = vmatprep.subr.bf16.mxu1 %v21116_v62  ;;  %v21612_v26 = vpop.f32.mrb[56].mxu0  ;;  %v21156_v24 = vcombine.high %v14867_v19, %v14871_v37 }
 0x866   :  { %18074 = vmatpush1.bf16.msra.mxu0 %v21177_v2  ;;  %v21613_v1 = vpop.f32.mrb[57].mxu0 }
 0x867   :  { %18075 = vmatprep.subr.bf16.mxu0 %v21186_v21  ;;  %v21614_v27 = vadd.f32 %v21613_v1, %v21612_v26  ;;  %v21615_v42 = vpop.f32.mrb[58].mxu0  ;;  %v14942_v21 = vld [vmem:[#allocation8 + $0xe20] sm:$0xff]  ;;  %v21155_v26 = vcombine.low %v14867_v19, %v14871_v37 }
 0x868   :  { %18254 = vmatpush1.bf16.msra.mxu1 %v21115_v22  ;;  %v21616_v14 = vpop.f32.mrb[59].mxu0  ;;  %v21226_v9 = vcombine.high %v14938_v16, %v14942_v21  ;;  %v14950_v1 = vld [vmem:[#allocation8 + $0xe60] sm:$0xff]  ;;  %v21225_v15 = vcombine.low %v14938_v16, %v14942_v21  ;;  %v14887_v42 = vld [vmem:[#allocation8 + $0xc68] sm:$0xff]  ;;  %v14444_v21 = vsub.s32 6, %v25207_v7 }
 0x869   :  { %18255 = vmatprep.subr.bf16.mxu1 %v21124_v51  ;;  %v21217_v51 = vcombine.low %v14930_v50, %v14934_v30  ;;  %v14954_v14 = vld [vmem:[#allocation8 + $0xe80] sm:$0xff]  ;;  %v21172_v3 = vcombine.high %v14883_v13, %v14887_v42  ;;  %v21171_v45 = vcombine.low %v14883_v13, %v14887_v42  ;;  %v14919_v16 = vld [vmem:[#allocation8 + $0xd68] sm:$0xff] }
 0x86a   :  { %18076 = vmatpush1.bf16.msra.mxu0 %v21185_v53  ;;  %v14875_v53 = vld [vmem:[#allocation8 + $0xc08] sm:$0xff]  ;;  %v14970_v30 = vld [vmem:[#allocation8 + $0xf00] sm:$0xff] }
 0x86b   :  { %18077 = vmatprep.subr.bf16.mxu0 %v21194_v41  ;;  %v14946_v41 = vld [vmem:[#allocation8 + $0xe40] sm:$0xff] }
 0x86c   :  { %18256 = vmatpush1.bf16.msra.mxu1 %v21123_v47  ;;  %v21164_v47 = vcombine.high %v14875_v53, %v14879_v40  ;;  %v21233_v38 = vcombine.low %v14946_v41, %v14950_v1  ;;  %v14994_v13 = vld [vmem:[#allocation8 + $0xfc0] sm:$0xff] }
 0x86d   :  { %18257 = vmatprep.subr.bf16.mxu1 %v21132_v57  ;;  %v25282_v5 = vpop.f32.mrb[60].mxu0  ;;  %v21234_v57 = vcombine.high %v14946_v41, %v14950_v1  ;;  %v14927_v41 = vld [vmem:[#allocation8 + $0xda8] sm:$0xff]  ;;  %v14445_v1 = vrot.slane %v25265_v23, %v14444_v21  ;;  %v14998_v42 = vld [vmem:[#allocation8 + $0xfe0] sm:$0xff] }
 0x86e   :  { %18078 = vmatpush1.bf16.msra.mxu0 %v21193_v48  ;;  %v21686_v34 = vpop.f32.mrb[61].mxu0  ;;  %v14958_v48 = vld [vmem:[#allocation8 + $0xea0] sm:$0xff]  ;;  %v21282_v23 = vcombine.high %v14994_v13, %v14998_v42  ;;  %v14959_v21 = vld [vmem:[#allocation8 + $0xea8] sm:$0xff] }
 0x86f   :  { %18079 = vmatprep.subr.bf16.mxu0 %v21202_v59  ;;  %v14402_v6 = vpop.f32.mrb[62].mxu0  ;;  %v14891_v59 = vld [vmem:[#allocation8 + $0xc88] sm:$0xff]  ;;  %v21242_v28 = vcombine.high %v14954_v14, %v14958_v48  ;;  %v21241_v55 = vcombine.low %v14954_v14, %v14958_v48 }
 0x870   :  { %18258 = vmatpush1.bf16.msra.mxu1 %v21131_v56  ;;  %v21687_v32 = vpop.f32.mrb[63].mxu0  ;;  %v14895_v56 = vld [vmem:[#allocation8 + $0xca8] sm:$0xff]  ;;  %v14974_v6 = vld [vmem:[#allocation8 + $0xf20] sm:$0xff] }
 0x871   :  { %18259 = vmatprep.subr.bf16.mxu1 %v21140_v4  ;;  %v14962_v4 = vld [vmem:[#allocation8 + $0xec0] sm:$0xff]  ;;  %v21180_v33 = vcombine.high %v14891_v59, %v14895_v56  ;;  %v14903_v34 = vld [vmem:[#allocation8 + $0xce8] sm:$0xff]  ;;  %v21179_v50 = vcombine.low %v14891_v59, %v14895_v56  ;;  %v21258_v19 = vcombine.high %v14970_v30, %v14974_v6 }
 0x872   :  { %v21590_v61 = vpop.f32.mrb[64].mxu1  ;;  %18080 = vmatpush1.bf16.msra.mxu0 %v21201_v20  ;;  %v14966_v20 = vld [vmem:[#allocation8 + $0xee0] sm:$0xff]  ;;  %v14931_v48 = vld [vmem:[#allocation8 + $0xdc8] sm:$0xff] }
 0x873   :  { %v21591_v44 = vpop.f32.mrb[65].mxu1  ;;  %18081 = vmatprep.subr.bf16.mxu0 %v21210_v8  ;;  %v14899_v8 = vld [vmem:[#allocation8 + $0xcc8] sm:$0xff]  ;;  %v21249_v32 = vcombine.low %v14962_v4, %v14966_v20 }
 0x874   :  { %v21592_v62 = vadd.f32 %v21591_v44, %v21590_v61  ;;  %v21593_v2 = vpop.f32.mrb[66].mxu1  ;;  %18260 = vmatpush1.bf16.msra.mxu1 %v21139_v10  ;;  %v21250_v10 = vcombine.high %v14962_v4, %v14966_v20  ;;  %v14907_v61 = vld [vmem:[#allocation8 + $0xd08] sm:$0xff]  ;;  %v21187_v37 = vcombine.low %v14899_v8, %v14903_v34  ;;  %v14978_v44 = vld [vmem:[#allocation8 + $0xf40] sm:$0xff] }
 0x875   :  { %v21594_v22 = vpop.f32.mrb[67].mxu1  ;;  %18261 = vmatprep.subr.bf16.mxu1 %v21148_v17  ;;  %v21188_v17 = vcombine.high %v14899_v8, %v14903_v34  ;;  %v21257_v2 = vcombine.low %v14970_v30, %v14974_v6  ;;  %v15002_v4 = vld [vmem:[#allocation8 + $0x1000] sm:$0xff]  ;;  %v21281_v34 = vcombine.low %v14994_v13, %v14998_v42 }
 0x876   :  { %v25284_v46 = vadd.f32 %v21614_v27, %v21592_v62  ;;  %18082 = vmatpush1.bf16.msra.mxu0 %v21209_v18  ;;  %v21163_v27 = vcombine.low %v14875_v53, %v14879_v40  ;;  %v14911_v18 = vld [vmem:[#allocation8 + $0xd28] sm:$0xff]  ;;  %v14990_v53 = vld [vmem:[#allocation8 + $0xfa0] sm:$0xff] }
 0x877   :  { %18083 = vmatprep.subr.bf16.mxu0 %v21218_v49  ;;  %v14982_v49 = vld [vmem:[#allocation8 + $0xf60] sm:$0xff]  ;;  %v21196_v62 = vcombine.high %v14907_v61, %v14911_v18 }
 0x878   :  { %18262 = vmatpush1.bf16.msra.mxu1 %v21147_v11  ;;  %v14915_v11 = vld [vmem:[#allocation8 + $0xd48] sm:$0xff]  ;;  %v21266_v22 = vcombine.high %v14978_v44, %v14982_v49  ;;  %v15006_v20 = vld [vmem:[#allocation8 + $0x1020] sm:$0xff] }
 0x879   :  { %18263 = vmatprep.subr.bf16.mxu1 %v21156_v24  ;;  %v21195_v24 = vcombine.low %v14907_v61, %v14911_v18  ;;  %v21204_v40 = vcombine.high %v14915_v11, %v14919_v16  ;;  %v21290_v39 = vcombine.high %v15002_v4, %v15006_v20  ;;  %v15010_v6 = vld [vmem:[#allocation8 + $0x1040] sm:$0xff]  ;;  %v14947_v18 = vld [vmem:[#allocation8 + $0xe48] sm:$0xff] }
 0x87a   :  { %18084 = vmatpush1.bf16.msra.mxu0 %v21217_v51  ;;  %v14986_v51 = vld [vmem:[#allocation8 + $0xf80] sm:$0xff] }
 0x87b   :  { %18085 = vmatprep.subr.bf16.mxu0 %v21226_v9  ;;  %v21265_v9 = vcombine.low %v14978_v44, %v14982_v49  ;;  %v21273_v14 = vcombine.low %v14986_v51, %v14990_v53  ;;  %v15018_v49 = vld [vmem:[#allocation8 + $0x1080] sm:$0xff] }
 0x87c   :  { %18264 = vmatpush1.bf16.msra.mxu1 %v21155_v26  ;;  %v14923_v26 = vld [vmem:[#allocation8 + $0xd88] sm:$0xff]  ;;  %v15038_v13 = vld [vmem:[#allocation8 + $0x1120] sm:$0xff] }
 0x87d   :  { %18274 = vmatprep.subr.bf16.mxu1 %v21164_v47  ;;  %v21274_v47 = vcombine.high %v14986_v51, %v14990_v53  ;;  %v15026_v51 = vld [vmem:[#allocation8 + $0x10c0] sm:$0xff] }
 0x87e   :  { %18086 = vmatpush1.bf16.msra.mxu0 %v21225_v15  ;;  %v21203_v15 = vcombine.low %v14915_v11, %v14919_v16  ;;  %v14955_v16 = vld [vmem:[#allocation8 + $0xe88] sm:$0xff]  ;;  %v15030_v53 = vld [vmem:[#allocation8 + $0x10e0] sm:$0xff] }
 0x87f   :  { %18266 = vmatmul.mubr.bf16.vlgmr.msra.gmra.mrb[72].mxu1 %v25274_v52  ;;  %18087 = vmatprep.subr.bf16.mxu0 %v21234_v57  ;;  %v21212_v57 = vcombine.high %v14923_v26, %v14927_v41 }
 0x880   :  { %18275 = vmatpush1.bf16.msra.mxu1 %v21163_v27  ;;  %18306 = vmatprep.mubr.bf16.mxu1 %v25276_v31 }
 0x881   :  { %18276 = vmatprep.subr.bf16.mxu1 %v21172_v3  ;;  %v14935_v3 = vld [vmem:[#allocation8 + $0xde8] sm:$0xff] }
 0x882   :  { %18088 = vmatpush1.bf16.msra.mxu0 %v21233_v38  ;;  %v14469_v38 = vadd.f32 %v14445_v1, %v14411_v43  ;;  %v21219_v30 = vcombine.low %v14931_v48, %v14935_v3  ;;  %v21314_v1 = vcombine.high %v15026_v51, %v15030_v53 }
 0x883   :  { %18089 = vmatprep.subr.bf16.mxu0 %v21242_v28 }
 0x884   :  { %18277 = vmatpush1.bf16.msra.mxu1 %v21171_v45  ;;  %v21211_v45 = vcombine.low %v14923_v26, %v14927_v41  ;;  %v14478_v36 = vmax.f32 %v14469_v38, 0.0  ;;  %v14963_v26 = vld [vmem:[#allocation8 + $0xec8] sm:$0xff]  ;;  %v15042_v38 = vld [vmem:[#allocation8 + $0x1140] sm:$0xff] }
 0x885   :  { %18278 = vmatprep.subr.bf16.mxu1 %v21180_v33  ;;  %v14967_v41 = vld [vmem:[#allocation8 + $0xee8] sm:$0xff] }
 0x886   :  { %18090 = vmatpush1.bf16.msra.mxu0 %v21241_v55  ;;  %v21220_v55 = vcombine.high %v14931_v48, %v14935_v3  ;;  %v21252_v42 = vcombine.high %v14963_v26, %v14967_v41  ;;  %v21251_v3 = vcombine.low %v14963_v26, %v14967_v41  ;;  %v15015_v26 = vld [vmem:[#allocation8 + $0x1068] sm:$0xff] }
 0x887   :  { %18091 = vmatprep.subr.bf16.mxu0 %v21250_v10  ;;  %v14939_v10 = vld [vmem:[#allocation8 + $0xe08] sm:$0xff] }
 0x888   :  { %18279 = vmatpush1.bf16.msra.mxu1 %v21179_v50  ;;  %v14943_v50 = vld [vmem:[#allocation8 + $0xe28] sm:$0xff] }
 0x889   :  { %18280 = vmatprep.subr.bf16.mxu1 %v21188_v17  ;;  %v15014_v17 = vld [vmem:[#allocation8 + $0x1060] sm:$0xff] }
 0x88a   :  { %18092 = vmatpush1.bf16.msra.mxu0 %v21249_v32  ;;  %v21228_v32 = vcombine.high %v14939_v10, %v14943_v50  ;;  %v21298_v44 = vcombine.high %v15010_v6, %v15014_v17  ;;  %v21297_v11 = vcombine.low %v15010_v6, %v15014_v17  ;;  %v15062_v6 = vld [vmem:[#allocation8 + $0x11e0] sm:$0xff]  ;;  %v20776_v17 = vld [vmem:[#allocation7 + $0x8] ss:$0 sm:$0xff] }
 0x88b   :  { %18093 = vmatprep.subr.bf16.mxu0 %v21258_v19  ;;  %v14951_v19 = vld [vmem:[#allocation8 + $0xe68] sm:$0xff] }
 0x88c   :  { %18281 = vmatpush1.bf16.msra.mxu1 %v21187_v37  ;;  %v25299_v37 = vpack.c.bf16 %v14478_v36, %v14478_v36 }
 0x88d   :  { %18282 = vmatprep.subr.bf16.mxu1 %v21196_v62  ;;  %v15022_v62 = vld [vmem:[#allocation8 + $0x10a0] sm:$0xff] }
 0x88e   :  { %18094 = vmatpush1.bf16.msra.mxu0 %v21257_v2  ;;  %v21236_v2 = vcombine.high %v14947_v18, %v14951_v19 }
 0x88f   :  { %18095 = vmatprep.subr.bf16.mxu0 %v21266_v22  ;;  %v21306_v22 = vcombine.high %v15018_v49, %v15022_v62 }
 0x890   :  { %18283 = vmatpush1.bf16.msra.mxu1 %v21195_v24  ;;  %v21235_v24 = vcombine.low %v14947_v18, %v14951_v19  ;;  %v14995_v18 = vld [vmem:[#allocation8 + $0xfc8] sm:$0xff] }
 0x891   :  { %18284 = vmatprep.subr.bf16.mxu1 %v21204_v40  ;;  %v21244_v40 = vcombine.high %v14955_v16, %v14959_v21  ;;  %v14999_v19 = vld [vmem:[#allocation8 + $0xfe8] sm:$0xff] }
 0x892   :  { %v21634_v27 = vpop.f32.mrb[68].mxu1  ;;  %18096 = vmatpush1.bf16.msra.mxu0 %v21265_v9  ;;  %v21305_v9 = vcombine.low %v15018_v49, %v15022_v62  ;;  %v14492_v62 = vld [vmem:[#allocation8 + $0x10] sm:$0xff] }
 0x893   :  { %v21635_v59 = vpop.f32.mrb[69].mxu1  ;;  %18097 = vmatprep.subr.bf16.mxu0 %v21274_v47  ;;  %v21243_v47 = vcombine.low %v14955_v16, %v14959_v21  ;;  %v15003_v21 = vld [vmem:[#allocation8 + $0x1008] sm:$0xff] }
 0x894   :  { %v21636_v56 = vadd.f32 %v21635_v59, %v21634_v27  ;;  %v21637_v28 = vpop.f32.mrb[70].mxu1  ;;  %18285 = vmatpush1.bf16.msra.mxu1 %v21203_v15  ;;  %v15034_v15 = vld [vmem:[#allocation8 + $0x1100] sm:$0xff]  ;;  %v14971_v27 = vld [vmem:[#allocation8 + $0xf08] sm:$0xff] }
 0x895   :  { %v21638_v33 = vpop.f32.mrb[71].mxu1  ;;  %18286 = vmatprep.subr.bf16.mxu1 %v21212_v57  ;;  %v21313_v57 = vcombine.low %v15026_v51, %v15030_v53  ;;  %v21322_v48 = vcombine.high %v15034_v15, %v15038_v13  ;;  %v15046_v59 = vld [vmem:[#allocation8 + $0x1160] sm:$0xff]  ;;  %v14979_v28 = vld [vmem:[#allocation8 + $0xf48] sm:$0xff]  ;;  %v21283_v53 = vcombine.low %v14995_v18, %v14999_v19 }
 0x896   :  { %v14360_v8 = vadd.f32 %v21636_v56, %v25284_v46  ;;  %18098 = vmatpush1.bf16.msra.mxu0 %v21273_v14  ;;  %v21289_v46 = vcombine.low %v15002_v4, %v15006_v20  ;;  %v14975_v14 = vld [vmem:[#allocation8 + $0xf28] sm:$0xff]  ;;  %v21321_v56 = vcombine.low %v15034_v15, %v15038_v13  ;;  %v21330_v4 = vcombine.high %v15042_v38, %v15046_v59  ;;  %v15050_v33 = vld [vmem:[#allocation8 + $0x1180] sm:$0xff]  ;;  %v14508_v15 = vld [vmem:[#allocation8 + $0x90] sm:$0xff] }
 0x897   :  { %18099 = vmatprep.subr.bf16.mxu0 %v21282_v23  ;;  %v21260_v23 = vcombine.high %v14971_v27, %v14975_v14  ;;  %v21259_v20 = vcombine.low %v14971_v27, %v14975_v14  ;;  %v14512_v13 = vld [vmem:[#allocation8 + $0xb0] sm:$0xff]  ;;  %v15019_v27 = vld [vmem:[#allocation8 + $0x1088] sm:$0xff] }
 0x898   :  { %v25295_v43 = vadd.f32 %v25282_v5, %v14360_v8  ;;  %18287 = vmatpush1.bf16.msra.mxu1 %v21211_v45  ;;  %v21227_v5 = vcombine.low %v14939_v10, %v14943_v50  ;;  %v14983_v45 = vld [vmem:[#allocation8 + $0xf68] sm:$0xff] }
 0x899   :  { %18288 = vmatprep.subr.bf16.mxu1 %v21220_v55  ;;  %v15054_v55 = vld [vmem:[#allocation8 + $0x11a0] sm:$0xff]  ;;  %v21268_v8 = vcombine.high %v14979_v28, %v14983_v45  ;;  %v14987_v10 = vld [vmem:[#allocation8 + $0xf88] sm:$0xff] }
 0x89a   :  { %v14413_v61 = vmax.f32 %v25172_v12, %v25295_v43  ;;  %18100 = vmatpush1.bf16.msra.mxu0 %v21281_v34  ;;  %v21329_v34 = vcombine.low %v15042_v38, %v15046_v59  ;;  %v14991_v50 = vld [vmem:[#allocation8 + $0xfa8] sm:$0xff]  ;;  %v21338_v36 = vcombine.high %v15050_v33, %v15054_v55  ;;  %v14516_v38 = vld [vmem:[#allocation8 + $0xd0] sm:$0xff] }
 0x89b   :  { %18110 = vmatprep.subr.bf16.mxu0 %v21290_v39  ;;  %v21267_v39 = vcombine.low %v14979_v28, %v14983_v45  ;;  %v21275_v49 = vcombine.low %v14987_v10, %v14991_v50  ;;  %v15023_v14 = vld [vmem:[#allocation8 + $0x10a8] sm:$0xff]  ;;  %v14520_v59 = vld [vmem:[#allocation8 + $0xf0] sm:$0xff] }
 0x89c   :  { %18289 = vmatpush1.bf16.msra.mxu1 %v21219_v30  ;;  %v15058_v30 = vld [vmem:[#allocation8 + $0x11c0] sm:$0xff]  ;;  %v15027_v28 = vld [vmem:[#allocation8 + $0x10c8] sm:$0xff] }
 0x89d   :  { %18102 = vmatmul.mubr.bf16.vlgmr.msra.gmra.mrb[64].mxu0 %v25299_v37  ;;  %18290 = vmatprep.subr.bf16.mxu1 %v21228_v32  ;;  %v21276_v32 = vcombine.high %v14987_v10, %v14991_v50  ;;  %v21345_v16 = vcombine.low %v15058_v30, %v15062_v6  ;;  %v15031_v45 = vld [vmem:[#allocation8 + $0x10e8] sm:$0xff] }
 0x89e   :  { %18111 = vmatpush1.bf16.msra.mxu0 %v21289_v46  ;;  %18142 = vmatprep.mubr.bf16.mxu0 %v24735_v0  ;;  %v21337_v46 = vcombine.low %v15050_v33, %v15054_v55  ;;  %v14524_v33 = vld [vmem:[#allocation8 + $0x110] sm:$0xff]  ;;  %v15035_v10 = vld [vmem:[#allocation8 + $0x1108] sm:$0xff] }
 0x89f   :  { %18112 = vmatprep.subr.bf16.mxu0 %v21298_v44  ;;  %v21346_v44 = vcombine.high %v15058_v30, %v15062_v6  ;;  %v14528_v55 = vld [vmem:[#allocation8 + $0x130] sm:$0xff]  ;;  %v15039_v50 = vld [vmem:[#allocation8 + $0x1128] sm:$0xff] }
 0x8a0   :  { %18291 = vmatpush1.bf16.msra.mxu1 %v21227_v5  ;;  %v14471_v5 = vadd.f32 %v20776_v17, %v14413_v61  ;;  %v15011_v61 = vld [vmem:[#allocation8 + $0x1048] sm:$0xff]  ;;  %v14532_v30 = vld [vmem:[#allocation8 + $0x150] sm:$0xff]  ;;  %v21324_v17 = vcombine.high %v15035_v10, %v15039_v50 }
 0x8a1   :  { %18292 = vmatprep.subr.bf16.mxu1 %v21236_v2  ;;  %v14496_v2 = vld [vmem:[#allocation8 + $0x30] sm:$0xff] }
 0x8a2   :  { %18113 = vmatpush1.bf16.msra.mxu0 %v21297_v11  ;;  %v21284_v11 = vcombine.high %v14995_v18, %v14999_v19  ;;  %v20782_v51 = vcombine.high %v14492_v62, %v14496_v2  ;;  %v20781_v43 = vcombine.low %v14492_v62, %v14496_v2  ;;  %v14536_v6 = vld [vmem:[#allocation8 + $0x170] sm:$0xff]  ;;  %v15047_v18 = vld [vmem:[#allocation8 + $0x1168] sm:$0xff] }
 0x8a3   :  { %18114 = vmatprep.subr.bf16.mxu0 %v21306_v22  ;;  %v15007_v22 = vld [vmem:[#allocation8 + $0x1028] sm:$0xff]  ;;  %v20822_v19 = vcombine.high %v14532_v30, %v14536_v6  ;;  %v20821_v2 = vcombine.low %v14532_v30, %v14536_v6  ;;  %v14517_v6 = vld [vmem:[#allocation8 + $0xd8] sm:$0xff] }
 0x8a4   :  { %18293 = vmatpush1.bf16.msra.mxu1 %v21235_v24  ;;  %v14480_v24 = vmax.f32 %v14471_v5, 0.0  ;;  %v21292_v12 = vcombine.high %v15003_v21, %v15007_v22  ;;  %v14540_v5 = vld [vmem:[#allocation8 + $0x190] sm:$0xff] }
 0x8a5   :  { %18294 = vmatprep.subr.bf16.mxu1 %v21244_v40  ;;  %v14500_v40 = vld [vmem:[#allocation8 + $0x50] sm:$0xff] }
 0x8a6   :  { %18115 = vmatpush1.bf16.msra.mxu0 %v21305_v9  ;;  %v14504_v9 = vld [vmem:[#allocation8 + $0x70] sm:$0xff]  ;;  %v25306_v41 = vpack.c.bf16 %v14480_v24, %v14480_v24 }
 0x8a7   :  { %18116 = vmatprep.subr.bf16.mxu0 %v21314_v1  ;;  %v20790_v1 = vcombine.high %v14500_v40, %v14504_v9  ;;  %v14548_v24 = vld [vmem:[#allocation8 + $0x1d0] sm:$0xff] }
 0x8a8   :  { %18295 = vmatpush1.bf16.msra.mxu1 %v21243_v47  ;;  %v21291_v47 = vcombine.low %v15003_v21, %v15007_v22 }
 0x8a9   :  { %18296 = vmatprep.subr.bf16.mxu1 %v21252_v42  ;;  %v21300_v42 = vcombine.high %v15011_v61, %v15015_v26 }
 0x8aa   :  { %18117 = vmatpush1.bf16.msra.mxu0 %v21313_v57  ;;  %v20789_v57 = vcombine.low %v14500_v40, %v14504_v9  ;;  %v15059_v9 = vld [vmem:[#allocation8 + $0x11c8] sm:$0xff] }
 0x8ab   :  { %18118 = vmatprep.subr.bf16.mxu0 %v21322_v48  ;;  %v20798_v48 = vcombine.high %v14508_v15, %v14512_v13 }
 0x8ac   :  { %18297 = vmatpush1.bf16.msra.mxu1 %v21251_v3  ;;  %v21299_v3 = vcombine.low %v15011_v61, %v15015_v26  ;;  %v14556_v26 = vld [vmem:[#allocation8 + $0x210] sm:$0xff] }
 0x8ad   :  { %18298 = vmatprep.subr.bf16.mxu1 %v21260_v23  ;;  %v21308_v23 = vcombine.high %v15019_v27, %v15023_v14 }
 0x8ae   :  { %18119 = vmatpush1.bf16.msra.mxu0 %v21321_v56  ;;  %v20797_v56 = vcombine.low %v14508_v15, %v14512_v13  ;;  %v14493_v13 = vld [vmem:[#allocation8 + $0x18] sm:$0xff] }
 0x8af   :  { %18120 = vmatprep.subr.bf16.mxu0 %v21330_v4  ;;  %v20806_v4 = vcombine.high %v14516_v38, %v14520_v59 }
 0x8b0   :  { %18299 = vmatpush1.bf16.msra.mxu1 %v21259_v20  ;;  %v21307_v20 = vcombine.low %v15019_v27, %v15023_v14  ;;  %v14564_v14 = vld [vmem:[#allocation8 + $0x250] sm:$0xff] }
 0x8b1   :  { %18300 = vmatprep.subr.bf16.mxu1 %v21268_v8  ;;  %v21316_v8 = vcombine.high %v15027_v28, %v15031_v45 }
 0x8b2   :  { %18121 = vmatpush1.bf16.msra.mxu0 %v21329_v34  ;;  %v20805_v34 = vcombine.low %v14516_v38, %v14520_v59  ;;  %v14501_v59 = vld [vmem:[#allocation8 + $0x58] sm:$0xff] }
 0x8b3   :  { %18122 = vmatprep.subr.bf16.mxu0 %v21338_v36  ;;  %v20814_v36 = vcombine.high %v14524_v33, %v14528_v55 }
 0x8b4   :  { %18301 = vmatpush1.bf16.msra.mxu1 %v21267_v39  ;;  %v21315_v39 = vcombine.low %v15027_v28, %v15031_v45  ;;  %v14572_v45 = vld [vmem:[#allocation8 + $0x290] sm:$0xff] }
 0x8b5   :  { %18302 = vmatprep.subr.bf16.mxu1 %v21276_v32  ;;  %v20813_v32 = vcombine.low %v14524_v33, %v14528_v55  ;;  %v14509_v55 = vld [vmem:[#allocation8 + $0x98] sm:$0xff] }
 0x8b6   :  { %18123 = vmatpush1.bf16.msra.mxu0 %v21337_v46  ;;  %v15043_v46 = vld [vmem:[#allocation8 + $0x1148] sm:$0xff] }
 0x8b7   :  { %18124 = vmatprep.subr.bf16.mxu0 %v21346_v44  ;;  %v21323_v44 = vcombine.low %v15035_v10, %v15039_v50  ;;  %v21332_v62 = vcombine.high %v15043_v46, %v15047_v18  ;;  %v21331_v22 = vcombine.low %v15043_v46, %v15047_v18  ;;  %v14580_v50 = vld [vmem:[#allocation8 + $0x2d0] sm:$0xff] }
 0x8b8   :  { %18303 = vmatpush1.bf16.msra.mxu1 %v21275_v49  ;;  %v14544_v49 = vld [vmem:[#allocation8 + $0x1b0] sm:$0xff] }
 0x8b9   :  { %18304 = vmatprep.subr.bf16.mxu1 %v21284_v11  ;;  %v15051_v11 = vld [vmem:[#allocation8 + $0x1188] sm:$0xff]  ;;  %v20830_v21 = vcombine.high %v14540_v5, %v14544_v49  ;;  %v20829_v40 = vcombine.low %v14540_v5, %v14544_v49  ;;  %v14588_v18 = vld [vmem:[#allocation8 + $0x310] sm:$0xff]  ;;  %v14529_v49 = vld [vmem:[#allocation8 + $0x138] sm:$0xff] }
 0x8ba   :  { %18125 = vmatpush1.bf16.msra.mxu0 %v21345_v16  ;;  %v15055_v16 = vld [vmem:[#allocation8 + $0x11a8] sm:$0xff] }
 0x8bb   :  { %18356 = vmatprep.subr.bf16.mxu0 %v20782_v51  ;;  %v14552_v51 = vld [vmem:[#allocation8 + $0x1f0] sm:$0xff]  ;;  %v21339_v61 = vcombine.low %v15051_v11, %v15055_v16 }
 0x8bc   :  { %18305 = vmatpush1.bf16.msra.mxu1 %v21283_v53  ;;  %v21340_v53 = vcombine.high %v15051_v11, %v15055_v16  ;;  %v20837_v15 = vcombine.low %v14548_v24, %v14552_v51  ;;  %v14596_v11 = vld [vmem:[#allocation8 + $0x350] sm:$0xff] }
 0x8bd   :  { %18143 = vmatmul.mubr.bf16.vlgmr.msra.gmra.mrb[64].mxu0 %v25306_v41  ;;  %18315 = vmatprep.subr.bf16.mxu1 %v21292_v12  ;;  %v15063_v12 = vld [vmem:[#allocation8 + $0x11e8] sm:$0xff]  ;;  %v14600_v16 = vld [vmem:[#allocation8 + $0x370] sm:$0xff] }
 0x8be   :  { %18357 = vmatpush1.bf16.msra.mxu0 %v20781_v43  ;;  %18388 = vmatprep.mubr.bf16.mxu0 %v25219_v35  ;;  %v20838_v43 = vcombine.high %v14548_v24, %v14552_v51  ;;  %v21347_v27 = vcombine.low %v15059_v9, %v15063_v12  ;;  %v14533_v24 = vld [vmem:[#allocation8 + $0x158] sm:$0xff] }
 0x8bf   :  { %18307 = vmatmul.mubr.bf16.vlgmr.msra.gmra.mrb[72].mxu1 %v25299_v37  ;;  %18358 = vmatprep.subr.bf16.mxu0 %v20790_v1  ;;  %v14560_v1 = vld [vmem:[#allocation8 + $0x230] sm:$0xff]  ;;  %v14537_v51 = vld [vmem:[#allocation8 + $0x178] sm:$0xff] }
 0x8c0   :  { %18316 = vmatpush1.bf16.msra.mxu1 %v21291_v47  ;;  %18347 = vmatprep.mubr.bf16.mxu1 %v24735_v0  ;;  %v21348_v47 = vcombine.high %v15059_v9, %v15063_v12  ;;  %v20845_v38 = vcombine.low %v14556_v26, %v14560_v1  ;;  %v14604_v9 = vld [vmem:[#allocation8 + $0x390] sm:$0xff] }
 0x8c1   :  { %18317 = vmatprep.subr.bf16.mxu1 %v21300_v42  ;;  %v14497_v42 = vld [vmem:[#allocation8 + $0x38] sm:$0xff]  ;;  %v14608_v12 = vld [vmem:[#allocation8 + $0x3b0] sm:$0xff] }
 0x8c2   :  { %18359 = vmatpush1.bf16.msra.mxu0 %v20789_v57  ;;  %v20846_v57 = vcombine.high %v14556_v26, %v14560_v1  ;;  %v20783_v28 = vcombine.low %v14493_v13, %v14497_v42  ;;  %v14541_v26 = vld [vmem:[#allocation8 + $0x198] sm:$0xff] }
 0x8c3   :  { %18360 = vmatprep.subr.bf16.mxu0 %v20798_v48  ;;  %v14568_v48 = vld [vmem:[#allocation8 + $0x270] sm:$0xff]  ;;  %v14545_v1 = vld [vmem:[#allocation8 + $0x1b8] sm:$0xff] }
 0x8c4   :  { %18318 = vmatpush1.bf16.msra.mxu1 %v21299_v3  ;;  %v20784_v3 = vcombine.high %v14493_v13, %v14497_v42  ;;  %v20853_v33 = vcombine.low %v14564_v14, %v14568_v48  ;;  %v14612_v13 = vld [vmem:[#allocation8 + $0x3d0] sm:$0xff] }
 0x8c5   :  { %18319 = vmatprep.subr.bf16.mxu1 %v21308_v23  ;;  %v14505_v23 = vld [vmem:[#allocation8 + $0x78] sm:$0xff]  ;;  %v14616_v42 = vld [vmem:[#allocation8 + $0x3f0] sm:$0xff] }
 0x8c6   :  { %18361 = vmatpush1.bf16.msra.mxu0 %v20797_v56  ;;  %v20854_v56 = vcombine.high %v14564_v14, %v14568_v48  ;;  %v20791_v10 = vcombine.low %v14501_v59, %v14505_v23  ;;  %v14549_v14 = vld [vmem:[#allocation8 + $0x1d8] sm:$0xff] }
 0x8c7   :  { %18362 = vmatprep.subr.bf16.mxu0 %v20806_v4  ;;  %v14576_v4 = vld [vmem:[#allocation8 + $0x2b0] sm:$0xff]  ;;  %v14553_v48 = vld [vmem:[#allocation8 + $0x1f8] sm:$0xff] }
 0x8c8   :  { %18320 = vmatpush1.bf16.msra.mxu1 %v21307_v20  ;;  %v20792_v20 = vcombine.high %v14501_v59, %v14505_v23  ;;  %v20861_v30 = vcombine.low %v14572_v45, %v14576_v4  ;;  %v14620_v59 = vld [vmem:[#allocation8 + $0x410] sm:$0xff] }
 0x8c9   :  { %18321 = vmatprep.subr.bf16.mxu1 %v21316_v8  ;;  %v14513_v8 = vld [vmem:[#allocation8 + $0xb8] sm:$0xff]  ;;  %v14624_v23 = vld [vmem:[#allocation8 + $0x430] sm:$0xff] }
 0x8ca   :  { %18363 = vmatpush1.bf16.msra.mxu0 %v20805_v34  ;;  %v20862_v34 = vcombine.high %v14572_v45, %v14576_v4  ;;  %v20799_v46 = vcombine.low %v14509_v55, %v14513_v8  ;;  %v14557_v45 = vld [vmem:[#allocation8 + $0x218] sm:$0xff] }
 0x8cb   :  { %18364 = vmatprep.subr.bf16.mxu0 %v20814_v36  ;;  %v14584_v36 = vld [vmem:[#allocation8 + $0x2f0] sm:$0xff]  ;;  %v14561_v4 = vld [vmem:[#allocation8 + $0x238] sm:$0xff] }
 0x8cc   :  { %18322 = vmatpush1.bf16.msra.mxu1 %v21315_v39  ;;  %v20800_v39 = vcombine.high %v14509_v55, %v14513_v8  ;;  %v20869_v5 = vcombine.low %v14580_v50, %v14584_v36  ;;  %v14628_v55 = vld [vmem:[#allocation8 + $0x450] sm:$0xff] }
 0x8cd   :  { %18323 = vmatprep.subr.bf16.mxu1 %v21324_v17  ;;  %v14521_v17 = vld [vmem:[#allocation8 + $0xf8] sm:$0xff]  ;;  %v14632_v8 = vld [vmem:[#allocation8 + $0x470] sm:$0xff] }
 0x8ce   :  { %18365 = vmatpush1.bf16.msra.mxu0 %v20813_v32  ;;  %v20870_v32 = vcombine.high %v14580_v50, %v14584_v36  ;;  %v14565_v50 = vld [vmem:[#allocation8 + $0x258] sm:$0xff] }
 0x8cf   :  { %18366 = vmatprep.subr.bf16.mxu0 %v20822_v19  ;;  %v14592_v19 = vld [vmem:[#allocation8 + $0x330] sm:$0xff]  ;;  %v14569_v36 = vld [vmem:[#allocation8 + $0x278] sm:$0xff] }
 0x8d0   :  { %18324 = vmatpush1.bf16.msra.mxu1 %v21323_v44  ;;  %v20808_v44 = vcombine.high %v14517_v6, %v14521_v17 }
 0x8d1   :  { %18325 = vmatprep.subr.bf16.mxu1 %v21332_v62  ;;  %v20878_v62 = vcombine.high %v14588_v18, %v14592_v19 }
 0x8d2   :  { %18367 = vmatpush1.bf16.msra.mxu0 %v20821_v2  ;;  %v20807_v2 = vcombine.low %v14517_v6, %v14521_v17  ;;  %v14636_v6 = vld [vmem:[#allocation8 + $0x490] sm:$0xff] }
 0x8d3   :  { %18368 = vmatprep.subr.bf16.mxu0 %v20830_v21  ;;  %v14640_v17 = vld [vmem:[#allocation8 + $0x4b0] sm:$0xff] }
 0x8d4   :  { %18326 = vmatpush1.bf16.msra.mxu1 %v21331_v22  ;;  %v20877_v22 = vcombine.low %v14588_v18, %v14592_v19  ;;  %v14573_v18 = vld [vmem:[#allocation8 + $0x298] sm:$0xff] }
 0x8d5   :  { %18327 = vmatprep.subr.bf16.mxu1 %v21340_v53  ;;  %v20886_v53 = vcombine.high %v14596_v11, %v14600_v16  ;;  %v14577_v19 = vld [vmem:[#allocation8 + $0x2b8] sm:$0xff] }
 0x8d6   :  { %18369 = vmatpush1.bf16.msra.mxu0 %v20829_v40 }
 0x8d7   :  { %18370 = vmatprep.subr.bf16.mxu0 %v20838_v43  ;;  %v20824_v43 = vcombine.high %v14533_v24, %v14537_v51 }
 0x8d8   :  { %18328 = vmatpush1.bf16.msra.mxu1 %v21339_v61  ;;  %v20885_v61 = vcombine.low %v14596_v11, %v14600_v16  ;;  %v14581_v11 = vld [vmem:[#allocation8 + $0x2d8] sm:$0xff] }
 0x8d9   :  { %18329 = vmatprep.subr.bf16.mxu1 %v21348_v47  ;;  %v20894_v47 = vcombine.high %v14604_v9, %v14608_v12  ;;  %v14585_v16 = vld [vmem:[#allocation8 + $0x2f8] sm:$0xff] }
 0x8da   :  { %18371 = vmatpush1.bf16.msra.mxu0 %v20837_v15  ;;  %v20823_v15 = vcombine.low %v14533_v24, %v14537_v51  ;;  %v14652_v24 = vld [vmem:[#allocation8 + $0x510] sm:$0xff] }
 0x8db   :  { %18372 = vmatprep.subr.bf16.mxu0 %v20846_v57  ;;  %v20832_v57 = vcombine.high %v14541_v26, %v14545_v1  ;;  %v14656_v51 = vld [vmem:[#allocation8 + $0x530] sm:$0xff] }
 0x8dc   :  { %18330 = vmatpush1.bf16.msra.mxu1 %v21347_v27  ;;  %v20893_v27 = vcombine.low %v14604_v9, %v14608_v12  ;;  %v14589_v9 = vld [vmem:[#allocation8 + $0x318] sm:$0xff] }
 0x8dd   :  { %18561 = vmatprep.subr.bf16.mxu1 %v20784_v3  ;;  %v20902_v3 = vcombine.high %v14612_v13, %v14616_v42  ;;  %v14593_v12 = vld [vmem:[#allocation8 + $0x338] sm:$0xff] }
 0x8de   :  { %18373 = vmatpush1.bf16.msra.mxu0 %v20845_v38  ;;  %v20831_v38 = vcombine.low %v14541_v26, %v14545_v1  ;;  %v14660_v26 = vld [vmem:[#allocation8 + $0x550] sm:$0xff] }
 0x8df   :  { %18348 = vmatmul.mubr.bf16.vlgmr.msra.gmra.mrb[72].mxu1 %v25306_v41  ;;  %18374 = vmatprep.subr.bf16.mxu0 %v20854_v56  ;;  %v20840_v56 = vcombine.high %v14549_v14, %v14553_v48  ;;  %v14664_v1 = vld [vmem:[#allocation8 + $0x570] sm:$0xff] }
 0x8e0   :  { %18562 = vmatpush1.bf16.msra.mxu1 %v20783_v28  ;;  %18593 = vmatprep.mubr.bf16.mxu1 %v25219_v35  ;;  %v14525_v35 = vld [vmem:[#allocation8 + $0x118] sm:$0xff]  ;;  %v20901_v28 = vcombine.low %v14612_v13, %v14616_v42 }
 0x8e1   :  { %18563 = vmatprep.subr.bf16.mxu1 %v20792_v20  ;;  %v20816_v21 = vcombine.high %v14525_v35, %v14529_v49  ;;  %v20815_v40 = vcombine.low %v14525_v35, %v14529_v49  ;;  %v20910_v20 = vcombine.high %v14620_v59, %v14624_v23  ;;  %v14644_v35 = vld [vmem:[#allocation8 + $0x4d0] sm:$0xff]  ;;  %v14597_v13 = vld [vmem:[#allocation8 + $0x358] sm:$0xff] }
 0x8e2   :  { %18375 = vmatpush1.bf16.msra.mxu0 %v20853_v33  ;;  %v20839_v33 = vcombine.low %v14549_v14, %v14553_v48  ;;  %v14648_v49 = vld [vmem:[#allocation8 + $0x4f0] sm:$0xff]  ;;  %v14601_v42 = vld [vmem:[#allocation8 + $0x378] sm:$0xff] }
 0x8e3   :  { %18376 = vmatprep.subr.bf16.mxu0 %v20862_v34  ;;  %v20848_v34 = vcombine.high %v14557_v45, %v14561_v4  ;;  %v14668_v14 = vld [vmem:[#allocation8 + $0x590] sm:$0xff] }
 0x8e4   :  { %18564 = vmatpush1.bf16.msra.mxu1 %v20791_v10  ;;  %v20909_v10 = vcombine.low %v14620_v59, %v14624_v23  ;;  %v14672_v48 = vld [vmem:[#allocation8 + $0x5b0] sm:$0xff]  ;;  %v14605_v59 = vld [vmem:[#allocation8 + $0x398] sm:$0xff] }
 0x8e5   :  { %18565 = vmatprep.subr.bf16.mxu1 %v20800_v39  ;;  %v20918_v39 = vcombine.high %v14628_v55, %v14632_v8  ;;  %v14609_v23 = vld [vmem:[#allocation8 + $0x3b8] sm:$0xff] }
 0x8e6   :  { %18377 = vmatpush1.bf16.msra.mxu0 %v20861_v30  ;;  %v20847_v30 = vcombine.low %v14557_v45, %v14561_v4  ;;  %v14676_v45 = vld [vmem:[#allocation8 + $0x5d0] sm:$0xff] }
 0x8e7   :  { %18378 = vmatprep.subr.bf16.mxu0 %v20870_v32  ;;  %v20856_v32 = vcombine.high %v14565_v50, %v14569_v36  ;;  %v14680_v4 = vld [vmem:[#allocation8 + $0x5f0] sm:$0xff] }
 0x8e8   :  { %18566 = vmatpush1.bf16.msra.mxu1 %v20799_v46  ;;  %v20917_v46 = vcombine.low %v14628_v55, %v14632_v8  ;;  %v14613_v55 = vld [vmem:[#allocation8 + $0x3d8] sm:$0xff] }
 0x8e9   :  { %18567 = vmatprep.subr.bf16.mxu1 %v20808_v44  ;;  %v20926_v44 = vcombine.high %v14636_v6, %v14640_v17  ;;  %v14617_v8 = vld [vmem:[#allocation8 + $0x3f8] sm:$0xff] }
 0x8ea   :  { %18379 = vmatpush1.bf16.msra.mxu0 %v20869_v5  ;;  %v20855_v5 = vcombine.low %v14565_v50, %v14569_v36  ;;  %v14684_v50 = vld [vmem:[#allocation8 + $0x610] sm:$0xff] }
 0x8eb   :  { %18380 = vmatprep.subr.bf16.mxu0 %v20878_v62  ;;  %v20864_v62 = vcombine.high %v14573_v18, %v14577_v19  ;;  %v14688_v36 = vld [vmem:[#allocation8 + $0x630] sm:$0xff] }
 0x8ec   :  { %18568 = vmatpush1.bf16.msra.mxu1 %v20807_v2  ;;  %v20925_v2 = vcombine.low %v14636_v6, %v14640_v17  ;;  %v14621_v6 = vld [vmem:[#allocation8 + $0x418] sm:$0xff] }
 0x8ed   :  { %18569 = vmatprep.subr.bf16.mxu1 %v20816_v21  ;;  %v20934_v21 = vcombine.high %v14644_v35, %v14648_v49  ;;  %v14625_v17 = vld [vmem:[#allocation8 + $0x438] sm:$0xff] }
 0x8ee   :  { %18381 = vmatpush1.bf16.msra.mxu0 %v20877_v22  ;;  %v20863_v22 = vcombine.low %v14573_v18, %v14577_v19  ;;  %v14692_v18 = vld [vmem:[#allocation8 + $0x650] sm:$0xff] }
 0x8ef   :  { %18382 = vmatprep.subr.bf16.mxu0 %v20886_v53  ;;  %v20872_v53 = vcombine.high %v14581_v11, %v14585_v16  ;;  %v14696_v19 = vld [vmem:[#allocation8 + $0x670] sm:$0xff] }
 0x8f0   :  { %18570 = vmatpush1.bf16.msra.mxu1 %v20815_v40  ;;  %v20933_v40 = vcombine.low %v14644_v35, %v14648_v49  ;;  %v14629_v35 = vld [vmem:[#allocation8 + $0x458] sm:$0xff] }
 0x8f1   :  { %18571 = vmatprep.subr.bf16.mxu1 %v20824_v43  ;;  %v20942_v43 = vcombine.high %v14652_v24, %v14656_v51  ;;  %v14633_v49 = vld [vmem:[#allocation8 + $0x478] sm:$0xff] }
 0x8f2   :  { %18383 = vmatpush1.bf16.msra.mxu0 %v20885_v61  ;;  %v20871_v61 = vcombine.low %v14581_v11, %v14585_v16  ;;  %v14700_v11 = vld [vmem:[#allocation8 + $0x690] sm:$0xff] }
 0x8f3   :  { %18384 = vmatprep.subr.bf16.mxu0 %v20894_v47  ;;  %v20880_v47 = vcombine.high %v14589_v9, %v14593_v12  ;;  %v14704_v16 = vld [vmem:[#allocation8 + $0x6b0] sm:$0xff] }
 0x8f4   :  { %18572 = vmatpush1.bf16.msra.mxu1 %v20823_v15  ;;  %v20941_v15 = vcombine.low %v14652_v24, %v14656_v51  ;;  %v14637_v24 = vld [vmem:[#allocation8 + $0x498] sm:$0xff] }
 0x8f5   :  { %18573 = vmatprep.subr.bf16.mxu1 %v20832_v57  ;;  %v20950_v57 = vcombine.high %v14660_v26, %v14664_v1  ;;  %v14641_v51 = vld [vmem:[#allocation8 + $0x4b8] sm:$0xff] }
 0x8f6   :  { %18385 = vmatpush1.bf16.msra.mxu0 %v20893_v27  ;;  %v20879_v27 = vcombine.low %v14589_v9, %v14593_v12  ;;  %v14708_v9 = vld [vmem:[#allocation8 + $0x6d0] sm:$0xff] }
 0x8f7   :  { %18386 = vmatprep.subr.bf16.mxu0 %v20902_v3  ;;  %v20888_v3 = vcombine.high %v14597_v13, %v14601_v42  ;;  %v14712_v12 = vld [vmem:[#allocation8 + $0x6f0] sm:$0xff] }
 0x8f8   :  { %18574 = vmatpush1.bf16.msra.mxu1 %v20831_v38  ;;  %v20949_v38 = vcombine.low %v14660_v26, %v14664_v1  ;;  %v14645_v26 = vld [vmem:[#allocation8 + $0x4d8] sm:$0xff] }
 0x8f9   :  { %18575 = vmatprep.subr.bf16.mxu1 %v20840_v56  ;;  %v20958_v56 = vcombine.high %v14668_v14, %v14672_v48  ;;  %v14649_v1 = vld [vmem:[#allocation8 + $0x4f8] sm:$0xff] }
 0x8fa   :  { %18387 = vmatpush1.bf16.msra.mxu0 %v20901_v28  ;;  %v20887_v28 = vcombine.low %v14597_v13, %v14601_v42  ;;  %v14716_v13 = vld [vmem:[#allocation8 + $0x710] sm:$0xff]  ;;  %v20936_v42 = vcombine.high %v14645_v26, %v14649_v1 }
 0x8fb   :  { %18397 = vmatprep.subr.bf16.mxu0 %v20910_v20  ;;  %v20896_v20 = vcombine.high %v14605_v59, %v14609_v23 }
 0x8fc   :  { %18576 = vmatpush1.bf16.msra.mxu1 %v20839_v33  ;;  %v20957_v33 = vcombine.low %v14668_v14, %v14672_v48  ;;  %v20935_v48 = vcombine.low %v14645_v26, %v14649_v1 }
 0x8fd   :  { %18389 = vmatmul.mubr.bf16.vlgmr.msra.gmra.mrb[68].mxu0 %v25240_v63  ;;  %18577 = vmatprep.subr.bf16.mxu1 %v20848_v34  ;;  %v20966_v34 = vcombine.high %v14676_v45, %v14680_v4 }
 0x8fe   :  { %18398 = vmatpush1.bf16.msra.mxu0 %v20909_v10  ;;  %18429 = vmatprep.mubr.bf16.mxu0 %v25242_v58  ;;  %v20895_v10 = vcombine.low %v14605_v59, %v14609_v23 }
 0x8ff   :  { %18399 = vmatprep.subr.bf16.mxu0 %v20918_v39  ;;  %v20904_v39 = vcombine.high %v14613_v55, %v14617_v8 }
 0x900   :  { %18578 = vmatpush1.bf16.msra.mxu1 %v20847_v30  ;;  %v20965_v30 = vcombine.low %v14676_v45, %v14680_v4 }
 0x901   :  { %18579 = vmatprep.subr.bf16.mxu1 %v20856_v32  ;;  %v20974_v32 = vcombine.high %v14684_v50, %v14688_v36 }
 0x902   :  { %18400 = vmatpush1.bf16.msra.mxu0 %v20917_v46  ;;  %v20903_v46 = vcombine.low %v14613_v55, %v14617_v8 }
 0x903   :  { %18401 = vmatprep.subr.bf16.mxu0 %v20926_v44  ;;  %v20912_v44 = vcombine.high %v14621_v6, %v14625_v17 }
 0x904   :  { %18580 = vmatpush1.bf16.msra.mxu1 %v20855_v5  ;;  %v20973_v5 = vcombine.low %v14684_v50, %v14688_v36 }
 0x905   :  { %18581 = vmatprep.subr.bf16.mxu1 %v20864_v62  ;;  %v20982_v62 = vcombine.high %v14692_v18, %v14696_v19 }
 0x906   :  { %18402 = vmatpush1.bf16.msra.mxu0 %v20925_v2  ;;  %v20911_v2 = vcombine.low %v14621_v6, %v14625_v17 }
 0x907   :  { %18403 = vmatprep.subr.bf16.mxu0 %v20934_v21  ;;  %v20920_v21 = vcombine.high %v14629_v35, %v14633_v49 }
 0x908   :  { %18582 = vmatpush1.bf16.msra.mxu1 %v20863_v22  ;;  %v20981_v22 = vcombine.low %v14692_v18, %v14696_v19 }
 0x909   :  { %18583 = vmatprep.subr.bf16.mxu1 %v20872_v53  ;;  %v20990_v53 = vcombine.high %v14700_v11, %v14704_v16 }
 0x90a   :  { %18404 = vmatpush1.bf16.msra.mxu0 %v20933_v40  ;;  %v20919_v40 = vcombine.low %v14629_v35, %v14633_v49 }
 0x90b   :  { %18405 = vmatprep.subr.bf16.mxu0 %v20942_v43  ;;  %v20928_v43 = vcombine.high %v14637_v24, %v14641_v51 }
 0x90c   :  { %18584 = vmatpush1.bf16.msra.mxu1 %v20871_v61  ;;  %v20989_v61 = vcombine.low %v14700_v11, %v14704_v16 }
 0x90d   :  { %18585 = vmatprep.subr.bf16.mxu1 %v20880_v47  ;;  %v20998_v47 = vcombine.high %v14708_v9, %v14712_v12 }
 0x90e   :  { %18406 = vmatpush1.bf16.msra.mxu0 %v20941_v15  ;;  %v20927_v15 = vcombine.low %v14637_v24, %v14641_v51 }
 0x90f   :  { %18407 = vmatprep.subr.bf16.mxu0 %v20950_v57  ;;  %v20997_v57 = vcombine.low %v14708_v9, %v14712_v12 }
 0x910   :  { %18586 = vmatpush1.bf16.msra.mxu1 %v20879_v27  ;;  %v14657_v27 = vld [vmem:[#allocation8 + $0x538] sm:$0xff] }
 0x911   :  { %18587 = vmatprep.subr.bf16.mxu1 %v20888_v3  ;;  %v14724_v3 = vld [vmem:[#allocation8 + $0x750] sm:$0xff] }
 0x912   :  { %18408 = vmatpush1.bf16.msra.mxu0 %v20949_v38  ;;  %v14728_v38 = vld [vmem:[#allocation8 + $0x770] sm:$0xff] }
 0x913   :  { %18409 = vmatprep.subr.bf16.mxu0 %v20958_v56  ;;  %v14661_v56 = vld [vmem:[#allocation8 + $0x558] sm:$0xff]  ;;  %v21014_v45 = vcombine.high %v14724_v3, %v14728_v38  ;;  %v21013_v8 = vcombine.low %v14724_v3, %v14728_v38 }
 0x914   :  { %18588 = vmatpush1.bf16.msra.mxu1 %v20887_v28  ;;  %v14665_v28 = vld [vmem:[#allocation8 + $0x578] sm:$0xff] }
 0x915   :  { %18589 = vmatprep.subr.bf16.mxu1 %v20896_v20  ;;  %v14732_v20 = vld [vmem:[#allocation8 + $0x790] sm:$0xff]  ;;  %v20952_v55 = vcombine.high %v14661_v56, %v14665_v28  ;;  %v20951_v36 = vcombine.low %v14661_v56, %v14665_v28 }
 0x916   :  { %18410 = vmatpush1.bf16.msra.mxu0 %v20957_v33  ;;  %v14736_v33 = vld [vmem:[#allocation8 + $0x7b0] sm:$0xff] }
 0x917   :  { %18411 = vmatprep.subr.bf16.mxu0 %v20966_v34  ;;  %v14669_v34 = vld [vmem:[#allocation8 + $0x598] sm:$0xff]  ;;  %v21022_v50 = vcombine.high %v14732_v20, %v14736_v33  ;;  %v21021_v17 = vcombine.low %v14732_v20, %v14736_v33 }
 0x918   :  { %18590 = vmatpush1.bf16.msra.mxu1 %v20895_v10  ;;  %v14673_v10 = vld [vmem:[#allocation8 + $0x5b8] sm:$0xff] }
 0x919   :  { %18591 = vmatprep.subr.bf16.mxu1 %v20904_v39  ;;  %v14740_v39 = vld [vmem:[#allocation8 + $0x7d0] sm:$0xff]  ;;  %v20960_v6 = vcombine.high %v14669_v34, %v14673_v10  ;;  %v20959_v19 = vcombine.low %v14669_v34, %v14673_v10 }
 0x91a   :  { %18412 = vmatpush1.bf16.msra.mxu0 %v20965_v30  ;;  %v14744_v30 = vld [vmem:[#allocation8 + $0x7f0] sm:$0xff] }
 0x91b   :  { %18413 = vmatprep.subr.bf16.mxu0 %v20974_v32  ;;  %v14677_v32 = vld [vmem:[#allocation8 + $0x5d8] sm:$0xff]  ;;  %v21030_v18 = vcombine.high %v14740_v39, %v14744_v30  ;;  %v21029_v49 = vcombine.low %v14740_v39, %v14744_v30 }
 0x91c   :  { %18592 = vmatpush1.bf16.msra.mxu1 %v20903_v46  ;;  %v14681_v46 = vld [vmem:[#allocation8 + $0x5f8] sm:$0xff] }
 0x91d   :  { %18602 = vmatprep.subr.bf16.mxu1 %v20912_v44  ;;  %v14748_v44 = vld [vmem:[#allocation8 + $0x810] sm:$0xff]  ;;  %v20968_v35 = vcombine.high %v14677_v32, %v14681_v46  ;;  %v20967_v16 = vcombine.low %v14677_v32, %v14681_v46 }
 0x91e   :  { %18414 = vmatpush1.bf16.msra.mxu0 %v20973_v5  ;;  %v14752_v5 = vld [vmem:[#allocation8 + $0x830] sm:$0xff] }
 0x91f   :  { %18594 = vmatmul.mubr.bf16.vlgmr.msra.gmra.mrb[76].mxu1 %v25240_v63  ;;  %18415 = vmatprep.subr.bf16.mxu0 %v20982_v62  ;;  %v14720_v63 = vld [vmem:[#allocation8 + $0x730] sm:$0xff]  ;;  %v14685_v62 = vld [vmem:[#allocation8 + $0x618] sm:$0xff]  ;;  %v21038_v11 = vcombine.high %v14748_v44, %v14752_v5  ;;  %v21037_v51 = vcombine.low %v14748_v44, %v14752_v5 }
 0x920   :  { %18603 = vmatpush1.bf16.msra.mxu1 %v20911_v2  ;;  %18634 = vmatprep.mubr.bf16.mxu1 %v25242_v58  ;;  %v14653_v58 = vld [vmem:[#allocation8 + $0x518] sm:$0xff]  ;;  %v21006_v14 = vcombine.high %v14716_v13, %v14720_v63  ;;  %v21005_v23 = vcombine.low %v14716_v13, %v14720_v63 }
 0x921   :  { %18604 = vmatprep.subr.bf16.mxu1 %v20920_v21  ;;  %v20944_v59 = vcombine.high %v14653_v58, %v14657_v27  ;;  %v20943_v4 = vcombine.low %v14653_v58, %v14657_v27  ;;  %v14689_v2 = vld [vmem:[#allocation8 + $0x638] sm:$0xff]  ;;  %v14756_v21 = vld [vmem:[#allocation8 + $0x850] sm:$0xff] }
 0x922   :  { %18416 = vmatpush1.bf16.msra.mxu0 %v20981_v22  ;;  %v14760_v22 = vld [vmem:[#allocation8 + $0x870] sm:$0xff]  ;;  %v20976_v24 = vcombine.high %v14685_v62, %v14689_v2  ;;  %v20975_v12 = vcombine.low %v14685_v62, %v14689_v2 }
 0x923   :  { %18417 = vmatprep.subr.bf16.mxu0 %v20990_v53  ;;  %v14693_v53 = vld [vmem:[#allocation8 + $0x658] sm:$0xff]  ;;  %v21046_v9 = vcombine.high %v14756_v21, %v14760_v22  ;;  %v21045_v1 = vcombine.low %v14756_v21, %v14760_v22 }
 0x924   :  { %18605 = vmatpush1.bf16.msra.mxu1 %v20919_v40  ;;  %v14697_v40 = vld [vmem:[#allocation8 + $0x678] sm:$0xff] }
 0x925   :  { %18606 = vmatprep.subr.bf16.mxu1 %v20928_v43  ;;  %v14764_v43 = vld [vmem:[#allocation8 + $0x890] sm:$0xff]  ;;  %v20984_v26 = vcombine.high %v14693_v53, %v14697_v40  ;;  %v20983_v63 = vcombine.low %v14693_v53, %v14697_v40 }
 0x926   :  { %18418 = vmatpush1.bf16.msra.mxu0 %v20989_v61  ;;  %v14768_v61 = vld [vmem:[#allocation8 + $0x8b0] sm:$0xff] }
 0x927   :  { %18419 = vmatprep.subr.bf16.mxu0 %v20998_v47  ;;  %v14701_v47 = vld [vmem:[#allocation8 + $0x698] sm:$0xff]  ;;  %v21054_v13 = vcombine.high %v14764_v43, %v14768_v61  ;;  %v21053_v27 = vcombine.low %v14764_v43, %v14768_v61 }
 0x928   :  { %18607 = vmatpush1.bf16.msra.mxu1 %v20927_v15  ;;  %v14705_v15 = vld [vmem:[#allocation8 + $0x6b8] sm:$0xff] }
 0x929   :  { %18608 = vmatprep.subr.bf16.mxu1 %v20936_v42  ;;  %v14772_v42 = vld [vmem:[#allocation8 + $0x8d0] sm:$0xff]  ;;  %v20992_v58 = vcombine.high %v14701_v47, %v14705_v15  ;;  %v20991_v38 = vcombine.low %v14701_v47, %v14705_v15 }
 0x92a   :  { %18420 = vmatpush1.bf16.msra.mxu0 %v20997_v57  ;;  %v14776_v57 = vld [vmem:[#allocation8 + $0x8f0] sm:$0xff] }
 0x92b   :  { %18421 = vmatprep.subr.bf16.mxu0 %v21006_v14  ;;  %v14709_v14 = vld [vmem:[#allocation8 + $0x6d8] sm:$0xff]  ;;  %v21062_v3 = vcombine.high %v14772_v42, %v14776_v57  ;;  %v21061_v28 = vcombine.low %v14772_v42, %v14776_v57 }
 0x92c   :  { %18609 = vmatpush1.bf16.msra.mxu1 %v20935_v48  ;;  %v14713_v48 = vld [vmem:[#allocation8 + $0x6f8] sm:$0xff] }
 0x92d   :  { %18610 = vmatprep.subr.bf16.mxu1 %v20944_v59  ;;  %v14780_v59 = vld [vmem:[#allocation8 + $0x910] sm:$0xff]  ;;  %v21000_v56 = vcombine.high %v14709_v14, %v14713_v48  ;;  %v20999_v33 = vcombine.low %v14709_v14, %v14713_v48 }
 0x92e   :  { %18422 = vmatpush1.bf16.msra.mxu0 %v21005_v23  ;;  %v14784_v23 = vld [vmem:[#allocation8 + $0x930] sm:$0xff] }
 0x92f   :  { %18423 = vmatprep.subr.bf16.mxu0 %v21014_v45  ;;  %v14717_v45 = vld [vmem:[#allocation8 + $0x718] sm:$0xff]  ;;  %v21070_v20 = vcombine.high %v14780_v59, %v14784_v23  ;;  %v21069_v10 = vcombine.low %v14780_v59, %v14784_v23 }
 0x930   :  { %18611 = vmatpush1.bf16.msra.mxu1 %v20943_v4  ;;  %v14721_v4 = vld [vmem:[#allocation8 + $0x738] sm:$0xff] }
 0x931   :  { %18612 = vmatprep.subr.bf16.mxu1 %v20952_v55  ;;  %v14788_v55 = vld [vmem:[#allocation8 + $0x950] sm:$0xff]  ;;  %v21008_v34 = vcombine.high %v14717_v45, %v14721_v4  ;;  %v21007_v30 = vcombine.low %v14717_v45, %v14721_v4 }
 0x932   :  { %18424 = vmatpush1.bf16.msra.mxu0 %v21013_v8  ;;  %v14792_v8 = vld [vmem:[#allocation8 + $0x970] sm:$0xff] }
 0x933   :  { %18425 = vmatprep.subr.bf16.mxu0 %v21022_v50  ;;  %v14725_v50 = vld [vmem:[#allocation8 + $0x758] sm:$0xff]  ;;  %v21078_v39 = vcombine.high %v14788_v55, %v14792_v8  ;;  %v21077_v46 = vcombine.low %v14788_v55, %v14792_v8 }
 0x934   :  { %18613 = vmatpush1.bf16.msra.mxu1 %v20951_v36  ;;  %v14729_v36 = vld [vmem:[#allocation8 + $0x778] sm:$0xff] }
 0x935   :  { %18614 = vmatprep.subr.bf16.mxu1 %v20960_v6  ;;  %v14796_v6 = vld [vmem:[#allocation8 + $0x990] sm:$0xff]  ;;  %v21016_v32 = vcombine.high %v14725_v50, %v14729_v36  ;;  %v21015_v5 = vcombine.low %v14725_v50, %v14729_v36  ;;  %v14785_v36 = vld [vmem:[#allocation8 + $0x938] sm:$0xff] }
 0x936   :  { %18426 = vmatpush1.bf16.msra.mxu0 %v21021_v17  ;;  %v14800_v17 = vld [vmem:[#allocation8 + $0x9b0] sm:$0xff] }
 0x937   :  { %18427 = vmatprep.subr.bf16.mxu0 %v21030_v18  ;;  %v14733_v18 = vld [vmem:[#allocation8 + $0x798] sm:$0xff]  ;;  %v21086_v44 = vcombine.high %v14796_v6, %v14800_v17  ;;  %v21085_v2 = vcombine.low %v14796_v6, %v14800_v17  ;;  %v14852_v6 = vld [vmem:[#allocation8 + $0xb50] sm:$0xff] }
 0x938   :  { %18615 = vmatpush1.bf16.msra.mxu1 %v20959_v19  ;;  %v14737_v19 = vld [vmem:[#allocation8 + $0x7b8] sm:$0xff]  ;;  %v14856_v17 = vld [vmem:[#allocation8 + $0xb70] sm:$0xff] }
 0x939   :  { %18616 = vmatprep.subr.bf16.mxu1 %v20968_v35  ;;  %v14804_v35 = vld [vmem:[#allocation8 + $0x9d0] sm:$0xff]  ;;  %v21024_v62 = vcombine.high %v14733_v18, %v14737_v19  ;;  %v21023_v22 = vcombine.low %v14733_v18, %v14737_v19  ;;  %v14789_v18 = vld [vmem:[#allocation8 + $0x958] sm:$0xff] }
 0x93a   :  { %18428 = vmatpush1.bf16.msra.mxu0 %v21029_v49  ;;  %v14808_v49 = vld [vmem:[#allocation8 + $0x9f0] sm:$0xff]  ;;  %v14793_v19 = vld [vmem:[#allocation8 + $0x978] sm:$0xff] }
 0x93b   :  { %18438 = vmatprep.subr.bf16.mxu0 %v21038_v11  ;;  %v14741_v11 = vld [vmem:[#allocation8 + $0x7d8] sm:$0xff]  ;;  %v21094_v21 = vcombine.high %v14804_v35, %v14808_v49  ;;  %v21093_v40 = vcombine.low %v14804_v35, %v14808_v49  ;;  %v14860_v35 = vld [vmem:[#allocation8 + $0xb90] sm:$0xff] }
 0x93c   :  { %18617 = vmatpush1.bf16.msra.mxu1 %v20967_v16  ;;  %v14745_v16 = vld [vmem:[#allocation8 + $0x7f8] sm:$0xff]  ;;  %v14864_v49 = vld [vmem:[#allocation8 + $0xbb0] sm:$0xff] }
 0x93d   :  { %18430 = vmatmul.mubr.bf16.vlgmr.msra.gmra.mrb[68].mxu0 %v25253_v29  ;;  %18618 = vmatprep.subr.bf16.mxu1 %v20976_v24  ;;  %v14812_v24 = vld [vmem:[#allocation8 + $0xa10] sm:$0xff]  ;;  %v21032_v53 = vcombine.high %v14741_v11, %v14745_v16  ;;  %v21031_v61 = vcombine.low %v14741_v11, %v14745_v16  ;;  %v14797_v11 = vld [vmem:[#allocation8 + $0x998] sm:$0xff] }
 0x93e   :  { %18439 = vmatpush1.bf16.msra.mxu0 %v21037_v51  ;;  %18470 = vmatprep.mubr.bf16.mxu0 %v25272_v54  ;;  %v14816_v51 = vld [vmem:[#allocation8 + $0xa30] sm:$0xff]  ;;  %v14801_v16 = vld [vmem:[#allocation8 + $0x9b8] sm:$0xff] }
 0x93f   :  { %18440 = vmatprep.subr.bf16.mxu0 %v21046_v9  ;;  %v14749_v9 = vld [vmem:[#allocation8 + $0x818] sm:$0xff]  ;;  %v21102_v43 = vcombine.high %v14812_v24, %v14816_v51  ;;  %v21101_v15 = vcombine.low %v14812_v24, %v14816_v51  ;;  %v14868_v24 = vld [vmem:[#allocation8 + $0xbd0] sm:$0xff] }
 0x940   :  { %18619 = vmatpush1.bf16.msra.mxu1 %v20975_v12  ;;  %v14753_v12 = vld [vmem:[#allocation8 + $0x838] sm:$0xff]  ;;  %v14872_v51 = vld [vmem:[#allocation8 + $0xbf0] sm:$0xff] }
 0x941   :  { %18620 = vmatprep.subr.bf16.mxu1 %v20984_v26  ;;  %v14820_v26 = vld [vmem:[#allocation8 + $0xa50] sm:$0xff]  ;;  %v21040_v47 = vcombine.high %v14749_v9, %v14753_v12  ;;  %v21039_v57 = vcombine.low %v14749_v9, %v14753_v12  ;;  %v14805_v9 = vld [vmem:[#allocation8 + $0x9d8] sm:$0xff] }
 0x942   :  { %18441 = vmatpush1.bf16.msra.mxu0 %v21045_v1  ;;  %v14824_v1 = vld [vmem:[#allocation8 + $0xa70] sm:$0xff]  ;;  %v14809_v12 = vld [vmem:[#allocation8 + $0x9f8] sm:$0xff] }
 0x943   :  { %18442 = vmatprep.subr.bf16.mxu0 %v21054_v13  ;;  %v14757_v13 = vld [vmem:[#allocation8 + $0x858] sm:$0xff]  ;;  %v21110_v42 = vcombine.high %v14820_v26, %v14824_v1  ;;  %v21109_v48 = vcombine.low %v14820_v26, %v14824_v1  ;;  %v14876_v26 = vld [vmem:[#allocation8 + $0xc10] sm:$0xff] }
 0x944   :  { %18621 = vmatpush1.bf16.msra.mxu1 %v20983_v63  ;;  %v14761_v63 = vld [vmem:[#allocation8 + $0x878] sm:$0xff]  ;;  %v14880_v1 = vld [vmem:[#allocation8 + $0xc30] sm:$0xff] }
 0x945   :  { %18622 = vmatprep.subr.bf16.mxu1 %v20992_v58  ;;  %v14828_v58 = vld [vmem:[#allocation8 + $0xa90] sm:$0xff]  ;;  %v21048_v14 = vcombine.high %v14757_v13, %v14761_v63  ;;  %v21047_v23 = vcombine.low %v14757_v13, %v14761_v63  ;;  %v14813_v13 = vld [vmem:[#allocation8 + $0xa18] sm:$0xff] }
 0x946   :  { %18443 = vmatpush1.bf16.msra.mxu0 %v21053_v27  ;;  %v14832_v27 = vld [vmem:[#allocation8 + $0xab0] sm:$0xff]  ;;  %v14817_v63 = vld [vmem:[#allocation8 + $0xa38] sm:$0xff] }
 0x947   :  { %18444 = vmatprep.subr.bf16.mxu0 %v21062_v3  ;;  %v14765_v3 = vld [vmem:[#allocation8 + $0x898] sm:$0xff]  ;;  %v21118_v59 = vcombine.high %v14828_v58, %v14832_v27  ;;  %v21117_v4 = vcombine.low %v14828_v58, %v14832_v27  ;;  %v14884_v58 = vld [vmem:[#allocation8 + $0xc50] sm:$0xff] }
 0x948   :  { %18623 = vmatpush1.bf16.msra.mxu1 %v20991_v38  ;;  %v14769_v38 = vld [vmem:[#allocation8 + $0x8b8] sm:$0xff]  ;;  %v14888_v27 = vld [vmem:[#allocation8 + $0xc70] sm:$0xff] }
 0x949   :  { %18624 = vmatprep.subr.bf16.mxu1 %v21000_v56  ;;  %v14836_v56 = vld [vmem:[#allocation8 + $0xad0] sm:$0xff]  ;;  %v21056_v45 = vcombine.high %v14765_v3, %v14769_v38  ;;  %v21055_v8 = vcombine.low %v14765_v3, %v14769_v38  ;;  %v14821_v3 = vld [vmem:[#allocation8 + $0xa58] sm:$0xff] }
 0x94a   :  { %18445 = vmatpush1.bf16.msra.mxu0 %v21061_v28  ;;  %v14840_v28 = vld [vmem:[#allocation8 + $0xaf0] sm:$0xff]  ;;  %v14825_v38 = vld [vmem:[#allocation8 + $0xa78] sm:$0xff] }
 0x94b   :  { %18446 = vmatprep.subr.bf16.mxu0 %v21070_v20  ;;  %v14773_v20 = vld [vmem:[#allocation8 + $0x8d8] sm:$0xff]  ;;  %v21126_v55 = vcombine.high %v14836_v56, %v14840_v28  ;;  %v21125_v50 = vcombine.low %v14836_v56, %v14840_v28  ;;  %v14892_v56 = vld [vmem:[#allocation8 + $0xc90] sm:$0xff] }
 0x94c   :  { %18625 = vmatpush1.bf16.msra.mxu1 %v20999_v33  ;;  %v14777_v33 = vld [vmem:[#allocation8 + $0x8f8] sm:$0xff]  ;;  %v14896_v28 = vld [vmem:[#allocation8 + $0xcb0] sm:$0xff] }
 0x94d   :  { %18626 = vmatprep.subr.bf16.mxu1 %v21008_v34  ;;  %v14844_v34 = vld [vmem:[#allocation8 + $0xb10] sm:$0xff] }
 0x94e   :  { %18447 = vmatpush1.bf16.msra.mxu0 %v21069_v10  ;;  %v21064_v10 = vcombine.high %v14773_v20, %v14777_v33 }
 0x94f   :  { %18448 = vmatprep.subr.bf16.mxu0 %v21078_v39 }
 0x950   :  { %18627 = vmatpush1.bf16.msra.mxu1 %v21007_v30  ;;  %v21063_v30 = vcombine.low %v14773_v20, %v14777_v33  ;;  %v14829_v20 = vld [vmem:[#allocation8 + $0xa98] sm:$0xff] }
 0x951   :  { %18628 = vmatprep.subr.bf16.mxu1 %v21016_v32  ;;  %v14833_v33 = vld [vmem:[#allocation8 + $0xab8] sm:$0xff] }
 0x952   :  { %18449 = vmatpush1.bf16.msra.mxu0 %v21077_v46 }
 0x953   :  { %18450 = vmatprep.subr.bf16.mxu0 %v21086_v44  ;;  %v21142_v44 = vcombine.high %v14852_v6, %v14856_v17 }
 0x954   :  { %18629 = vmatpush1.bf16.msra.mxu1 %v21015_v5 }
 0x955   :  { %18630 = vmatprep.subr.bf16.mxu1 %v21024_v62  ;;  %v21080_v62 = vcombine.high %v14789_v18, %v14793_v19 }
 0x956   :  { %18451 = vmatpush1.bf16.msra.mxu0 %v21085_v2  ;;  %v21141_v2 = vcombine.low %v14852_v6, %v14856_v17  ;;  %v14908_v6 = vld [vmem:[#allocation8 + $0xd10] sm:$0xff] }
 0x957   :  { %18452 = vmatprep.subr.bf16.mxu0 %v21094_v21  ;;  %v21150_v21 = vcombine.high %v14860_v35, %v14864_v49  ;;  %v14912_v17 = vld [vmem:[#allocation8 + $0xd30] sm:$0xff] }
 0x958   :  { %18631 = vmatpush1.bf16.msra.mxu1 %v21023_v22  ;;  %v21079_v22 = vcombine.low %v14789_v18, %v14793_v19  ;;  %v14845_v18 = vld [vmem:[#allocation8 + $0xb18] sm:$0xff] }
 0x959   :  { %18632 = vmatprep.subr.bf16.mxu1 %v21032_v53  ;;  %v21088_v53 = vcombine.high %v14797_v11, %v14801_v16  ;;  %v14849_v19 = vld [vmem:[#allocation8 + $0xb38] sm:$0xff] }
 0x95a   :  { %18453 = vmatpush1.bf16.msra.mxu0 %v21093_v40  ;;  %v21149_v40 = vcombine.low %v14860_v35, %v14864_v49  ;;  %v14916_v35 = vld [vmem:[#allocation8 + $0xd50] sm:$0xff] }
 0x95b   :  { %18454 = vmatprep.subr.bf16.mxu0 %v21102_v43  ;;  %v21158_v43 = vcombine.high %v14868_v24, %v14872_v51  ;;  %v14920_v49 = vld [vmem:[#allocation8 + $0xd70] sm:$0xff] }
 0x95c   :  { %18633 = vmatpush1.bf16.msra.mxu1 %v21031_v61  ;;  %v21087_v61 = vcombine.low %v14797_v11, %v14801_v16  ;;  %v14853_v11 = vld [vmem:[#allocation8 + $0xb58] sm:$0xff] }
 0x95d   :  { %18643 = vmatprep.subr.bf16.mxu1 %v21040_v47  ;;  %v21096_v47 = vcombine.high %v14805_v9, %v14809_v12  ;;  %v14857_v16 = vld [vmem:[#allocation8 + $0xb78] sm:$0xff] }
 0x95e   :  { %18455 = vmatpush1.bf16.msra.mxu0 %v21101_v15  ;;  %v21157_v15 = vcombine.low %v14868_v24, %v14872_v51  ;;  %v14924_v24 = vld [vmem:[#allocation8 + $0xd90] sm:$0xff] }
 0x95f   :  { %18635 = vmatmul.mubr.bf16.vlgmr.msra.gmra.mrb[76].mxu1 %v25253_v29  ;;  %18456 = vmatprep.subr.bf16.mxu0 %v21110_v42  ;;  %v14848_v29 = vld [vmem:[#allocation8 + $0xb30] sm:$0xff]  ;;  %v21166_v42 = vcombine.high %v14876_v26, %v14880_v1 }
 0x960   :  { %18644 = vmatpush1.bf16.msra.mxu1 %v21039_v57  ;;  %18675 = vmatprep.mubr.bf16.mxu1 %v25272_v54  ;;  %v14781_v54 = vld [vmem:[#allocation8 + $0x918] sm:$0xff]  ;;  %v21134_v39 = vcombine.high %v14844_v34, %v14848_v29  ;;  %v21133_v46 = vcombine.low %v14844_v34, %v14848_v29  ;;  %v21095_v57 = vcombine.low %v14805_v9, %v14809_v12  ;;  %v14900_v34 = vld [vmem:[#allocation8 + $0xcd0] sm:$0xff] }
 0x961   :  { %18645 = vmatprep.subr.bf16.mxu1 %v21048_v14  ;;  %v21072_v32 = vcombine.high %v14781_v54, %v14785_v36  ;;  %v21071_v5 = vcombine.low %v14781_v54, %v14785_v36  ;;  %v21104_v14 = vcombine.high %v14813_v13, %v14817_v63  ;;  %v14904_v29 = vld [vmem:[#allocation8 + $0xcf0] sm:$0xff]  ;;  %v14837_v54 = vld [vmem:[#allocation8 + $0xad8] sm:$0xff] }
 0x962   :  { %18457 = vmatpush1.bf16.msra.mxu0 %v21109_v48  ;;  %v21165_v48 = vcombine.low %v14876_v26, %v14880_v1  ;;  %v14841_v36 = vld [vmem:[#allocation8 + $0xaf8] sm:$0xff]  ;;  %v14928_v51 = vld [vmem:[#allocation8 + $0xdb0] sm:$0xff]  ;;  %v21143_v26 = vcombine.low %v14853_v11, %v14857_v16 }
 0x963   :  { %18458 = vmatprep.subr.bf16.mxu0 %v21118_v59  ;;  %v21174_v59 = vcombine.high %v14884_v58, %v14888_v27  ;;  %v14861_v9 = vld [vmem:[#allocation8 + $0xb98] sm:$0xff]  ;;  %v14932_v1 = vld [vmem:[#allocation8 + $0xdd0] sm:$0xff] }
 0x964   :  { %18646 = vmatpush1.bf16.msra.mxu1 %v21047_v23  ;;  %v21103_v23 = vcombine.low %v14813_v13, %v14817_v63  ;;  %v14865_v12 = vld [vmem:[#allocation8 + $0xbb8] sm:$0xff] }
 0x965   :  { %18647 = vmatprep.subr.bf16.mxu1 %v21056_v45  ;;  %v21112_v45 = vcombine.high %v14821_v3, %v14825_v38  ;;  %v21152_v13 = vcombine.high %v14861_v9, %v14865_v12 }
 0x966   :  { %18459 = vmatpush1.bf16.msra.mxu0 %v21117_v4  ;;  %v21173_v4 = vcombine.low %v14884_v58, %v14888_v27  ;;  %v14873_v58 = vld [vmem:[#allocation8 + $0xbf8] sm:$0xff] }
 0x967   :  { %18460 = vmatprep.subr.bf16.mxu0 %v21126_v55  ;;  %v21182_v55 = vcombine.high %v14892_v56, %v14896_v28 }
 0x968   :  { %18648 = vmatpush1.bf16.msra.mxu1 %v21055_v8  ;;  %v21111_v8 = vcombine.low %v14821_v3, %v14825_v38  ;;  %v14940_v3 = vld [vmem:[#allocation8 + $0xe10] sm:$0xff] }
 0x969   :  { %18649 = vmatprep.subr.bf16.mxu1 %v21064_v10  ;;  %v21120_v10 = vcombine.high %v14829_v20, %v14833_v33  ;;  %v14944_v38 = vld [vmem:[#allocation8 + $0xe30] sm:$0xff] }
 0x96a   :  { %18461 = vmatpush1.bf16.msra.mxu0 %v21125_v50  ;;  %v21181_v50 = vcombine.low %v14892_v56, %v14896_v28  ;;  %v14877_v56 = vld [vmem:[#allocation8 + $0xc18] sm:$0xff] }
 0x96b   :  { %18462 = vmatprep.subr.bf16.mxu0 %v21134_v39  ;;  %v21190_v39 = vcombine.high %v14900_v34, %v14904_v29  ;;  %v14881_v28 = vld [vmem:[#allocation8 + $0xc38] sm:$0xff] }
 0x96c   :  { %18650 = vmatpush1.bf16.msra.mxu1 %v21063_v30  ;;  %v21119_v30 = vcombine.low %v14829_v20, %v14833_v33  ;;  %v14948_v20 = vld [vmem:[#allocation8 + $0xe50] sm:$0xff] }
 0x96d   :  { %18651 = vmatprep.subr.bf16.mxu1 %v21072_v32  ;;  %v21128_v32 = vcombine.high %v14837_v54, %v14841_v36  ;;  %v14952_v33 = vld [vmem:[#allocation8 + $0xe70] sm:$0xff] }
 0x96e   :  { %18463 = vmatpush1.bf16.msra.mxu0 %v21133_v46  ;;  %v21189_v46 = vcombine.low %v14900_v34, %v14904_v29  ;;  %v14885_v34 = vld [vmem:[#allocation8 + $0xc58] sm:$0xff] }
 0x96f   :  { %18464 = vmatprep.subr.bf16.mxu0 %v21142_v44  ;;  %v21198_v44 = vcombine.high %v14908_v6, %v14912_v17  ;;  %v14889_v29 = vld [vmem:[#allocation8 + $0xc78] sm:$0xff] }
 0x970   :  { %18652 = vmatpush1.bf16.msra.mxu1 %v21071_v5  ;;  %v21127_v5 = vcombine.low %v14837_v54, %v14841_v36  ;;  %v14956_v54 = vld [vmem:[#allocation8 + $0xe90] sm:$0xff] }
 0x971   :  { %18653 = vmatprep.subr.bf16.mxu1 %v21080_v62  ;;  %v21136_v62 = vcombine.high %v14845_v18, %v14849_v19  ;;  %v14960_v36 = vld [vmem:[#allocation8 + $0xeb0] sm:$0xff] }
 0x972   :  { %18465 = vmatpush1.bf16.msra.mxu0 %v21141_v2  ;;  %v21197_v2 = vcombine.low %v14908_v6, %v14912_v17  ;;  %v14893_v6 = vld [vmem:[#allocation8 + $0xc98] sm:$0xff] }
 0x973   :  { %18466 = vmatprep.subr.bf16.mxu0 %v21150_v21  ;;  %v21206_v21 = vcombine.high %v14916_v35, %v14920_v49  ;;  %v14897_v17 = vld [vmem:[#allocation8 + $0xcb8] sm:$0xff] }
 0x974   :  { %18654 = vmatpush1.bf16.msra.mxu1 %v21079_v22  ;;  %v21135_v22 = vcombine.low %v14845_v18, %v14849_v19  ;;  %v14964_v18 = vld [vmem:[#allocation8 + $0xed0] sm:$0xff] }
 0x975   :  { %18655 = vmatprep.subr.bf16.mxu1 %v21088_v53  ;;  %v21144_v53 = vcombine.high %v14853_v11, %v14857_v16  ;;  %v14968_v19 = vld [vmem:[#allocation8 + $0xef0] sm:$0xff] }
 0x976   :  { %18467 = vmatpush1.bf16.msra.mxu0 %v21149_v40  ;;  %v21205_v40 = vcombine.low %v14916_v35, %v14920_v49  ;;  %v14901_v35 = vld [vmem:[#allocation8 + $0xcd8] sm:$0xff]  ;;  %v14972_v11 = vld [vmem:[#allocation8 + $0xf10] sm:$0xff] }
 0x977   :  { %18468 = vmatprep.subr.bf16.mxu0 %v21158_v43  ;;  %v21214_v43 = vcombine.high %v14924_v24, %v14928_v51  ;;  %v14905_v49 = vld [vmem:[#allocation8 + $0xcf8] sm:$0xff] }
 0x978   :  { %18656 = vmatpush1.bf16.msra.mxu1 %v21087_v61  ;;  %v21192_v16 = vcombine.high %v14901_v35, %v14905_v49 }
 0x979   :  { %18657 = vmatprep.subr.bf16.mxu1 %v21096_v47  ;;  %v14936_v47 = vld [vmem:[#allocation8 + $0xdf0] sm:$0xff] }
 0x97a   :  { %18469 = vmatpush1.bf16.msra.mxu0 %v21157_v15 }
 0x97b   :  { %18479 = vmatprep.subr.bf16.mxu0 %v21166_v42  ;;  %v21213_v42 = vcombine.low %v14924_v24, %v14928_v51  ;;  %v21191_v51 = vcombine.low %v14901_v35, %v14905_v49 }
 0x97c   :  { %18658 = vmatpush1.bf16.msra.mxu1 %v21095_v57  ;;  %v14869_v57 = vld [vmem:[#allocation8 + $0xbd8] sm:$0xff] }
 0x97d   :  { %18471 = vmatmul.mubr.bf16.vlgmr.msra.gmra.mrb[68].mxu0 %v25274_v52  ;;  %18659 = vmatprep.subr.bf16.mxu1 %v21104_v14  ;;  %v21222_v14 = vcombine.high %v14932_v1, %v14936_v47 }
 0x97e   :  { %18480 = vmatpush1.bf16.msra.mxu0 %v21165_v48  ;;  %18511 = vmatprep.mubr.bf16.mxu0 %v25276_v31  ;;  %v21151_v48 = vcombine.low %v14861_v9, %v14865_v12 }
 0x97f   :  { %18481 = vmatprep.subr.bf16.mxu0 %v21174_v59  ;;  %v21160_v59 = vcombine.high %v14869_v57, %v14873_v58 }
 0x980   :  { %18660 = vmatpush1.bf16.msra.mxu1 %v21103_v23  ;;  %v21221_v23 = vcombine.low %v14932_v1, %v14936_v47 }
 0x981   :  { %18661 = vmatprep.subr.bf16.mxu1 %v21112_v45  ;;  %v21230_v45 = vcombine.high %v14940_v3, %v14944_v38 }
 0x982   :  { %18482 = vmatpush1.bf16.msra.mxu0 %v21173_v4  ;;  %v21159_v4 = vcombine.low %v14869_v57, %v14873_v58  ;;  %v14925_v58 = vld [vmem:[#allocation8 + $0xd98] sm:$0xff] }
 0x983   :  { %18483 = vmatprep.subr.bf16.mxu0 %v21182_v55  ;;  %v21168_v55 = vcombine.high %v14877_v56, %v14881_v28 }
 0x984   :  { %18662 = vmatpush1.bf16.msra.mxu1 %v21111_v8  ;;  %v21229_v8 = vcombine.low %v14940_v3, %v14944_v38  ;;  %v14996_v3 = vld [vmem:[#allocation8 + $0xfd0] sm:$0xff] }
 0x985   :  { %18663 = vmatprep.subr.bf16.mxu1 %v21120_v10  ;;  %v21238_v10 = vcombine.high %v14948_v20, %v14952_v33  ;;  %v15000_v38 = vld [vmem:[#allocation8 + $0xff0] sm:$0xff] }
 0x986   :  { %18484 = vmatpush1.bf16.msra.mxu0 %v21181_v50  ;;  %v21167_v50 = vcombine.low %v14877_v56, %v14881_v28  ;;  %v14933_v28 = vld [vmem:[#allocation8 + $0xdd8] sm:$0xff] }
 0x987   :  { %18485 = vmatprep.subr.bf16.mxu0 %v21190_v39  ;;  %v21176_v39 = vcombine.high %v14885_v34, %v14889_v29 }
 0x988   :  { %18664 = vmatpush1.bf16.msra.mxu1 %v21119_v30  ;;  %v21237_v30 = vcombine.low %v14948_v20, %v14952_v33  ;;  %v21286_v33 = vcombine.high %v14996_v3, %v15000_v38 }
 0x989   :  { %18665 = vmatprep.subr.bf16.mxu1 %v21128_v32  ;;  %v21246_v32 = vcombine.high %v14956_v54, %v14960_v36 }
 0x98a   :  { %18486 = vmatpush1.bf16.msra.mxu0 %v21189_v46  ;;  %v21175_v46 = vcombine.low %v14885_v34, %v14889_v29  ;;  %v15004_v29 = vld [vmem:[#allocation8 + $0x1010] sm:$0xff] }
 0x98b   :  { %18487 = vmatprep.subr.bf16.mxu0 %v21198_v44  ;;  %v21184_v44 = vcombine.high %v14893_v6, %v14897_v17 }
 0x98c   :  { %18666 = vmatpush1.bf16.msra.mxu1 %v21127_v5  ;;  %v21245_v5 = vcombine.low %v14956_v54, %v14960_v36  ;;  %v21285_v36 = vcombine.low %v14996_v3, %v15000_v38 }
 0x98d   :  { %18667 = vmatprep.subr.bf16.mxu1 %v21136_v62  ;;  %v21254_v62 = vcombine.high %v14964_v18, %v14968_v19 }
 0x98e   :  { %18488 = vmatpush1.bf16.msra.mxu0 %v21197_v2  ;;  %v21183_v2 = vcombine.low %v14893_v6, %v14897_v17 }
 0x98f   :  { %18489 = vmatprep.subr.bf16.mxu0 %v21206_v21  ;;  %v21253_v21 = vcombine.low %v14964_v18, %v14968_v19 }
 0x990   :  { %v25324_v61 = vpop.f32.mrb[64].mxu0  ;;  %18668 = vmatpush1.bf16.msra.mxu1 %v21135_v22  ;;  %v14913_v22 = vld [vmem:[#allocation8 + $0xd38] sm:$0xff] }
 0x991   :  { %v25326_v15 = vpop.f32.mrb[65].mxu0  ;;  %18669 = vmatprep.subr.bf16.mxu1 %v21144_v53  ;;  %v14980_v53 = vld [vmem:[#allocation8 + $0xf50] sm:$0xff] }
 0x992   :  { %v18148_v63 = vpop.f32.mrb[66].mxu0  ;;  %18490 = vmatpush1.bf16.msra.mxu0 %v21205_v40  ;;  %v14984_v40 = vld [vmem:[#allocation8 + $0xf70] sm:$0xff] }
 0x993   :  { %v18149_v27 = vpop.f32.mrb[67].mxu0  ;;  %18491 = vmatprep.subr.bf16.mxu0 %v21214_v43  ;;  %v14917_v43 = vld [vmem:[#allocation8 + $0xd58] sm:$0xff]  ;;  %v21270_v1 = vcombine.high %v14980_v53, %v14984_v40  ;;  %v14992_v63 = vld [vmem:[#allocation8 + $0xfb0] sm:$0xff]  ;;  %v21269_v57 = vcombine.low %v14980_v53, %v14984_v40 }
 0x994   :  { %18670 = vmatpush1.bf16.msra.mxu1 %v21143_v26  ;;  %v14921_v26 = vld [vmem:[#allocation8 + $0xd78] sm:$0xff] }
 0x995   :  { %18671 = vmatprep.subr.bf16.mxu1 %v21152_v13  ;;  %v14988_v13 = vld [vmem:[#allocation8 + $0xf90] sm:$0xff]  ;;  %v14929_v27 = vld [vmem:[#allocation8 + $0xdb8] sm:$0xff] }
 0x996   :  { %18492 = vmatpush1.bf16.msra.mxu0 %v21213_v42  ;;  %v21208_v42 = vcombine.high %v14917_v43, %v14921_v26  ;;  %v21277_v56 = vcombine.low %v14988_v13, %v14992_v63  ;;  %v21215_v34 = vcombine.low %v14925_v58, %v14929_v27 }
 0x997   :  { %18493 = vmatprep.subr.bf16.mxu0 %v21222_v14  ;;  %v21278_v14 = vcombine.high %v14988_v13, %v14992_v63 }
 0x998   :  { %18672 = vmatpush1.bf16.msra.mxu1 %v21151_v48  ;;  %v21207_v48 = vcombine.low %v14917_v43, %v14921_v26 }
 0x999   :  { %18673 = vmatprep.subr.bf16.mxu1 %v21160_v59  ;;  %v21216_v59 = vcombine.high %v14925_v58, %v14929_v27 }
 0x99a   :  { %18494 = vmatpush1.bf16.msra.mxu0 %v21221_v23 }
 0x99b   :  { %18495 = vmatprep.subr.bf16.mxu0 %v21230_v45  ;;  %v14937_v45 = vld [vmem:[#allocation8 + $0xdf8] sm:$0xff] }
 0x99c   :  { %18674 = vmatpush1.bf16.msra.mxu1 %v21159_v4  ;;  %v21224_v54 = vcombine.high %v14933_v28, %v14937_v45  ;;  %v21223_v17 = vcombine.low %v14933_v28, %v14937_v45 }
 0x99d   :  { %18684 = vmatprep.subr.bf16.mxu1 %v21168_v55 }
 0x99e   :  { %18496 = vmatpush1.bf16.msra.mxu0 %v21229_v8 }
 0x99f   :  { %18676 = vmatmul.mubr.bf16.vlgmr.msra.gmra.mrb[76].mxu1 %v25274_v52  ;;  %18497 = vmatprep.subr.bf16.mxu0 %v21238_v10  ;;  %v14976_v52 = vld [vmem:[#allocation8 + $0xf30] sm:$0xff] }
 0x9a0   :  { %18685 = vmatpush1.bf16.msra.mxu1 %v21167_v50  ;;  %18716 = vmatprep.mubr.bf16.mxu1 %v25276_v31  ;;  %v14909_v31 = vld [vmem:[#allocation8 + $0xd18] sm:$0xff]  ;;  %v21262_v24 = vcombine.high %v14972_v11, %v14976_v52  ;;  %v21261_v12 = vcombine.low %v14972_v11, %v14976_v52  ;;  %v15008_v10 = vld [vmem:[#allocation8 + $0x1030] sm:$0xff] }
 0x9a1   :  { %18686 = vmatprep.subr.bf16.mxu1 %v21176_v39  ;;  %v21200_v9 = vcombine.high %v14909_v31, %v14913_v22  ;;  %v21199_v47 = vcombine.low %v14909_v31, %v14913_v22  ;;  %v14941_v39 = vld [vmem:[#allocation8 + $0xe18] sm:$0xff]  ;;  %v21294_v6 = vcombine.high %v15004_v29, %v15008_v10  ;;  %v21293_v19 = vcombine.low %v15004_v29, %v15008_v10 }
 0x9a2   :  { %18498 = vmatpush1.bf16.msra.mxu0 %v21237_v30  ;;  %v14945_v30 = vld [vmem:[#allocation8 + $0xe38] sm:$0xff] }
 0x9a3   :  { %18499 = vmatprep.subr.bf16.mxu0 %v21246_v32  ;;  %v15012_v32 = vld [vmem:[#allocation8 + $0x1050] sm:$0xff]  ;;  %v21232_v18 = vcombine.high %v14941_v39, %v14945_v30  ;;  %v21231_v49 = vcombine.low %v14941_v39, %v14945_v30  ;;  %v14989_v10 = vld [vmem:[#allocation8 + $0xf98] sm:$0xff] }
 0x9a4   :  { %18687 = vmatpush1.bf16.msra.mxu1 %v21175_v46  ;;  %v15016_v46 = vld [vmem:[#allocation8 + $0x1070] sm:$0xff] }
 0x9a5   :  { %18688 = vmatprep.subr.bf16.mxu1 %v21184_v44  ;;  %v14949_v44 = vld [vmem:[#allocation8 + $0xe58] sm:$0xff]  ;;  %v21302_v35 = vcombine.high %v15012_v32, %v15016_v46  ;;  %v21301_v52 = vcombine.low %v15012_v32, %v15016_v46  ;;  %v15060_v39 = vld [vmem:[#allocation8 + $0x11d0] sm:$0xff] }
 0x9a6   :  { %18500 = vmatpush1.bf16.msra.mxu0 %v21245_v5  ;;  %v14953_v5 = vld [vmem:[#allocation8 + $0xe78] sm:$0xff]  ;;  %v15064_v30 = vld [vmem:[#allocation8 + $0x11f0] sm:$0xff] }
 0x9a7   :  { %18501 = vmatprep.subr.bf16.mxu0 %v21254_v62  ;;  %v15020_v62 = vld [vmem:[#allocation8 + $0x1090] sm:$0xff]  ;;  %v21240_v11 = vcombine.high %v14949_v44, %v14953_v5  ;;  %v21239_v22 = vcombine.low %v14949_v44, %v14953_v5  ;;  %v14997_v32 = vld [vmem:[#allocation8 + $0xfd8] sm:$0xff]  ;;  %v21349_v5 = vcombine.low %v15060_v39, %v15064_v30 }
 0x9a8   :  { %18689 = vmatpush1.bf16.msra.mxu1 %v21183_v2  ;;  %v15024_v2 = vld [vmem:[#allocation8 + $0x10b0] sm:$0xff]  ;;  %v15001_v46 = vld [vmem:[#allocation8 + $0xff8] sm:$0xff] }
 0x9a9   :  { %18690 = vmatprep.subr.bf16.mxu1 %v21192_v16  ;;  %v14957_v16 = vld [vmem:[#allocation8 + $0xe98] sm:$0xff]  ;;  %v21310_v31 = vcombine.high %v15020_v62, %v15024_v2  ;;  %v21309_v40 = vcombine.low %v15020_v62, %v15024_v2  ;;  %v21288_v44 = vcombine.high %v14997_v32, %v15001_v46  ;;  %v21287_v62 = vcombine.low %v14997_v32, %v15001_v46 }
 0x9aa   :  { %18502 = vmatpush1.bf16.msra.mxu0 %v21253_v21  ;;  %v14961_v21 = vld [vmem:[#allocation8 + $0xeb8] sm:$0xff] }
 0x9ab   :  { %18503 = vmatprep.subr.bf16.mxu0 %v21262_v24  ;;  %v15028_v24 = vld [vmem:[#allocation8 + $0x10d0] sm:$0xff]  ;;  %v21248_v53 = vcombine.high %v14957_v16, %v14961_v21  ;;  %v21247_v26 = vcombine.low %v14957_v16, %v14961_v21 }
 0x9ac   :  { %18691 = vmatpush1.bf16.msra.mxu1 %v21191_v51  ;;  %v15032_v51 = vld [vmem:[#allocation8 + $0x10f0] sm:$0xff] }
 0x9ad   :  { %18692 = vmatprep.subr.bf16.mxu1 %v21200_v9  ;;  %v14965_v9 = vld [vmem:[#allocation8 + $0xed8] sm:$0xff]  ;;  %v21318_v43 = vcombine.high %v15028_v24, %v15032_v51  ;;  %v21317_v63 = vcombine.low %v15028_v24, %v15032_v51 }
 0x9ae   :  { %18504 = vmatpush1.bf16.msra.mxu0 %v21261_v12  ;;  %v14969_v12 = vld [vmem:[#allocation8 + $0xef8] sm:$0xff] }
 0x9af   :  { %18505 = vmatprep.subr.bf16.mxu0 %v21270_v1  ;;  %v15036_v1 = vld [vmem:[#allocation8 + $0x1110] sm:$0xff]  ;;  %v21256_v13 = vcombine.high %v14965_v9, %v14969_v12  ;;  %v21255_v27 = vcombine.low %v14965_v9, %v14969_v12 }
 0x9b0   :  { %18693 = vmatpush1.bf16.msra.mxu1 %v21199_v47  ;;  %v15040_v47 = vld [vmem:[#allocation8 + $0x1130] sm:$0xff] }
 0x9b1   :  { %18694 = vmatprep.subr.bf16.mxu1 %v21208_v42  ;;  %v14973_v42 = vld [vmem:[#allocation8 + $0xf18] sm:$0xff]  ;;  %v21326_v58 = vcombine.high %v15036_v1, %v15040_v47  ;;  %v21325_v38 = vcombine.low %v15036_v1, %v15040_v47 }
 0x9b2   :  { %v25330_v23 = vpop.f32.mrb[72].mxu1  ;;  %18506 = vmatpush1.bf16.msra.mxu0 %v21269_v57  ;;  %v14977_v57 = vld [vmem:[#allocation8 + $0xf38] sm:$0xff] }
 0x9b3   :  { %v18766_v4 = vmax.f32 %v25324_v61, %v25330_v23  ;;  %v25334_v20 = vpop.f32.mrb[73].mxu1  ;;  %18507 = vmatprep.subr.bf16.mxu0 %v21278_v14  ;;  %v15044_v14 = vld [vmem:[#allocation8 + $0x1150] sm:$0xff]  ;;  %v21264_v3 = vcombine.high %v14973_v42, %v14977_v57  ;;  %v21263_v45 = vcombine.low %v14973_v42, %v14977_v57  ;;  %v15053_v42 = vld [vmem:[#allocation8 + $0x1198] sm:$0xff] }
 0x9b4   :  { %v18767_v55 = vmax.f32 %v25326_v15, %v25334_v20  ;;  %v18353_v8 = vpop.f32.mrb[74].mxu1  ;;  %18695 = vmatpush1.bf16.msra.mxu1 %v21207_v48  ;;  %v15048_v48 = vld [vmem:[#allocation8 + $0x1170] sm:$0xff]  ;;  %v15057_v57 = vld [vmem:[#allocation8 + $0x11b8] sm:$0xff] }
 0x9b5   :  { %v18354_v50 = vpop.f32.mrb[75].mxu1  ;;  %18696 = vmatprep.subr.bf16.mxu1 %v21216_v59  ;;  %v14981_v59 = vld [vmem:[#allocation8 + $0xf58] sm:$0xff]  ;;  %v21334_v28 = vcombine.high %v15044_v14, %v15048_v48  ;;  %v15056_v8 = vld [vmem:[#allocation8 + $0x11b0] sm:$0xff]  ;;  %v21333_v29 = vcombine.low %v15044_v14, %v15048_v48 }
 0x9b6   :  { %18508 = vmatpush1.bf16.msra.mxu0 %v21277_v56  ;;  %v14985_v56 = vld [vmem:[#allocation8 + $0xf78] sm:$0xff] }
 0x9b7   :  { %18509 = vmatprep.subr.bf16.mxu0 %v21286_v33  ;;  %v15052_v33 = vld [vmem:[#allocation8 + $0x1190] sm:$0xff]  ;;  %v14993_v50 = vld [vmem:[#allocation8 + $0xfb8] sm:$0xff] }
 0x9b8   :  { %18697 = vmatpush1.bf16.msra.mxu1 %v21215_v34  ;;  %v21272_v34 = vcombine.high %v14981_v59, %v14985_v56  ;;  %v15061_v14 = vld [vmem:[#allocation8 + $0x11d8] sm:$0xff] }
 0x9b9   :  { %18698 = vmatprep.subr.bf16.mxu1 %v21224_v54  ;;  %v21342_v54 = vcombine.high %v15052_v33, %v15056_v8  ;;  %v15065_v48 = vld [vmem:[#allocation8 + $0x11f8] sm:$0xff] }
 0x9ba   :  { %18510 = vmatpush1.bf16.msra.mxu0 %v21285_v36  ;;  %v21271_v36 = vcombine.low %v14981_v59, %v14985_v56  ;;  %v21351_v59 = vcombine.low %v15061_v14, %v15065_v48  ;;  %v24512_v56 = vld [vmem:[#allocation11 + $0x40] sm:$0xff]  }
 0x9bb   :  { %18520 = vmatprep.subr.bf16.mxu0 %v21294_v6  ;;  %v21280_v6 = vcombine.high %v14989_v10, %v14993_v50 }
 0x9bc   :  { %18699 = vmatpush1.bf16.msra.mxu1 %v21223_v17  ;;  %v21341_v17 = vcombine.low %v15052_v33, %v15056_v8  ;;  %v24515_v33 = vld [vmem:[#allocation11 + $0x8] sm:$0xff]   ;;  %v24516_v8 = vld [vmem:[#allocation11 + $0x50] sm:$0xff]  }
 0x9bd   :  { %18512 = vmatmul.mubr.bf16.vlgmr.msra.gmra.mrb[68].mxu0 %v25299_v37  ;;  %18700 = vmatprep.subr.bf16.mxu1 %v21232_v18  ;;  %v21350_v18 = vcombine.high %v15060_v39, %v15064_v30  ;;  %v24524_v39 = vld [vmem:[#allocation11 + $0x70] sm:$0xff]  }
 0x9be   :  { %18521 = vmatpush1.bf16.msra.mxu0 %v21293_v19  ;;  %18552 = vmatprep.mubr.bf16.mxu0 %v24735_v0  ;;  %v21279_v19 = vcombine.low %v14989_v10, %v14993_v50  ;;  %v24519_v10 = vld [vmem:[#allocation11 + $0x18] sm:$0xff]   ;;  %v24520_v50 = vld [vmem:[#allocation11 + $0x60] sm:$0xff]   ;;  %v24525_v30 = vld [vmem:[#allocation11 + $0x30] sm:$0xff]  }
 0x9bf   :  { %18522 = vmatprep.subr.bf16.mxu0 %v21302_v35  ;;  %v15005_v35 = vld [vmem:[#allocation8 + $0x1018] sm:$0xff] }
 0x9c0   :  { %18701 = vmatpush1.bf16.msra.mxu1 %v21231_v49  ;;  %v15009_v49 = vld [vmem:[#allocation8 + $0x1038] sm:$0xff] }
 0x9c1   :  { %18702 = vmatprep.subr.bf16.mxu1 %v21240_v11  ;;  %v21296_v2 = vcombine.high %v15005_v35, %v15009_v49  ;;  %v15013_v11 = vld [vmem:[#allocation8 + $0x1058] sm:$0xff]  ;;  %v21295_v16 = vcombine.low %v15005_v35, %v15009_v49 }
 0x9c2   :  { %18523 = vmatpush1.bf16.msra.mxu0 %v21301_v52  ;;  %v15017_v52 = vld [vmem:[#allocation8 + $0x1078] sm:$0xff] }
 0x9c3   :  { %18524 = vmatprep.subr.bf16.mxu0 %v21310_v31  ;;  %v21304_v21 = vcombine.high %v15013_v11, %v15017_v52  ;;  %v15021_v31 = vld [vmem:[#allocation8 + $0x1098] sm:$0xff]  ;;  %v21303_v24 = vcombine.low %v15013_v11, %v15017_v52 }
 0x9c4   :  { %18703 = vmatpush1.bf16.msra.mxu1 %v21239_v22  ;;  %v15025_v22 = vld [vmem:[#allocation8 + $0x10b8] sm:$0xff] }
 0x9c5   :  { %18704 = vmatprep.subr.bf16.mxu1 %v21248_v53  ;;  %v21312_v51 = vcombine.high %v15021_v31, %v15025_v22  ;;  %v15029_v53 = vld [vmem:[#allocation8 + $0x10d8] sm:$0xff]  ;;  %v21311_v9 = vcombine.low %v15021_v31, %v15025_v22 }
 0x9c6   :  { %18525 = vmatpush1.bf16.msra.mxu0 %v21309_v40  ;;  %v15033_v40 = vld [vmem:[#allocation8 + $0x10f8] sm:$0xff] }
 0x9c7   :  { %18526 = vmatprep.subr.bf16.mxu0 %v21318_v43  ;;  %v21320_v12 = vcombine.high %v15029_v53, %v15033_v40  ;;  %v15037_v43 = vld [vmem:[#allocation8 + $0x1118] sm:$0xff]  ;;  %v21319_v1 = vcombine.low %v15029_v53, %v15033_v40 }
 0x9c8   :  { %18705 = vmatpush1.bf16.msra.mxu1 %v21247_v26  ;;  %v15041_v26 = vld [vmem:[#allocation8 + $0x1138] sm:$0xff] }
 0x9c9   :  { %18706 = vmatprep.subr.bf16.mxu1 %v21256_v13  ;;  %v21328_v47 = vcombine.high %v15037_v43, %v15041_v26  ;;  %v15045_v13 = vld [vmem:[#allocation8 + $0x1158] sm:$0xff] }
 0x9ca   :  { %18527 = vmatpush1.bf16.msra.mxu0 %v21317_v63  ;;  %v21327_v63 = vcombine.low %v15037_v43, %v15041_v26 }
 0x9cb   :  { %18528 = vmatprep.subr.bf16.mxu0 %v21326_v58 }
 0x9cc   :  { %18707 = vmatpush1.bf16.msra.mxu1 %v21255_v27  ;;  %v21344_v27 = vcombine.high %v15053_v42, %v15057_v57 }
 0x9cd   :  { %18708 = vmatprep.subr.bf16.mxu1 %v21264_v3  ;;  %v21343_v3 = vcombine.low %v15053_v42, %v15057_v57 }
 0x9ce   :  { %18529 = vmatpush1.bf16.msra.mxu0 %v21325_v38  ;;  %v21352_v38 = vcombine.high %v15061_v14, %v15065_v48 }
 0x9cf   :  { %18530 = vmatprep.subr.bf16.mxu0 %v21334_v28  ;;  %v24513_v28 = vld [vmem:[#allocation11] sm:$0xff]  }
 0x9d0   :  { %18709 = vmatpush1.bf16.msra.mxu1 %v21263_v45  ;;  %v24514_v45 = vld [vmem:[#allocation11 + $0x48] sm:$0xff]  }
 0x9d1   :  { %18710 = vmatprep.subr.bf16.mxu1 %v21272_v34  ;;  %v24517_v34 = vld [vmem:[#allocation11 + $0x10] sm:$0xff]  }
 0x9d2   :  { %18531 = vmatpush1.bf16.msra.mxu0 %v21333_v29  ;;  %v24518_v29 = vld [vmem:[#allocation11 + $0x58] sm:$0xff]  }
 0x9d3   :  { %18532 = vmatprep.subr.bf16.mxu0 %v21342_v54  ;;  %v24521_v54 = vld [vmem:[#allocation11 + $0x20] sm:$0xff]  }
 0x9d4   :  { %18711 = vmatpush1.bf16.msra.mxu1 %v21271_v36  ;;  %v24523_v36 = vld [vmem:[#allocation11 + $0x28] sm:$0xff]  }
 0x9d5   :  { %18712 = vmatprep.subr.bf16.mxu1 %v21280_v6  ;;  %v24526_v6 = vld [vmem:[#allocation11 + $0x78] sm:$0xff]  }
 0x9d6   :  { %18533 = vmatpush1.bf16.msra.mxu0 %v21341_v17  ;;  %v24527_v17 = vld [vmem:[#allocation11 + $0x38] sm:$0xff]  }
 0x9d7   :  { %18534 = vmatprep.subr.bf16.mxu0 %v21350_v18 }
 0x9d8   :  { %18713 = vmatpush1.bf16.msra.mxu1 %v21279_v19 }
 0x9d9   :  { %18714 = vmatprep.subr.bf16.mxu1 %v21288_v44  ;;  %v18772_v44 = vld [vmem:[#allocation10] sm:$0x3] }
 0x9da   :  { %18535 = vmatpush1.bf16.msra.mxu0 %v21349_v5  ;;  %v18777_v49 = vrot.slane %v18772_v44, %v14420_v25  ;;  %v18781_v11 = vrot.slane %v18772_v44, %v14424_v60  ;;  %v21353_v60 = vld [vmem:[#allocation13] ss:$0 sm:$0xff] }
 0x9db   :  { %21642 = vmatprep.subr.bf16.mxu0 %v24512_v56 }
 0x9dc   :  { %18715 = vmatpush1.bf16.msra.mxu1 %v21287_v62 }
 0x9dd   :  { %18553 = vmatmul.mubr.bf16.vlgmr.msra.gmra.mrb[68].mxu0 %v25306_v41  ;;  %18725 = vmatprep.subr.bf16.mxu1 %v21296_v2 }
 0x9de   :  { %21643 = vmatpush3.bf16.msra.mxu0 %v24513_v28 }
 0x9df   :  { %18717 = vmatmul.mubr.bf16.vlgmr.msra.gmra.mrb[76].mxu1 %v25299_v37  ;;  %v15049_v37 = vld [vmem:[#allocation8 + $0x1178] sm:$0xff]  ;;  %21644 = vmatprep.subr.bf16.mxu0 %v24514_v45 }
 0x9e0   :  { %18726 = vmatpush1.bf16.msra.mxu1 %v21295_v16  ;;  %18757 = vmatprep.mubr.bf16.mxu1 %v24735_v0  ;;  %v21336_v0 = vcombine.high %v15045_v13, %v15049_v37  ;;  %v21335_v58 = vcombine.low %v15045_v13, %v15049_v37 }
 0x9e1   :  { %18727 = vmatprep.subr.bf16.mxu1 %v21304_v21 }
 0x9e2   :  { %21645 = vmatpush3.bf16.msra.mxu0 %v24515_v33 }
 0x9e3   :  { %21646 = vmatprep.subr.bf16.mxu0 %v24516_v8 }
 0x9e4   :  { %18728 = vmatpush1.bf16.msra.mxu1 %v21303_v24 }
 0x9e5   :  { %18729 = vmatprep.subr.bf16.mxu1 %v21312_v51 }
 0x9e6   :  { %21647 = vmatpush3.bf16.msra.mxu0 %v24517_v34 }
 0x9e7   :  { %21648 = vmatprep.subr.bf16.mxu0 %v24518_v29 }
 0x9e8   :  { %18730 = vmatpush1.bf16.msra.mxu1 %v21311_v9 }
 0x9e9   :  { %18731 = vmatprep.subr.bf16.mxu1 %v21320_v12 }
 0x9ea   :  { %21649 = vmatpush3.bf16.msra.mxu0 %v24519_v10 }
 0x9eb   :  { %21650 = vmatprep.subr.bf16.mxu0 %v24520_v50 }
 0x9ec   :  { %18732 = vmatpush1.bf16.msra.mxu1 %v21319_v1 }
 0x9ed   :  { %18733 = vmatprep.subr.bf16.mxu1 %v21328_v47 }
 0x9ee   :  { %21651 = vmatpush3.bf16.msra.mxu0 %v24521_v54 }
 0x9f0   :  { %18734 = vmatpush1.bf16.msra.mxu1 %v21327_v63 }
 0x9f1   :  { %18735 = vmatprep.subr.bf16.mxu1 %v21336_v0 }
 0x9f4   :  { %18736 = vmatpush1.bf16.msra.mxu1 %v21335_v58 }
 0x9f5   :  { %18737 = vmatprep.subr.bf16.mxu1 %v21344_v27 }
 0x9f8   :  { %18738 = vmatpush1.bf16.msra.mxu1 %v21343_v3 }
 0x9f9   :  { %18739 = vmatprep.subr.bf16.mxu1 %v21352_v38 }
 0x9fc   :  { %18740 = vmatpush1.bf16.msra.mxu1 %v21351_v59 }
 0x9ff   :  { %18758 = vmatmul.mubr.bf16.vlgmr.msra.gmra.mrb[76].mxu1 %v25306_v41  ;;  %v24522_v41 = vld [vmem:[#allocation11 + $0x68] sm:$0xff]  }
 0xa00   :  { %21652 = vmatprep.subr.bf16.mxu0 %v24522_v41 }
 0xa01   :  { %21653 = vmatpush3.bf16.msra.mxu0 %v24523_v36 }
 0xa02   :  { %21654 = vmatprep.subr.bf16.mxu0 %v24524_v39 }
 0xa05   :  { %21655 = vmatpush3.bf16.msra.mxu0 %v24525_v30 }
 0xa06   :  { %21656 = vmatprep.subr.bf16.mxu0 %v24526_v6 }
 0xa09   :  { %21657 = vmatpush3.bf16.msra.mxu0 %v24527_v17 }
 0xab0   :  { %v18554_v32 = vpop.f32.mrb[68].mxu0 }
 0xab1   :  { %v18556_v46 = vpop.f32.mrb[69].mxu0 }
 0xab2   :  { %v18558_v18 = vpop.f32.mrb[70].mxu0 }
 0xab3   :  { %v18559_v19 = vpop.f32.mrb[71].mxu0 }
 0xad2   :  { %v18759_v5 = vpop.f32.mrb[76].mxu1 }
 0xad3   :  { %v18768_v35 = vmax.f32 %v18554_v32, %v18759_v5  ;;  %v18761_v62 = vpop.f32.mrb[77].mxu1 }
 0xad4   :  { %v18769_v2 = vmax.f32 %v18556_v46, %v18761_v62  ;;  %v18763_v52 = vpop.f32.mrb[78].mxu1 }
 0xad5   :  { %v18770_v16 = vmax.f32 %v18766_v4, %v18768_v35  ;;  %v18764_v21 = vpop.f32.mrb[79].mxu1 }
 0xad6   :  { %v18771_v31 = vmax.f32 %v18767_v55, %v18769_v2 }
 0xad7   :  { %v18784_v22 = vadd.f32 %v18777_v49, %v18770_v16 }
 0xad8   :  { %v18785_v24 = vadd.f32 %v18781_v11, %v18771_v31 }
 0xad9   :  { %v18786_v51 = vmax.f32 %v18784_v22, 0.0 }
 0xada   :  { %v18787_v53 = vmax.f32 %v18785_v24, 0.0 }
 0xadb   :  { %v18788_v40 = vpack.c.bf16 %v18786_v51, %v18786_v51 }
 0xadc   :  { %v18789_v25 = vpack.c.bf16 %v18787_v53, %v18787_v53 }
 0xade   :  { %18957 = vmatprep.mubr.bf16.mxu0 %v18789_v25 }
 0xadf   :  { %18958 = vmatmul.mubr.bf16.vlgmr.msra.gmra.mrb[72].mxu0 %v18788_v40 }
 0xbb2   :  { %v21658_v7 = vpop.f32.mrb[72].mxu0 }
 0xbb3   :  { %v21659_v9 = vpop.f32.mrb[73].mxu0 }
 0xbb4   :  { %v21660_v12 = vadd.f32 %v21659_v9, %v21658_v7  ;;  %v21661_v43 = vpop.f32.mrb[74].mxu0 }
 0xbb5   :  { %v21662_v61 = vpop.f32.mrb[75].mxu0 }
 0xbb6   :  { %v18960_v23 = vadd.f32 %v21660_v12, %v21353_v60 }
 0xbb8   :  { %v18965_v4 = vmax.f32 %v18960_v23, 0.0 }
 0xbba   :  { %18966 = vst [vmem:[#allocation14] sm:$0xff] %v18965_v4 }
 0xbbb   :  { %24701 = shalt.err (!%p24698_p4)
}
 0xbbc   :  { %s24702_s16 = scalar_lea.hbm %s25373_s7, 128 }
 0xbbd   :  { %p24703_p5 = scmp.ne.s32.totalorder %s25373_s7, %s24702_s16  ;;  %p24706_p6 = scmp.lt.u32.totalorder %s24702_s16, %s25373_s7 }
 0xbbf   :  { %p24708_p7 = pnand %p24706_p6, %p24703_p5 }
 0xbc1   :  { %24711 = shalt.err (!%p24708_p7)
}
 0xbc2   :  { %18976 = dma.vmem_to_hbm [thread:$0]  %s18974_s14, 128, %s25373_s7, [#allocation4]  }
 0xbc3   :  { %24720 = dma.done.wait [#allocation4], 128  }
 0xbc4   :  { %24721 = vsyncadd [#allocation4], 4294967168 }
 0xbc5   :  { %18980 = vsyncpa [#allocation3], 1 }
 0xbc6   :  { %18981 = vsyncpa [#allocation6], 1 }
 0xbc7   :  { %18982 = vsyncpa [#allocation9], 1 }
 0xbc8   :  { %18983 = vsyncpa [#allocation12], 1 }
 0xbc9   :  { %18984 = vsyncpa [#allocation4], 1 }

</bundles_post_ra>
